<compile_context>
chip_gen: v6e
topology: v6e:2x2x1
jax: 0.10.0
libtpu: 0.0.40
codegen_flags: <defaults>
</compile_context>

<pallas_src>
import functools

import numpy as np
import jax
import jax.numpy as jnp
from jax import lax
from jax.experimental import pallas as pl
from jax.experimental.pallas import tpu as pltpu

_BN_EPS = 1e-3
_PAD_NEG = -1e30  # stand-in for -inf, used ONLY on the maxpool operand


def _round_up(v, m):
    return ((v + m - 1) // m) * m


# ----------------------------------------------------------------------------
# Fused Inception-block kernel (one grid step == one image)
# ----------------------------------------------------------------------------
def _inception_kernel(gx_ref, mask_ref, wpt_ref, bpt_ref,
                      w23_ref, b23_ref, w4_ref, b4_ref, out_ref,
                      *, mp, wp, lead, red23):
    # gx_ref:   (Mg, Cin) bf16  one image, NHWC rows, spatial zero-pad ring,
    #                           flattened row-major, + `lead` guard rows each end
    # mask_ref: (Mg, 1)   f32   1.0 exactly on valid (non-padding) grid centers
    # wpt/bpt:  fused 1x1 weights, columns [red2 | red3 | ch1x1]
    # w23/b23:  block-diagonal 3x3 tap weights (9, red2+red3, c2+c3)
    # w4/b4:    pool-proj 1x1
    # out_ref:  (Mp, c1+c2+c3+c4) f32 output slab on the padded grid
    #           (ring rows = garbage, dropped by the wrapper)
    x_all = gx_ref[...]                                           # (Mg, Cin) bf16
    mask = mask_ref[...]                                          # (Mg, 1)  f32

    # -- stage 1: branch2/3 1x1 reduces + branch1 1x1 as one fused matmul ------
    y = jnp.dot(x_all, wpt_ref[...], preferred_element_type=jnp.float32)
    y = jnp.maximum(y + bpt_ref[...], 0.0)                        # (Mg, red23+c1)
    # zero-pad ring for the 3x3 convs (relu(bias) on ring rows must not leak in)
    r23 = (y[:, :red23] * mask).astype(jnp.bfloat16)              # (Mg, red23)
    o1 = y[lead:lead + mp, red23:]                                # (Mp, c1) f32

    # maxpool operand: padding ring behaves like -inf (never fed to a matmul
    # before the max, so no overflow/NaN path exists)
    x_pool = jnp.where(mask > 0.0, x_all, _PAD_NEG).astype(jnp.bfloat16)

    # -- stage 2: 3x3 convs (branches 2+3, fused) + 3x3 maxpool (branch 4) -----
    # 9 static taps -> 9 shifted row slices; dy shifts are sublane-aligned
    # because wp % 8 == 0 and lead % 8 == 0.
    acc = jnp.zeros((mp, b23_ref.shape[-1]), jnp.float32)
    pooled = None
    for dy in range(3):
        for dx in range(3):
            off = lead + (dy - 1) * wp + (dx - 1)                 # static, >= 0
            acc = acc + jnp.dot(r23[off:off + mp, :], w23_ref[dy * 3 + dx],
                                preferred_element_type=jnp.float32)
            wx = x_pool[off:off + mp, :]
            pooled = wx if pooled is None else jnp.maximum(pooled, wx)

    o23 = jnp.maximum(acc + b23_ref[...], 0.0)                    # (Mp, c2+c3)
    o4 = jnp.maximum(
        jnp.dot(pooled, w4_ref[...], preferred_element_type=jnp.float32)
        + b4_ref[...], 0.0)                                       # (Mp, c4)

    # one lane-dense full-width store of the fused [b1|b2|b3|b4] slab
    out_ref[...] = jnp.concatenate([o1, o23, o4], axis=-1)


def _resident(shape):
    """Full-array block whose index never changes -> stays VMEM resident."""
    nd = len(shape)
    return pl.BlockSpec(tuple(shape), lambda n, _nd=nd: (0,) * _nd)


def inception_forward(x_nchw, folded, cfg):
    """Inception block forward: NCHW in -> NCHW out (torch.cat(..., 1) order)."""
    N, C, H, W = x_nchw.shape
    Hp = H + 2
    Wp = _round_up(W + 2, 8)            # sublane-aligned padded row width
    lead = _round_up(Wp + 1, 8)         # sublane-aligned guard length
    Mp = Hp * Wp                        # rows of one padded image grid
    Mg = Mp + 2 * lead
    c1, red2, red3 = cfg["ch1x1"], cfg["ch3x3red"], cfg["ch5x5red"]
    c2, c3, c4 = cfg["ch3x3"], cfg["ch5x5"], cfg["pool_proj"]
    red23 = red2 + red3
    ctot = c1 + c2 + c3 + c4

    # channels-last, spatial zero-pad (ring + right alignment), flatten rows,
    # add guard rows, cast to bf16 (halves HBM traffic / VMEM footprint)
    x_nhwc = jnp.transpose(x_nchw, (0, 2, 3, 1))
    xpad = jnp.pad(x_nhwc, ((0, 0), (1, 1), (1, Wp - W - 1), (0, 0)))
    gx = jnp.pad(xpad.reshape(N, Mp, C), ((0, 0), (lead, lead), (0, 0)))
    gx = gx.astype(jnp.bfloat16)                                   # (N, Mg, C)

    # static 0/1 mask over flat rows (same for every image): 1.0 on valid centers
    m = np.zeros((Hp, Wp), np.float32)
    m[1:H + 1, 1:W + 1] = 1.0
    mask = jnp.asarray(np.pad(m.reshape(Mp), (lead, lead)).reshape(Mg, 1))

    kernel = functools.partial(_inception_kernel, mp=Mp, wp=Wp, lead=lead,
                               red23=red23)

    out = pl.pallas_call(
        kernel,
        out_shape=jax.ShapeDtypeStruct((N, Mp, ctot), jnp.float32),
        grid=(N,),
        in_specs=[
            pl.BlockSpec((None, Mg, C), lambda n: (n, 0, 0)),      # per-image tile
            _resident(mask.shape),
            _resident(folded["w_point"].shape),
            _resident(folded["b_point"].shape),
            _resident(folded["w3x3"].shape),
            _resident(folded["b3x3"].shape),
            _resident(folded["w_pool"].shape),
            _resident(folded["b_pool"].shape),
        ],
        out_specs=pl.BlockSpec((None, Mp, ctot), lambda n: (n, 0, 0)),
        compiler_params=pltpu.CompilerParams(
            dimension_semantics=("parallel",),     # shard images across TCs (v7x)
            vmem_limit_bytes=64 * 1024 * 1024),
    )(gx, mask, folded["w_point"], folded["b_point"],
      folded["w3x3"], folded["b3x3"], folded["w_pool"], folded["b_pool"])

    # drop pad ring / alignment columns, back to NCHW (module boundary layout)
    out = out.reshape(N, Hp, Wp, ctot)[:, 1:H + 1, 1:W + 1, :]
    return jnp.transpose(out, (0, 3, 1, 2))


def make_forward(cfg):
    @jax.jit
    def forward(x, folded):
        return inception_forward(x, folded, cfg)
    return forward


# ----------------------------------------------------------------------------
# Parameters (PyTorch layout) + host-side BN folding / weight packing
# ----------------------------------------------------------------------------
def init_params(key, in_channels, ch1x1, ch3x3red, ch3x3, ch5x5red, ch5x5,
                pool_proj):
    def conv_bn(k, cin, cout, ksize):
        kw, kg, kb, km, kv = jax.random.split(k, 5)
        return dict(
            w=jax.random.normal(kw, (cout, cin, ksize, ksize), jnp.float32) * 0.1,
            gamma=1.0 + 0.1 * jax.random.normal(kg, (cout,), jnp.float32),
            beta=0.1 * jax.random.normal(kb, (cout,), jnp.float32),
            mean=0.1 * jax.random.normal(km, (cout,), jnp.float32),
            var=0.5 + 0.25 * jnp.abs(jax.random.normal(kv, (cout,), jnp.float32)),
        )
    ks = jax.random.split(key, 6)
    return dict(
        b1=conv_bn(ks[0], in_channels, ch1x1, 1),
        b2r=conv_bn(ks[1], in_channels, ch3x3red, 1),
        b2=conv_bn(ks[2], ch3x3red, ch3x3, 3),
        b3r=conv_bn(ks[3], in_channels, ch5x5red, 1),
        b3=conv_bn(ks[4], ch5x5red, ch5x5, 3),
        b4=conv_bn(ks[5], in_channels, pool_proj, 1),
    )


def _fold_bn(p):
    scale = p["gamma"] / jnp.sqrt(p["var"] + _BN_EPS)
    shift = p["beta"] - p["mean"] * scale
    return p["w"] * scale[:, None, None, None], shift


def fold_params(params):
    w1, s1 = _fold_bn(params["b1"])
    w2r, s2r = _fold_bn(params["b2r"])
    w2, s2 = _fold_bn(params["b2"])
    w3r, s3r = _fold_bn(params["b3r"])
    w3, s3 = _fold_bn(params["b3"])
    w4, s4 = _fold_bn(params["b4"])

    mat1 = lambda w: jnp.transpose(w[:, :, 0, 0], (1, 0))           # (O,I,1,1)->(I,O)
    taps = lambda w: jnp.transpose(w, (2, 3, 1, 0)).reshape(        # (O,I,3,3)->(9,I,O)
        9, w.shape[1], w.shape[0])

    red2, red3 = w2r.shape[0], w3r.shape[0]
    c2, c3 = w2.shape[0], w3.shape[0]

    # fused 1x1 stage, columns ordered [red2 | red3 | ch1x1] so the reduce
    # slice starts at lane 0 in the kernel
    w_point = jnp.concatenate([mat1(w2r), mat1(w3r), mat1(w1)], axis=1)
    b_point = jnp.concatenate([s2r, s3r, s1])[None, :]

    # block-diagonal 3x3 tap weights: ONE matmul per tap covers branches 2 and 3
    t2, t3 = taps(w2), taps(w3)
    w23 = jnp.zeros((9, red2 + red3, c2 + c3), jnp.float32)
    w23 = w23.at[:, :red2, :c2].set(t2).at[:, red2:, c2:].set(t3)

    return dict(
        w_point=w_point.astype(jnp.bfloat16),
        b_point=b_point.astype(jnp.float32),
        w3x3=w23.astype(jnp.bfloat16),
        b3x3=jnp.concatenate([s2, s3])[None, :].astype(jnp.float32),
        w_pool=mat1(w4).astype(jnp.bfloat16),
        b_pool=s4[None, :].astype(jnp.float32),
    )


# ----------------------------------------------------------------------------
# Pure-JAX reference (mirrors the PyTorch forward, eval mode, f32)
# ----------------------------------------------------------------------------
def reference_forward(x, params):
    def basic(z, p, padding):
        y = lax.conv_general_dilated(
            z, p["w"], window_strides=(1, 1), padding=padding,
            dimension_numbers=("NCHW", "OIHW", "NCHW"),
            precision=lax.Precision.HIGHEST)
        inv = p["gamma"] / jnp.sqrt(p["var"] + _BN_EPS)
        y = y * inv[None, :, None, None] \
            + (p["beta"] - p["mean"] * inv)[None, :, None, None]
        return jnp.maximum(y, 0.0)

    same = ((1, 1), (1, 1))
    none = ((0, 0), (0, 0))
    b1 = basic(x, params["b1"], none)
    b2 = basic(basic(x, params["b2r"], none), params["b2"], same)
    b3 = basic(basic(x, params["b3r"], none), params["b3"], same)
    pooled = lax.reduce_window(x, -jnp.inf, lax.max, (1, 1, 3, 3), (1, 1, 1, 1),
                               ((0, 0), (0, 0), (1, 1), (1, 1)))
    b4 = basic(pooled, params["b4"], none)
    return jnp.concatenate([b1, b2, b3, b4], axis=1)


if __name__ == "__main__":
    N, C, H, W = 2, 16, 16, 16
    cfg = dict(in_channels=C, ch1x1=32, ch3x3red=16, ch3x3=32,
               ch5x5red=16, ch5x5=32, pool_proj=32)   # concat -> 128 channels

    key = jax.random.PRNGKey(0)
    kx, kp = jax.random.split(key)
    x = jax.random.normal(kx, (N, C, H, W), jnp.float32)
    params = init_params(kp, **cfg)
    folded = fold_params(params)

    forward = make_forward(cfg)
    out = jax.block_until_ready(forward(x, folded))

    ref = jax.block_until_ready(reference_forward(x, params))
    ctot = cfg["ch1x1"] + cfg["ch3x3"] + cfg["ch5x5"] + cfg["pool_proj"]
    assert out.shape == (N, ctot, H, W), out.shape
    # bf16 matmul inputs with f32 accumulation: relaxed tolerance vs f32 reference
    np.testing.assert_allclose(np.asarray(out), np.asarray(ref),
                               rtol=3e-2, atol=3e-2)
    print("KERNEL_OK")
</pallas_src>

<mosaic_0001>
module attributes {stable_mosaic.version = 11 : i64} {
  func.func @_inception_kernel(%arg0: i32, %arg1: memref<1x496x16xbf16, #tpu.memory_space<vmem>>, %arg2: memref<496x1xf32, #tpu.memory_space<vmem>>, %arg3: memref<16x64xbf16, #tpu.memory_space<vmem>>, %arg4: memref<1x64xf32, #tpu.memory_space<vmem>>, %arg5: memref<9x32x64xbf16, #tpu.memory_space<vmem>>, %arg6: memref<1x64xf32, #tpu.memory_space<vmem>>, %arg7: memref<16x32xbf16, #tpu.memory_space<vmem>>, %arg8: memref<1x32xf32, #tpu.memory_space<vmem>>, %arg9: memref<1x432x128xf32, #tpu.memory_space<vmem>>) attributes {dimension_semantics = [#tpu.dimension_semantics<parallel>], iteration_bounds = array<i64: 2>, scalar_prefetch = 0 : i64, scratch_operands = 0 : i64, tpu.core_type = #tpu.core_type<tc>, window_params = [{transform_indices = @transform_0, window_bounds = array<i64: 1, 496, 16>}, {pipeline_mode = #tpu.pipeline_mode<synchronous>, transform_indices = @transform_1, window_bounds = array<i64: 496, 1>}, {pipeline_mode = #tpu.pipeline_mode<synchronous>, transform_indices = @transform_2, window_bounds = array<i64: 16, 64>}, {pipeline_mode = #tpu.pipeline_mode<synchronous>, transform_indices = @transform_3, window_bounds = array<i64: 1, 64>}, {pipeline_mode = #tpu.pipeline_mode<synchronous>, transform_indices = @transform_4, window_bounds = array<i64: 9, 32, 64>}, {pipeline_mode = #tpu.pipeline_mode<synchronous>, transform_indices = @transform_5, window_bounds = array<i64: 1, 64>}, {pipeline_mode = #tpu.pipeline_mode<synchronous>, transform_indices = @transform_6, window_bounds = array<i64: 16, 32>}, {pipeline_mode = #tpu.pipeline_mode<synchronous>, transform_indices = @transform_7, window_bounds = array<i64: 1, 32>}, {transform_indices = @transform_8, window_bounds = array<i64: 1, 432, 128>}]} {
    %c0 = arith.constant 0 : index
    %c0_0 = arith.constant 0 : index
    %c0_1 = arith.constant 0 : index
    %0 = vector.load %arg1[%c0, %c0_0, %c0_1] : memref<1x496x16xbf16, #tpu.memory_space<vmem>>, vector<1x496x16xbf16>
    %1 = vector.shape_cast %0 : vector<1x496x16xbf16> to vector<496x16xbf16>
    %c0_2 = arith.constant 0 : index
    %c0_3 = arith.constant 0 : index
    %2 = vector.load %arg2[%c0_2, %c0_3] : memref<496x1xf32, #tpu.memory_space<vmem>>, vector<496x1xf32>
    %c0_4 = arith.constant 0 : index
    %c0_5 = arith.constant 0 : index
    %3 = vector.load %arg3[%c0_4, %c0_5] : memref<16x64xbf16, #tpu.memory_space<vmem>>, vector<16x64xbf16>
    %cst = arith.constant dense<0.000000e+00> : vector<496x64xf32>
    %4 = tpu.matmul %1, %3, %cst {dimension_numbers = #tpu.dot_dimension_numbers<[1], [0], [0], [1], [0, 0, 1, 1], [], []>} : vector<496x16xbf16>, vector<16x64xbf16>, vector<496x64xf32> -> vector<496x64xf32>
    %c0_6 = arith.constant 0 : index
    %c0_7 = arith.constant 0 : index
    %5 = vector.load %arg4[%c0_6, %c0_7] : memref<1x64xf32, #tpu.memory_space<vmem>>, vector<1x64xf32>
    %6 = vector.broadcast %5 : vector<1x64xf32> to vector<496x64xf32>
    %7 = arith.addf %4, %6 : vector<496x64xf32>
    %cst_8 = arith.constant 0.000000e+00 : f32
    %8 = vector.broadcast %cst_8 : f32 to vector<496x64xf32>
    %9 = arith.maximumf %7, %8 : vector<496x64xf32>
    %10 = vector.extract_strided_slice %9 {offsets = [0, 0], sizes = [496, 32], strides = [1, 1]} : vector<496x64xf32> to vector<496x32xf32>
    %11 = vector.broadcast %2 : vector<496x1xf32> to vector<496x32xf32>
    %12 = arith.mulf %10, %11 : vector<496x32xf32>
    %13 = arith.truncf %12 : vector<496x32xf32> to vector<496x32xbf16>
    %14 = vector.extract_strided_slice %9 {offsets = [32, 32], sizes = [432, 32], strides = [1, 1]} : vector<496x64xf32> to vector<432x32xf32>
    %cst_9 = arith.constant 0.000000e+00 : f32
    %15 = vector.broadcast %cst_9 : f32 to vector<496x1xf32>
    %16 = arith.cmpf ogt, %2, %15 : vector<496x1xf32>
    %cst_10 = arith.constant -1.000000e+30 : f32
    %17 = arith.truncf %cst_10 : f32 to bf16
    %18 = vector.shape_cast %16 : vector<496x1xi1> to vector<496x1xi1>
    %19 = vector.broadcast %18 : vector<496x1xi1> to vector<496x16xi1>
    %20 = vector.broadcast %17 : bf16 to vector<496x16xbf16>
    %21 = arith.select %19, %1, %20 : vector<496x16xi1>, vector<496x16xbf16>
    %cst_11 = arith.constant 0.000000e+00 : f32
    %22 = vector.broadcast %cst_11 : f32 to vector<432x64xf32>
    %23 = vector.extract_strided_slice %13 {offsets = [7, 0], sizes = [432, 32], strides = [1, 1]} : vector<496x32xbf16> to vector<432x32xbf16>
    %c0_12 = arith.constant 0 : index
    %c0_13 = arith.constant 0 : index
    %c0_14 = arith.constant 0 : index
    %24 = vector.load %arg5[%c0_12, %c0_13, %c0_14] : memref<9x32x64xbf16, #tpu.memory_space<vmem>>, vector<1x32x64xbf16>
    %25 = vector.shape_cast %24 : vector<1x32x64xbf16> to vector<32x64xbf16>
    %cst_15 = arith.constant dense<0.000000e+00> : vector<432x64xf32>
    %26 = tpu.matmul %23, %25, %cst_15 {dimension_numbers = #tpu.dot_dimension_numbers<[1], [0], [0], [1], [0, 0, 1, 1], [], []>} : vector<432x32xbf16>, vector<32x64xbf16>, vector<432x64xf32> -> vector<432x64xf32>
    %27 = arith.addf %22, %26 : vector<432x64xf32>
    %28 = vector.extract_strided_slice %21 {offsets = [7, 0], sizes = [432, 16], strides = [1, 1]} : vector<496x16xbf16> to vector<432x16xbf16>
    %29 = vector.extract_strided_slice %13 {offsets = [8, 0], sizes = [432, 32], strides = [1, 1]} : vector<496x32xbf16> to vector<432x32xbf16>
    %c1 = arith.constant 1 : index
    %c0_16 = arith.constant 0 : index
    %c0_17 = arith.constant 0 : index
    %30 = vector.load %arg5[%c1, %c0_16, %c0_17] : memref<9x32x64xbf16, #tpu.memory_space<vmem>>, vector<1x32x64xbf16>
    %31 = vector.shape_cast %30 : vector<1x32x64xbf16> to vector<32x64xbf16>
    %cst_18 = arith.constant dense<0.000000e+00> : vector<432x64xf32>
    %32 = tpu.matmul %29, %31, %cst_18 {dimension_numbers = #tpu.dot_dimension_numbers<[1], [0], [0], [1], [0, 0, 1, 1], [], []>} : vector<432x32xbf16>, vector<32x64xbf16>, vector<432x64xf32> -> vector<432x64xf32>
    %33 = arith.addf %27, %32 : vector<432x64xf32>
    %34 = vector.extract_strided_slice %21 {offsets = [8, 0], sizes = [432, 16], strides = [1, 1]} : vector<496x16xbf16> to vector<432x16xbf16>
    %35 = arith.maximumf %28, %34 : vector<432x16xbf16>
    %36 = vector.extract_strided_slice %13 {offsets = [9, 0], sizes = [432, 32], strides = [1, 1]} : vector<496x32xbf16> to vector<432x32xbf16>
    %c2 = arith.constant 2 : index
    %c0_19 = arith.constant 0 : index
    %c0_20 = arith.constant 0 : index
    %37 = vector.load %arg5[%c2, %c0_19, %c0_20] : memref<9x32x64xbf16, #tpu.memory_space<vmem>>, vector<1x32x64xbf16>
    %38 = vector.shape_cast %37 : vector<1x32x64xbf16> to vector<32x64xbf16>
    %cst_21 = arith.constant dense<0.000000e+00> : vector<432x64xf32>
    %39 = tpu.matmul %36, %38, %cst_21 {dimension_numbers = #tpu.dot_dimension_numbers<[1], [0], [0], [1], [0, 0, 1, 1], [], []>} : vector<432x32xbf16>, vector<32x64xbf16>, vector<432x64xf32> -> vector<432x64xf32>
    %40 = arith.addf %33, %39 : vector<432x64xf32>
    %41 = vector.extract_strided_slice %21 {offsets = [9, 0], sizes = [432, 16], strides = [1, 1]} : vector<496x16xbf16> to vector<432x16xbf16>
    %42 = arith.maximumf %35, %41 : vector<432x16xbf16>
    %43 = vector.extract_strided_slice %13 {offsets = [31, 0], sizes = [432, 32], strides = [1, 1]} : vector<496x32xbf16> to vector<432x32xbf16>
    %c3 = arith.constant 3 : index
    %c0_22 = arith.constant 0 : index
    %c0_23 = arith.constant 0 : index
    %44 = vector.load %arg5[%c3, %c0_22, %c0_23] : memref<9x32x64xbf16, #tpu.memory_space<vmem>>, vector<1x32x64xbf16>
    %45 = vector.shape_cast %44 : vector<1x32x64xbf16> to vector<32x64xbf16>
    %cst_24 = arith.constant dense<0.000000e+00> : vector<432x64xf32>
    %46 = tpu.matmul %43, %45, %cst_24 {dimension_numbers = #tpu.dot_dimension_numbers<[1], [0], [0], [1], [0, 0, 1, 1], [], []>} : vector<432x32xbf16>, vector<32x64xbf16>, vector<432x64xf32> -> vector<432x64xf32>
    %47 = arith.addf %40, %46 : vector<432x64xf32>
    %48 = vector.extract_strided_slice %21 {offsets = [31, 0], sizes = [432, 16], strides = [1, 1]} : vector<496x16xbf16> to vector<432x16xbf16>
    %49 = arith.maximumf %42, %48 : vector<432x16xbf16>
    %50 = vector.extract_strided_slice %13 {offsets = [32, 0], sizes = [432, 32], strides = [1, 1]} : vector<496x32xbf16> to vector<432x32xbf16>
    %c4 = arith.constant 4 : index
    %c0_25 = arith.constant 0 : index
    %c0_26 = arith.constant 0 : index
    %51 = vector.load %arg5[%c4, %c0_25, %c0_26] : memref<9x32x64xbf16, #tpu.memory_space<vmem>>, vector<1x32x64xbf16>
    %52 = vector.shape_cast %51 : vector<1x32x64xbf16> to vector<32x64xbf16>
    %cst_27 = arith.constant dense<0.000000e+00> : vector<432x64xf32>
    %53 = tpu.matmul %50, %52, %cst_27 {dimension_numbers = #tpu.dot_dimension_numbers<[1], [0], [0], [1], [0, 0, 1, 1], [], []>} : vector<432x32xbf16>, vector<32x64xbf16>, vector<432x64xf32> -> vector<432x64xf32>
    %54 = arith.addf %47, %53 : vector<432x64xf32>
    %55 = vector.extract_strided_slice %21 {offsets = [32, 0], sizes = [432, 16], strides = [1, 1]} : vector<496x16xbf16> to vector<432x16xbf16>
    %56 = arith.maximumf %49, %55 : vector<432x16xbf16>
    %57 = vector.extract_strided_slice %13 {offsets = [33, 0], sizes = [432, 32], strides = [1, 1]} : vector<496x32xbf16> to vector<432x32xbf16>
    %c5 = arith.constant 5 : index
    %c0_28 = arith.constant 0 : index
    %c0_29 = arith.constant 0 : index
    %58 = vector.load %arg5[%c5, %c0_28, %c0_29] : memref<9x32x64xbf16, #tpu.memory_space<vmem>>, vector<1x32x64xbf16>
    %59 = vector.shape_cast %58 : vector<1x32x64xbf16> to vector<32x64xbf16>
    %cst_30 = arith.constant dense<0.000000e+00> : vector<432x64xf32>
    %60 = tpu.matmul %57, %59, %cst_30 {dimension_numbers = #tpu.dot_dimension_numbers<[1], [0], [0], [1], [0, 0, 1, 1], [], []>} : vector<432x32xbf16>, vector<32x64xbf16>, vector<432x64xf32> -> vector<432x64xf32>
    %61 = arith.addf %54, %60 : vector<432x64xf32>
    %62 = vector.extract_strided_slice %21 {offsets = [33, 0], sizes = [432, 16], strides = [1, 1]} : vector<496x16xbf16> to vector<432x16xbf16>
    %63 = arith.maximumf %56, %62 : vector<432x16xbf16>
    %64 = vector.extract_strided_slice %13 {offsets = [55, 0], sizes = [432, 32], strides = [1, 1]} : vector<496x32xbf16> to vector<432x32xbf16>
    %c6 = arith.constant 6 : index
    %c0_31 = arith.constant 0 : index
    %c0_32 = arith.constant 0 : index
    %65 = vector.load %arg5[%c6, %c0_31, %c0_32] : memref<9x32x64xbf16, #tpu.memory_space<vmem>>, vector<1x32x64xbf16>
    %66 = vector.shape_cast %65 : vector<1x32x64xbf16> to vector<32x64xbf16>
    %cst_33 = arith.constant dense<0.000000e+00> : vector<432x64xf32>
    %67 = tpu.matmul %64, %66, %cst_33 {dimension_numbers = #tpu.dot_dimension_numbers<[1], [0], [0], [1], [0, 0, 1, 1], [], []>} : vector<432x32xbf16>, vector<32x64xbf16>, vector<432x64xf32> -> vector<432x64xf32>
    %68 = arith.addf %61, %67 : vector<432x64xf32>
    %69 = vector.extract_strided_slice %21 {offsets = [55, 0], sizes = [432, 16], strides = [1, 1]} : vector<496x16xbf16> to vector<432x16xbf16>
    %70 = arith.maximumf %63, %69 : vector<432x16xbf16>
    %71 = vector.extract_strided_slice %13 {offsets = [56, 0], sizes = [432, 32], strides = [1, 1]} : vector<496x32xbf16> to vector<432x32xbf16>
    %c7 = arith.constant 7 : index
    %c0_34 = arith.constant 0 : index
    %c0_35 = arith.constant 0 : index
    %72 = vector.load %arg5[%c7, %c0_34, %c0_35] : memref<9x32x64xbf16, #tpu.memory_space<vmem>>, vector<1x32x64xbf16>
    %73 = vector.shape_cast %72 : vector<1x32x64xbf16> to vector<32x64xbf16>
    %cst_36 = arith.constant dense<0.000000e+00> : vector<432x64xf32>
    %74 = tpu.matmul %71, %73, %cst_36 {dimension_numbers = #tpu.dot_dimension_numbers<[1], [0], [0], [1], [0, 0, 1, 1], [], []>} : vector<432x32xbf16>, vector<32x64xbf16>, vector<432x64xf32> -> vector<432x64xf32>
    %75 = arith.addf %68, %74 : vector<432x64xf32>
    %76 = vector.extract_strided_slice %21 {offsets = [56, 0], sizes = [432, 16], strides = [1, 1]} : vector<496x16xbf16> to vector<432x16xbf16>
    %77 = arith.maximumf %70, %76 : vector<432x16xbf16>
    %78 = vector.extract_strided_slice %13 {offsets = [57, 0], sizes = [432, 32], strides = [1, 1]} : vector<496x32xbf16> to vector<432x32xbf16>
    %c8 = arith.constant 8 : index
    %c0_37 = arith.constant 0 : index
    %c0_38 = arith.constant 0 : index
    %79 = vector.load %arg5[%c8, %c0_37, %c0_38] : memref<9x32x64xbf16, #tpu.memory_space<vmem>>, vector<1x32x64xbf16>
    %80 = vector.shape_cast %79 : vector<1x32x64xbf16> to vector<32x64xbf16>
    %cst_39 = arith.constant dense<0.000000e+00> : vector<432x64xf32>
    %81 = tpu.matmul %78, %80, %cst_39 {dimension_numbers = #tpu.dot_dimension_numbers<[1], [0], [0], [1], [0, 0, 1, 1], [], []>} : vector<432x32xbf16>, vector<32x64xbf16>, vector<432x64xf32> -> vector<432x64xf32>
    %82 = arith.addf %75, %81 : vector<432x64xf32>
    %83 = vector.extract_strided_slice %21 {offsets = [57, 0], sizes = [432, 16], strides = [1, 1]} : vector<496x16xbf16> to vector<432x16xbf16>
    %84 = arith.maximumf %77, %83 : vector<432x16xbf16>
    %c0_40 = arith.constant 0 : index
    %c0_41 = arith.constant 0 : index
    %85 = vector.load %arg6[%c0_40, %c0_41] : memref<1x64xf32, #tpu.memory_space<vmem>>, vector<1x64xf32>
    %86 = vector.broadcast %85 : vector<1x64xf32> to vector<432x64xf32>
    %87 = arith.addf %82, %86 : vector<432x64xf32>
    %cst_42 = arith.constant 0.000000e+00 : f32
    %88 = vector.broadcast %cst_42 : f32 to vector<432x64xf32>
    %89 = arith.maximumf %87, %88 : vector<432x64xf32>
    %c0_43 = arith.constant 0 : index
    %c0_44 = arith.constant 0 : index
    %90 = vector.load %arg7[%c0_43, %c0_44] : memref<16x32xbf16, #tpu.memory_space<vmem>>, vector<16x32xbf16>
    %cst_45 = arith.constant dense<0.000000e+00> : vector<432x32xf32>
    %91 = tpu.matmul %84, %90, %cst_45 {dimension_numbers = #tpu.dot_dimension_numbers<[1], [0], [0], [1], [0, 0, 1, 1], [], []>} : vector<432x16xbf16>, vector<16x32xbf16>, vector<432x32xf32> -> vector<432x32xf32>
    %c0_46 = arith.constant 0 : index
    %c0_47 = arith.constant 0 : index
    %92 = vector.load %arg8[%c0_46, %c0_47] : memref<1x32xf32, #tpu.memory_space<vmem>>, vector<1x32xf32>
    %93 = vector.broadcast %92 : vector<1x32xf32> to vector<432x32xf32>
    %94 = arith.addf %91, %93 : vector<432x32xf32>
    %cst_48 = arith.constant 0.000000e+00 : f32
    %95 = vector.broadcast %cst_48 : f32 to vector<432x32xf32>
    %96 = arith.maximumf %94, %95 : vector<432x32xf32>
    %97 = tpu.concatenate %14, %89, %96 in 1 : vector<432x32xf32>, vector<432x64xf32>, vector<432x32xf32> -> vector<432x128xf32>
    %c0_49 = arith.constant 0 : index
    %c0_50 = arith.constant 0 : index
    %c0_51 = arith.constant 0 : index
    %98 = vector.load %arg9[%c0_49, %c0_50, %c0_51] : memref<1x432x128xf32, #tpu.memory_space<vmem>>, vector<1x432x128xf32>
    %99 = vector.shape_cast %98 : vector<1x432x128xf32> to vector<432x128xf32>
    %100 = vector.shape_cast %97 : vector<432x128xf32> to vector<1x432x128xf32>
    tpu.vector_store %arg9[%c0_49, %c0_50, %c0_51], %100 {strides = array<i32>} : memref<1x432x128xf32, #tpu.memory_space<vmem>>, vector<1x432x128xf32>,
    return
  }
  func.func @transform_0(%arg0: i32) -> (i32, i32, i32) {
    %c0_i32 = arith.constant 0 : i32
    %c0_i32_0 = arith.constant 0 : i32
    %c0_i32_1 = arith.constant 0 : i32
    return %arg0, %c0_i32, %c0_i32_0 : i32, i32, i32
  }
  func.func @transform_1(%arg0: i32) -> (i32, i32) {
    %c0_i32 = arith.constant 0 : i32
    %c0_i32_0 = arith.constant 0 : i32
    %c0_i32_1 = arith.constant 0 : i32
    return %c0_i32, %c0_i32_0 : i32, i32
  }
  func.func @transform_2(%arg0: i32) -> (i32, i32) {
    %c0_i32 = arith.constant 0 : i32
    %c0_i32_0 = arith.constant 0 : i32
    %c0_i32_1 = arith.constant 0 : i32
    return %c0_i32, %c0_i32_0 : i32, i32
  }
  func.func @transform_3(%arg0: i32) -> (i32, i32) {
    %c0_i32 = arith.constant 0 : i32
    %c0_i32_0 = arith.constant 0 : i32
    %c0_i32_1 = arith.constant 0 : i32
    return %c0_i32, %c0_i32_0 : i32, i32
  }
  func.func @transform_4(%arg0: i32) -> (i32, i32, i32) {
    %c0_i32 = arith.constant 0 : i32
    %c0_i32_0 = arith.constant 0 : i32
    %c0_i32_1 = arith.constant 0 : i32
    %c0_i32_2 = arith.constant 0 : i32
    return %c0_i32, %c0_i32_0, %c0_i32_1 : i32, i32, i32
  }
  func.func @transform_5(%arg0: i32) -> (i32, i32) {
    %c0_i32 = arith.constant 0 : i32
    %c0_i32_0 = arith.constant 0 : i32
    %c0_i32_1 = arith.constant 0 : i32
    return %c0_i32, %c0_i32_0 : i32, i32
  }
  func.func @transform_6(%arg0: i32) -> (i32, i32) {
    %c0_i32 = arith.constant 0 : i32
    %c0_i32_0 = arith.constant 0 : i32
    %c0_i32_1 = arith.constant 0 : i32
    return %c0_i32, %c0_i32_0 : i32, i32
  }
  func.func @transform_7(%arg0: i32) -> (i32, i32) {
    %c0_i32 = arith.constant 0 : i32
    %c0_i32_0 = arith.constant 0 : i32
    %c0_i32_1 = arith.constant 0 : i32
    return %c0_i32, %c0_i32_0 : i32, i32
  }
  func.func @transform_8(%arg0: i32) -> (i32, i32, i32) {
    %c0_i32 = arith.constant 0 : i32
    %c0_i32_0 = arith.constant 0 : i32
    %c0_i32_1 = arith.constant 0 : i32
    return %arg0, %c0_i32, %c0_i32_0 : i32, i32, i32
  }
}

</mosaic_0001>

<bundles_post_ra>
// kernel: forward.1
= control target key start
LH: loop header
LB: loop body
LE: loop exit
PB: predicated region body
PF: predicated region fallthrough
CT: control target
= control target key end

     0   :  { %s11239_s27 = smov 0   ;;  %s18868_s0 = inlined_call_operand.vmem [shape: bf16[2,496,16], index: 0, kind: input, shape index: {}]   ;;  %s18869_s1 = inlined_call_operand.vmem [shape: f32[496,1], index: 1, kind: input, shape index: {}]   ;;  %s18870_s2 = inlined_call_operand.vmem [shape: bf16[16,64], index: 2, kind: input, shape index: {}]   ;;  %s18871_s3 = inlined_call_operand.vmem [shape: f32[1,64], index: 3, kind: input, shape index: {}]   ;;  %s18872_s4 = inlined_call_operand.vmem [shape: bf16[9,32,64], index: 4, kind: input, shape index: {}]   ;;  %s18873_s5 = inlined_call_operand.vmem [shape: f32[1,64], index: 5, kind: input, shape index: {}]   ;;  %s18874_s6 = inlined_call_operand.vmem [shape: bf16[16,32], index: 6, kind: input, shape index: {}]   ;;  %s18875_s7 = inlined_call_operand.vmem [shape: f32[1,32], index: 7, kind: input, shape index: {}]   ;;  %s18876_s8 = inlined_call_operand.vmem [shape: f32[2,432,128], index: 8, kind: output, shape index: {}]  }
   0x1 LB: > { %s9054_s28 = sadd.s32 4294967295, %s11187_s27   ;;  %p9058_p0 = scmp.ge.s32.totalorder %s11187_s27, 1  ;;  %s11187_s27 = sphi %s11239_s27, %s18_s27  }
   0x2   : > { %p262_p1 = scmp.lt.s32.totalorder %s11187_s27, 3 }
   0x4   : > { %p263_p2 = pnand %p9058_p0, %p262_p1 }
   0x6   : > { %266 = sbr.rel (%p263_p2) target bundleno = 2011 (0x7db), region = 52 }
   0xb   : > { %v11250_v0 = vld [vmem:[%s18869_s1 + $0xc0] sm:$0xff]  ;;  %v11255_v1 = vld [vmem:[%s18869_s1 + $0xb0] sm:$0xff]  ;;  %v18877_v2 = vmov 0   ;;  %p296_p3 = scmp.lt.s32.totalorder %s9054_s28, 1  ;;  %v18881_v4 = vmov 0.0   ;;  %v11268_v5 = vld [vmem:[%s18869_s1 + $0xc8] sm:$0xff] }
   0xc   : > { %11063 = vset.pattern.permute.xlu1 %v18877_v2  ;;  %11062 = vset.pattern.permute.xlu0 %v18877_v2  ;;  %v11064_v3 = vld [vmem:[%s18870_s2] sm:$0xff]   ;;  %v11273_v6 = vld [vmem:[%s18869_s1 + $0xb8] sm:$0xff]  ;;  %vm11191_vm0 = vmmov 0   ;;  %v11294_v8 = vld [vmem:[%s18869_s1 + $0xd0] sm:$0xff]  ;;  %vm601_vm1 = vcmask 130048   ;;  %s11192_s9 = smov 96  }
   0xd   : > { %1160 = vperm.xlu1 %11063, %v11250_v0   ;;  %1150 = vperm.xlu0 %11062, %v11255_v1   ;;  %s20930_s28 = smov (!%p296_p3, %s9054_s28), 1  ;;  %v11289_v7 = vld [vmem:[%s18869_s1 + $0xd8] sm:$0xff]  ;;  %v11308_v12 = vld [vmem:[%s18869_s1 + $0xe8] sm:$0xff]  ;;  %v11313_v13 = vld [vmem:[%s18869_s1 + $0xe0] sm:$0xff]  ;;  %s11193_s14 = smov 32  }
   0xe   : > { %9799 = vmatprep.subr.bf16.mxu0 %v18881_v4  ;;  %9801 = vmatprep.mubr.msk.bf16.mxu0 %vm11191_vm0, %v18881_v4  ;;  %s11047_s17 = smul.u32 248, %s20930_s28  ;;  %v11325_v16 = vld [vmem:[%s18869_s1 + $0xf8] sm:$0xff]  ;;  %v11330_v17 = vld [vmem:[%s18869_s1 + $0xf0] sm:$0xff]  ;;  %v11337_v19 = vld [vmem:[%s18869_s1 + $0x108] sm:$0xff] }
   0xf   : > { %9800 = vmatpush3.bf16.msra.mxu0 %v11064_v3  ;;  %11043 = vmatprep.subr.bf16.mxu1 %v18881_v4  ;;  %v11342_v20 = vld [vmem:[%s18869_s1 + $0x100] sm:$0xff]  ;;  %v11354_v23 = vld [vmem:[%s18869_s1 + $0x118] sm:$0xff]  ;;  %v11359_v24 = vld [vmem:[%s18869_s1 + $0x110] sm:$0xff]  ;;  %s11048_s20 = smul.u32 432, %s20930_s28 }
  0x10   : > { %9925 = vmatprep.subr.bf16.mxu0 %v18881_v4  ;;  %9973 = vmatprep.mubr.msk.bf16.mxu1 %vm11191_vm0, %v18881_v4  ;;  %s11299_s24 = scalar_lea.vmem %s18868_s0, %s11047_s17  ;;  %v11366_v26 = vld [vmem:[%s18869_s1 + $0x128] sm:$0xff]  ;;  %v11371_v27 = vld [vmem:[%s18869_s1 + $0x120] sm:$0xff]  ;;  %v11383_v30 = vld [vmem:[%s18869_s1 + $0x138] sm:$0xff] }
  0x11   : > { %1165 = vperm.xlu1 %11063, %v11268_v5   ;;  %1155 = vperm.xlu0 %11062, %v11273_v6   ;;  %v307_v9 = vld [vmem:[%s11299_s24] sm:$0xf]  ;;  %v308_v10 = vld [vmem:[%s11299_s24 + $0x4] sm:$0xf]  ;;  %v309_v14 = vld [vmem:[%s11299_s24 + $0x8] sm:$0xf]  ;;  %s18542_s23 = scalar_lea.vmem %s18876_s8, %s11048_s20 }
  0x12   : > { %v9062_v11 = vcombine.low %v307_v9, %v308_v10  ;;  %v310_v15 = vld [vmem:[%s11299_s24 + $0xc] sm:$0xf]  ;;  %v311_v21 = vld [vmem:[%s11299_s24 + $0x10] sm:$0xf]  ;;  %v312_v22 = vld [vmem:[%s11299_s24 + $0x14] sm:$0xf] }
  0x13   : > { %v9063_v18 = vcombine.low %v309_v14, %v310_v15  ;;  %v9064_v25 = vcombine.low %v311_v21, %v312_v22  ;;  %v313_v28 = vld [vmem:[%s11299_s24 + $0x18] sm:$0xf]  ;;  %v314_v29 = vld [vmem:[%s11299_s24 + $0x1c] sm:$0xf]  ;;  %v11388_v31 = vld [vmem:[%s18869_s1 + $0x130] sm:$0xff] }
  0x14   : > { %9802 = vmatmul.mubr.msk.bf16.vlgmr.msra.gmra.mxu0 %vm601_vm1, %v9062_v11  ;;  %v9065_v32 = vcombine.low %v313_v28, %v314_v29  ;;  %v11395_v33 = vld [vmem:[%s18869_s1 + $0x148] sm:$0xff]  ;;  %v11400_v34 = vld [vmem:[%s18869_s1 + $0x140] sm:$0xff]  ;;  %v11412_v37 = vld [vmem:[%s18869_s1 + $0x158] sm:$0xff] }
  0x15   : > { %1175 = vperm.xlu1 %11063, %v11289_v7   ;;  %1170 = vperm.xlu0 %11062, %v11294_v8   ;;  %v315_v35 = vld [vmem:[%s11299_s24 + $0x20] sm:$0xf]  ;;  %v316_v36 = vld [vmem:[%s11299_s24 + $0x24] sm:$0xf]  ;;  %v11417_v38 = vld [vmem:[%s18869_s1 + $0x150] sm:$0xff] }
  0x16   : > { %9805 = vmatprep.mubr.msk.bf16.mxu0 %vm11191_vm0, %v18881_v4  ;;  %v9066_v39 = vcombine.low %v315_v35, %v316_v36  ;;  %v11422_v40 = vld [vmem:[%s18869_s1 + $0x168] sm:$0xff]  ;;  %v11429_v41 = vld [vmem:[%s18869_s1 + $0x160] sm:$0xff]  ;;  %v11438_v43 = vld [vmem:[%s18869_s1 + $0x178] sm:$0xff] }
  0x17   : > { %v317_v42 = vld [vmem:[%s11299_s24 + $0x28] sm:$0xf]  ;;  %v318_v44 = vld [vmem:[%s11299_s24 + $0x2c] sm:$0xf]  ;;  %v11446_v45 = vld [vmem:[%s18869_s1 + $0x170] sm:$0xff] }
  0x18   : > { %v9067_v46 = vcombine.low %v317_v42, %v318_v44  ;;  %v11451_v47 = vld [vmem:[%s18869_s1 + $0x188] sm:$0xff]  ;;  %v11458_v48 = vld [vmem:[%s18869_s1 + $0x180] sm:$0xff]  ;;  %v319_v49 = vld [vmem:[%s11299_s24 + $0x30] sm:$0xf] }
  0x19   : > { %1185 = vperm.xlu1 %11063, %v11308_v12   ;;  %1180 = vperm.xlu0 %11062, %v11313_v13   ;;  %v320_v50 = vld [vmem:[%s11299_s24 + $0x34] sm:$0xf]  ;;  %v11470_v51 = vld [vmem:[%s18869_s1 + $0x198] sm:$0xff]  ;;  %v11482_v54 = vld [vmem:[%s18869_s1 + $0x1a8] sm:$0xff] }
  0x1a   : > { %v11475_v52 = vld [vmem:[%s18869_s1 + $0x190] sm:$0xff]  ;;  %v9068_v53 = vcombine.low %v319_v49, %v320_v50  ;;  %v11487_v55 = vld [vmem:[%s18869_s1 + $0x1a0] sm:$0xff]  ;;  %v321_v56 = vld [vmem:[%s11299_s24 + $0x38] sm:$0xf] }
  0x1b   : > { %v322_v57 = vld [vmem:[%s11299_s24 + $0x3c] sm:$0xf]  ;;  %v11504_v59 = vld [vmem:[%s18869_s1 + $0x1b0] sm:$0xff]  ;;  %v11511_v61 = vld [vmem:[%s18869_s1 + $0x8] sm:$0xff] }
  0x1c   : > { %9806 = vmatmul.mubr.msk.bf16.gmra.mxu0 %vm601_vm1, %v9063_v18  ;;  %v11499_v58 = vld [vmem:[%s18869_s1 + $0x1b8] sm:$0xff]  ;;  %19232 = vst [vmem:[#allocation2_spill] sm:$0xff] %v11504_v59  ;;  %v9069_v60 = vcombine.low %v321_v56, %v322_v57  ;;  %v11516_v62 = vld [vmem:[%s18869_s1] sm:$0xff]  ;;  %v11533_v10 = vld [vmem:[%s18869_s1 + $0x10] sm:$0xff]  ;;  %vm1442_vm2 = vcmp.gt.f32.partialorder %v11511_v61, 0.0 }
  0x1d   : > { %1195 = vperm.xlu1 %11063, %v11325_v16   ;;  %1190 = vperm.xlu0 %11062, %v11330_v17   ;;  %v323_v63 = vld [vmem:[%s11299_s24 + $0x40] sm:$0xf]  ;;  %v324_v3 = vld [vmem:[%s11299_s24 + $0x44] sm:$0xf]  ;;  %v11528_v9 = vld [vmem:[%s18869_s1 + $0x18] sm:$0xff]  ;;  %vm1441_vm3 = vcmp.gt.f32.partialorder %v11516_v62, 0.0 }
  0x1e   : > { %9809 = vmatprep.mubr.msk.bf16.mxu0 %vm11191_vm0, %v18881_v4  ;;  %v9070_v11 = vcombine.low %v323_v63, %v324_v3  ;;  %v11540_v14 = vld [vmem:[%s18869_s1 + $0x28] sm:$0xff]  ;;  %v11545_v15 = vld [vmem:[%s18869_s1 + $0x20] sm:$0xff]  ;;  %v11557_v22 = vld [vmem:[%s18869_s1 + $0x38] sm:$0xff]  ;;  %vm1444_vm4 = vcmp.gt.f32.partialorder %v11528_v9, 0.0  ;;  %vm1443_vm5 = vcmp.gt.f32.partialorder %v11533_v10, 0.0 }
  0x1f   : > { %v325_v18 = vld [vmem:[%s11299_s24 + $0x48] sm:$0xf]  ;;  %v326_v21 = vld [vmem:[%s11299_s24 + $0x4c] sm:$0xf]  ;;  %v327_v35 = vld [vmem:[%s11299_s24 + $0x50] sm:$0xf] }
  0x20   : > { %v9071_v28 = vcombine.low %v325_v18, %v326_v21  ;;  %v11569_v29 = vld [vmem:[%s18869_s1 + $0x48] sm:$0xff]  ;;  %v328_v36 = vld [vmem:[%s11299_s24 + $0x54] sm:$0xf]  ;;  %v11603_v49 = vld [vmem:[%s18869_s1 + $0x60] sm:$0xff]  ;;  %vm1446_vm6 = vcmp.gt.f32.partialorder %v11540_v14, 0.0  ;;  %vm1445_vm7 = vcmp.gt.f32.partialorder %v11545_v15, 0.0 }
  0x21   : > { %1205 = vperm.xlu1 %11063, %v11337_v19   ;;  %1200 = vperm.xlu0 %11062, %v11342_v20   ;;  %v11591_v42 = vld [vmem:[%s18869_s1 + $0x50] sm:$0xff]  ;;  %v9072_v44 = vcombine.low %v327_v35, %v328_v36  ;;  %v329_v50 = vld [vmem:[%s11299_s24 + $0x58] sm:$0xf]  ;;  %v11632_v3 = vld [vmem:[%s18869_s1 + $0x88] sm:$0xff]  ;;  %vm1448_vm8 = vcmp.gt.f32.partialorder %v11557_v22, 0.0  ;;  %vm1450_vm10 = vcmp.gt.f32.partialorder %v11569_v29, 0.0 }
  0x22   : > { %v11091_v56 = vld [vmem:[%s18872_s4 + $0x18] sm:$0xff]   ;;  %v331_v18 = vld [vmem:[%s11299_s24 + $0x60] sm:$0xf]  ;;  %v332_v21 = vld [vmem:[%s11299_s24 + $0x64] sm:$0xf]  ;;  %vm1451_vm13 = vcmp.gt.f32.partialorder %v11591_v42, 0.0 }
  0x23   : > { %v11618_v57 = vld [vmem:[%s18869_s1 + $0x78] sm:$0xff]  ;;  %9926 = vmatpush3.bf16.msra.mxu0 %v11091_v56  ;;  %11045 = vmatpush3.bf16.msra.mxu1 %v11091_v56  ;;  %v11654_v35 = vld [vmem:[%s18869_s1 + $0x90] sm:$0xff]  ;;  %v9074_v36 = vcombine.low %v331_v18, %v332_v21  ;;  %v334_v56 = vld [vmem:[%s11299_s24 + $0x6c] sm:$0xf]  ;;  %vm1453_vm15 = vcmp.gt.f32.partialorder %v11603_v49, 0.0 }
  0x24   : > { %9810 = vmatmul.mubr.msk.bf16.gmra.mxu0 %vm601_vm1, %v9064_v25  ;;  %v11562_v25 = vld [vmem:[%s18869_s1 + $0x30] sm:$0xff]  ;;  %9927 = vmatprep.subr.bf16.mxu0 %v18881_v4  ;;  %v11683_v18 = vld [vmem:[%s18869_s1 + $0x1c0] sm:$0xff] }
  0x25   : > { %1215 = vperm.xlu1 %11063, %v11354_v23   ;;  %1210 = vperm.xlu0 %11062, %v11359_v24   ;;  %19234 = vst [vmem:[#allocation4_spill] sm:$0xff] %v11683_v18  ;;  %v11695_v2 = vld [vmem:[%s18869_s1 + $0x1d0] sm:$0xff]  ;;  %vm1447_vm9 = vcmp.gt.f32.partialorder %v11562_v25, 0.0 }
  0x26   : > { %9813 = vmatprep.mubr.msk.bf16.mxu0 %vm11191_vm0, %v18881_v4  ;;  %11044 = vmatprep.subr.bf16.mxu1 %v18881_v4  ;;  %19236 = vst [vmem:[#allocation6_spill] sm:$0xff] %v11695_v2 }
  0x29   : > { %1225 = vperm.xlu1 %11063, %v11366_v26   ;;  %1220 = vperm.xlu0 %11062, %v11371_v27  }
  0x2c   : > { %9814 = vmatmul.mubr.msk.bf16.gmra.mxu0 %vm601_vm1, %v9065_v32  ;;  %v11574_v32 = vld [vmem:[%s18869_s1 + $0x40] sm:$0xff] }
  0x2d   : > { %1235 = vperm.xlu1 %11063, %v11383_v30   ;;  %1230 = vperm.xlu0 %11062, %v11388_v31   ;;  %vm1449_vm11 = vcmp.gt.f32.partialorder %v11574_v32, 0.0 }
  0x2e   : > { %9817 = vmatprep.mubr.msk.bf16.mxu0 %vm11191_vm0, %v18881_v4 }
  0x31   : > { %1245 = vperm.xlu1 %11063, %v11395_v33   ;;  %1240 = vperm.xlu0 %11062, %v11400_v34  }
  0x34   : > { %9818 = vmatmul.mubr.msk.bf16.gmra.mxu0 %vm601_vm1, %v9066_v39  ;;  %v11586_v39 = vld [vmem:[%s18869_s1 + $0x58] sm:$0xff] }
  0x35   : > { %1255 = vperm.xlu1 %11063, %v11412_v37   ;;  %1250 = vperm.xlu0 %11062, %v11417_v38   ;;  %vm1452_vm12 = vcmp.gt.f32.partialorder %v11586_v39, 0.0 }
  0x36   : > { %9821 = vmatprep.mubr.msk.bf16.mxu0 %vm11191_vm0, %v18881_v4 }
  0x39   : > { %1265 = vperm.xlu1 %11063, %v11422_v40   ;;  %1260 = vperm.xlu0 %11062, %v11429_v41  }
  0x3c   : > { %9822 = vmatmul.mubr.msk.bf16.gmra.mxu0 %vm601_vm1, %v9067_v46  ;;  %v11598_v46 = vld [vmem:[%s18869_s1 + $0x68] sm:$0xff] }
  0x3d   : > { %1275 = vperm.xlu1 %11063, %v11438_v43   ;;  %1270 = vperm.xlu0 %11062, %v11446_v45   ;;  %vm1454_vm14 = vcmp.gt.f32.partialorder %v11598_v46, 0.0 }
  0x3e   : > { %9825 = vmatprep.mubr.msk.bf16.mxu0 %vm11191_vm0, %v18881_v4 }
  0x41   : > { %1285 = vperm.xlu1 %11063, %v11451_v47   ;;  %1280 = vperm.xlu0 %11062, %v11458_v48  }
  0x44   : > { %9826 = vmatmul.mubr.msk.bf16.gmra.mxu0 %vm601_vm1, %v9068_v53  ;;  %v330_v53 = vld [vmem:[%s11299_s24 + $0x5c] sm:$0xf] }
  0x45   : > { %1295 = vperm.xlu1 %11063, %v11470_v51   ;;  %1290 = vperm.xlu0 %11062, %v11475_v52   ;;  %v9073_v63 = vcombine.low %v329_v50, %v330_v53  ;;  %v11666_v50 = vld [vmem:[%s18869_s1 + $0xa0] sm:$0xff]  ;;  %v333_v53 = vld [vmem:[%s11299_s24 + $0x68] sm:$0xf] }
  0x46   : > { %9829 = vmatprep.mubr.msk.bf16.mxu0 %vm11191_vm0, %v18881_v4  ;;  %v9075_v21 = vcombine.low %v333_v53, %v334_v56  ;;  %v335_v53 = vld [vmem:[%s11299_s24 + $0x70] sm:$0xf]  ;;  %v336_v56 = vld [vmem:[%s11299_s24 + $0x74] sm:$0xf] }
  0x49   : > { %1305 = vperm.xlu1 %11063, %v11482_v54   ;;  %1300 = vperm.xlu0 %11062, %v11487_v55  }
  0x4c   : > { %9830 = vmatmul.mubr.msk.bf16.gmra.mxu0 %vm601_vm1, %v9069_v60  ;;  %v11623_v60 = vld [vmem:[%s18869_s1 + $0x70] sm:$0xff] }
  0x4d   : > { %1315 = vperm.xlu1 %11063, %v11499_v58   ;;  %1310 = vperm.xlu0 %11062, %v11504_v59  }
  0x4e   : > { %9833 = vmatprep.mubr.msk.bf16.mxu0 %vm11191_vm0, %v18881_v4 }
  0x51   : > { %1045 = vperm.xlu1 %11063, %v11511_v61   ;;  %1040 = vperm.xlu0 %11062, %v11516_v62   ;;  %v19240_v61 = vmov 0.0   ;;  %v337_v62 = vld [vmem:[%s11299_s24 + $0x78] sm:$0xf] }
  0x54   : > { %9834 = vmatmul.mubr.msk.bf16.gmra.mxu0 %vm601_vm1, %v9070_v11  ;;  %v11637_v11 = vld [vmem:[%s18869_s1 + $0x80] sm:$0xff] }
  0x55   : > { %1055 = vperm.xlu1 %11063, %v11528_v9   ;;  %1050 = vperm.xlu0 %11062, %v11533_v10  }
  0x56   : > { %9837 = vmatprep.mubr.msk.bf16.mxu0 %vm11191_vm0, %v18881_v4 }
  0x59   : > { %1065 = vperm.xlu1 %11063, %v11540_v14   ;;  %1060 = vperm.xlu0 %11062, %v11545_v15  }
  0x5c   : > { %9838 = vmatmul.mubr.msk.bf16.gmra.mxu0 %vm601_vm1, %v9071_v28  ;;  %v11649_v28 = vld [vmem:[%s18869_s1 + $0x98] sm:$0xff] }
  0x5d   : > { %1075 = vperm.xlu1 %11063, %v11557_v22   ;;  %1070 = vperm.xlu0 %11062, %v11562_v25  }
  0x5e   : > { %9841 = vmatprep.mubr.msk.bf16.mxu0 %vm11191_vm0, %v18881_v4 }
  0x61   : > { %1085 = vperm.xlu1 %11063, %v11569_v29   ;;  %1080 = vperm.xlu0 %11062, %v11574_v32   ;;  %v341_v29 = vld [vmem:[%s11299_s24 + $0x88] sm:$0xf]  ;;  %v342_v32 = vld [vmem:[%s11299_s24 + $0x8c] sm:$0xf] }
  0x64   : > { %9842 = vmatmul.mubr.msk.bf16.gmra.mxu0 %vm601_vm1, %v9072_v44  ;;  %v11661_v44 = vld [vmem:[%s18869_s1 + $0xa8] sm:$0xff] }
  0x65   : > { %1095 = vperm.xlu1 %11063, %v11586_v39   ;;  %1090 = vperm.xlu0 %11062, %v11591_v42   ;;  %v9079_v39 = vcombine.low %v341_v29, %v342_v32 }
  0x66   : > { %9845 = vmatprep.mubr.msk.bf16.mxu0 %vm11191_vm0, %v18881_v4 }
  0x69   : > { %1105 = vperm.xlu1 %11063, %v11598_v46   ;;  %1100 = vperm.xlu0 %11062, %v11603_v49   ;;  %v343_v46 = vld [vmem:[%s11299_s24 + $0x90] sm:$0xf] }
  0x6c   : > { %9846 = vmatmul.mubr.msk.bf16.gmra.mxu0 %vm601_vm1, %v9073_v63  ;;  %v11678_v63 = vld [vmem:[%s18869_s1 + $0x1c8] sm:$0xff] }
  0x6d   : > { %1115 = vperm.xlu1 %11063, %v11618_v57   ;;  %1110 = vperm.xlu0 %11062, %v11623_v60   ;;  %19233 = vst [vmem:[#allocation3_spill] sm:$0xff] %v11678_v63 }
  0x6e   : > { %9849 = vmatprep.mubr.msk.bf16.mxu0 %vm11191_vm0, %v18881_v4 }
  0x71   : > { %1125 = vperm.xlu1 %11063, %v11632_v3   ;;  %1120 = vperm.xlu0 %11062, %v11637_v11  }
  0x74   : > { %9850 = vmatmul.mubr.msk.bf16.gmra.mxu0 %vm601_vm1, %v9074_v36  ;;  %v11690_v36 = vld [vmem:[%s18869_s1 + $0x1d8] sm:$0xff] }
  0x75   : > { %1135 = vperm.xlu1 %11063, %v11649_v28   ;;  %1130 = vperm.xlu0 %11062, %v11654_v35   ;;  %19235 = vst [vmem:[#allocation5_spill] sm:$0xff] %v11690_v36 }
  0x76   : > { %9853 = vmatprep.mubr.msk.bf16.mxu0 %vm11191_vm0, %v18881_v4 }
  0x79   : > { %1145 = vperm.xlu1 %11063, %v11661_v44   ;;  %1140 = vperm.xlu0 %11062, %v11666_v50  }
  0x7c   : > { %9854 = vmatmul.mubr.msk.bf16.gmra.mxu0 %vm601_vm1, %v9075_v21  ;;  %v11712_v21 = vld [vmem:[%s18869_s1 + $0x1e0] sm:$0xff] }
  0x7d   : > { %1325 = vperm.xlu1 %11063, %v11678_v63   ;;  %1320 = vperm.xlu0 %11062, %v11683_v18   ;;  %v11707_v18 = vld [vmem:[%s18869_s1 + $0x1e8] sm:$0xff]  ;;  %19238 = vst [vmem:[#allocation8_spill] sm:$0xff] %v11712_v21  ;;  %v9076_v63 = vcombine.low %v335_v53, %v336_v56  ;;  %v338_v56 = vld [vmem:[%s11299_s24 + $0x7c] sm:$0xf] }
  0x7e   : > { %9857 = vmatprep.mubr.msk.bf16.mxu0 %vm11191_vm0, %v18881_v4  ;;  %19237 = vst [vmem:[#allocation7_spill] sm:$0xff] %v11707_v18  ;;  %v19239_v4 = vmov 0  }
  0x7f   : > { %v1526_v42 = vsel %vm1454_vm14, 1, %v19239_v4  ;;  %vm1468_vm14 = vcmp.gt.f32.partialorder %v11289_v7, 0.0 }
  0x81   : > { %1335 = vperm.xlu1 %11063, %v11690_v36   ;;  %1330 = vperm.xlu0 %11062, %v11695_v2   ;;  %v1514_v2 = vsel %vm1442_vm2, 1, %v19239_v4  ;;  %v1513_v36 = vsel %vm1441_vm3, 1, %v19239_v4  ;;  %vm1456_vm2 = vcmp.gt.f32.partialorder %v11618_v57, 0.0  ;;  %vm1455_vm3 = vcmp.gt.f32.partialorder %v11623_v60, 0.0 }
  0x82   : > { %v1528_v29 = vsel %vm1456_vm2, 1, %v19239_v4  ;;  %v1527_v32 = vsel %vm1455_vm3, 1, %v19239_v4  ;;  %vm1470_vm2 = vcmp.gt.f32.partialorder %v11308_v12, 0.0  ;;  %vm1469_vm3 = vcmp.gt.f32.partialorder %v11313_v13, 0.0  ;;  %v351_v12 = vld [vmem:[%s11299_s24 + $0xb0] sm:$0xf] }
  0x83   : > { %v352_v13 = vld [vmem:[%s11299_s24 + $0xb4] sm:$0xf] }
  0x84   : > { %9858 = vmatmul.mubr.msk.bf16.gmra.mxu0 %vm601_vm1, %v9076_v63  ;;  %v9077_v63 = vcombine.low %v337_v62, %v338_v56  ;;  %v1517_v62 = vsel %vm1445_vm7, 1, %v19239_v4  ;;  %v1520_v56 = vsel %vm1448_vm8, 1, %v19239_v4  ;;  %vm1459_vm7 = vcmp.gt.f32.partialorder %v11654_v35, 0.0 }
  0x85   : > { %1345 = vperm.xlu1 %11063, %v11707_v18   ;;  %1340 = vperm.xlu0 %11062, %v11712_v21   ;;  %v1516_v21 = vsel %vm1444_vm4, 1, %v19239_v4  ;;  %v1515_v18 = vsel %vm1443_vm5, 1, %v19239_v4  ;;  %vm1458_vm4 = vcmp.gt.f32.partialorder %v11632_v3, 0.0  ;;  %vm1457_vm5 = vcmp.gt.f32.partialorder %v11637_v11, 0.0  ;;  %v345_v3 = vld [vmem:[%s11299_s24 + $0x98] sm:$0xf] }
  0x86   : > { %9861 = vmatprep.mubr.msk.bf16.mxu0 %vm11191_vm0, %v19240_v61  ;;  %v346_v11 = vld [vmem:[%s11299_s24 + $0x9c] sm:$0xf]  ;;  %vm1462_vm8 = vcmp.gt.f32.partialorder %v11661_v44, 0.0  ;;  %v347_v44 = vld [vmem:[%s11299_s24 + $0xa0] sm:$0xf] }
  0x88   : > { %v11723_v59 = vpop.permute.xlu1 %1160  ;;  %v11725_v53 = vpop.permute.xlu0 %1150 }
  0x89   : > { %1579 = vperm.xlu1 %11063, %v1514_v2   ;;  %1576 = vperm.xlu0 %11062, %v1513_v36   ;;  %v11097_v2 = vld [vmem:[%s18872_s4 + $0x10] sm:$0xff]   ;;  %v1518_v36 = vsel %vm1446_vm6, 1, %v19239_v4  ;;  %vm1460_vm6 = vcmp.gt.f32.partialorder %v11649_v28, 0.0 }
  0x8a   : > { %11046 = vmatpush3.bf16.msra.mxu1 %v11097_v2  ;;  %9928 = vmatpush3.bf16.msra.mxu0 %v11097_v2 }
  0x8b   : > { %10037 = vmatprep.subr.bf16.mxu1 %v19240_v61  ;;  %10149 = vmatprep.subr.bf16.mxu0 %v19240_v61 }
  0x8c   : > { %v11735_v9 = vpop.permute.xlu1 %1165  ;;  %v11737_v10 = vpop.permute.xlu0 %1155  ;;  %9862 = vmatmul.mubr.msk.bf16.gmra.mxu0 %vm601_vm1, %v9077_v63  ;;  %v1519_v63 = vsel %vm1447_vm9, 1, %v19239_v4  ;;  %vm1461_vm9 = vcmp.gt.f32.partialorder %v11666_v50, 0.0  ;;  %v348_v50 = vld [vmem:[%s11299_s24 + $0xa4] sm:$0xf] }
  0x8d   : > { %1585 = vperm.xlu1 %11063, %v1516_v21   ;;  %1582 = vperm.xlu0 %11062, %v1515_v18   ;;  %v339_v18 = vld [vmem:[%s11299_s24 + $0x80] sm:$0xf]  ;;  %v340_v21 = vld [vmem:[%s11299_s24 + $0x84] sm:$0xf] }
  0x8e   : > { %9865 = vmatprep.mubr.msk.bf16.mxu0 %vm11191_vm0, %v19240_v61  ;;  %v9078_v22 = vcombine.low %v339_v18, %v340_v21  ;;  %v1524_v21 = vsel %vm1452_vm12, 1, %v19239_v4  ;;  %vm1465_vm12 = vcmp.gt.f32.partialorder %v11250_v0, 0.0  ;;  %v349_v0 = vld [vmem:[%s11299_s24 + $0xa8] sm:$0xf] }
  0x90   : > { %v11747_v14 = vpop.permute.xlu1 %1175  ;;  %v11749_v15 = vpop.permute.xlu0 %1170 }
  0x91   : > { %1591 = vperm.xlu1 %11063, %v1518_v36   ;;  %1588 = vperm.xlu0 %11062, %v1517_v62   ;;  %v1522_v36 = vsel %vm1450_vm10, 1, %v19239_v4  ;;  %v1521_v62 = vsel %vm1449_vm11, 1, %v19239_v4  ;;  %vm1463_vm10 = vcmp.gt.f32.partialorder %v11255_v1, 0.0  ;;  %vm1464_vm11 = vcmp.gt.f32.partialorder %v11273_v6, 0.0 }
  0x92   : > { %v9082_v6 = vcombine.low %v347_v44, %v348_v50 }
  0x94   : > { %v11761_v25 = vpop.permute.xlu1 %1185  ;;  %v11763_v2 = vpop.permute.xlu0 %1180  ;;  %9866 = vmatmul.mubr.msk.bf16.gmra.mxu0 %vm601_vm1, %v9078_v22  ;;  %v1525_v22 = vsel %vm1453_vm15, 1, %v19239_v4  ;;  %vm1467_vm15 = vcmp.gt.f32.partialorder %v11294_v8, 0.0 }
  0x95   : > { %1597 = vperm.xlu1 %11063, %v1520_v56   ;;  %1594 = vperm.xlu0 %11062, %v1519_v63   ;;  %v1523_v56 = vsel %vm1451_vm13, 1, %v19239_v4  ;;  %vm1466_vm13 = vcmp.gt.f32.partialorder %v11268_v5, 0.0 }
  0x96   : > { %9869 = vmatprep.mubr.msk.bf16.mxu0 %vm11191_vm0, %v19240_v61 }
  0x98   : > { %v11774_v18 = vpop.permute.xlu1 %1195  ;;  %v11778_v63 = vpop.permute.xlu0 %1190 }
  0x99   : > { %1603 = vperm.xlu1 %11063, %v1522_v36   ;;  %1600 = vperm.xlu0 %11062, %v1521_v62   ;;  %v344_v62 = vld [vmem:[%s11299_s24 + $0x94] sm:$0xf] }
  0x9a   : > { %v9080_v57 = vcombine.low %v343_v46, %v344_v62  ;;  %v9081_v46 = vcombine.low %v345_v3, %v346_v11  ;;  %v1534_v62 = vsel %vm1462_vm8, 1, %v19239_v4  ;;  %v1537_v3 = vsel %vm1465_vm12, 1, %v19239_v4 }
  0x9b   : > { %vm1476_vm8 = vcmp.gt.f32.partialorder %v11354_v23, 0.0  ;;  %vm1480_vm12 = vcmp.gt.f32.partialorder %v11383_v30, 0.0 }
  0x9c   : > { %9870 = vmatmul.mubr.msk.bf16.gmra.mxu0 %vm601_vm1, %v9079_v39  ;;  %v11787_v36 = vpop.permute.xlu1 %1205  ;;  %v11793_v49 = vpop.permute.xlu0 %1200 }
  0x9d   : > { %1609 = vperm.xlu1 %11063, %v1524_v21   ;;  %1606 = vperm.xlu0 %11062, %v1523_v56   ;;  %v1530_v21 = vsel %vm1458_vm4, 1, %v19239_v4  ;;  %v1529_v56 = vsel %vm1457_vm5, 1, %v19239_v4  ;;  %vm1472_vm4 = vcmp.gt.f32.partialorder %v11325_v16, 0.0  ;;  %vm1471_vm5 = vcmp.gt.f32.partialorder %v11330_v17, 0.0 }
  0x9e   : > { %9873 = vmatprep.mubr.msk.bf16.mxu0 %vm11191_vm0, %v19240_v61  ;;  %v1544_v50 = vsel %vm1472_vm4, 1, %v19239_v4  ;;  %vm1486_vm4 = vcmp.gt.f32.partialorder %v11422_v40, 0.0 }
  0xa0   : > { %v11799_v60 = vpop.permute.xlu1 %1215  ;;  %v11803_v39 = vpop.permute.xlu0 %1210 }
  0xa1   : > { %1615 = vperm.xlu1 %11063, %v1526_v42   ;;  %1612 = vperm.xlu0 %11062, %v1525_v22   ;;  %v1532_v42 = vsel %vm1460_vm6, 1, %v19239_v4  ;;  %v1531_v22 = vsel %vm1459_vm7, 1, %v19239_v4  ;;  %vm1474_vm6 = vcmp.gt.f32.partialorder %v11337_v19, 0.0  ;;  %vm1473_vm7 = vcmp.gt.f32.partialorder %v11342_v20, 0.0  ;;  %v353_v19 = vld [vmem:[%s11299_s24 + $0xb8] sm:$0xf] }
  0xa2   : > { %v354_v20 = vld [vmem:[%s11299_s24 + $0xbc] sm:$0xf] }
  0xa4   : > { %9874 = vmatmul.mubr.msk.bf16.gmra.mxu0 %vm601_vm1, %v9080_v57  ;;  %v11816_v28 = vpop.permute.xlu1 %1225  ;;  %v11818_v35 = vpop.permute.xlu0 %1220  ;;  %v1536_v57 = vsel %vm1464_vm11, 1, %v19239_v4  ;;  %vm1477_vm11 = vcmp.gt.f32.partialorder %v11371_v27, 0.0  ;;  %v356_v27 = vld [vmem:[%s11299_s24 + $0xc4] sm:$0xf] }
  0xa5   : > { %1621 = vperm.xlu1 %11063, %v1528_v29   ;;  %1618 = vperm.xlu0 %11062, %v1527_v32   ;;  %v1533_v29 = vsel %vm1461_vm9, 1, %v19239_v4  ;;  %vm1475_vm9 = vcmp.gt.f32.partialorder %v11359_v24, 0.0  ;;  %v9085_v24 = vcombine.low %v353_v19, %v354_v20 }
  0xa6   : > { %9877 = vmatprep.mubr.msk.bf16.mxu0 %vm11191_vm0, %v19240_v61 }
  0xa8   : > { %v11829_v32 = vpop.permute.xlu1 %1235  ;;  %v11834_v1 = vpop.permute.xlu0 %1230 }
  0xa9   : > { %1627 = vperm.xlu1 %11063, %v1530_v21   ;;  %1624 = vperm.xlu0 %11062, %v1529_v56   ;;  %v1535_v21 = vsel %vm1463_vm10, 1, %v19239_v4  ;;  %v1538_v56 = vsel %vm1466_vm13, 1, %v19239_v4  ;;  %vm1478_vm10 = vcmp.gt.f32.partialorder %v11366_v26, 0.0  ;;  %vm1479_vm13 = vcmp.gt.f32.partialorder %v11388_v31, 0.0  ;;  %v355_v26 = vld [vmem:[%s11299_s24 + $0xc0] sm:$0xf] }
  0xaa   : > { %v1551_v30 = vsel %vm1479_vm13, 1, %v19239_v4  ;;  %v9086_v31 = vcombine.low %v355_v26, %v356_v27  ;;  %vm1493_vm13 = vcmp.gt.f32.partialorder %v11487_v55, 0.0  ;;  %v363_v55 = vld [vmem:[%s11299_s24 + $0xe0] sm:$0xf] }
  0xac   : > { %9878 = vmatmul.mubr.msk.bf16.gmra.mxu0 %vm601_vm1, %v9081_v46  ;;  %v11842_v11 = vpop.permute.xlu1 %1245  ;;  %v11848_v5 = vpop.permute.xlu0 %1240  ;;  %v1539_v46 = vsel %vm1467_vm15, 1, %v19239_v4  ;;  %vm1481_vm15 = vcmp.gt.f32.partialorder %v11400_v34, 0.0  ;;  %v358_v34 = vld [vmem:[%s11299_s24 + $0xcc] sm:$0xf] }
  0xad   : > { %1633 = vperm.xlu1 %11063, %v1532_v42   ;;  %1630 = vperm.xlu0 %11062, %v1531_v22   ;;  %v350_v42 = vld [vmem:[%s11299_s24 + $0xac] sm:$0xf]  ;;  %v1540_v22 = vsel %vm1468_vm14, 1, %v19239_v4  ;;  %vm1482_vm14 = vcmp.gt.f32.partialorder %v11395_v33, 0.0  ;;  %v357_v33 = vld [vmem:[%s11299_s24 + $0xc8] sm:$0xf] }
  0xae   : > { %9881 = vmatprep.mubr.msk.bf16.mxu0 %vm11191_vm0, %v19240_v61  ;;  %v9083_v7 = vcombine.low %v349_v0, %v350_v42  ;;  %v1548_v0 = vsel %vm1476_vm8, 1, %v19239_v4  ;;  %v1547_v42 = vsel %vm1475_vm9, 1, %v19239_v4  ;;  %v9087_v19 = vcombine.low %v357_v33, %v358_v34  ;;  %v361_v34 = vld [vmem:[%s11299_s24 + $0xd8] sm:$0xf] }
  0xaf   : > { %vm1490_vm8 = vcmp.gt.f32.partialorder %v11451_v47, 0.0  ;;  %vm1489_vm9 = vcmp.gt.f32.partialorder %v11458_v48, 0.0 }
  0xb0   : > { %v11854_v8 = vpop.permute.xlu1 %1255  ;;  %v11858_v44 = vpop.permute.xlu0 %1250  ;;  %v1561_v33 = vsel %vm1489_vm9, 1, %v19239_v4  ;;  %vm2056_vm9 = vcmask 261120  }
  0xb1   : > { %1639 = vperm.xlu1 %11063, %v1534_v62   ;;  %1636 = vperm.xlu0 %11062, %v1533_v29   ;;  %v1542_v62 = vsel %vm1470_vm2, 1, %v19239_v4  ;;  %v1541_v29 = vsel %vm1469_vm3, 1, %v19239_v4  ;;  %vm1484_vm2 = vcmp.gt.f32.partialorder %v11412_v37, 0.0  ;;  %vm1483_vm3 = vcmp.gt.f32.partialorder %v11417_v38, 0.0 }
  0xb2   : > { %v1555_v37 = vsel %vm1483_vm3, 1, %v19239_v4 }
  0xb4   : > { %9882 = vmatmul.mubr.msk.bf16.gmra.mxu0 %vm601_vm1, %v9082_v6  ;;  %v11871_v16 = vpop.permute.xlu1 %1265  ;;  %v11873_v17 = vpop.permute.xlu0 %1260  ;;  %v1546_v6 = vsel %vm1474_vm6, 1, %v19239_v4  ;;  %vm1488_vm6 = vcmp.gt.f32.partialorder %v11438_v43, 0.0 }
  0xb5   : > { %1645 = vperm.xlu1 %11063, %v1536_v57   ;;  %1642 = vperm.xlu0 %11062, %v1535_v21   ;;  %v1543_v57 = vsel %vm1471_vm5, 1, %v19239_v4  ;;  %v9084_v21 = vcombine.low %v351_v12, %v352_v13  ;;  %19241 = vst [vmem:[#allocation9_spill] sm:$0xff] %v11871_v16  ;;  %19242 = vst [vmem:[#allocation10_spill] sm:$0xff] %v11873_v17  ;;  %v1554_v13 = vsel %vm1482_vm14, 1, %v19239_v4  ;;  %vm1485_vm5 = vcmp.gt.f32.partialorder %v11429_v41, 0.0 }
  0xb6   : > { %9885 = vmatprep.mubr.msk.bf16.mxu0 %vm11191_vm0, %v19240_v61  ;;  %v359_v41 = vld [vmem:[%s11299_s24 + $0xd0] sm:$0xf]  ;;  %vm1496_vm14 = vcmp.gt.f32.partialorder %v11499_v58, 0.0 }
  0xb8   : > { %v11890_v23 = vpop.permute.xlu0 %1270 }
  0xb9   : > { %1651 = vperm.xlu1 %11063, %v1538_v56   ;;  %1648 = vperm.xlu0 %11062, %v1537_v3   ;;  %v1545_v56 = vsel %vm1473_vm7, 1, %v19239_v4  ;;  %v11884_v3 = vpop.permute.xlu1 %1275  ;;  %19244 = vst [vmem:[#allocation12_spill] sm:$0xff] %v11890_v23  ;;  %vm1487_vm7 = vcmp.gt.f32.partialorder %v11446_v45, 0.0 }
  0xba   : > { %19243 = vst [vmem:[#allocation11_spill] sm:$0xff] %v11884_v3  ;;  %v1559_v43 = vsel %vm1487_vm7, 1, %v19239_v4 }
  0xbc   : > { %9886 = vmatmul.mubr.msk.bf16.gmra.mxu0 %vm601_vm1, %v9083_v7 }
  0xbd   : > { %1657 = vperm.xlu1 %11063, %v1540_v22   ;;  %1654 = vperm.xlu0 %11062, %v1539_v46   ;;  %v1550_v22 = vsel %vm1478_vm10, 1, %v19239_v4  ;;  %v1549_v46 = vsel %vm1477_vm11, 1, %v19239_v4  ;;  %v11897_v7 = vpop.permute.xlu1 %1285  ;;  %vm1492_vm10 = vcmp.gt.f32.partialorder %v11470_v51, 0.0  ;;  %vm1491_vm11 = vcmp.gt.f32.partialorder %v11475_v52, 0.0 }
  0xbe   : > { %9889 = vmatprep.mubr.msk.bf16.mxu0 %vm11191_vm0, %v19240_v61  ;;  %19245 = vst [vmem:[#allocation13_spill] sm:$0xff] %v11897_v7  ;;  %v1564_v51 = vsel %vm1492_vm10, 1, %v19239_v4  ;;  %v1563_v52 = vsel %vm1491_vm11, 1, %v19239_v4 }
  0xc1   : > { %1663 = vperm.xlu1 %11063, %v1542_v62   ;;  %1660 = vperm.xlu0 %11062, %v1541_v29   ;;  %v11903_v62 = vpop.permute.xlu0 %1280  ;;  %v1552_v29 = vsel %vm1480_vm12, 1, %v19239_v4  ;;  %v11909_v12 = vpop.permute.xlu1 %1295  ;;  %vm1494_vm12 = vcmp.gt.f32.partialorder %v11482_v54, 0.0 }
  0xc2   : > { %19246 = vst [vmem:[#allocation14_spill] sm:$0xff] %v11903_v62  ;;  %19247 = vst [vmem:[#allocation15_spill] sm:$0xff] %v11909_v12 }
  0xc4   : > { %9890 = vmatmul.mubr.msk.bf16.gmra.mxu0 %vm601_vm1, %v9084_v21 }
  0xc5   : > { %1669 = vperm.xlu1 %11063, %v1544_v50   ;;  %1666 = vperm.xlu0 %11062, %v1543_v57   ;;  %v1553_v50 = vsel %vm1481_vm15, 1, %v19239_v4  ;;  %v11915_v57 = vpop.permute.xlu0 %1290  ;;  %v11930_v20 = vpop.permute.xlu1 %1305 }
  0xc6   : > { %9893 = vmatprep.mubr.msk.bf16.mxu0 %vm11191_vm0, %v19240_v61  ;;  %19248 = vst [vmem:[#allocation16_spill] sm:$0xff] %v11915_v57  ;;  %19249 = vst [vmem:[#allocation17_spill] sm:$0xff] %v11930_v20 }
  0xc9   : > { %1675 = vperm.xlu1 %11063, %v1546_v6   ;;  %1672 = vperm.xlu0 %11062, %v1545_v56   ;;  %v1556_v56 = vsel %vm1484_vm2, 1, %v19239_v4  ;;  %v11945_v27 = vpop.permute.xlu1 %1315 }
  0xca   : > { %19251 = vst [vmem:[#allocation19_spill] sm:$0xff] %v11945_v27 }
  0xcc   : > { %9894 = vmatmul.mubr.msk.bf16.gmra.mxu0 %vm601_vm1, %v9085_v24  ;;  %v1558_v24 = vsel %vm1486_vm4, 1, %v19239_v4 }
  0xcd   : > { %1681 = vperm.xlu1 %11063, %v1548_v0   ;;  %1678 = vperm.xlu0 %11062, %v1547_v42   ;;  %v11932_v0 = vpop.permute.xlu0 %1300  ;;  %v11962_v48 = vpop.permute.xlu1 %1045 }
  0xce   : > { %9897 = vmatprep.mubr.msk.bf16.mxu0 %vm11191_vm0, %v19240_v61  ;;  %19250 = vst [vmem:[#allocation18_spill] sm:$0xff] %v11932_v0 }
  0xd1   : > { %1687 = vperm.xlu1 %11063, %v1550_v22   ;;  %1684 = vperm.xlu0 %11062, %v1549_v46   ;;  %v1557_v22 = vsel %vm1485_vm5, 1, %v19239_v4  ;;  %v360_v46 = vld [vmem:[%s11299_s24 + $0xd4] sm:$0xf]  ;;  %v11951_v45 = vpop.permute.xlu0 %1310 }
  0xd2   : > { %19252 = vst [vmem:[#allocation20_spill] sm:$0xff] %v11951_v45 }
  0xd4   : > { %v11917_v21 = vpop.f32.mrf.mxu0  ;;  %9898 = vmatmul.mubr.msk.bf16.gmra.mxu0 %vm601_vm1, %v9086_v31  ;;  %v9088_v31 = vcombine.low %v359_v41, %v360_v46  ;;  %v1566_v41 = vsel %vm1494_vm12, 1, %v19239_v4  ;;  %v1565_v46 = vsel %vm1493_vm13, 1, %v19239_v4 }
  0xd5   : > { %1693 = vperm.xlu1 %11063, %v1552_v29   ;;  %1690 = vperm.xlu0 %11062, %v1551_v30   ;;  %v1560_v29 = vsel %vm1488_vm6, 1, %v19239_v4 }
  0xd6   : > { %9901 = vmatprep.mubr.msk.bf16.mxu0 %vm11191_vm0, %v19240_v61  ;;  %v9803_v6 = vpop.f32.mrf.mxu0 }
  0xd7   : > { %v362_v6 = vld [vmem:[%s11299_s24 + $0xdc] sm:$0xf] }
  0xd8   : > { %v11928_v38 = vpop.f32.mrf.mxu0 }
  0xd9   : > { %1699 = vperm.xlu1 %11063, %v1554_v13   ;;  %1696 = vperm.xlu0 %11062, %v1553_v50   ;;  %v1562_v50 = vsel %vm1490_vm8, 1, %v19239_v4  ;;  %vm1988_vm8 = vcmask 1043456  }
  0xda   : > { %v9804_v42 = vpop.f32.mrf.mxu0 }
  0xdb   : > { %v9089_v42 = vcombine.low %v361_v34, %v362_v6 }
  0xdc   : > { %v11938_v40 = vpop.f32.mrf.mxu0  ;;  %9902 = vmatmul.mubr.msk.bf16.gmra.mxu0 %vm601_vm1, %v9087_v19 }
  0xdd   : > { %1705 = vperm.xlu1 %11063, %v1556_v56   ;;  %1702 = vperm.xlu0 %11062, %v1555_v37   ;;  %v11968_v56 = vpop.permute.xlu0 %1040 }
  0xde   : > { %9905 = vmatprep.mubr.msk.bf16.mxu0 %vm11191_vm0, %v19240_v61  ;;  %v9807_v26 = vpop.f32.mrf.mxu0 }
  0xdf   : > { %v19253_v26 = vld [vmem:[#allocation2_spill] sm:$0xff] }
  0xe0   : > { %v11953_v30 = vpop.f32.mrf.mxu0  ;;  %vm1495_vm15 = vcmp.gt.f32.partialorder %v19253_v26, 0.0 }
  0xe1   : > { %1711 = vperm.xlu1 %11063, %v1558_v24   ;;  %1708 = vperm.xlu0 %11062, %v1557_v22   ;;  %v11974_v22 = vpop.permute.xlu1 %1055  ;;  %v11980_v54 = vpop.permute.xlu0 %1050  ;;  %v1567_v58 = vsel %vm1495_vm15, 1, %v19239_v4 }
  0xe2   : > { %v9808_v13 = vpop.f32.mrf.mxu0 }
  0xe3   : > { %v1568_v13 = vsel %vm1496_vm14, 1, %v19239_v4 }
  0xe4   : > { %v11959_v47 = vpop.f32.mrf.mxu0  ;;  %9906 = vmatmul.mubr.msk.bf16.gmra.mxu0 %vm601_vm1, %v9088_v31 }
  0xe5   : > { %1717 = vperm.xlu1 %11063, %v1560_v29   ;;  %1714 = vperm.xlu0 %11062, %v1559_v43   ;;  %v364_v43 = vld [vmem:[%s11299_s24 + $0xe4] sm:$0xf] }
  0xe6   : > { %9909 = vmatprep.mubr.msk.bf16.mxu0 %vm11191_vm0, %v19240_v61  ;;  %v9811_v37 = vpop.f32.mrf.mxu0  ;;  %v9090_v6 = vcombine.low %v363_v55, %v364_v43  ;;  %v365_v55 = vld [vmem:[%s11299_s24 + $0xe8] sm:$0xf]  ;;  %v366_v43 = vld [vmem:[%s11299_s24 + $0xec] sm:$0xf] }
  0xe7   : > { %v11993_v37 = vpop.permute.xlu1 %1065 }
  0xe8   : > { %v748_v19 = vpop.f32.mrf.mxu0 }
  0xe9   : > { %1723 = vperm.xlu1 %11063, %v1562_v50   ;;  %1720 = vperm.xlu0 %11062, %v1561_v33   ;;  %v19254_v50 = vld [vmem:[#allocation3_spill] sm:$0xff]  ;;  %v19255_v33 = vld [vmem:[#allocation4_spill] sm:$0xff] }
  0xea   : > { %v9812_v24 = vpop.f32.mrf.mxu0  ;;  %vm1498_vm2 = vcmp.gt.f32.partialorder %v19254_v50, 0.0  ;;  %vm1497_vm3 = vcmp.gt.f32.partialorder %v19255_v33, 0.0 }
  0xeb   : > { %v1569_v24 = vsel %vm1497_vm3, 1, %v19239_v4  ;;  %vm2982_vm3 = vsmask.f32 7440 }
  0xec   : > { %v11982_v29 = vpop.f32.mrf.mxu0  ;;  %9910 = vmatmul.mubr.msk.bf16.gmra.mxu0 %vm601_vm1, %v9089_v42  ;;  %v1570_v42 = vsel %vm1498_vm2, 1, %v19239_v4  ;;  %vm2981_vm2 = vsmask.f32 3328 }
  0xed   : > { %1729 = vperm.xlu1 %11063, %v1564_v51   ;;  %1726 = vperm.xlu0 %11062, %v1563_v52   ;;  %v11995_v51 = vpop.permute.xlu0 %1060 }
  0xee   : > { %9913 = vmatprep.mubr.msk.bf16.mxu0 %vm11191_vm0, %v19240_v61  ;;  %v9815_v31 = vpop.f32.mrf.mxu0 }
  0xef   : > { %v12011_v31 = vld [vmem:[%s18871_s3] ss:$0 sm:$0xff] }
  0xf0   : > { %v756_v34 = vpop.f32.mrf.mxu0  ;;  %v741_v50 = vadd.f32 %v12011_v31, %v11953_v30  ;;  %v738_v30 = vadd.f32 %v12011_v31, %v11938_v40  ;;  %v367_v40 = vld [vmem:[%s11299_s24 + $0xf0] sm:$0xf] }
  0xf1   : > { %1735 = vperm.xlu1 %11063, %v1566_v41   ;;  %1732 = vperm.xlu0 %11062, %v1565_v46   ;;  %v19256_v41 = vld [vmem:[#allocation5_spill] sm:$0xff]  ;;  %v19257_v46 = vld [vmem:[#allocation6_spill] sm:$0xff] }
  0xf2   : > { %v9816_v52 = vpop.f32.mrf.mxu0  ;;  %vm1500_vm4 = vcmp.gt.f32.partialorder %v19256_v41, 0.0  ;;  %vm1499_vm5 = vcmp.gt.f32.partialorder %v19257_v46, 0.0  ;;  %v19259_v41 = vld [vmem:[#allocation8_spill] sm:$0xff]  ;;  %v12021_v46 = vpop.permute.xlu0 %1070  ;;  %v979_v27 = vmax.f32 %v741_v50, 0.0  ;;  %v978_v20 = vmax.f32 %v738_v30, 0.0 }
  0xf3   : > { %v1572_v33 = vsel %vm1500_vm4, 1, %v19239_v4  ;;  %v19258_v52 = vld [vmem:[#allocation7_spill] sm:$0xff]  ;;  %vm1501_vm7 = vcmp.gt.f32.partialorder %v19259_v41, 0.0  ;;  %v754_v30 = vadd.f32 %v12011_v31, %v11982_v29 }
  0xf4   : > { %v12001_v26 = vpop.f32.mrf.mxu0  ;;  %9914 = vmatmul.mubr.msk.bf16.gmra.mxu0 %vm601_vm1, %v9090_v6  ;;  %v1571_v6 = vsel %vm1499_vm5, 1, %v19239_v4  ;;  %vm1502_vm6 = vcmp.gt.f32.partialorder %v19258_v52, 0.0  ;;  %v730_v52 = vadd.f32 %v12011_v31, %v11917_v21  ;;  %v1573_v0 = vsel %vm1501_vm7, 1, %v19239_v4 }
  0xf5   : > { %1741 = vperm.xlu1 %11063, %v1568_v13   ;;  %1738 = vperm.xlu0 %11062, %v1567_v58   ;;  %v12013_v58 = vpop.permute.xlu1 %1075  ;;  %v1574_v41 = vsel %vm1502_vm6, 1, %v19239_v4  ;;  %v1351_v50 = vmul.f32 %v11974_v22, %v979_v27  ;;  %v1350_v7 = vmul.f32 %v11980_v54, %v978_v20  ;;  %v762_v20 = vadd.f32 %v12011_v31, %v12001_v26  ;;  %vm12552_vm6 = vmor %vm2981_vm2, %vm2982_vm3 }
  0xf6   : > { %9917 = vmatprep.mubr.msk.bf16.mxu0 %vm11191_vm0, %v19240_v61  ;;  %v9819_v13 = vpop.f32.mrf.mxu0  ;;  %v12044_v4 = vpop.permute.xlu0 %1080  ;;  %vm4200_vm7 = vcmask 1042432  }
  0xf7   : > { %v12057_v29 = vpack.c.bf16 %v1351_v50, %v1350_v7 }
  0xf8   : > { %v764_v45 = vpop.f32.mrf.mxu0 }
  0xf9   : > { %1747 = vperm.xlu1 %11063, %v1570_v42   ;;  %1744 = vperm.xlu0 %11062, %v1569_v24   ;;  %v9091_v42 = vcombine.low %v365_v55, %v366_v43  ;;  %v733_v24 = vadd.f32 %v12011_v31, %v11928_v38  ;;  %v746_v55 = vadd.f32 %v12011_v31, %v11959_v47 }
  0xfa   : > { %v9820_v13 = vpop.f32.mrf.mxu0  ;;  %v749_v43 = vadd.f32 %v12011_v31, %v748_v19  ;;  %v976_v19 = vmax.f32 %v730_v52, 0.0  ;;  %19260 = vst [vmem:[#allocation2_spill] sm:$0xff] %v12057_v29 }
  0xfb   : > { %v368_v13 = vld [vmem:[%s11299_s24 + $0xf4] sm:$0xf]  ;;  %v980_v57 = vmax.f32 %v746_v55, 0.0 }
  0xfc   : > { %v769_v38 = vpop.f32.mrf.mxu0  ;;  %9918 = vmatmul.mubr.msk.bf16.gmra.mxu0 %vm601_vm1, %v9091_v42  ;;  %v9092_v42 = vcombine.low %v367_v40, %v368_v13  ;;  %v1348_v27 = vmul.f32 %v11968_v56, %v976_v19  ;;  %v1990_v56 = vrot.slane %v12057_v29, 4 }
  0xfd   : > { %1753 = vperm.xlu1 %11063, %v1572_v33   ;;  %1750 = vperm.xlu0 %11062, %v1571_v6   ;;  %v977_v33 = vmax.f32 %v733_v24, 0.0  ;;  %v12037_v6 = vpop.permute.xlu1 %1085  ;;  %v12040_v21 = vadd.f32 %v12011_v31, %v769_v38  ;;  %v981_v24 = vmax.f32 %v749_v43, 0.0  ;;  %v757_v38 = vadd.f32 %v12011_v31, %v756_v34 }
  0xfe   : > { %9921 = vmatprep.mubr.msk.bf16.mxu0 %vm11191_vm0, %v19240_v61  ;;  %v9823_v47 = vpop.f32.mrf.mxu0 }
  0xff   : > { %v1349_v62 = vmul.f32 %v11962_v48, %v977_v33  ;;  %v986_v47 = vmax.f32 %v12040_v21, 0.0  ;;  %v982_v48 = vmax.f32 %v754_v30, 0.0  ;;  %v983_v55 = vmax.f32 %v757_v38, 0.0 }
 0x100   : > { %v772_v12 = vpop.f32.mrf.mxu0  ;;  %v1353_v26 = vmul.f32 %v11993_v37, %v981_v24  ;;  %v984_v33 = vmax.f32 %v762_v20, 0.0 }
 0x101   : > { %1759 = vperm.xlu1 %11063, %v1574_v41   ;;  %1756 = vperm.xlu0 %11062, %v1573_v0   ;;  %v773_v0 = vadd.f32 %v12011_v31, %v772_v12  ;;  %v1096_v22 = vpop.permute.xlu1 %1095  ;;  %v1091_v41 = vpop.permute.xlu0 %1090  ;;  %v765_v12 = vadd.f32 %v12011_v31, %v764_v45  ;;  %v12063_v43 = vpack.c.bf16 %v1349_v62, %v1348_v27 }
 0x102   : > { %v9824_v52 = vpop.f32.mrf.mxu0  ;;  %v1358_v40 = vmul.f32 %v1091_v41, %v986_v47  ;;  %v1355_v41 = vmul.f32 %v12013_v58, %v983_v55 }
 0x103   : > { %v987_v34 = vmax.f32 %v773_v0, 0.0  ;;  %19261 = vst [vmem:[#allocation3_spill] sm:$0xff] %v12063_v43  ;;  %v985_v21 = vmax.f32 %v765_v12, 0.0  ;;  %v1989_v50 = vrot.slane %v12063_v43, 4 }
 0x104   : > { %v777_v54 = vpop.f32.mrf.mxu0  ;;  %9922 = vmatmul.mubr.msk.bf16.gmra.mxu0 %vm601_vm1, %v9092_v42  ;;  %v1352_v42 = vmul.f32 %v11995_v51, %v980_v57 }
 0x105   : > { %8242 = vrot.lane.b32.xlu0 %v980_v57, %s11192_s9  ;;  %8244 = vrot.lane.b32.xlu1 %v981_v24, %s11192_s9  ;;  %v1359_v13 = vmul.f32 %v1096_v22, %v987_v34  ;;  %v778_v62 = vadd.f32 %v12011_v31, %v777_v54  ;;  %v1991_v24 = vsel %vm1988_vm8, %v1989_v50, %v1990_v56  ;;  %v1106_v51 = vpop.permute.xlu1 %1105  ;;  %v1101_v22 = vpop.permute.xlu0 %1100 }
 0x106   : > { %9929 = vmatprep.mubr.msk.bf16.mxu0 %vm11191_vm0, %v19240_v61  ;;  %v9827_v7 = vpop.f32.mrf.mxu0  ;;  %v12078_v38 = vpack.c.bf16 %v1353_v26, %v1352_v42  ;;  %v1356_v42 = vmul.f32 %v12044_v4, %v984_v33 }
 0x107   : > { %v12071_v45 = vpack.c.bf16 %v1359_v13, %v1358_v40  ;;  %v988_v0 = vmax.f32 %v778_v62, 0.0  ;;  %v1354_v13 = vmul.f32 %v12021_v46, %v982_v48 }
 0x108   : > { %v780_v19 = vpop.f32.mrf.mxu0  ;;  %19263 = vst [vmem:[#allocation5_spill] sm:$0xff] %v12078_v38  ;;  %v1992_v20 = vrot.slane %v12078_v38, 4 }
 0x109   : > { %8246 = vrot.lane.b32.xlu0 %v982_v48, %s11192_s9  ;;  %8248 = vrot.lane.b32.xlu1 %v983_v55, %s11192_s9  ;;  %19262 = vst [vmem:[#allocation4_spill] sm:$0xff] %v12071_v45  ;;  %v781_v37 = vadd.f32 %v12011_v31, %v780_v19  ;;  %v1360_v12 = vmul.f32 %v1101_v22, %v988_v0  ;;  %v1116_v4 = vpop.permute.xlu1 %1115 }
 0x10a   : > { %v9828_v30 = vpop.f32.mrf.mxu0  ;;  %v1993_v58 = vsel %vm1988_vm8, %v1990_v56, %v1992_v20  ;;  %v1357_v55 = vmul.f32 %v12037_v6, %v985_v21 }
 0x10b   : > { %v989_v27 = vmax.f32 %v781_v37, 0.0 }
 0x10c   : > { %9930 = vmatmul.mubr.msk.bf16.vlgmr.msra.gmra.mxu0 %vm2056_vm9, %v1991_v24  ;;  %v785_v52 = vpop.f32.mrf.mxu0  ;;  %v12105_v37 = vpack.c.bf16 %v1357_v55, %v1356_v42 }
 0x10d   : > { %8250 = vrot.lane.b32.xlu0 %v984_v33, %s11192_s9  ;;  %8252 = vrot.lane.b32.xlu1 %v985_v21, %s11192_s9  ;;  %v1361_v54 = vmul.f32 %v1106_v51, %v989_v27  ;;  %v786_v26 = vadd.f32 %v12011_v31, %v785_v52  ;;  %v1111_v33 = vpop.permute.xlu0 %1110 }
 0x10e   : > { %9933 = vmatprep.mubr.msk.bf16.mxu0 %vm11191_vm0, %v19240_v61  ;;  %v9831_v57 = vpop.f32.mrf.mxu0  ;;  %19266 = vst [vmem:[#allocation8_spill] sm:$0xff] %v12105_v37 }
 0x10f   : > { %v12090_v7 = vpack.c.bf16 %v1361_v54, %v1360_v12  ;;  %v990_v46 = vmax.f32 %v786_v26, 0.0 }
 0x110   : > { %v788_v40 = vpop.f32.mrf.mxu0 }
 0x111   : > { %8254 = vrot.lane.b32.xlu0 %v986_v47, %s11192_s9  ;;  %8256 = vrot.lane.b32.xlu1 %v987_v34, %s11192_s9  ;;  %19264 = vst [vmem:[#allocation6_spill] sm:$0xff] %v12090_v7  ;;  %v12095_v47 = vpack.c.bf16 %v1355_v41, %v1354_v13  ;;  %v789_v6 = vadd.f32 %v12011_v31, %v788_v40 }
 0x112   : > { %v9832_v62 = vpop.f32.mrf.mxu0  ;;  %v1362_v22 = vmul.f32 %v1111_v33, %v990_v46 }
 0x113   : > { %19265 = vst [vmem:[#allocation7_spill] sm:$0xff] %v12095_v47  ;;  %v1994_v19 = vrot.slane %v12095_v47, 4 }
 0x114   : > { %9934 = vmatmul.mubr.msk.bf16.gmra.mxu0 %vm2056_vm9, %v1993_v58  ;;  %v793_v34 = vpop.f32.mrf.mxu0 }
 0x115   : > { %8258 = vrot.lane.b32.xlu0 %v988_v0, %s11192_s9  ;;  %8260 = vrot.lane.b32.xlu1 %v989_v27, %s11192_s9  ;;  %v1995_v56 = vsel %vm1988_vm8, %v1992_v20, %v1994_v19  ;;  %v18888_v0 = vrot.slane %v12105_v37, 4  ;;  %v991_v27 = vmax.f32 %v789_v6, 0.0  ;;  %v794_v26 = vadd.f32 %v12011_v31, %v793_v34 }
 0x116   : > { %9937 = vmatprep.mubr.msk.bf16.mxu0 %vm11191_vm0, %v19240_v61  ;;  %v9835_v48 = vpop.f32.mrf.mxu0 }
 0x117   : > { %v12116_v51 = vsel %vm1988_vm8, %v1994_v19, %v18888_v0  ;;  %v1363_v41 = vmul.f32 %v1116_v4, %v991_v27  ;;  %v992_v58 = vmax.f32 %v794_v26, 0.0 }
 0x118   : > { %v796_v50 = vpop.f32.mrf.mxu0  ;;  %19267 = vst [vmem:[#allocation21_spill] sm:$0xff] %v12116_v51 }
 0x119   : > { %8262 = vrot.lane.b32.xlu0 %v990_v46, %s11192_s9  ;;  %8264 = vrot.lane.b32.xlu1 %v991_v27, %s11192_s9  ;;  %v12123_v12 = vpack.c.bf16 %v1363_v41, %v1362_v22  ;;  %v797_v42 = vadd.f32 %v12011_v31, %v796_v50  ;;  %v1121_v27 = vpop.permute.xlu0 %1120 }
 0x11a   : > { %v9836_v30 = vpop.f32.mrf.mxu0  ;;  %v1364_v34 = vmul.f32 %v1121_v27, %v992_v58 }
 0x11b   : > { %19268 = vst [vmem:[#allocation22_spill] sm:$0xff] %v12123_v12 }
 0x11c   : > { %9938 = vmatmul.mubr.msk.bf16.gmra.mxu0 %vm2056_vm9, %v1995_v56  ;;  %v801_v24 = vpop.f32.mrf.mxu0  ;;  %v993_v56 = vmax.f32 %v797_v42, 0.0 }
 0x11d   : > { %9941 = vmatprep.mubr.msk.bf16.mxu0 %vm11191_vm0, %v19240_v61  ;;  %8266 = vrot.lane.b32.xlu0 %v992_v58, %s11192_s9 }
 0x11e   : > { %v9839_v21 = vpop.f32.mrf.mxu0  ;;  %8268 = vrot.lane.b32.xlu1 %v993_v56, %s11192_s9 }
 0x11f   : > { %v1126_v21 = vpop.permute.xlu1 %1125 }
 0x120   : > { %v804_v52 = vpop.f32.mrf.mxu0 }
 0x122   : > { %v9840_v57 = vpop.f32.mrf.mxu0 }
 0x123   : > { %v1365_v57 = vmul.f32 %v1126_v21, %v993_v56  ;;  %v1136_v42 = vpop.permute.xlu1 %1135  ;;  %v805_v56 = vadd.f32 %v12011_v31, %v804_v52 }
 0x124   : > { %v809_v20 = vpop.f32.mrf.mxu0  ;;  %9942 = vmatmul.mubr.msk.bf16.gmra.mxu0 %vm2056_vm9, %v12116_v51 }
 0x125   : > { %9945 = vmatprep.mubr.msk.bf16.mxu0 %vm11191_vm0, %v19240_v61  ;;  %v12137_v33 = vpack.c.bf16 %v1365_v57, %v1364_v34  ;;  %v810_v51 = vadd.f32 %v12011_v31, %v809_v20 }
 0x126   : > { %v9843_v54 = vpop.f32.mrf.mxu0 }
 0x127   : > { %19269 = vst [vmem:[#allocation23_spill] sm:$0xff] %v12137_v33  ;;  %v802_v54 = vadd.f32 %v12011_v31, %v801_v24  ;;  %v995_v24 = vmax.f32 %v805_v56, 0.0  ;;  %v1146_v57 = vpop.permute.xlu1 %1145 }
 0x128   : > { %v812_v40 = vpop.f32.mrf.mxu0 }
 0x129   : > { %v994_v26 = vmax.f32 %v802_v54, 0.0  ;;  %v1367_v54 = vmul.f32 %v1136_v42, %v995_v24  ;;  %8272 = vrot.lane.b32.xlu1 %v995_v24, %s11192_s9 }
 0x12a   : > { %v9844_v13 = vpop.f32.mrf.mxu0 }
 0x12b   : > { %8270 = vrot.lane.b32.xlu0 %v994_v26, %s11192_s9 }
 0x12c   : > { %v12126_v62 = vpop.f32.mrf.mxu0 }
 0x12e   : > { %v9847_v46 = vpop.f32.mrf.mxu0 }
 0x12f   : > { %v1131_v46 = vpop.permute.xlu0 %1130 }
 0x130   : > { %v12129_v48 = vpop.f32.mrf.mxu0 }
 0x132   : > { %v9848_v55 = vpop.f32.mrf.mxu0 }
 0x133   : > { %v1141_v21 = vpop.permute.xlu0 %1140 }
 0x134   : > { %v12131_v19 = vpop.f32.mrf.mxu0 }
 0x136   : > { %v9851_v30 = vpop.f32.mrf.mxu0 }
 0x138   : > { %v12134_v6 = vpop.f32.mrf.mxu0 }
 0x13a   : > { %v9852_v4 = vpop.f32.mrf.mxu0 }
 0x13c   : > { %v12139_v22 = vpop.f32.mrf.mxu0 }
 0x13e   : > { %v9855_v41 = vpop.f32.mrf.mxu0 }
 0x13f   : > { %v1366_v41 = vmul.f32 %v1131_v46, %v994_v26  ;;  %v813_v26 = vadd.f32 %v12011_v31, %v812_v40 }
 0x140   : > { %v12142_v13 = vpop.f32.mrf.mxu0 }
 0x141   : > { %v12155_v0 = vpack.c.bf16 %v1367_v54, %v1366_v41  ;;  %v997_v24 = vmax.f32 %v813_v26, 0.0  ;;  %v12187_v26 = vadd.f32 %v12011_v31, %v12126_v62 }
 0x142   : > { %v9856_v50 = vpop.f32.mrf.mxu0 }
 0x143   : > { %v12153_v50 = vpop.permute.xlu0 %1320  ;;  %19271 = vst [vmem:[#allocation25_spill] sm:$0xff] %v12155_v0  ;;  %8276 = vrot.lane.b32.xlu1 %v997_v24, %s11192_s9  ;;  %v1369_v54 = vmul.f32 %v1146_v57, %v997_v24 }
 0x144   : > { %v12144_v55 = vpop.f32.mrf.mxu0  ;;  %19270 = vst [vmem:[#allocation24_spill] sm:$0xff] %v12153_v50 }
 0x146   : > { %v9859_v58 = vpop.f32.mrf.mxu0 }
 0x147   : > { %v12157_v58 = vpop.permute.xlu1 %1325  ;;  %v12160_v52 = vpop.permute.xlu0 %1330 }
 0x148   : > { %v12147_v30 = vpop.f32.mrf.mxu0  ;;  %19272 = vst [vmem:[#allocation26_spill] sm:$0xff] %v12157_v58  ;;  %19273 = vst [vmem:[#allocation27_spill] sm:$0xff] %v12160_v52 }
 0x14a   : > { %v9860_v27 = vpop.f32.mrf.mxu0 }
 0x14b   : > { %v996_v27 = vmax.f32 %v810_v51, 0.0  ;;  %v12164_v56 = vpop.permute.xlu1 %1335  ;;  %v12168_v42 = vpop.permute.xlu0 %1340 }
 0x14c   : > { %v12150_v34 = vpop.f32.mrf.mxu0  ;;  %19274 = vst [vmem:[#allocation28_spill] sm:$0xff] %v12164_v56  ;;  %19275 = vst [vmem:[#allocation29_spill] sm:$0xff] %v12168_v42 }
 0x14d   : > { %8274 = vrot.lane.b32.xlu0 %v996_v27, %s11192_s9  ;;  %v1368_v51 = vmul.f32 %v1141_v21, %v996_v27  ;;  %v18891_v21 = vmax.f32 %v12187_v26, 0.0 }
 0x14e   : > { %v9863_v4 = vpop.f32.mrf.mxu0 }
 0x14f   : > { %v12171_v4 = vpop.permute.xlu1 %1345  ;;  %v12173_v20 = vpop.permute.xlu0 %1576  ;;  %v12177_v56 = vpack.c.bf16 %v1369_v54, %v1368_v51  ;;  %v821_v54 = vadd.f32 %v12011_v31, %v12129_v48 }
 0x150   : > { %v12162_v23 = vpop.f32.mrf.mxu0  ;;  %19276 = vst [vmem:[#allocation30_spill] sm:$0xff] %v12171_v4  ;;  %19277 = vst [vmem:[#allocation31_spill] sm:$0xff] %v12173_v20  ;;  %v1998_v20 = vrot.slane %v12071_v45, 4 }
 0x151   : > { %19278 = vst [vmem:[#allocation32_spill] sm:$0xff] %v12177_v56  ;;  %8278 = vrot.lane.b32.xlu0 %v18891_v21, %s11192_s9 }
 0x152   : > { %v9864_v46 = vpop.f32.mrf.mxu0 }
 0x153   : > { %v12179_v58 = vpop.permute.xlu1 %1579  ;;  %v12181_v40 = vpop.permute.xlu0 %1582 }
 0x154   : > { %v12175_v41 = vpop.f32.mrf.mxu0  ;;  %19279 = vst [vmem:[#allocation33_spill] sm:$0xff] %v12179_v58  ;;  %19280 = vst [vmem:[#allocation34_spill] sm:$0xff] %v12181_v40 }
 0x156   : > { %v9867_v52 = vpop.f32.mrf.mxu0 }
 0x157   : > { %v12183_v46 = vpop.permute.xlu1 %1585  ;;  %v12189_v4 = vpop.permute.xlu0 %1588  ;;  %v19283_v52 = vrot.slane %v12105_v37, 4 }
 0x158   : > { %19281 = vst [vmem:[#allocation35_spill] sm:$0xff] %v12183_v46  ;;  %19282 = vst [vmem:[#allocation36_spill] sm:$0xff] %v12189_v4  ;;  %v12193_v57 = vpop.f32.mrf.mxu0  ;;  %v999_v4 = vmax.f32 %v821_v54, 0.0  ;;  %v826_v54 = vadd.f32 %v12011_v31, %v12131_v19 }
 0x159   : > { %v12198_v27 = vsel %vm1988_vm8, %v19283_v52, %v1998_v20 }
 0x15a   : > { %19284 = vst [vmem:[#allocation37_spill] sm:$0xff] %v12198_v27  ;;  %9946 = vmatmul.mubr.msk.bf16.gmra.mxu0 %vm2056_vm9, %v12198_v27  ;;  %v9868_v24 = vpop.f32.mrf.mxu0  ;;  %8280 = vrot.lane.b32.xlu1 %v999_v4, %s11192_s9 }
 0x15b   : > { %v12202_v51 = vpop.permute.xlu1 %1591  ;;  %9949 = vmatprep.mubr.msk.bf16.mxu0 %vm11191_vm0, %v19240_v61  ;;  %v12209_v62 = vpop.permute.xlu0 %1594  ;;  %v11099_v24 = vld [vmem:[%s18872_s4 + $0x28] sm:$0xff]  }
 0x15c   : > { %19285 = vst [vmem:[#allocation38_spill] sm:$0xff] %v12202_v51  ;;  %19286 = vst [vmem:[#allocation39_spill] sm:$0xff] %v12209_v62  ;;  %v12215_v46 = vpop.f32.mrf.mxu0  ;;  %10150 = vmatpush3.bf16.msra.mxu0 %v11099_v24 }
 0x15d   : > { %10151 = vmatprep.subr.bf16.mxu0 %v19240_v61 }
 0x15e   : > { %v9871_v21 = vpop.f32.mrf.mxu0 }
 0x15f   : > { %v12213_v52 = vpop.permute.xlu1 %1597  ;;  %v12220_v51 = vpop.permute.xlu0 %1600  ;;  %v11100_v21 = vld [vmem:[%s18872_s4 + $0x20] sm:$0xff]  }
 0x160   : > { %19287 = vst [vmem:[#allocation40_spill] sm:$0xff] %v12213_v52  ;;  %19288 = vst [vmem:[#allocation41_spill] sm:$0xff] %v12220_v51  ;;  %v2000_v52 = vrot.slane %v12090_v7, 4  ;;  %v12231_v40 = vpop.f32.mrf.mxu0  ;;  %v1000_v51 = vmax.f32 %v826_v54, 0.0  ;;  %10152 = vmatpush3.bf16.msra.mxu0 %v11100_v21 }
 0x161   : > { %10373 = vmatprep.subr.bf16.mxu0 %v19240_v61 }
 0x162   : > { %v12239_v24 = vsel %vm1988_vm8, %v1998_v20, %v2000_v52  ;;  %8282 = vrot.lane.b32.xlu0 %v1000_v51, %s11192_s9  ;;  %v829_v20 = vadd.f32 %v12011_v31, %v12134_v6 }
 0x163   : > { %v12224_v62 = vpop.permute.xlu1 %1603  ;;  %v12226_v48 = vpop.permute.xlu0 %1606  ;;  %19292 = vst [vmem:[#allocation45_spill] sm:$0xff] %v12239_v24  ;;  %9950 = vmatmul.mubr.msk.bf16.gmra.mxu0 %vm2056_vm9, %v12239_v24 }
 0x164   : > { %19289 = vst [vmem:[#allocation42_spill] sm:$0xff] %v12224_v62  ;;  %19290 = vst [vmem:[#allocation43_spill] sm:$0xff] %v12226_v48  ;;  %v9872_v62 = vpop.f32.mrf.mxu0  ;;  %9953 = vmatprep.mubr.msk.bf16.mxu0 %vm11191_vm0, %v19240_v61 }
 0x165   : > { %v1001_v62 = vmax.f32 %v829_v20, 0.0 }
 0x167   : > { %v12233_v58 = vpop.permute.xlu1 %1609  ;;  %v12241_v27 = vpop.permute.xlu0 %1612  ;;  %8284 = vrot.lane.b32.xlu1 %v1001_v62, %s11192_s9  ;;  %v1373_v3 = vmul.f32 %v11735_v9, %v1001_v62  ;;  %v845_v62 = vadd.f32 %v12011_v31, %v12147_v30  ;;  %v12361_v30 = vadd.f32 %v12011_v31, %v12150_v34 }
 0x168   : > { %19291 = vst [vmem:[#allocation44_spill] sm:$0xff] %v12233_v58  ;;  %19293 = vst [vmem:[#allocation46_spill] sm:$0xff] %v12241_v27  ;;  %v12255_v27 = vpop.f32.mrf.mxu0 }
 0x16a   : > { %v9875_v48 = vpop.f32.mrf.mxu0 }
 0x16b   : > { %v12249_v19 = vpop.permute.xlu1 %1615  ;;  %v12251_v54 = vpop.permute.xlu0 %1618 }
 0x16c   : > { %19294 = vst [vmem:[#allocation47_spill] sm:$0xff] %v12249_v19  ;;  %19295 = vst [vmem:[#allocation48_spill] sm:$0xff] %v12251_v54  ;;  %v834_v54 = vadd.f32 %v12011_v31, %v12139_v22  ;;  %v2002_v19 = vrot.slane %v12123_v12, 4  ;;  %v12269_v20 = vpop.f32.mrf.mxu0 }
 0x16e   : > { %v1002_v6 = vmax.f32 %v834_v54, 0.0  ;;  %v12272_v50 = vsel %vm1988_vm8, %v2000_v52, %v2002_v19  ;;  %v9876_v48 = vpop.f32.mrf.mxu0  ;;  %v837_v52 = vadd.f32 %v12011_v31, %v12142_v13  ;;  %v1372_v13 = vmul.f32 %v11723_v59, %v1000_v51 }
 0x16f   : > { %v12257_v58 = vpop.permute.xlu1 %1621  ;;  %v12260_v24 = vpop.permute.xlu0 %1624  ;;  %19300 = vst [vmem:[#allocation53_spill] sm:$0xff] %v12272_v50  ;;  %9954 = vmatmul.mubr.msk.bf16.gmra.mxu0 %vm2056_vm9, %v12272_v50  ;;  %v1371_v48 = vmul.f32 %v11737_v10, %v999_v4  ;;  %v2004_v10 = vrot.slane %v12137_v33, 4 }
 0x170   : > { %19296 = vst [vmem:[#allocation49_spill] sm:$0xff] %v12257_v58  ;;  %19297 = vst [vmem:[#allocation50_spill] sm:$0xff] %v12260_v24  ;;  %8286 = vrot.lane.b32.xlu0 %v1002_v6, %s11192_s9  ;;  %9957 = vmatprep.mubr.msk.bf16.mxu0 %vm11191_vm0, %v19240_v61  ;;  %v12285_v54 = vpop.f32.mrf.mxu0  ;;  %v1003_v24 = vmax.f32 %v837_v52, 0.0 }
 0x172   : > { %8288 = vrot.lane.b32.xlu1 %v1003_v24, %s11192_s9 }
 0x173   : > { %v12262_v21 = vpop.permute.xlu1 %1627  ;;  %v12264_v42 = vpop.permute.xlu0 %1630 }
 0x174   : > { %19298 = vst [vmem:[#allocation51_spill] sm:$0xff] %v12262_v21  ;;  %19299 = vst [vmem:[#allocation52_spill] sm:$0xff] %v12264_v42 }
 0x177   : > { %v12274_v58 = vpop.permute.xlu1 %1633  ;;  %v12281_v22 = vpop.permute.xlu0 %1636 }
 0x178   : > { %19301 = vst [vmem:[#allocation54_spill] sm:$0xff] %v12274_v58  ;;  %19302 = vst [vmem:[#allocation55_spill] sm:$0xff] %v12281_v22  ;;  %v9879_v58 = vpop.f32.mrf.mxu0  ;;  %v19306_v22 = vmax.f32 %v12187_v26, 0.0  ;;  %v12316_v26 = vsel %vm1988_vm8, %v2002_v19, %v2004_v10 }
 0x179   : > { %v12304_v58 = vpack.c.bf16 %v1373_v3, %v1372_v13  ;;  %19312 = vst [vmem:[#allocation64_spill] sm:$0xff] %v12316_v26  ;;  %9958 = vmatmul.mubr.msk.bf16.gmra.mxu0 %vm2056_vm9, %v12316_v26  ;;  %v1005_v13 = vmax.f32 %v845_v62, 0.0  ;;  %v2006_v62 = vrot.slane %v12155_v0, 4  ;;  %v11115_v26 = vld [vmem:[%s11299_s24 + $0xb0] sm:$0xf] }
 0x17a   : > { %v12311_v9 = vpop.f32.mrf.mxu0  ;;  %9961 = vmatprep.mubr.msk.bf16.mxu0 %vm11191_vm0, %v19240_v61 }
 0x17b   : > { %v12283_v42 = vpop.permute.xlu1 %1639  ;;  %v12289_v21 = vpop.permute.xlu0 %1642  ;;  %19309 = vst [vmem:[#allocation61_spill] sm:$0xff] %v12304_v58  ;;  %v2012_v3 = vrot.slane %v12304_v58, 4  ;;  %8292 = vrot.lane.b32.xlu1 %v1005_v13, %s11192_s9 }
 0x17c   : > { %19303 = vst [vmem:[#allocation56_spill] sm:$0xff] %v12283_v42  ;;  %19304 = vst [vmem:[#allocation57_spill] sm:$0xff] %v12289_v21  ;;  %v1370_v42 = vmul.f32 %v11725_v53, %v19306_v22 }
 0x17e   : > { %v12302_v17 = vpack.c.bf16 %v1371_v48, %v1370_v42  ;;  %v11098_v42 = vld [vmem:[%s18872_s4 + $0x8] sm:$0xff]  }
 0x17f   : > { %v12292_v50 = vpop.permute.xlu1 %1645  ;;  %v12299_v12 = vpop.permute.xlu0 %1648 }
 0x180   : > { %19305 = vst [vmem:[#allocation58_spill] sm:$0xff] %v12292_v50  ;;  %19307 = vst [vmem:[#allocation59_spill] sm:$0xff] %v12299_v12  ;;  %v842_v50 = vadd.f32 %v12011_v31, %v12144_v55  ;;  %v18913_v59 = vrot.slane %v12302_v17, 4  ;;  %v9880_v55 = vpop.f32.mrf.mxu0  ;;  %v2008_v12 = vrot.slane %v12177_v56, 4 }
 0x181   : > { %19308 = vst [vmem:[#allocation60_spill] sm:$0xff] %v12302_v17 }
 0x182   : > { %v1004_v53 = vmax.f32 %v842_v50, 0.0  ;;  %v12328_v51 = vsel %vm1988_vm8, %v18913_v59, %v2012_v3  ;;  %v12346_v48 = vpop.f32.mrf.mxu0 }
 0x183   : > { %v12306_v52 = vpop.permute.xlu1 %1651  ;;  %v12313_v4 = vpop.permute.xlu0 %1654  ;;  %19313 = vst [vmem:[#allocation65_spill] sm:$0xff] %v12328_v51  ;;  %9974 = vmatmul.mubr.msk.bf16.vlgmr.msra.gmra.mxu1 %vm2056_vm9, %v12328_v51 }
 0x184   : > { %19310 = vst [vmem:[#allocation62_spill] sm:$0xff] %v12306_v52  ;;  %19311 = vst [vmem:[#allocation63_spill] sm:$0xff] %v12313_v4  ;;  %8290 = vrot.lane.b32.xlu0 %v1004_v53, %s11192_s9  ;;  %10038 = vmatpush3.bf16.msra.mxu1 %v11098_v42  ;;  %v9883_v59 = vpop.f32.mrf.mxu0  ;;  %v1375_v42 = vmul.f32 %v11747_v14, %v1003_v24  ;;  %v1006_v14 = vmax.f32 %v12361_v30, 0.0 }
 0x185   : > { %9977 = vmatprep.mubr.msk.bf16.mxu1 %vm11191_vm0, %v19240_v61  ;;  %10039 = vmatprep.subr.bf16.mxu1 %v19240_v61 }
 0x186   : > { %v12380_v34 = vpop.f32.mrf.mxu0 }
 0x187   : > { %v12335_v50 = vpop.permute.xlu1 %1657  ;;  %v12340_v19 = vpop.permute.xlu0 %1660 }
 0x188   : > { %19314 = vst [vmem:[#allocation66_spill] sm:$0xff] %v12335_v50  ;;  %19315 = vst [vmem:[#allocation67_spill] sm:$0xff] %v12340_v19  ;;  %v1374_v50 = vmul.f32 %v11749_v15, %v1002_v6  ;;  %v12369_v15 = vsel %vm1988_vm8, %v2004_v10, %v2006_v62  ;;  %8294 = vrot.lane.b32.xlu0 %v1006_v14, %s11192_s9  ;;  %v9884_v10 = vpop.f32.mrf.mxu0 }
 0x189   : > { %19322 = vst [vmem:[#allocation74_spill] sm:$0xff] %v12369_v15  ;;  %9962 = vmatmul.mubr.msk.bf16.gmra.mxu0 %vm2056_vm9, %v12369_v15 }
 0x18a   : > { %v12355_v19 = vpack.c.bf16 %v1375_v42, %v1374_v50  ;;  %9965 = vmatprep.mubr.msk.bf16.mxu0 %vm11191_vm0, %v19240_v61  ;;  %v853_v42 = vadd.f32 %v12011_v31, %v12162_v23  ;;  %v1376_v23 = vmul.f32 %v11763_v2, %v1004_v53 }
 0x18b   : > { %v12344_v22 = vpop.permute.xlu1 %1663  ;;  %v12348_v55 = vpop.permute.xlu0 %1666 }
 0x18c   : > { %19316 = vst [vmem:[#allocation68_spill] sm:$0xff] %v12344_v22  ;;  %19317 = vst [vmem:[#allocation69_spill] sm:$0xff] %v12348_v55  ;;  %v2014_v59 = vrot.slane %v12355_v19, 4  ;;  %v1007_v30 = vmax.f32 %v853_v42, 0.0  ;;  %v1377_v22 = vmul.f32 %v11761_v25, %v1005_v13  ;;  %v12418_v25 = vadd.f32 %v12011_v31, %v12175_v41 }
 0x18d   : > { %19319 = vst [vmem:[#allocation71_spill] sm:$0xff] %v12355_v19 }
 0x18e   : > { %v12372_v24 = vsel %vm1988_vm8, %v2012_v3, %v2014_v59  ;;  %8296 = vrot.lane.b32.xlu1 %v1007_v30, %s11192_s9  ;;  %v18930_v2 = vmax.f32 %v12418_v25, 0.0 }
 0x18f   : > { %v12353_v4 = vpop.permute.xlu1 %1669  ;;  %v12357_v52 = vpop.permute.xlu0 %1672  ;;  %19323 = vst [vmem:[#allocation75_spill] sm:$0xff] %v12372_v24  ;;  %9978 = vmatmul.mubr.msk.bf16.gmra.mxu1 %vm2056_vm9, %v12372_v24  ;;  %v1379_v24 = vmul.f32 %v11774_v18, %v1007_v30  ;;  %v12477_v18 = vadd.f32 %v12011_v31, %v12215_v46 }
 0x190   : > { %19318 = vst [vmem:[#allocation70_spill] sm:$0xff] %v12353_v4  ;;  %19320 = vst [vmem:[#allocation72_spill] sm:$0xff] %v12357_v52  ;;  %9981 = vmatprep.mubr.msk.bf16.mxu1 %vm11191_vm0, %v19240_v61  ;;  %8298 = vrot.lane.b32.xlu0 %v18930_v2, %s11192_s9 }
 0x193   : > { %v12365_v55 = vpop.permute.xlu1 %1675  ;;  %v12374_v6 = vpop.permute.xlu0 %1678 }
 0x194   : > { %19321 = vst [vmem:[#allocation73_spill] sm:$0xff] %v12365_v55  ;;  %19324 = vst [vmem:[#allocation76_spill] sm:$0xff] %v12374_v6  ;;  %v12393_v6 = vpop.f32.mrf.mxu0 }
 0x196   : > { %v9887_v55 = vpop.f32.mrf.mxu0 }
 0x197   : > { %v12387_v3 = vpop.permute.xlu1 %1681  ;;  %v12389_v50 = vpop.permute.xlu0 %1684 }
 0x198   : > { %19325 = vst [vmem:[#allocation77_spill] sm:$0xff] %v12387_v3  ;;  %19326 = vst [vmem:[#allocation78_spill] sm:$0xff] %v12389_v50  ;;  %v12401_v10 = vpop.f32.mrf.mxu0  ;;  %v11101_v50 = vld [vmem:[%s18872_s4] sm:$0xff]  }
 0x199   : > { %10040 = vmatpush3.bf16.msra.mxu1 %v11101_v50 }
 0x19a   : > { %v9888_v42 = vpop.f32.mrf.mxu0  ;;  %10261 = vmatprep.subr.bf16.mxu1 %v19240_v61 }
 0x19b   : > { %v12395_v52 = vpop.permute.xlu1 %1687  ;;  %v12398_v4 = vpop.permute.xlu0 %1690 }
 0x19c   : > { %19327 = vst [vmem:[#allocation79_spill] sm:$0xff] %v12395_v52  ;;  %19328 = vst [vmem:[#allocation80_spill] sm:$0xff] %v12398_v4  ;;  %v12410_v52 = vpack.c.bf16 %v1377_v22, %v1376_v23  ;;  %v12412_v55 = vpop.f32.mrf.mxu0  ;;  %v12428_v22 = vsel %vm1988_vm8, %v2006_v62, %v2008_v12 }
 0x19d   : > { %19333 = vst [vmem:[#allocation85_spill] sm:$0xff] %v12428_v22  ;;  %9966 = vmatmul.mubr.msk.bf16.gmra.mxu0 %vm2056_vm9, %v12428_v22 }
 0x19e   : > { %19330 = vst [vmem:[#allocation82_spill] sm:$0xff] %v12410_v52  ;;  %v9891_v13 = vpop.f32.mrf.mxu0  ;;  %v2016_v53 = vrot.slane %v12410_v52, 4  ;;  %9969 = vmatprep.mubr.msk.bf16.mxu0 %vm11191_vm0, %v19240_v61  ;;  %v11118_v52 = vld [vmem:[%s11299_s24 + $0xc0] sm:$0xf] }
 0x19f   : > { %v12407_v3 = vpop.permute.xlu1 %1693  ;;  %v12414_v4 = vpop.permute.xlu0 %1696 }
 0x1a0   : > { %19329 = vst [vmem:[#allocation81_spill] sm:$0xff] %v12407_v3  ;;  %19331 = vst [vmem:[#allocation83_spill] sm:$0xff] %v12414_v4  ;;  %v12423_v50 = vpop.f32.mrf.mxu0  ;;  %v12433_v41 = vsel %vm1988_vm8, %v2014_v59, %v2016_v53 }
 0x1a1   : > { %19334 = vst [vmem:[#allocation86_spill] sm:$0xff] %v12433_v41  ;;  %9982 = vmatmul.mubr.msk.bf16.gmra.mxu1 %vm2056_vm9, %v12433_v41 }
 0x1a2   : > { %v9892_v23 = vpop.f32.mrf.mxu0  ;;  %9985 = vmatprep.mubr.msk.bf16.mxu1 %vm11191_vm0, %v19240_v61 }
 0x1a3   : > { %v12425_v42 = vpop.permute.xlu1 %1699  ;;  %v12440_v13 = vpop.permute.xlu0 %1702  ;;  %v12452_v23 = vadd.f32 %v12011_v31, %v12193_v57  ;;  %v1378_v57 = vmul.f32 %v11778_v63, %v1006_v14  ;;  %v19340_v63 = vrot.slane %v12302_v17, 4 }
 0x1a4   : > { %19332 = vst [vmem:[#allocation84_spill] sm:$0xff] %v12425_v42  ;;  %19335 = vst [vmem:[#allocation87_spill] sm:$0xff] %v12440_v13  ;;  %v12446_v62 = vpop.f32.mrf.mxu0 }
 0x1a5   : > { %v18942_v3 = vmax.f32 %v12452_v23, 0.0  ;;  %v12466_v15 = vpack.c.bf16 %v1379_v24, %v1378_v57  ;;  %v18947_v24 = vmax.f32 %v12477_v18, 0.0  ;;  %v19351_v17 = vmax.f32 %v12452_v23, 0.0 }
 0x1a6   : > { %v9895_v59 = vpop.f32.mrf.mxu0 }
 0x1a7   : > { %v12448_v4 = vpop.permute.xlu1 %1705  ;;  %v1709_v42 = vpop.permute.xlu0 %1708  ;;  %8300 = vrot.lane.b32.xlu1 %v18942_v3, %s11192_s9  ;;  %19337 = vst [vmem:[#allocation89_spill] sm:$0xff] %v12466_v15  ;;  %8302 = vrot.lane.b32.xlu0 %v18947_v24, %s11192_s9 }
 0x1a8   : > { %19336 = vst [vmem:[#allocation88_spill] sm:$0xff] %v12448_v4  ;;  %v12454_v2 = vpop.f32.mrf.mxu0  ;;  %vm1805_vm10 = vcmp.eq.s32.totalorder %v1709_v42, 1 }
 0x1a9   : > { %vm1871_vm11 = vmpackc.low %vm1805_vm10, %vm1805_vm10  ;;  %vm4201_vm10 = vcmask 1046532  }
 0x1aa   : > { %v9896_v21 = vpop.f32.mrf.mxu0 }
 0x1ab   : > { %v1712_v59 = vpop.permute.xlu1 %1711  ;;  %v12469_v21 = vsel %vm1871_vm11, %v11115_v26, -1.00492276e+30  ;;  %v18945_v26 = vrot.slane %v12466_v15, 4  ;;  %v12488_v30 = vpop.permute.xlu0 %1714 }
 0x1ac   : > { %v12460_v41 = vpop.f32.mrf.mxu0  ;;  %19338 = vst [vmem:[#allocation90_spill] sm:$0xff] %v12469_v21  ;;  %v3414_v3 = vshll.u32 %v12469_v21, 16  ;;  %v3418_v19 = vshrl.u32 %v12469_v21, 16  ;;  %vm1806_vm12 = vcmp.eq.s32.totalorder %v1712_v59, 1  ;;  %19342 = vst [vmem:[#allocation93_spill] sm:$0xff] %v12488_v30 }
 0x1ad   : > { %vm1872_vm15 = vmpackc.low %vm1806_vm12, %vm1806_vm12 }
 0x1ae   : > { %v9899_v51 = vpop.f32.mrf.mxu0  ;;  %v12499_v59 = vrot.slane %v3414_v3, 5  ;;  %vm12583_vm12 = vmor %vm4200_vm7, %vm4201_vm10 }
 0x1af   : > { %v1718_v13 = vpop.permute.xlu1 %1717  ;;  %v12482_v51 = vsel %vm1988_vm8, %v2008_v12, %v19340_v63  ;;  %v12495_v12 = vsel %vm1988_vm8, %v2016_v53, %v18945_v26  ;;  %v11116_v53 = vld [vmem:[%s11299_s24 + $0xbc] sm:$0xf]  ;;  %v11117_v63 = vld [vmem:[%s11299_s24 + $0xb4] sm:$0xf]  ;;  %v1721_v26 = vpop.permute.xlu0 %1720 }
 0x1b0   : > { %v12464_v22 = vpop.f32.mrf.mxu0  ;;  %19341 = vst [vmem:[#allocation92_spill] sm:$0xff] %v12482_v51  ;;  %9970 = vmatmul.mubr.msk.bf16.gmra.mxu0 %vm2056_vm9, %v12482_v51  ;;  %vm1808_vm13 = vcmp.eq.s32.totalorder %v1718_v13, 1  ;;  %19343 = vst [vmem:[#allocation94_spill] sm:$0xff] %v12495_v12  ;;  %v3420_v13 = vrot.slane %v3418_v19, 4  ;;  %9986 = vmatmul.mubr.msk.bf16.gmra.mxu1 %vm2056_vm9, %v12495_v12  ;;  %v12518_v12 = vshrl.u32 %v12057_v29, 16  ;;  %vm1809_vm4 = vcmp.eq.s32.totalorder %v1721_v26, 1 }
 0x1b1   : > { %10153 = vmatprep.mubr.msk.bf16.mxu0 %vm11191_vm0, %v19240_v61  ;;  %vm1874_vm14 = vmpackc.low %vm1808_vm13, %vm1808_vm13  ;;  %19345 = vst [vmem:[#allocation96_spill] sm:$0xff] %v12499_v59  ;;  %9989 = vmatprep.mubr.msk.bf16.mxu1 %vm11191_vm0, %v19240_v61 }
 0x1b2   : > { %v9900_v42 = vpop.f32.mrf.mxu0  ;;  %v3421_v19 = vor.u32 %v3420_v13, %v12499_v59  ;;  %19349 = vst [vmem:[#allocation100_spill] sm:$0xff] %v12518_v12  ;;  %vm1875_vm5 = vmpackc.low %vm1809_vm4, %vm1809_vm4 }
 0x1b3   : > { %v12509_v42 = vsel %vm1874_vm14, %v11116_v53, -1.00492276e+30  ;;  %v1724_v0 = vpop.permute.xlu1 %1723 }
 0x1b4   : > { %v12471_v4 = vpop.f32.mrf.mxu0  ;;  %19346 = vst [vmem:[#allocation97_spill] sm:$0xff] %v12509_v42  ;;  %v3444_v24 = vshll.u32 %v12509_v42, 16  ;;  %v3448_v51 = vshrl.u32 %v12509_v42, 16  ;;  %v3422_v58 = vrot.slane %v3421_v19, 4  ;;  %vm1810_vm11 = vcmp.eq.s32.totalorder %v1724_v0, 1  ;;  %v1727_v0 = vpop.permute.xlu0 %1726 }
 0x1b5   : > { %19339 = vst [vmem:[#allocation91_spill] sm:$0xff] %v12471_v4  ;;  %vm1876_vm13 = vmpackc.low %vm1810_vm11, %vm1810_vm11  ;;  %vm1811_vm3 = vcmp.eq.s32.totalorder %v1727_v0, 1 }
 0x1b6   : > { %v9903_v14 = vpop.f32.mrf.mxu0  ;;  %v12537_v56 = vrot.slane %v3444_v24, 5  ;;  %v3450_v26 = vrot.slane %v3448_v51, 4  ;;  %v19362_v24 = vshrl.u32 %v12063_v43, 16  ;;  %vm1877_vm4 = vmpackc.low %vm1811_vm3, %vm1811_vm3 }
 0x1b7   : > { %v12512_v14 = vsel %vm1872_vm15, %v11117_v63, -1.00492276e+30  ;;  %v12526_v63 = vadd.f32 %v12011_v31, %v12231_v40  ;;  %v1381_v40 = vmul.f32 %v11787_v36, %v19351_v17  ;;  %v19357_v36 = vmov 0 }
 0x1b8   : > { %v12497_v46 = vpop.f32.mrf.mxu0  ;;  %19347 = vst [vmem:[#allocation98_spill] sm:$0xff] %v12512_v14  ;;  %v3424_v53 = vshll.u32 %v12512_v14, 16  ;;  %19352 = vst [vmem:[#allocation102_spill] sm:$0xff] %v12537_v56  ;;  %v19358_v36 = vsel %vm12552_vm6, 4294967295, %v19357_v36  ;;  %v19360_v17 = vmax.f32 %v12418_v25, 0.0 }
 0x1b9   : > { %19344 = vst [vmem:[#allocation95_spill] sm:$0xff] %v12497_v46  ;;  %v19356_v23 = vmax.f32 %v12526_v63, 0.0  ;;  %19359 = vst [vmem:[#allocation105_spill] sm:$0xff] %v19358_v36  ;;  %v19383_v46 = vmax.f32 %v12526_v63, 0.0 }
 0x1ba   : > { %v9904_v57 = vpop.f32.mrf.mxu0 }
 0x1bb   : > { %v3641_v57 = vrot.slane %v12518_v12, 4  ;;  %8304 = vrot.lane.b32.xlu1 %v19356_v23, %s11192_s9 }
 0x1bc   : > { %v12514_v3 = vpop.f32.mrf.mxu0 }
 0x1bd   : > { %19348 = vst [vmem:[#allocation99_spill] sm:$0xff] %v12514_v3  ;;  %v12541_v3 = vrot.slane %v3424_v53, 5  ;;  %v19363_v53 = vshll.u32 %v12063_v43, 16  ;;  %v1383_v43 = vmul.f32 %v11799_v60, %v19383_v46 }
 0x1be   : > { %v9907_v30 = vpop.f32.mrf.mxu0 }
 0x1bf   : > { %19354 = vst [vmem:[#allocation103_spill] sm:$0xff] %v12541_v3  ;;  %v12545_v30 = vsel %vm1875_vm5, %v11118_v52, -1.00492276e+30  ;;  %v3638_v52 = vrot.slane %v19362_v24, 4  ;;  %v12568_v23 = vsel %vm12552_vm6, %v3422_v58, %v12541_v3  ;;  %v19366_v24 = vrot.slane %v12469_v21, 5  ;;  %v1730_v58 = vpop.permute.xlu1 %1729 }
 0x1c0   : > { %v12528_v13 = vpop.f32.mrf.mxu0  ;;  %19355 = vst [vmem:[#allocation104_spill] sm:$0xff] %v12545_v30  ;;  %19364 = vst [vmem:[#allocation107_spill] sm:$0xff] %v12568_v23  ;;  %v3454_v25 = vshll.u32 %v12545_v30, 16  ;;  %vm1812_vm14 = vcmp.eq.s32.totalorder %v1730_v58, 1 }
 0x1c1   : > { %19350 = vst [vmem:[#allocation101_spill] sm:$0xff] %v12528_v13  ;;  %v19353_v13 = vshll.u32 %v12057_v29, 16  ;;  %v3451_v29 = vor.u32 %v3450_v26, %v12537_v56  ;;  %v4333_v12 = vrot.slane %v19366_v24, 4  ;;  %v18968_v26 = vrot.slane %v12512_v14, 5  ;;  %vm1878_vm15 = vmpackc.low %vm1812_vm14, %vm1812_vm14 }
 0x1c2   : > { %v9908_v33 = vpop.f32.mrf.mxu0 }
 0x1c3   : > { %v3642_v59 = vrot.slane %v19353_v13, 5  ;;  %v1380_v33 = vmul.f32 %v11793_v49, %v19360_v17  ;;  %v3639_v13 = vrot.slane %v19363_v53, 5  ;;  %v3622_v53 = vmax.bf16 %v12568_v23, %v12469_v21 }
 0x1c4   : > { %v12559_v51 = vpop.f32.mrf.mxu0 }
 0x1c5   : > { %19361 = vst [vmem:[#allocation106_spill] sm:$0xff] %v12559_v51  ;;  %v12570_v19 = vpack.c.bf16 %v1381_v40, %v1380_v33  ;;  %v12574_v17 = vor.u32 %v3642_v59, %v3641_v57  ;;  %v3640_v40 = vor.u32 %v3639_v13, %v3638_v52  ;;  %v19368_v33 = vmov 0 }
 0x1c6   : > { %v9911_v49 = vpop.f32.mrf.mxu0  ;;  %v19369_v33 = vsel %vm12583_vm12, 4294967295, %v19368_v33  ;;  %v3452_v59 = vrot.slane %v3451_v29, 4  ;;  %v12587_v57 = vrot.slane %v3454_v25, 5  ;;  %v12598_v52 = vsel %vm12583_vm12, %v4333_v12, %v18968_v26  ;;  %v11120_v26 = vld [vmem:[%s11299_s24 + $0xcc] sm:$0xf] }
 0x1c7   : > { %19365 = vst [vmem:[#allocation108_spill] sm:$0xff] %v12570_v19  ;;  %19370 = vst [vmem:[#allocation110_spill] sm:$0xff] %v19369_v33  ;;  %v12591_v49 = vadd.f32 %v12011_v31, %v12255_v27  ;;  %v18969_v24 = vrot.slane %v12570_v19, 4  ;;  %v3644_v29 = vsel %vm2981_vm2, %v3640_v40, %v12574_v17  ;;  %v4465_v13 = vmax.bf16 %v12598_v52, %v3622_v53  ;;  %v11119_v53 = vld [vmem:[%s11299_s24 + $0xc4] sm:$0xf] }
 0x1c8   : > { %v12580_v3 = vpop.f32.mrf.mxu0  ;;  %19371 = vst [vmem:[#allocation111_spill] sm:$0xff] %v12598_v52  ;;  %v19372_v27 = vrot.slane %v12466_v15, 4  ;;  %10154 = vmatmul.mubr.msk.bf16.vlgmr.msra.gmra.mxu0 %vm2056_vm9, %v3644_v29  ;;  %v12620_v58 = vsel %vm1876_vm13, %v11119_v53, -1.00492276e+30  ;;  %v12625_v40 = vsel %vm12552_vm6, %v3452_v59, %v12587_v57  ;;  %v3458_v29 = vshrl.u32 %v12545_v30, 16 }
 0x1c9   : > { %19367 = vst [vmem:[#allocation109_spill] sm:$0xff] %v12580_v3  ;;  %v18972_v31 = vmax.f32 %v12591_v49, 0.0  ;;  %10157 = vmatprep.mubr.msk.bf16.mxu0 %vm11191_vm0, %v19240_v61  ;;  %19375 = vst [vmem:[#allocation114_spill] sm:$0xff] %v12620_v58  ;;  %v5009_v53 = vmax.bf16 %v4465_v13, %v12509_v42  ;;  %v11121_v59 = vld [vmem:[%s11299_s24 + $0xc8] sm:$0xf]  ;;  %v3464_v21 = vshll.u32 %v12620_v58, 16 }
 0x1ca   : > { %v9912_v23 = vpop.f32.mrf.mxu0  ;;  %19376 = vst [vmem:[#allocation115_spill] sm:$0xff] %v12625_v40  ;;  %v12639_v25 = vsel %vm1877_vm4, %v11121_v59, -1.00492276e+30  ;;  %v3460_v14 = vrot.slane %v3458_v29, 4 }
 0x1cb   : > { %v12609_v23 = vsel %vm1988_vm8, %v19372_v27, %v18969_v24  ;;  %8306 = vrot.lane.b32.xlu0 %v18972_v31, %s11192_s9  ;;  %v12636_v24 = vsel %vm1878_vm15, %v11120_v26, -1.00492276e+30  ;;  %v19379_v31 = vrot.slane %v12509_v42, 5  ;;  %v3468_v27 = vshrl.u32 %v12620_v58, 16 }
 0x1cc   : > { %19373 = vst [vmem:[#allocation112_spill] sm:$0xff] %v12609_v23  ;;  %v12612_v12 = vpop.f32.mrf.mxu0  ;;  %9990 = vmatmul.mubr.msk.bf16.gmra.mxu1 %vm2056_vm9, %v12609_v23  ;;  %19377 = vst [vmem:[#allocation116_spill] sm:$0xff] %v12636_v24  ;;  %v3474_v13 = vshll.u32 %v12639_v25, 16  ;;  %v3478_v26 = vshrl.u32 %v12639_v25, 16  ;;  %v18985_v56 = vrot.slane %v12639_v25, 5  ;;  %v3484_v15 = vshll.u32 %v12636_v24, 16 }
 0x1cd   : > { %19374 = vst [vmem:[#allocation113_spill] sm:$0xff] %v12612_v12  ;;  %9993 = vmatprep.mubr.msk.bf16.mxu1 %vm11191_vm0, %v19240_v61  ;;  %v4342_v23 = vrot.slane %v19379_v31, 4  ;;  %v19380_v31 = vrot.slane %v12545_v30, 5  ;;  %v5473_v51 = vmax.bf16 %v5009_v53, %v12625_v40 }
 0x1ce   : > { %v9915_v0 = vpop.f32.mrf.mxu0  ;;  %v3480_v12 = vrot.slane %v3478_v26, 4  ;;  %v4351_v3 = vrot.slane %v18985_v56, 4  ;;  %v3466_v26 = vrot.slane %v3464_v21, 5  ;;  %v3461_v56 = vor.u32 %v3460_v14, %v12587_v57 }
 0x1cf   : > { %v3625_v0 = vmax.bf16 %v12625_v40, %v12509_v42  ;;  %v12660_v42 = vrot.slane %v3474_v13, 5  ;;  %v3488_v21 = vshrl.u32 %v12636_v24, 16  ;;  %v12701_v14 = vshrl.u32 %v12078_v38, 16 }
 0x1d0   : > { %v12641_v52 = vpop.f32.mrf.mxu0  ;;  %v3462_v16 = vrot.slane %v3461_v56, 4 }
 0x1d1   : > { %19378 = vst [vmem:[#allocation117_spill] sm:$0xff] %v12641_v52  ;;  %v12658_v52 = vsel %vm12583_vm12, %v4342_v23, %v19380_v31  ;;  %v12674_v23 = vld [vmem:[%s18871_s3] ss:$0 sm:$0xff]  ;;  %v3481_v53 = vor.u32 %v3480_v12, %v12660_v42  ;;  %v19384_v31 = vrot.slane %v12636_v24, 5  ;;  %19387 = vst [vmem:[#allocation122_spill] sm:$0xff] %v12701_v14 }
 0x1d2   : > { %v9916_v59 = vpop.f32.mrf.mxu0  ;;  %19381 = vst [vmem:[#allocation118_spill] sm:$0xff] %v12658_v52  ;;  %v4468_v4 = vmax.bf16 %v12658_v52, %v3625_v0  ;;  %v12678_v13 = vadd.f32 %v12674_v23, %v12269_v20  ;;  %v6031_v60 = vmax.bf16 %v5473_v51, %v12658_v52  ;;  %v3470_v0 = vrot.slane %v3468_v27, 4 }
 0x1d3   : > { %v1733_v59 = vpop.permute.xlu0 %1732  ;;  %v12685_v63 = vsel %vm12583_vm12, %v4351_v3, %v19384_v31  ;;  %v12690_v20 = vrot.slane %v3484_v15, 5  ;;  %v3482_v12 = vrot.slane %v3481_v53, 4  ;;  %v1736_v31 = vpop.permute.xlu1 %1735  ;;  %v19388_v15 = vmax.f32 %v12477_v18, 0.0 }
 0x1d4   : > { %v12665_v29 = vpop.f32.mrf.mxu0  ;;  %19385 = vst [vmem:[#allocation120_spill] sm:$0xff] %v12685_v63  ;;  %v18988_v40 = vmax.f32 %v12678_v13, 0.0  ;;  %vm1813_vm5 = vcmp.eq.s32.totalorder %v1733_v59, 1  ;;  %v5012_v51 = vmax.bf16 %v4468_v4, %v12639_v25  ;;  %v11123_v59 = vld [vmem:[%s11299_s24 + $0xd0] sm:$0xf]  ;;  %v3490_v18 = vrot.slane %v3488_v21, 4 }
 0x1d5   : > { %19382 = vst [vmem:[#allocation119_spill] sm:$0xff] %v12665_v29  ;;  %v6434_v29 = vmax.bf16 %v6031_v60, %v12639_v25  ;;  %vm1879_vm7 = vmpackc.low %vm1813_vm5, %vm1813_vm5  ;;  %v1382_v57 = vmul.f32 %v11803_v39, %v19388_v15  ;;  %v3487_v27 = vsel %vm12552_vm6, %v3482_v12, %v12690_v20  ;;  %v3471_v60 = vor.u32 %v3470_v0, %v3466_v26 }
 0x1d6   : > { %v9919_v46 = vpop.f32.mrf.mxu0  ;;  %8308 = vrot.lane.b32.xlu1 %v18988_v40, %s11192_s9  ;;  %v12710_v53 = vsel %vm1879_vm7, %v11123_v59, -1.00492276e+30  ;;  %v12713_v52 = vmax.bf16 %v5012_v51, %v3487_v27  ;;  %vm1814_vm10 = vcmp.eq.s32.totalorder %v1736_v31, 1  ;;  %v12728_v51 = vshll.u32 %v12078_v38, 16 }
 0x1d7   : > { %19389 = vst [vmem:[#allocation123_spill] sm:$0xff] %v12710_v53  ;;  %v3628_v46 = vmax.bf16 %v3487_v27, %v12639_v25  ;;  %v6862_v40 = vmax.bf16 %v6434_v29, %v3487_v27  ;;  %v3494_v0 = vshll.u32 %v12710_v53, 16  ;;  %v3498_v59 = vshrl.u32 %v12710_v53, 16  ;;  %vm1880_vm11 = vmpackc.low %vm1814_vm10, %vm1814_vm10  ;;  %v1742_v21 = vpop.permute.xlu1 %1741 }
 0x1d8   : > { %v12694_v3 = vpop.f32.mrf.mxu0  ;;  %19390 = vst [vmem:[#allocation124_spill] sm:$0xff] %v12713_v52  ;;  %19394 = vst [vmem:[#allocation128_spill] sm:$0xff] %v12728_v51  ;;  %v3472_v29 = vrot.slane %v3471_v60, 4  ;;  %v12735_v31 = vsel %vm12552_vm6, %v3462_v16, %v3466_v26  ;;  %v3645_v38 = vrot.slane %v12701_v14, 4  ;;  %vm1816_vm13 = vcmp.eq.s32.totalorder %v1742_v21, 1 }
 0x1d9   : > { %19386 = vst [vmem:[#allocation121_spill] sm:$0xff] %v12694_v3  ;;  %v12715_v3 = vpack.c.bf16 %v1383_v43, %v1382_v57  ;;  %v12720_v15 = vmax.bf16 %v6862_v40, %v12685_v63  ;;  %v12723_v12 = vmax.bf16 %v12685_v63, %v3628_v46  ;;  %v4346_v40 = vrot.slane %v12620_v58, 5  ;;  %19395 = vst [vmem:[#allocation129_spill] sm:$0xff] %v12735_v31 }
 0x1da   : > { %v9920_v4 = vpop.f32.mrf.mxu0  ;;  %v12739_v57 = vadd.f32 %v12674_v23, %v12285_v54  ;;  %v3496_v60 = vrot.slane %v3494_v0, 5  ;;  %v3500_v43 = vrot.slane %v3498_v59, 4  ;;  %v19398_v54 = vrot.slane %v12570_v19, 4  ;;  %vm1882_vm3 = vmpackc.low %vm1816_vm13, %vm1816_vm13 }
 0x1db   : > { %19391 = vst [vmem:[#allocation125_spill] sm:$0xff] %v12715_v3  ;;  %19393 = vst [vmem:[#allocation127_spill] sm:$0xff] %v12720_v15  ;;  %v18992_v27 = vrot.slane %v12715_v3, 4  ;;  %v1739_v4 = vpop.permute.xlu0 %1738  ;;  %v11124_v15 = vld [vmem:[%s11299_s24 + $0xd4] sm:$0xf]  ;;  %v3626_v0 = vmax.bf16 %v12735_v31, %v12545_v30 }
 0x1dc   : > { %v12717_v39 = vpop.f32.mrf.mxu0  ;;  %v18991_v16 = vmax.f32 %v12739_v57, 0.0  ;;  %vm1815_vm14 = vcmp.eq.s32.totalorder %v1739_v4, 1 }
 0x1dd   : > { %19392 = vst [vmem:[#allocation126_spill] sm:$0xff] %v12717_v39  ;;  %v12747_v39 = vsel %vm1880_vm11, %v11124_v15, -1.00492276e+30  ;;  %v12755_v26 = vsel %vm1988_vm8, %v19398_v54, %v18992_v27  ;;  %v12763_v15 = vsel %vm12552_vm6, %v3472_v29, %v12660_v42  ;;  %v4348_v54 = vrot.slane %v4346_v40, 4  ;;  %vm1881_vm15 = vmpackc.low %vm1815_vm14, %vm1815_vm14 }
 0x1de   : > { %v9923_v56 = vpop.f32.mrf.mxu0  ;;  %19397 = vst [vmem:[#allocation131_spill] sm:$0xff] %v12747_v39  ;;  %19399 = vst [vmem:[#allocation132_spill] sm:$0xff] %v12755_v26  ;;  %9994 = vmatmul.mubr.msk.bf16.gmra.mxu1 %vm2056_vm9, %v12755_v26  ;;  %8310 = vrot.lane.b32.xlu0 %v18991_v16, %s11192_s9  ;;  %v3504_v42 = vshll.u32 %v12747_v39, 16  ;;  %v3501_v29 = vor.u32 %v3500_v43, %v3496_v60  ;;  %v3508_v4 = vshrl.u32 %v12747_v39, 16  ;;  %v11125_v16 = vld [vmem:[%s11299_s24 + $0xd8] sm:$0xf] }
 0x1df   : > { %v3491_v56 = vor.u32 %v3490_v18, %v12690_v20  ;;  %v19400_v20 = vrot.slane %v12545_v30, 5  ;;  %19401 = vst [vmem:[#allocation133_spill] sm:$0xff] %v12763_v15  ;;  %9997 = vmatprep.mubr.msk.bf16.mxu1 %vm11191_vm0, %v19240_v61  ;;  %v19405_v26 = vrot.slane %v12639_v25, 5  ;;  %v1745_v25 = vpop.permute.xlu0 %1744  ;;  %vm2387_vm14 = vsmask.f32 4352 }
 0x1e0   : > { %v12742_v46 = vpop.f32.mrf.mxu0  ;;  %vm1817_vm5 = vcmp.eq.s32.totalorder %v1745_v25, 1 }
 0x1e1   : > { %19396 = vst [vmem:[#allocation130_spill] sm:$0xff] %v12742_v46  ;;  %v3646_v46 = vrot.slane %v12728_v51, 5  ;;  %v4345_v18 = vrot.slane %v19400_v20, 4  ;;  %v3492_v21 = vrot.slane %v3491_v56, 4  ;;  %v12791_v56 = vsel %vm1881_vm15, %v11125_v16, -1.00492276e+30  ;;  %vm12847_vm10 = vmpackc.low %vm1817_vm5, %vm1817_vm5 }
 0x1e2   : > { %v9924_v63 = vpop.f32.mrf.mxu0  ;;  %19404 = vst [vmem:[#allocation136_spill] sm:$0xff] %v12791_v56  ;;  %v11126_v16 = vld [vmem:[%s11299_s24 + $0xdc] sm:$0xf]  ;;  %vm4481_vm15 = vsmask.f32 256 }
 0x1e3   : > { %v12769_v59 = vor.u32 %v3646_v46, %v3645_v38  ;;  %v3627_v38 = vmax.bf16 %v12763_v15, %v12620_v58  ;;  %v12787_v43 = vsel %vm12583_vm12, %v4345_v18, %v4346_v40  ;;  %v3506_v18 = vrot.slane %v3504_v42, 5 }
 0x1e4   : > { %v12774_v63 = vpop.f32.mrf.mxu0  ;;  %19403 = vst [vmem:[#allocation135_spill] sm:$0xff] %v12787_v43  ;;  %v4469_v27 = vmax.bf16 %v12787_v43, %v3626_v0  ;;  %v12806_v52 = vsel %vm1882_vm3, %v11126_v16, -1.00492276e+30  ;;  %v3518_v0 = vshrl.u32 %v12791_v56, 16  ;;  %v3510_v43 = vrot.slane %v3508_v4, 4 }
 0x1e5   : > { %19402 = vst [vmem:[#allocation134_spill] sm:$0xff] %v12774_v63  ;;  %v3648_v46 = vsel %vm2981_vm2, %v12574_v17, %v12769_v59  ;;  %v12798_v63 = vsel %vm12583_vm12, %v4348_v54, %v19405_v26  ;;  %v3514_v17 = vshll.u32 %v12791_v56, 16  ;;  %19408 = vst [vmem:[#allocation139_spill] sm:$0xff] %v12806_v52  ;;  %v12811_v26 = vsel %vm12552_vm6, %v3492_v21, %v3496_v60 }
 0x1e6   : > { %v9931_v20 = vpop.f32.mrf.mxu0  ;;  %10158 = vmatmul.mubr.msk.bf16.gmra.mxu0 %vm2056_vm9, %v3648_v46  ;;  %19406 = vst [vmem:[#allocation137_spill] sm:$0xff] %v12798_v63  ;;  %v3502_v46 = vrot.slane %v3501_v29, 4  ;;  %19409 = vst [vmem:[#allocation140_spill] sm:$0xff] %v12811_v26  ;;  %v4470_v54 = vmax.bf16 %v12798_v63, %v3627_v38  ;;  %v3520_v42 = vrot.slane %v3518_v0, 4  ;;  %v12819_v29 = vadd.f32 %v12674_v23, %v12311_v9 }
 0x1e7   : > { %v1748_v20 = vpop.permute.xlu1 %1747  ;;  %10161 = vmatprep.mubr.msk.bf16.mxu0 %vm11191_vm0, %v19240_v61  ;;  %v12814_v31 = vrot.slane %v3514_v17, 5  ;;  %v12822_v16 = vshrl.u32 %v12095_v47, 16  ;;  %v19411_v4 = vrot.slane %v12636_v24, 5  ;;  %v5395_v21 = vshll.u32 %v12806_v52, 16 }
 0x1e8   : > { %v12803_v40 = vpop.f32.mrf.mxu0  ;;  %vm1818_vm4 = vcmp.eq.s32.totalorder %v1748_v20, 1  ;;  %v5399_v17 = vshrl.u32 %v12806_v52, 16  ;;  %v3629_v9 = vmax.bf16 %v12811_v26, %v12636_v24  ;;  %v5013_v25 = vmax.bf16 %v4469_v27, %v12636_v24 }
 0x1e9   : > { %19407 = vst [vmem:[#allocation138_spill] sm:$0xff] %v12803_v40  ;;  %v4355_v40 = vrot.slane %v12710_v53, 5  ;;  %19410 = vst [vmem:[#allocation141_spill] sm:$0xff] %v12822_v16  ;;  %v4354_v60 = vrot.slane %v19411_v4, 4  ;;  %v19416_v4 = vmax.f32 %v12678_v13, 0.0  ;;  %v3521_v63 = vor.u32 %v3520_v42, %v12814_v31 }
 0x1ea   : > { %v9932_v30 = vpop.f32.mrf.mxu0  ;;  %vm12837_vm7 = vmpackc.low %vm1818_vm4, %vm1818_vm4  ;;  %v19419_v58 = vmax.f32 %v12591_v49, 0.0  ;;  %v3511_v14 = vor.u32 %v3510_v43, %v3506_v18  ;;  %v4358_v27 = vrot.slane %v12747_v39, 5  ;;  %v4361_v43 = vrot.slane %v12791_v56, 5 }
 0x1eb   : > { %v12831_v30 = vsel %vm12552_vm6, %v3502_v46, %v3506_v18  ;;  %v5014_v46 = vmax.bf16 %v4470_v54, %v12710_v53  ;;  %v4357_v13 = vrot.slane %v4355_v40, 4  ;;  %v5397_v54 = vrot.slane %v5395_v21, 5 }
 0x1ec   : > { %v12827_v38 = vpop.f32.mrf.mxu0  ;;  %19413 = vst [vmem:[#allocation143_spill] sm:$0xff] %v12831_v30  ;;  %v1384_v51 = vmul.f32 %v11818_v35, %v19419_v58  ;;  %v5401_v58 = vrot.slane %v5399_v17, 4  ;;  %v12882_v0 = vrot.slane %v3521_v63, 4  ;;  %v3512_v17 = vrot.slane %v3511_v14, 4 }
 0x1ed   : > { %19412 = vst [vmem:[#allocation142_spill] sm:$0xff] %v12827_v38  ;;  %v1385_v38 = vmul.f32 %v11816_v28, %v19416_v4  ;;  %v19420_v28 = vmax.f32 %v12819_v29, 0.0  ;;  %v5478_v42 = vmax.bf16 %v5014_v46, %v12831_v30  ;;  %v12861_v4 = vsel %vm12583_vm12, %v4354_v60, %v4355_v40 }
 0x1ee   : > { %v9935_v20 = vpop.f32.mrf.mxu0  ;;  %19421 = vst [vmem:[#allocation144_spill] sm:$0xff] %v12861_v4  ;;  %v4472_v18 = vmax.bf16 %v12861_v4, %v3629_v9  ;;  %v12878_v40 = vshll.u32 %v12095_v47, 16  ;;  %19427 = vst [vmem:[#allocation150_spill] sm:$0xff] %v12882_v0  ;;  %v5477_v46 = vmax.bf16 %v5013_v25, %v12811_v26  ;;  %v5015_v9 = vmax.bf16 %v12723_v12, %v12747_v39 }
 0x1ef   : > { %8312 = vrot.lane.b32.xlu1 %v19420_v28, %s11192_s9  ;;  %v11127_v20 = vld [vmem:[%s11299_s24 + $0xe4] sm:$0xf]  ;;  %v11128_v28 = vld [vmem:[%s11299_s24 + $0xe0] sm:$0xf]  ;;  %v12880_v60 = vpack.c.bf16 %v1385_v38, %v1384_v51  ;;  %v12890_v15 = vsel %vm12583_vm12, %v4357_v13, %v4358_v27  ;;  %v5402_v25 = vor.u32 %v5401_v58, %v5397_v54  ;;  %v5398_v47 = vsel %vm12552_vm6, %v12882_v0, %v5397_v54 }
 0x1f0   : > { %v12866_v49 = vsel %vm12837_vm7, %v11127_v20, -1.00492276e+30  ;;  %v12868_v35 = vpop.f32.mrf.mxu0  ;;  %v12875_v21 = vsel %vm12847_vm10, %v11128_v28, -1.00492276e+30  ;;  %19425 = vst [vmem:[#allocation148_spill] sm:$0xff] %v12878_v40  ;;  %19428 = vst [vmem:[#allocation151_spill] sm:$0xff] %v12890_v15  ;;  %v6036_v14 = vmax.bf16 %v5478_v42, %v12890_v15  ;;  %v5016_v12 = vmax.bf16 %v4472_v18, %v12791_v56  ;;  %v1751_v18 = vpop.permute.xlu0 %1750 }
 0x1f1   : > { %19422 = vst [vmem:[#allocation145_spill] sm:$0xff] %v12866_v49  ;;  %19423 = vst [vmem:[#allocation146_spill] sm:$0xff] %v12868_v35  ;;  %v4360_v35 = vrot.slane %v4358_v27, 4  ;;  %v5415_v24 = vshll.u32 %v12866_v49, 16  ;;  %v5419_v28 = vshrl.u32 %v12866_v49, 16  ;;  %v5405_v51 = vshll.u32 %v12875_v21, 16 }
 0x1f2   : > { %19424 = vst [vmem:[#allocation147_spill] sm:$0xff] %v12875_v21  ;;  %19426 = vst [vmem:[#allocation149_spill] sm:$0xff] %v12880_v60  ;;  %v9936_v20 = vpop.f32.mrf.mxu0  ;;  %v5409_v63 = vshrl.u32 %v12875_v21, 16  ;;  %v6035_v27 = vmax.bf16 %v5477_v46, %v12861_v4  ;;  %v12910_v42 = vadd.f32 %v12674_v23, %v12346_v48  ;;  %v19021_v58 = vrot.slane %v12880_v60, 4 }
 0x1f3   : > { %v4363_v20 = vrot.slane %v4361_v43, 4  ;;  %v5407_v13 = vrot.slane %v5405_v51, 5  ;;  %v5417_v53 = vrot.slane %v5415_v24, 5  ;;  %v5421_v15 = vrot.slane %v5419_v28, 4 }
 0x1f4   : > { %v12895_v38 = vpop.f32.mrf.mxu0  ;;  %v5411_v26 = vrot.slane %v5409_v63, 4  ;;  %v3649_v46 = vrot.slane %v12822_v16, 4  ;;  %v5480_v51 = vmax.bf16 %v5398_v47, %v5016_v12  ;;  %v19432_v48 = vrot.slane %v12715_v3, 4 }
 0x1f5   : > { %19429 = vst [vmem:[#allocation152_spill] sm:$0xff] %v12895_v38  ;;  %v12906_v38 = vsel %vm12552_vm6, %v3512_v17, %v12814_v31  ;;  %v4364_v28 = vrot.slane %v12806_v52, 5  ;;  %vm1819_vm11 = vcmp.eq.s32.totalorder %v1751_v18, 1  ;;  %v5403_v12 = vrot.slane %v5402_v25, 4 }
 0x1f6   : > { %v9939_v30 = vpop.f32.mrf.mxu0  ;;  %19430 = vst [vmem:[#allocation153_spill] sm:$0xff] %v12906_v38  ;;  %v5479_v54 = vmax.bf16 %v5015_v9, %v12906_v38  ;;  %v5412_v63 = vor.u32 %v5411_v26, %v5407_v13  ;;  %v12924_v17 = vsel %vm1988_vm8, %v19432_v48, %v19021_v58  ;;  %v6438_v9 = vmax.bf16 %v6035_v27, %v12791_v56  ;;  %vm1885_vm13 = vmpackc.low %vm1819_vm11, %vm1819_vm11  ;;  %v19480_v56 = vld [vmem:[#allocation101_spill] sm:$0xff] }
 0x1f7   : > { %v3650_v30 = vrot.slane %v12878_v40, 5  ;;  %19433 = vst [vmem:[#allocation155_spill] sm:$0xff] %v12924_v17  ;;  %9998 = vmatmul.mubr.msk.bf16.gmra.mxu1 %vm2056_vm9, %v12924_v17  ;;  %v6439_v31 = vmax.bf16 %v6036_v14, %v12806_v52  ;;  %v19435_v48 = vmax.f32 %v12910_v42, 0.0  ;;  %v12944_v27 = vsel %vm12583_vm12, %v4363_v20, %v4364_v28 }
 0x1f8   : > { %v12916_v24 = vpop.f32.mrf.mxu0  ;;  %10001 = vmatprep.mubr.msk.bf16.mxu1 %vm11191_vm0, %v19240_v61  ;;  %19436 = vst [vmem:[#allocation157_spill] sm:$0xff] %v12944_v27  ;;  %v5422_v18 = vor.u32 %v5421_v15, %v5417_v53  ;;  %v6038_v14 = vmax.bf16 %v5480_v51, %v12944_v27  ;;  %v6866_v20 = vmax.bf16 %v6438_v9, %v5398_v47  ;;  %v5978_v58 = vrot.slane %v12866_v49, 5 }
 0x1f9   : > { %19431 = vst [vmem:[#allocation154_spill] sm:$0xff] %v12916_v24  ;;  %v12930_v0 = vor.u32 %v3650_v30, %v3649_v46  ;;  %v12935_v24 = vsel %vm12583_vm12, %v4360_v35, %v4361_v43  ;;  %8314 = vrot.lane.b32.xlu0 %v19435_v48, %s11192_s9  ;;  %v5413_v46 = vrot.slane %v5412_v63, 4  ;;  %v5975_v30 = vrot.slane %v12875_v21, 5 }
 0x1fa   : > { %v9940_v26 = vpop.f32.mrf.mxu0  ;;  %19434 = vst [vmem:[#allocation156_spill] sm:$0xff] %v12935_v24  ;;  %v6037_v25 = vmax.bf16 %v5479_v54, %v12935_v24  ;;  %v5974_v54 = vrot.slane %v4364_v28, 4  ;;  %v12965_v63 = vrot.slane %v5422_v18, 4  ;;  %v6441_v9 = vmax.bf16 %v6038_v14, %v12866_v49 }
 0x1fb   : > { %v3652_v35 = vsel %vm2981_vm2, %v12769_v59, %v12930_v0  ;;  %v11129_v26 = vld [vmem:[%s11299_s24 + $0xe8] sm:$0xf]  ;;  %v12962_v59 = vsel %vm12552_vm6, %v5403_v12, %v5407_v13  ;;  %v12975_v28 = vsel %vm12552_vm6, %v5413_v46, %v5417_v53  ;;  %v7278_v18 = vmax.bf16 %v6866_v20, %v12944_v27 }
 0x1fc   : > { %v12950_v43 = vpop.f32.mrf.mxu0  ;;  %10162 = vmatmul.mubr.msk.bf16.gmra.mxu0 %vm2056_vm9, %v3652_v35  ;;  %v12956_v48 = vsel %vm1885_vm13, %v11129_v26, -1.00492276e+30  ;;  %19439 = vst [vmem:[#allocation160_spill] sm:$0xff] %v12962_v59  ;;  %19440 = vst [vmem:[#allocation161_spill] sm:$0xff] %v12965_v63  ;;  %v6440_v35 = vmax.bf16 %v6037_v25, %v12875_v21  ;;  %v6867_v26 = vmax.bf16 %v6439_v31, %v12962_v59  ;;  %v5977_v31 = vrot.slane %v5975_v30, 4 }
 0x1fd   : > { %19437 = vst [vmem:[#allocation158_spill] sm:$0xff] %v12950_v43  ;;  %19438 = vst [vmem:[#allocation159_spill] sm:$0xff] %v12956_v48  ;;  %10165 = vmatprep.mubr.msk.bf16.mxu0 %vm11191_vm0, %v19240_v61  ;;  %v6784_v51 = vshll.u32 %v12956_v48, 16  ;;  %v12979_v13 = vsel %vm12583_vm12, %v5974_v54, %v5975_v30  ;;  %v893_v14 = vadd.f32 %v12674_v23, %v12380_v34  ;;  %v19447_v20 = vmax.f32 %v12819_v29, 0.0 }
 0x1fe   : > { %v9943_v15 = vpop.f32.mrf.mxu0  ;;  %19442 = vst [vmem:[#allocation163_spill] sm:$0xff] %v12975_v28  ;;  %19443 = vst [vmem:[#allocation164_spill] sm:$0xff] %v12979_v13  ;;  %v7279_v25 = vmax.bf16 %v6867_v26, %v12979_v13  ;;  %v6868_v53 = vmax.bf16 %v6440_v35, %v12975_v28  ;;  %v5980_v26 = vrot.slane %v5978_v58, 4  ;;  %v19448_v34 = vmax.f32 %v12739_v57, 0.0 }
 0x1ff   : > { %v12981_v12 = vrot.slane %v6784_v51, 5  ;;  %v1387_v30 = vmul.f32 %v11829_v32, %v19447_v20  ;;  %v13005_v49 = vsel %vm12583_vm12, %v5977_v31, %v5978_v58  ;;  %v13022_v58 = vshrl.u32 %v12105_v37, 16 }
 0x200   : > { %v12970_v47 = vpop.f32.mrf.mxu0  ;;  %v12993_v54 = vcombine.low %v7278_v18, %v7279_v25  ;;  %v1386_v35 = vmul.f32 %v11834_v1, %v19448_v34  ;;  %19449 = vst [vmem:[#allocation168_spill] sm:$0xff] %v13005_v49  ;;  %v19450_v18 = vrot.slane %v12956_v48, 5  ;;  %v7280_v32 = vmax.bf16 %v6868_v53, %v13005_v49 }
 0x201   : > { %19441 = vst [vmem:[#allocation162_spill] sm:$0xff] %v12970_v47  ;;  %19444 = vst [vmem:[#allocation165_spill] sm:$0xff] %v12981_v12  ;;  %v6787_v46 = vsel %vm12552_vm6, %v12965_v63, %v12981_v12  ;;  %v898_v1 = vadd.f32 %v12674_v23, %v12393_v6  ;;  %v13035_v6 = vshrl.u32 %v12071_v45, 16  ;;  %v13038_v20 = vshll.u32 %v12071_v45, 16  ;;  %v19471_v12 = vld [vmem:[#allocation22_spill] sm:$0xff] }
 0x202   : > { %v9944_v15 = vpop.f32.mrf.mxu0  ;;  %19445 = vst [vmem:[#allocation166_spill] sm:$0xff] %v12993_v54  ;;  %v6869_v59 = vmax.bf16 %v6787_v46, %v6441_v9  ;;  %v13011_v25 = vsel %vm12583_vm12, %v5980_v26, %v19450_v18  ;;  %v13027_v31 = vpack.c.bf16 %v1387_v30, %v1386_v35  ;;  %v901_v34 = vadd.f32 %v12674_v23, %v12401_v10  ;;  %v19504_v47 = vld [vmem:[#allocation14_spill] sm:$0xff] }
 0x203   : > { %v1017_v15 = vmax.f32 %v893_v14, 0.0  ;;  %19451 = vst [vmem:[#allocation169_spill] sm:$0xff] %v13011_v25  ;;  %v19454_v14 = vmax.f32 %v12910_v42, 0.0  ;;  %19456 = vst [vmem:[#allocation173_spill] sm:$0xff] %v13035_v6  ;;  %v906_v35 = vadd.f32 %v12674_v23, %v12412_v55  ;;  %v13133_v28 = vshrl.u32 %v19471_v12, 16 }
 0x204   : > { %v7281_v57 = vmax.bf16 %v6869_v59, %v13011_v25  ;;  %19453 = vst [vmem:[#allocation171_spill] sm:$0xff] %v13027_v31  ;;  %v1018_v59 = vmax.f32 %v898_v1, 0.0  ;;  %v2026_v42 = vrot.slane %v13027_v31, 4  ;;  %v1019_v1 = vmax.f32 %v901_v34, 0.0 }
 0x205   : > { %8316 = vrot.lane.b32.xlu1 %v1017_v15, %s11192_s9  ;;  %v1389_v29 = vmul.f32 %v11842_v11, %v1017_v15  ;;  %v1388_v53 = vmul.f32 %v11848_v5, %v19454_v14  ;;  %v3653_v5 = vrot.slane %v13022_v58, 4  ;;  %v1020_v14 = vmax.f32 %v906_v35, 0.0 }
 0x206   : > { %v13032_v11 = vcombine.low %v7280_v32, %v7281_v57  ;;  %8318 = vrot.lane.b32.xlu0 %v1018_v59, %s11192_s9  ;;  %v19459_v32 = vrot.slane %v12880_v60, 4  ;;  %v1390_v35 = vmul.f32 %v11858_v44, %v1018_v59  ;;  %v917_v25 = vadd.f32 %v12674_v23, %v12454_v2 }
 0x207   : > { %v13040_v26 = vpack.c.bf16 %v1389_v29, %v1388_v53  ;;  %v13172_v48 = vadd.f32 %v12674_v23, %v19480_v56  ;;  %vm5489_vm10 = vsmask.f32 7424 }
 0x208   : > { %19455 = vst [vmem:[#allocation172_spill] sm:$0xff] %v13032_v11  ;;  %v13055_v29 = vsel %vm1988_vm8, %v19459_v32, %v2026_v42  ;;  %v1023_v59 = vmax.f32 %v917_v25, 0.0 }
 0x209   : > { %19457 = vst [vmem:[#allocation174_spill] sm:$0xff] %v13040_v26  ;;  %19460 = vst [vmem:[#allocation176_spill] sm:$0xff] %v13055_v29  ;;  %10002 = vmatmul.mubr.msk.bf16.gmra.mxu1 %vm2056_vm9, %v13055_v29  ;;  %v2028_v53 = vrot.slane %v13040_v26, 4  ;;  %8320 = vrot.lane.b32.xlu1 %v1019_v1, %s11192_s9 }
 0x20a   : > { %10005 = vmatprep.mubr.msk.bf16.mxu1 %vm11191_vm0, %v19240_v61  ;;  %8322 = vrot.lane.b32.xlu0 %v1020_v14, %s11192_s9 }
 0x20b   : > { %v13097_v63 = vsel %vm1988_vm8, %v2026_v42, %v2028_v53 }
 0x20c   : > { %19465 = vst [vmem:[#allocation181_spill] sm:$0xff] %v13097_v63 }
 0x211   : > { %10006 = vmatmul.mubr.msk.bf16.gmra.mxu1 %vm2056_vm9, %v13097_v63 }
 0x212   : > { %10009 = vmatprep.mubr.msk.bf16.mxu1 %vm11191_vm0, %v19240_v61 }
 0x21a   : > { %v12995_v51 = vpop.f32.mrf.mxu0 }
 0x21b   : > { %19446 = vst [vmem:[#allocation167_spill] sm:$0xff] %v12995_v51 }
 0x21c   : > { %v9947_v13 = vpop.f32.mrf.mxu0 }
 0x21d   : > { %v13025_v13 = vshll.u32 %v12105_v37, 16  ;;  %v13430_v37 = vshrl.u32 %v13027_v31, 16 }
 0x21e   : > { %v13019_v9 = vpop.f32.mrf.mxu0 }
 0x21f   : > { %19452 = vst [vmem:[#allocation170_spill] sm:$0xff] %v13019_v9  ;;  %v3654_v15 = vrot.slane %v13025_v13, 5 }
 0x220   : > { %v9948_v46 = vpop.f32.mrf.mxu0 }
 0x221   : > { %v3655_v57 = vor.u32 %v3654_v15, %v3653_v5  ;;  %v3657_v46 = vrot.slane %v13035_v6, 4  ;;  %v3658_v5 = vrot.slane %v13038_v20, 5  ;;  %v909_v15 = vadd.f32 %v12674_v23, %v12423_v50 }
 0x222   : > { %v13086_v50 = vshll.u32 %v12090_v7, 16 }
 0x223   : > { %v13043_v30 = vpop.f32.mrf.mxu0  ;;  %v13065_v55 = vsel %vm2981_vm2, %v12930_v0, %v3655_v57  ;;  %v914_v0 = vadd.f32 %v12674_v23, %v12446_v62  ;;  %v1021_v32 = vmax.f32 %v909_v15, 0.0  ;;  %v13092_v62 = vadd.f32 %v12674_v23, %v12460_v41 }
 0x224   : > { %19458 = vst [vmem:[#allocation175_spill] sm:$0xff] %v13043_v30  ;;  %19462 = vst [vmem:[#allocation178_spill] sm:$0xff] %v13065_v55  ;;  %10166 = vmatmul.mubr.msk.bf16.gmra.mxu0 %vm2056_vm9, %v13065_v55  ;;  %v3659_v44 = vor.u32 %v3658_v5, %v3657_v46  ;;  %v3662_v41 = vrot.slane %v13086_v50, 5  ;;  %v19467_v46 = vld [vmem:[#allocation9_spill] sm:$0xff] }
 0x225   : > { %v9951_v18 = vpop.f32.mrf.mxu0  ;;  %10169 = vmatprep.mubr.msk.bf16.mxu0 %vm11191_vm0, %v19240_v61  ;;  %8324 = vrot.lane.b32.xlu1 %v1021_v32, %s11192_s9  ;;  %v19030_v15 = vmax.f32 %v13092_v62, 0.0  ;;  %v1393_v5 = vmul.f32 %v19467_v46, %v1021_v32  ;;  %v19470_v46 = vld [vmem:[#allocation95_spill] sm:$0xff]  ;;  %19472 = vst [vmem:[#allocation9_spill] sm:$0xff] %v13133_v28  ;;  %v19491_v55 = vld [vmem:[#allocation113_spill] sm:$0xff] }
 0x226   : > { %v1391_v18 = vmul.f32 %v11854_v8, %v1019_v1  ;;  %v13080_v8 = vshrl.u32 %v12090_v7, 16  ;;  %v1022_v1 = vmax.f32 %v914_v0, 0.0  ;;  %v13109_v42 = vsel %vm2981_vm2, %v3655_v57, %v3659_v44 }
 0x227   : > { %v13061_v10 = vpop.f32.mrf.mxu0  ;;  %19466 = vst [vmem:[#allocation182_spill] sm:$0xff] %v13109_v42  ;;  %v13130_v49 = vadd.f32 %v12674_v23, %v19470_v46  ;;  %v19475_v46 = vld [vmem:[#allocation99_spill] sm:$0xff]  ;;  %v13425_v7 = vshll.u32 %v12880_v60, 16 }
 0x228   : > { %19461 = vst [vmem:[#allocation177_spill] sm:$0xff] %v13061_v10  ;;  %19463 = vst [vmem:[#allocation179_spill] sm:$0xff] %v13080_v8  ;;  %8326 = vrot.lane.b32.xlu0 %v1022_v1, %s11192_s9  ;;  %v3661_v2 = vrot.slane %v13080_v8, 4  ;;  %v13148_v21 = vadd.f32 %v12674_v23, %v19475_v46  ;;  %v19478_v46 = vld [vmem:[#allocation11_spill] sm:$0xff] }
 0x229   : > { %v9952_v34 = vpop.f32.mrf.mxu0  ;;  %8328 = vrot.lane.b32.xlu1 %v1023_v59, %s11192_s9  ;;  %v19479_v52 = vmax.f32 %v13130_v49, 0.0 }
 0x22a   : > { %v13094_v34 = vpack.c.bf16 %v1391_v18, %v1390_v35  ;;  %v925_v18 = vadd.f32 %v12674_v23, %v12464_v22  ;;  %v19468_v22 = vld [vmem:[#allocation91_spill] sm:$0xff]  ;;  %v19469_v35 = vld [vmem:[#allocation10_spill] sm:$0xff] }
 0x22b   : > { %v13123_v57 = vadd.f32 %v12674_v23, %v19468_v22  ;;  %v1392_v32 = vmul.f32 %v19469_v35, %v1020_v14  ;;  %v1395_v35 = vmul.f32 %v19478_v46, %v1023_v59  ;;  %v19482_v46 = vld [vmem:[#allocation12_spill] sm:$0xff] }
 0x22c   : > { %19464 = vst [vmem:[#allocation180_spill] sm:$0xff] %v13094_v34  ;;  %v2030_v25 = vrot.slane %v13094_v34, 4  ;;  %10170 = vmatmul.mubr.msk.bf16.gmra.mxu0 %vm2056_vm9, %v13109_v42  ;;  %v1025_v0 = vmax.f32 %v925_v18, 0.0  ;;  %8330 = vrot.lane.b32.xlu0 %v19030_v15, %s11192_s9  ;;  %v13136_v18 = vshll.u32 %v19471_v12, 16  ;;  %v3663_v15 = vor.u32 %v3662_v41, %v3661_v2 }
 0x22d   : > { %10173 = vmatprep.mubr.msk.bf16.mxu0 %vm11191_vm0, %v19240_v61  ;;  %v13138_v27 = vpack.c.bf16 %v1393_v5, %v1392_v32  ;;  %v19033_v14 = vmax.f32 %v13123_v57, 0.0  ;;  %v1394_v5 = vmul.f32 %v19482_v46, %v1022_v1  ;;  %v19487_v1 = vld [vmem:[#allocation109_spill] sm:$0xff]  ;;  %v19490_v42 = vmax.f32 %v13172_v48, 0.0 }
 0x22e   : > { %v13141_v22 = vsel %vm1988_vm8, %v2028_v53, %v2030_v25  ;;  %8332 = vrot.lane.b32.xlu1 %v1025_v0, %s11192_s9  ;;  %v3665_v53 = vrot.slane %v13133_v28, 4  ;;  %v3666_v41 = vrot.slane %v13136_v18, 5  ;;  %v13161_v32 = vsel %vm2981_vm2, %v3659_v44, %v3663_v15  ;;  %v19481_v44 = vld [vmem:[#allocation106_spill] sm:$0xff] }
 0x22f   : > { %19473 = vst [vmem:[#allocation91_spill] sm:$0xff] %v13138_v27  ;;  %19474 = vst [vmem:[#allocation10_spill] sm:$0xff] %v13141_v22  ;;  %v13153_v2 = vpop.f32.mrf.mxu0  ;;  %10010 = vmatmul.mubr.msk.bf16.gmra.mxu1 %vm2056_vm9, %v13141_v22  ;;  %v13178_v59 = vadd.f32 %v12674_v23, %v19481_v44  ;;  %v13198_v46 = vadd.f32 %v12674_v23, %v19487_v1 }
 0x230   : > { %8334 = vrot.lane.b32.xlu0 %v19033_v14, %s11192_s9  ;;  %19476 = vst [vmem:[#allocation95_spill] sm:$0xff] %v13153_v2  ;;  %19477 = vst [vmem:[#allocation99_spill] sm:$0xff] %v13161_v32  ;;  %10013 = vmatprep.mubr.msk.bf16.mxu1 %vm11191_vm0, %v19240_v61  ;;  %v2032_v14 = vrot.slane %v13138_v27, 4 }
 0x231   : > { %v9955_v22 = vpop.f32.mrf.mxu0  ;;  %v19492_v1 = vmax.f32 %v13178_v59, 0.0 }
 0x232   : > { %8336 = vrot.lane.b32.xlu1 %v19479_v52, %s11192_s9  ;;  %v19483_v52 = vmax.f32 %v13148_v21, 0.0  ;;  %v19485_v22 = vld [vmem:[#allocation23_spill] sm:$0xff]  ;;  %v13203_v63 = vsel %vm1988_vm8, %v2030_v25, %v2032_v14 }
 0x233   : > { %v13187_v56 = vpop.f32.mrf.mxu0  ;;  %v13190_v29 = vshrl.u32 %v19485_v22, 16  ;;  %v13193_v17 = vshll.u32 %v19485_v22, 16  ;;  %19489 = vst [vmem:[#allocation12_spill] sm:$0xff] %v13203_v63  ;;  %v19494_v25 = vld [vmem:[#allocation3_spill] sm:$0xff] }
 0x234   : > { %10174 = vmatmul.mubr.msk.bf16.gmra.mxu0 %vm2056_vm9, %v13161_v32  ;;  %8338 = vrot.lane.b32.xlu0 %v19483_v52, %s11192_s9  ;;  %19484 = vst [vmem:[#allocation11_spill] sm:$0xff] %v13187_v56  ;;  %v13200_v32 = vpack.c.bf16 %v1395_v35, %v1394_v5  ;;  %v3667_v52 = vor.u32 %v3666_v41, %v3665_v53  ;;  %v19493_v35 = vld [vmem:[#allocation117_spill] sm:$0xff]  ;;  %v19495_v10 = vshrl.u32 %v19494_v25, 16 }
 0x235   : > { %10177 = vmatprep.mubr.msk.bf16.mxu0 %vm11191_vm0, %v19240_v61  ;;  %19486 = vst [vmem:[#allocation101_spill] sm:$0xff] %v13190_v29  ;;  %v954_v56 = vadd.f32 %v12674_v23, %v19491_v55  ;;  %v9956_v2 = vpop.f32.mrf.mxu0  ;;  %v957_v5 = vadd.f32 %v12674_v23, %v19493_v35  ;;  %v3670_v23 = vrot.slane %v13193_v17, 5  ;;  %v19499_v35 = vshll.u32 %v19494_v25, 16  ;;  %v19507_v25 = vld [vmem:[#allocation24_spill] sm:$0xff] }
 0x236   : > { %19488 = vst [vmem:[#allocation106_spill] sm:$0xff] %v13200_v32  ;;  %8340 = vrot.lane.b32.xlu1 %v19490_v42, %s11192_s9  ;;  %v2391_v53 = vrot.slane %v19495_v10, 3  ;;  %v3669_v42 = vrot.slane %v13190_v29, 4  ;;  %v13222_v55 = vsel %vm2981_vm2, %v3663_v15, %v3667_v52  ;;  %v19497_v2 = vld [vmem:[#allocation13_spill] sm:$0xff]  ;;  %v19498_v10 = vmax.f32 %v13198_v46, 0.0  ;;  %v19501_v15 = vld [vmem:[#allocation2_spill] sm:$0xff] }
 0x237   : > { %10014 = vmatmul.mubr.msk.bf16.gmra.mxu1 %vm2056_vm9, %v13203_v63  ;;  %v1032_v41 = vmax.f32 %v954_v56, 0.0  ;;  %19496 = vst [vmem:[#allocation109_spill] sm:$0xff] %v13222_v55  ;;  %v1397_v44 = vmul.f32 %v19497_v2, %v1025_v0  ;;  %v2394_v63 = vrot.slane %v19499_v35, 4  ;;  %v19500_v56 = vld [vmem:[#allocation100_spill] sm:$0xff]  ;;  %v19502_v9 = vshll.u32 %v19501_v15, 16 }
 0x238   : > { %8342 = vrot.lane.b32.xlu0 %v19492_v1, %s11192_s9  ;;  %10017 = vmatprep.mubr.msk.bf16.mxu1 %vm11191_vm0, %v19240_v61  ;;  %v2034_v1 = vrot.slane %v13200_v32, 4  ;;  %v2399_v30 = vrot.slane %v19500_v56, 3  ;;  %v1033_v0 = vmax.f32 %v957_v5, 0.0  ;;  %v19503_v2 = vmax.f32 %v13092_v62, 0.0  ;;  %v19508_v56 = vld [vmem:[#allocation26_spill] sm:$0xff] }
 0x239   : > { %v2402_v51 = vrot.slane %v19502_v9, 4  ;;  %v1404_v35 = vmul.f32 %v19507_v25, %v1032_v41 }
 0x23a   : > { %8344 = vrot.lane.b32.xlu1 %v19498_v10, %s11192_s9  ;;  %v1396_v43 = vmul.f32 %v19504_v47, %v19503_v2  ;;  %v19505_v10 = vld [vmem:[#allocation25_spill] sm:$0xff]  ;;  %v1405_v12 = vmul.f32 %v19508_v56, %v1033_v0  ;;  %v13256_v62 = vsel %vm1988_vm8, %v2032_v14, %v2034_v1  ;;  %v3671_v47 = vor.u32 %v3670_v23, %v3669_v42  ;;  %v13290_v56 = vpop.f32.mrf.mxu0 }
 0x23b   : > { %v13245_v22 = vshrl.u32 %v19505_v10, 16  ;;  %v13251_v9 = vshll.u32 %v19505_v10, 16  ;;  %19511 = vst [vmem:[#allocation13_spill] sm:$0xff] %v13256_v62  ;;  %v2395_v2 = vor.u32 %v2394_v63, %v2391_v53  ;;  %v13261_v25 = vor.u32 %v2402_v51, %v2399_v30  ;;  %v19517_v53 = vld [vmem:[#allocation16_spill] sm:$0xff]  ;;  %19520 = vst [vmem:[#allocation26_spill] sm:$0xff] %v13290_v56 }
 0x23c   : > { %10178 = vmatmul.mubr.msk.bf16.gmra.mxu0 %vm2056_vm9, %v13222_v55  ;;  %8346 = vrot.lane.b32.xlu0 %v1032_v41, %s11192_s9  ;;  %v13253_v5 = vpack.c.bf16 %v1397_v44, %v1396_v43  ;;  %v13259_v15 = vpack.c.bf16 %v1405_v12, %v1404_v35  ;;  %v13271_v14 = vsel %vm2981_vm2, %v3667_v52, %v3671_v47  ;;  %v19514_v44 = vmax.f32 %v13130_v49, 0.0  ;;  %v19515_v12 = vld [vmem:[#allocation15_spill] sm:$0xff]  ;;  %v19518_v49 = vld [vmem:[#allocation32_spill] sm:$0xff] }
 0x23d   : > { %10181 = vmatprep.mubr.msk.bf16.mxu0 %vm11191_vm0, %v19240_v61  ;;  %19506 = vst [vmem:[#allocation113_spill] sm:$0xff] %v13245_v22  ;;  %19509 = vst [vmem:[#allocation117_spill] sm:$0xff] %v13251_v9  ;;  %v3673_v41 = vrot.slane %v13245_v22, 4  ;;  %v13268_v43 = vsel %vm2387_vm14, %v2395_v2, %v13261_v25  ;;  %v3674_v51 = vrot.slane %v13251_v9, 5  ;;  %v19516_v30 = vmax.f32 %v13123_v57, 0.0 }
 0x23e   : > { %19510 = vst [vmem:[#allocation3_spill] sm:$0xff] %v13253_v5  ;;  %8348 = vrot.lane.b32.xlu1 %v1033_v0, %s11192_s9  ;;  %19512 = vst [vmem:[#allocation2_spill] sm:$0xff] %v13259_v15  ;;  %v1399_v42 = vmul.f32 %v19515_v12, %v19514_v44  ;;  %v2036_v63 = vrot.slane %v13253_v5, 4  ;;  %v13288_v52 = vshrl.u32 %v19518_v49, 16  ;;  %v13293_v0 = vshll.u32 %v19518_v49, 16  ;;  %v9959_v12 = vpop.f32.mrf.mxu0 }
 0x23f   : > { %10018 = vmatmul.mubr.msk.bf16.gmra.mxu1 %vm2056_vm9, %v13256_v62  ;;  %19513 = vst [vmem:[#allocation14_spill] sm:$0xff] %v13271_v14  ;;  %v1398_v23 = vmul.f32 %v19517_v53, %v19516_v30  ;;  %v3675_v44 = vor.u32 %v3674_v51, %v3673_v41  ;;  %v13409_v49 = vshll.u32 %v12570_v19, 16  ;;  %v13419_v10 = vshll.u32 %v12715_v3, 16 }
 0x240   : > { %10021 = vmatprep.mubr.msk.bf16.mxu1 %vm11191_vm0, %v19240_v61  ;;  %19519 = vst [vmem:[#allocation24_spill] sm:$0xff] %v13288_v52  ;;  %19521 = vst [vmem:[#allocation15_spill] sm:$0xff] %v13293_v0  ;;  %v13298_v2 = vsel %vm1988_vm8, %v2034_v1, %v2036_v63  ;;  %v3677_v30 = vrot.slane %v13288_v52, 4  ;;  %v13305_v62 = vpop.f32.mrf.mxu0  ;;  %v3678_v51 = vrot.slane %v13293_v0, 5 }
 0x241   : > { %v13295_v35 = vpack.c.bf16 %v1399_v42, %v1398_v23  ;;  %19523 = vst [vmem:[#allocation183_spill] sm:$0xff] %v13298_v2  ;;  %19525 = vst [vmem:[#allocation185_spill] sm:$0xff] %v13305_v62  ;;  %v19527_v42 = vmax.f32 %v13172_v48, 0.0  ;;  %v19528_v23 = vld [vmem:[#allocation17_spill] sm:$0xff]  ;;  %v19532_v48 = vld [vmem:[#allocation60_spill] sm:$0xff] }
 0x243   : > { %19522 = vst [vmem:[#allocation16_spill] sm:$0xff] %v13295_v35  ;;  %v13300_v57 = vpop.f32.mrf.mxu1  ;;  %v1401_v1 = vmul.f32 %v19528_v23, %v19527_v42  ;;  %v2038_v41 = vrot.slane %v13295_v35, 4  ;;  %v13327_v42 = vshrl.u32 %v19532_v48, 16 }
 0x244   : > { %10182 = vmatmul.mubr.msk.bf16.gmra.mxu0 %vm2056_vm9, %v13271_v14  ;;  %19524 = vst [vmem:[#allocation184_spill] sm:$0xff] %v13300_v57  ;;  %v13308_v14 = vsel %vm2981_vm2, %v3671_v47, %v3675_v44  ;;  %v19530_v47 = vmax.f32 %v13148_v21, 0.0  ;;  %v13330_v57 = vshll.u32 %v19532_v48, 16 }
 0x245   : > { %10185 = vmatprep.mubr.msk.bf16.mxu0 %vm11191_vm0, %v19240_v61  ;;  %v9975_v53 = vpop.f32.mrf.mxu1  ;;  %19526 = vst [vmem:[#allocation186_spill] sm:$0xff] %v13308_v14  ;;  %v3681_v21 = vrot.slane %v13327_v42, 4 }
 0x246   : > { %v9960_v53 = vpop.f32.mrf.mxu0  ;;  %19534 = vst [vmem:[#allocation187_spill] sm:$0xff] %v13330_v57 }
 0x247   : > { %10022 = vmatmul.mubr.msk.bf16.gmra.mxu1 %vm2056_vm9, %v13298_v2  ;;  %v13319_v12 = vpop.f32.mrf.mxu1  ;;  %v19531_v2 = vld [vmem:[#allocation18_spill] sm:$0xff]  ;;  %v3679_v53 = vor.u32 %v3678_v51, %v3677_v30  ;;  %v11103_v30 = vld [vmem:[%s18872_s4 + $0x48] sm:$0xff]   ;;  %v19542_v51 = vld [vmem:[#allocation61_spill] sm:$0xff] }
 0x248   : > { %10025 = vmatprep.mubr.msk.bf16.mxu1 %vm11191_vm0, %v19240_v61  ;;  %19529 = vst [vmem:[#allocation17_spill] sm:$0xff] %v13319_v12  ;;  %v1400_v55 = vmul.f32 %v19531_v2, %v19530_v47  ;;  %19533 = vst [vmem:[#allocation18_spill] sm:$0xff] %v13327_v42  ;;  %v19538_v47 = vmax.f32 %v13198_v46, 0.0  ;;  %10374 = vmatpush3.bf16.msra.mxu0 %v11103_v30 }
 0x249   : > { %v9976_v23 = vpop.f32.mrf.mxu1  ;;  %v13341_v2 = vsel %vm2981_vm2, %v3675_v44, %v3679_v53  ;;  %v19540_v44 = vmax.f32 %v13178_v59, 0.0  ;;  %10375 = vmatprep.subr.bf16.mxu0 %v19240_v61 }
 0x24a   : > { %v13332_v62 = vpack.c.bf16 %v1401_v1, %v1400_v55  ;;  %19537 = vst [vmem:[#allocation190_spill] sm:$0xff] %v13341_v2  ;;  %v19539_v23 = vld [vmem:[#allocation19_spill] sm:$0xff]  ;;  %v19541_v1 = vld [vmem:[#allocation20_spill] sm:$0xff] }
 0x24b   : > { %v1403_v12 = vmul.f32 %v19539_v23, %v19538_v47  ;;  %v1402_v46 = vmul.f32 %v19541_v1, %v19540_v44  ;;  %v13361_v47 = vshrl.u32 %v19542_v51, 16  ;;  %v13364_v23 = vshll.u32 %v19542_v51, 16  ;;  %v19547_v1 = vld [vmem:[#allocation82_spill] sm:$0xff] }
 0x24c   : > { %10186 = vmatmul.mubr.msk.bf16.gmra.mxu0 %vm2056_vm9, %v13308_v14  ;;  %19535 = vst [vmem:[#allocation188_spill] sm:$0xff] %v13332_v62  ;;  %v13335_v14 = vsel %vm1988_vm8, %v2036_v63, %v2038_v41  ;;  %v2040_v55 = vrot.slane %v13332_v62, 4  ;;  %v3682_v63 = vrot.slane %v13330_v57, 5  ;;  %v13377_v48 = vshrl.u32 %v19547_v1, 16 }
 0x24d   : > { %10189 = vmatprep.mubr.msk.bf16.mxu0 %vm11191_vm0, %v19240_v61  ;;  %19536 = vst [vmem:[#allocation189_spill] sm:$0xff] %v13335_v14  ;;  %19543 = vst [vmem:[#allocation19_spill] sm:$0xff] %v13361_v47  ;;  %v3685_v59 = vrot.slane %v13361_v47, 4  ;;  %v3686_v44 = vrot.slane %v13364_v23, 5  ;;  %v13380_v30 = vshll.u32 %v19547_v1, 16  ;;  %v13459_v62 = vshll.u32 %v13094_v34, 16 }
 0x24e   : > { %19544 = vst [vmem:[#allocation20_spill] sm:$0xff] %v13364_v23  ;;  %v3683_v56 = vor.u32 %v3682_v63, %v3681_v21  ;;  %19548 = vst [vmem:[#allocation193_spill] sm:$0xff] %v13377_v48  ;;  %v19551_v21 = vld [vmem:[#allocation71_spill] sm:$0xff]  ;;  %v2516_v54 = vrot.slane %v13377_v48, 3  ;;  %v2555_v23 = vrot.slane %v13425_v7, 4 }
 0x24f   : > { %10026 = vmatmul.mubr.msk.bf16.gmra.mxu1 %vm2056_vm9, %v13335_v14  ;;  %v13366_v14 = vpack.c.bf16 %v1403_v12, %v1402_v46  ;;  %19549 = vst [vmem:[#allocation194_spill] sm:$0xff] %v13380_v30  ;;  %v13389_v63 = vshrl.u32 %v19551_v21, 16  ;;  %v13392_v46 = vshll.u32 %v19551_v21, 16  ;;  %v13412_v21 = vshrl.u32 %v12715_v3, 16 }
 0x250   : > { %10029 = vmatprep.mubr.msk.bf16.mxu1 %vm11191_vm0, %v19240_v61  ;;  %v13383_v12 = vsel %vm2981_vm2, %v3679_v53, %v3683_v56  ;;  %v11105_v53 = vld [vmem:[%s18872_s4 + $0x40] sm:$0xff]   ;;  %v3687_v45 = vor.u32 %v3686_v44, %v3685_v59  ;;  %v2519_v15 = vrot.slane %v13380_v30, 4  ;;  %v13441_v59 = vshll.u32 %v13027_v31, 16 }
 0x251   : > { %19545 = vst [vmem:[#allocation191_spill] sm:$0xff] %v13366_v14  ;;  %19550 = vst [vmem:[#allocation195_spill] sm:$0xff] %v13383_v12  ;;  %10376 = vmatpush3.bf16.msra.mxu0 %v11105_v53  ;;  %v19557_v11 = vrot.slane %v13366_v14, 4  ;;  %v13444_v44 = vshrl.u32 %v13040_v26, 16  ;;  %v13447_v53 = vshll.u32 %v13040_v26, 16  ;;  %v2543_v35 = vrot.slane %v13412_v21, 3 }
 0x252   : > { %19552 = vst [vmem:[#allocation196_spill] sm:$0xff] %v13389_v63  ;;  %19553 = vst [vmem:[#allocation197_spill] sm:$0xff] %v13392_v46  ;;  %10597 = vmatprep.subr.bf16.mxu0 %v19240_v61 }
 0x254   : > { %10190 = vmatmul.mubr.msk.bf16.gmra.mxu0 %vm2056_vm9, %v13341_v2  ;;  %v13369_v2 = vsel %vm1988_vm8, %v2038_v41, %v2040_v55  ;;  %v13406_v41 = vshrl.u32 %v12570_v19, 16  ;;  %v13427_v19 = vpop.f32.mrf.mxu1 }
 0x255   : > { %10193 = vmatprep.mubr.msk.bf16.mxu0 %vm11191_vm0, %v19240_v61  ;;  %19546 = vst [vmem:[#allocation192_spill] sm:$0xff] %v13369_v2  ;;  %19556 = vst [vmem:[#allocation199_spill] sm:$0xff] %v13427_v19 }
 0x256   : > { %v9979_v19 = vpop.f32.mrf.mxu1  ;;  %v2534_v4 = vrot.slane %v13406_v41, 3 }
 0x257   : > { %10030 = vmatmul.mubr.msk.bf16.gmra.mxu1 %vm2056_vm9, %v13369_v2  ;;  %v19554_v2 = vld [vmem:[#allocation89_spill] sm:$0xff]  ;;  %v13464_v19 = vsel %vm2981_vm2, %v3683_v56, %v3687_v45 }
 0x258   : > { %10033 = vmatprep.mubr.msk.bf16.mxu1 %vm11191_vm0, %v19240_v61  ;;  %v13395_v51 = vshrl.u32 %v19554_v2, 16  ;;  %v13403_v1 = vshll.u32 %v19554_v2, 16  ;;  %v13422_v2 = vshrl.u32 %v12880_v60, 16  ;;  %v3690_v60 = vrot.slane %v13392_v46, 5  ;;  %19561 = vst [vmem:[#allocation203_spill] sm:$0xff] %v13464_v19  ;;  %v13466_v26 = vpop.f32.mrf.mxu1 }
 0x259   : > { %19562 = vst [vmem:[#allocation204_spill] sm:$0xff] %v13466_v26  ;;  %v13472_v46 = vor.u32 %v2519_v15, %v2516_v54  ;;  %v2561_v15 = vrot.slane %v13430_v37, 3 }
 0x25a   : > { %v2528_v31 = vrot.slane %v13403_v1, 4  ;;  %v9980_v56 = vpop.f32.mrf.mxu1  ;;  %v2552_v24 = vrot.slane %v13422_v2, 3 }
 0x25b   : > { %19563 = vst [vmem:[#allocation205_spill] sm:$0xff] %v13472_v46 }
 0x25c   : > { %10194 = vmatmul.mubr.msk.bf16.gmra.mxu0 %vm2056_vm9, %v13383_v12  ;;  %v13416_v12 = vpop.f32.mrf.mxu0  ;;  %v2556_v56 = vor.u32 %v2555_v23, %v2552_v24  ;;  %v19568_v23 = vld [vmem:[#allocation122_spill] sm:$0xff] }
 0x25d   : > { %10197 = vmatprep.mubr.msk.bf16.mxu0 %vm11191_vm0, %v19240_v61  ;;  %19555 = vst [vmem:[#allocation198_spill] sm:$0xff] %v13416_v12  ;;  %v13435_v12 = vsel %vm1988_vm8, %v2040_v55, %v19557_v11  ;;  %v2525_v11 = vrot.slane %v13395_v51, 3  ;;  %v3689_v55 = vrot.slane %v13389_v63, 4  ;;  %v2537_v63 = vrot.slane %v13409_v49, 4 }
 0x25e   : > { %19558 = vst [vmem:[#allocation200_spill] sm:$0xff] %v13435_v12  ;;  %v9963_v3 = vpop.f32.mrf.mxu0 }
 0x25f   : > { %v13451_v3 = vshrl.u32 %v13094_v34, 16  ;;  %10034 = vmatmul.mubr.msk.bf16.gmra.mxu1 %vm2056_vm9, %v13435_v12  ;;  %v2529_v34 = vor.u32 %v2528_v31, %v2525_v11  ;;  %v2546_v12 = vrot.slane %v13419_v10, 4  ;;  %v2538_v26 = vor.u32 %v2537_v63, %v2534_v4 }
 0x260   : > { %v13455_v14 = vpop.f32.mrf.mxu0  ;;  %10041 = vmatprep.mubr.msk.bf16.mxu1 %vm11191_vm0, %v19240_v61  ;;  %v2564_v4 = vrot.slane %v13441_v59, 4  ;;  %v2570_v63 = vrot.slane %v13444_v44, 3 }
 0x261   : > { %19559 = vst [vmem:[#allocation201_spill] sm:$0xff] %v13451_v3  ;;  %19560 = vst [vmem:[#allocation202_spill] sm:$0xff] %v13455_v14  ;;  %v13484_v54 = vsel %vm2387_vm14, %v13472_v46, %v2529_v34  ;;  %v2547_v31 = vor.u32 %v2546_v12, %v2543_v35  ;;  %v13488_v11 = vsel %vm2387_vm14, %v2529_v34, %v2538_v26  ;;  %v2579_v35 = vrot.slane %v13451_v3, 3 }
 0x262   : > { %v9964_v14 = vpop.f32.mrf.mxu0  ;;  %19564 = vst [vmem:[#allocation206_spill] sm:$0xff] %v13484_v54  ;;  %19565 = vst [vmem:[#allocation207_spill] sm:$0xff] %v13488_v11  ;;  %v2582_v12 = vrot.slane %v13459_v62, 4  ;;  %v2565_v24 = vor.u32 %v2564_v4, %v2561_v15  ;;  %v2408_v11 = vrot.slane %v19568_v23, 3  ;;  %v19569_v54 = vld [vmem:[#allocation128_spill] sm:$0xff]  ;;  %v2426_v23 = vrot.slane %v13022_v58, 3 }
 0x263   : > { %v3691_v14 = vor.u32 %v3690_v60, %v3689_v55  ;;  %v13496_v60 = vsel %vm2387_vm14, %v2538_v26, %v2547_v31  ;;  %v2573_v55 = vrot.slane %v13447_v53, 4  ;;  %v13502_v34 = vsel %vm2387_vm14, %v2547_v31, %v2556_v56  ;;  %v11104_v15 = vld [vmem:[%s18872_s4 + $0x30] sm:$0xff]  }
 0x264   : > { %10198 = vmatmul.mubr.msk.bf16.gmra.mxu0 %vm2056_vm9, %v13464_v19  ;;  %v11102_v19 = vld [vmem:[%s18872_s4 + $0x38] sm:$0xff]   ;;  %19566 = vst [vmem:[#allocation208_spill] sm:$0xff] %v13496_v60  ;;  %19567 = vst [vmem:[#allocation209_spill] sm:$0xff] %v13502_v34  ;;  %v2411_v46 = vrot.slane %v19569_v54, 4  ;;  %v13506_v5 = vor.u32 %v2582_v12, %v2579_v35  ;;  %v3693_v26 = vrot.slane %v13377_v48, 4  ;;  %v13512_v60 = vsel %vm2387_vm14, %v2556_v56, %v2565_v24  ;;  %v13552_v12 = vpop.f32.mrf.mxu0 }
 0x265   : > { %10201 = vmatprep.mubr.msk.bf16.mxu0 %vm11191_vm0, %v19240_v61  ;;  %v2574_v47 = vor.u32 %v2573_v55, %v2570_v63  ;;  %19570 = vst [vmem:[#allocation210_spill] sm:$0xff] %v13512_v60  ;;  %v13515_v38 = vsel %vm2981_vm2, %v3687_v45, %v3691_v14  ;;  %v3694_v31 = vrot.slane %v13380_v30, 5  ;;  %v2417_v63 = vrot.slane %v12822_v16, 3  ;;  %19575 = vst [vmem:[#allocation215_spill] sm:$0xff] %v13552_v12 }
 0x266   : > { %19571 = vst [vmem:[#allocation211_spill] sm:$0xff] %v13515_v38  ;;  %v2412_v45 = vor.u32 %v2411_v46, %v2408_v11  ;;  %v3697_v55 = vrot.slane %v13395_v51, 4  ;;  %v3698_v46 = vrot.slane %v13403_v1, 5  ;;  %v4522_v11 = vrot.slane %v13395_v51, 7 }
 0x267   : > { %10042 = vmatmul.mubr.msk.bf16.vlgmr.msra.gmra.mxu1 %vm2056_vm9, %v13268_v43  ;;  %v13524_v43 = vsel %vm2387_vm14, %v2565_v24, %v2574_v47  ;;  %v13528_v56 = vsel %vm2387_vm14, %v2574_v47, %v13506_v5  ;;  %v2420_v47 = vrot.slane %v12878_v40, 4  ;;  %v4528_v24 = vrot.slane %v13412_v21, 7 }
 0x268   : > { %10262 = vmatpush3.bf16.msra.mxu1 %v11102_v19  ;;  %10045 = vmatprep.mubr.msk.bf16.mxu1 %vm11191_vm0, %v19240_v61  ;;  %19572 = vst [vmem:[#allocation212_spill] sm:$0xff] %v13524_v43  ;;  %19573 = vst [vmem:[#allocation213_spill] sm:$0xff] %v13528_v56  ;;  %v3695_v19 = vor.u32 %v3694_v31, %v3693_v26  ;;  %v2413_v4 = vsel %vm2387_vm14, %v13261_v25, %v2412_v45  ;;  %v4525_v25 = vrot.slane %v13406_v41, 7  ;;  %v13557_v26 = vpop.f32.mrf.mxu1 }
 0x269   : > { %10263 = vmatprep.subr.bf16.mxu1 %v19240_v61  ;;  %19576 = vst [vmem:[#allocation216_spill] sm:$0xff] %v13557_v26  ;;  %v13560_v31 = vor.u32 %v4522_v11, %v13403_v1  ;;  %v3699_v12 = vor.u32 %v3698_v46, %v3697_v55 }
 0x26a   : > { %v13543_v35 = vsel %vm2981_vm2, %v3691_v14, %v3695_v19  ;;  %v2421_v14 = vor.u32 %v2420_v47, %v2417_v63  ;;  %v9983_v40 = vpop.f32.mrf.mxu1  ;;  %v4534_v63 = vrot.slane %v13430_v37, 7 }
 0x26b   : > { %19574 = vst [vmem:[#allocation214_spill] sm:$0xff] %v13543_v35  ;;  %19577 = vst [vmem:[#allocation217_spill] sm:$0xff] %v13560_v31  ;;  %v2429_v40 = vrot.slane %v13025_v13, 4 }
 0x26c   : > { %10202 = vmatmul.mubr.msk.bf16.gmra.mxu0 %vm2056_vm9, %v13515_v38  ;;  %10264 = vmatpush3.bf16.msra.mxu1 %v11104_v15  ;;  %v4526_v15 = vor.u32 %v4525_v25, %v13409_v49  ;;  %v4529_v38 = vor.u32 %v4528_v24, %v13419_v10  ;;  %v2422_v54 = vsel %vm2387_vm14, %v2412_v45, %v2421_v14  ;;  %v13579_v55 = vpop.f32.mrf.mxu1  ;;  %v3701_v45 = vrot.slane %v13406_v41, 4 }
 0x26d   : > { %10205 = vmatprep.mubr.msk.bf16.mxu0 %vm11191_vm0, %v19240_v61  ;;  %10485 = vmatprep.subr.bf16.mxu1 %v19240_v61  ;;  %19581 = vst [vmem:[#allocation221_spill] sm:$0xff] %v13579_v55  ;;  %v4535_v46 = vor.u32 %v4534_v63, %v13441_v59  ;;  %v3702_v55 = vrot.slane %v13409_v49, 5 }
 0x26e   : > { %v13566_v16 = vsel %vm4481_vm15, %v4522_v11, %v4526_v15  ;;  %v13572_v26 = vsel %vm4481_vm15, %v4525_v25, %v4529_v38  ;;  %v13588_v15 = vsel %vm2981_vm2, %v3695_v19, %v3699_v12  ;;  %v2430_v19 = vor.u32 %v2429_v40, %v2426_v23 }
 0x26f   : > { %10046 = vmatmul.mubr.msk.bf16.gmra.mxu1 %vm2056_vm9, %v2413_v4  ;;  %v9967_v4 = vpop.f32.mrf.mxu0  ;;  %19578 = vst [vmem:[#allocation218_spill] sm:$0xff] %v13566_v16  ;;  %19580 = vst [vmem:[#allocation220_spill] sm:$0xff] %v13572_v26  ;;  %v19662_v16 = vld [vmem:[#allocation3_spill] sm:$0xff] }
 0x270   : > { %10049 = vmatprep.mubr.msk.bf16.mxu1 %vm11191_vm0, %v19240_v61  ;;  %v4537_v4 = vrot.slane %v13444_v44, 7  ;;  %19583 = vst [vmem:[#allocation223_spill] sm:$0xff] %v13588_v15 }
 0x271   : > { %v13569_v47 = vpop.f32.mrf.mxu0 }
 0x272   : > { %19579 = vst [vmem:[#allocation219_spill] sm:$0xff] %v13569_v47  ;;  %v4538_v25 = vor.u32 %v4537_v4, %v13447_v53  ;;  %v9984_v47 = vpop.f32.mrf.mxu1 }
 0x273   : > { %v9968_v11 = vpop.f32.mrf.mxu0  ;;  %v13607_v47 = vsel %vm2387_vm14, %v2421_v14, %v2430_v19  ;;  %v3705_v14 = vrot.slane %v13412_v21, 4 }
 0x274   : > { %10206 = vmatmul.mubr.msk.bf16.gmra.mxu0 %vm2056_vm9, %v13543_v35  ;;  %v4531_v35 = vrot.slane %v13422_v2, 7  ;;  %v19109_v11 = vrot.slane %v13451_v3, 7 }
 0x275   : > { %10209 = vmatprep.mubr.msk.bf16.mxu0 %vm11191_vm0, %v19240_v61 }
 0x276   : > { %v4532_v31 = vor.u32 %v4531_v35, %v13425_v7  ;;  %v13595_v26 = vsel %vm4481_vm15, %v4531_v35, %v4535_v46  ;;  %v2435_v35 = vrot.slane %v13035_v6, 3  ;;  %v2438_v46 = vrot.slane %v13038_v20, 4 }
 0x277   : > { %10050 = vmatmul.mubr.msk.bf16.gmra.mxu1 %vm2056_vm9, %v2422_v54  ;;  %19584 = vst [vmem:[#allocation224_spill] sm:$0xff] %v13595_v26  ;;  %v13600_v54 = vsel %vm4481_vm15, %v4534_v63, %v4538_v25  ;;  %v4541_v63 = vor.u32 %v19109_v11, %v13459_v62  ;;  %v19112_v25 = vrot.slane %v13380_v30, 1  ;;  %v5534_v26 = vrot.slane %v13419_v10, 1  ;;  %v19668_v30 = vld [vmem:[#allocation20_spill] sm:$0xff] }
 0x278   : > { %v13584_v38 = vsel %vm4481_vm15, %v4528_v24, %v4532_v31  ;;  %10053 = vmatprep.mubr.msk.bf16.mxu1 %vm11191_vm0, %v19240_v61  ;;  %19585 = vst [vmem:[#allocation225_spill] sm:$0xff] %v13600_v54  ;;  %v3703_v24 = vor.u32 %v3702_v55, %v3701_v45  ;;  %v19586_v31 = vld [vmem:[#allocation93_spill] sm:$0xff]  ;;  %v3706_v55 = vrot.slane %v13419_v10, 5  ;;  %v19591_v45 = vld [vmem:[#allocation88_spill] sm:$0xff]  ;;  %v2439_v11 = vor.u32 %v2438_v46, %v2435_v35 }
 0x279   : > { %19582 = vst [vmem:[#allocation222_spill] sm:$0xff] %v13584_v38  ;;  %vm1807_vm3 = vcmp.eq.s32.totalorder %v19586_v31, 1  ;;  %19587 = vst [vmem:[#allocation93_spill] sm:$0xff] %v13607_v47  ;;  %vm1804_vm5 = vcmp.eq.s32.totalorder %v19591_v45, 1  ;;  %v13632_v31 = vsel %vm4481_vm15, %v4537_v4, %v4541_v63  ;;  %v5531_v54 = vrot.slane %v13409_v49, 1  ;;  %v19593_v38 = vld [vmem:[#allocation87_spill] sm:$0xff] }
 0x27a   : > { %vm13616_vm4 = vmpackc.low %vm1807_vm3, %vm1807_vm3  ;;  %v13621_v40 = vsel %vm2981_vm2, %v3699_v12, %v3703_v24  ;;  %19592 = vst [vmem:[#allocation88_spill] sm:$0xff] %v13632_v31  ;;  %v5528_v12 = vrot.slane %v13403_v1, 1  ;;  %vm1803_vm7 = vcmp.eq.s32.totalorder %v19593_v38, 1  ;;  %v3707_v63 = vor.u32 %v3706_v55, %v3705_v14  ;;  %v13656_v31 = vpop.f32.mrf.mxu0 }
 0x27b   : > { %19590 = vst [vmem:[#allocation226_spill] sm:$0xff] %v13621_v40  ;;  %v5533_v46 = vor.u32 %v5531_v54, %v13406_v41  ;;  %v5536_v49 = vor.u32 %v5534_v26, %v13412_v21  ;;  %v2444_v10 = vrot.slane %v13080_v8, 3  ;;  %19596 = vst [vmem:[#allocation228_spill] sm:$0xff] %v13656_v31  ;;  %v5540_v41 = vrot.slane %v13441_v59, 1 }
 0x27c   : > { %10210 = vmatmul.mubr.msk.bf16.gmra.mxu0 %vm2056_vm9, %v13588_v15  ;;  %v5527_v15 = vor.u32 %v19112_v25, %v13377_v48  ;;  %v5530_v1 = vor.u32 %v5528_v12, %v13395_v51  ;;  %v2447_v25 = vrot.slane %v13086_v50, 4  ;;  %v13663_v51 = vsel %vm2387_vm14, %v2430_v19, %v2439_v11  ;;  %vm13673_vm11 = vmpackc.low %vm1803_vm7, %vm1803_vm7  ;;  %v9971_v19 = vpop.f32.mrf.mxu0 }
 0x27d   : > { %10213 = vmatprep.mubr.msk.bf16.mxu0 %vm11191_vm0, %v19240_v61  ;;  %19598 = vst [vmem:[#allocation230_spill] sm:$0xff] %v13663_v51  ;;  %v5543_v21 = vrot.slane %v13447_v53, 1  ;;  %v3710_v38 = vrot.slane %v13425_v7, 5  ;;  %vm1870_vm13 = vmpackc.low %vm1804_vm5, %vm1804_vm5  ;;  %v2501_v48 = vrot.slane %v19668_v30, 4  ;;  %v19687_v30 = vld [vmem:[#allocation188_spill] sm:$0xff] }
 0x27e   : > { %v13650_v35 = vsel %vm5489_vm10, %v5527_v15, %v5528_v12  ;;  %v13659_v23 = vsel %vm5489_vm10, %v5530_v1, %v5531_v54  ;;  %v13666_v15 = vsel %vm5489_vm10, %v5533_v46, %v5534_v26  ;;  %v3709_v54 = vrot.slane %v13422_v2, 4  ;;  %v13690_v1 = vpop.f32.mrf.mxu1 }
 0x27f   : > { %10054 = vmatmul.mubr.msk.bf16.gmra.mxu1 %vm2056_vm9, %v13607_v47  ;;  %19595 = vst [vmem:[#allocation227_spill] sm:$0xff] %v13650_v35  ;;  %19597 = vst [vmem:[#allocation229_spill] sm:$0xff] %v13659_v23  ;;  %v13685_v12 = vsel %vm2981_vm2, %v3703_v24, %v3707_v63  ;;  %v5542_v46 = vor.u32 %v5540_v41, %v13430_v37  ;;  %v5545_v19 = vor.u32 %v5543_v21, %v13444_v44 }
 0x280   : > { %10057 = vmatprep.mubr.msk.bf16.mxu1 %vm11191_vm0, %v19240_v61  ;;  %19599 = vst [vmem:[#allocation231_spill] sm:$0xff] %v13666_v15  ;;  %19603 = vst [vmem:[#allocation233_spill] sm:$0xff] %v13685_v12  ;;  %v2448_v45 = vor.u32 %v2447_v25, %v2444_v10  ;;  %v9987_v15 = vpop.f32.mrf.mxu1  ;;  %v2453_v10 = vrot.slane %v13133_v28, 3 }
 0x281   : > { %19604 = vst [vmem:[#allocation234_spill] sm:$0xff] %v13690_v1  ;;  %v13714_v23 = vsel %vm5489_vm10, %v5542_v46, %v5543_v21  ;;  %v5546_v21 = vrot.slane %v13459_v62, 1 }
 0x282   : > { %19608 = vst [vmem:[#allocation238_spill] sm:$0xff] %v13714_v23  ;;  %v13726_v25 = vsel %vm2387_vm14, %v2439_v11, %v2448_v45  ;;  %v3714_v11 = vrot.slane %v13441_v59, 5 }
 0x283   : > { %19611 = vst [vmem:[#allocation241_spill] sm:$0xff] %v13726_v25 }
 0x284   : > { %10214 = vmatmul.mubr.msk.bf16.gmra.mxu0 %vm2056_vm9, %v13621_v40  ;;  %v11130_v40 = vld [vmem:[%s11299_s24 + $0xb8] sm:$0xf] }
 0x285   : > { %10217 = vmatprep.mubr.msk.bf16.mxu0 %vm11191_vm0, %v19240_v61  ;;  %v13646_v4 = vsel %vm13616_vm4, %v11130_v40, -1.00492276e+30  ;;  %v5537_v40 = vrot.slane %v13425_v7, 1 }
 0x286   : > { %19594 = vst [vmem:[#allocation87_spill] sm:$0xff] %v13646_v4  ;;  %v3438_v24 = vshrl.u32 %v13646_v4, 16 }
 0x287   : > { %10058 = vmatmul.mubr.msk.bf16.gmra.mxu1 %vm2056_vm9, %v13663_v51  ;;  %v13681_v26 = vsel %vm5489_vm10, %v5536_v49, %v5537_v40  ;;  %v5539_v55 = vor.u32 %v5537_v40, %v13422_v2  ;;  %v3434_v2 = vshll.u32 %v13646_v4, 16  ;;  %v13701_v49 = vpop.f32.mrf.mxu0  ;;  %v11131_v40 = vld [vmem:[%s11299_s24 + $0xa8] sm:$0xf] }
 0x288   : > { %19602 = vst [vmem:[#allocation232_spill] sm:$0xff] %v13681_v26  ;;  %10061 = vmatprep.mubr.msk.bf16.mxu1 %vm11191_vm0, %v19240_v61  ;;  %19605 = vst [vmem:[#allocation235_spill] sm:$0xff] %v13701_v49  ;;  %v13709_v26 = vsel %vm13673_vm11, %v11131_v40, -1.00492276e+30  ;;  %v3711_v49 = vor.u32 %v3710_v38, %v3709_v54  ;;  %v3713_v38 = vrot.slane %v13430_v37, 4 }
 0x289   : > { %v13704_v7 = vsel %vm5489_vm10, %v5539_v55, %v5540_v41  ;;  %19607 = vst [vmem:[#allocation237_spill] sm:$0xff] %v13709_v26  ;;  %v9972_v35 = vpop.f32.mrf.mxu0  ;;  %v13719_v41 = vpop.f32.mrf.mxu1  ;;  %v3394_v55 = vshll.u32 %v13709_v26, 16  ;;  %v3398_v14 = vshrl.u32 %v13709_v26, 16  ;;  %v13723_v40 = vrot.slane %v3434_v2, 5 }
 0x28a   : > { %19606 = vst [vmem:[#allocation236_spill] sm:$0xff] %v13704_v7  ;;  %19610 = vst [vmem:[#allocation240_spill] sm:$0xff] %v13719_v41  ;;  %v3440_v7 = vrot.slane %v3438_v24, 4  ;;  %v2456_v35 = vrot.slane %v13136_v18, 4  ;;  %v13737_v46 = vsel %vm2981_vm2, %v3707_v63, %v3711_v49  ;;  %v13743_v2 = vsel %vm5489_vm10, %v5545_v19, %v5546_v21  ;;  %v19616_v41 = vld [vmem:[#allocation98_spill] sm:$0xff] }
 0x28b   : > { %v9988_v15 = vpop.f32.mrf.mxu1  ;;  %19612 = vst [vmem:[#allocation242_spill] sm:$0xff] %v13737_v46  ;;  %19613 = vst [vmem:[#allocation243_spill] sm:$0xff] %v13743_v2  ;;  %v13746_v24 = vor.u32 %v5546_v21, %v13451_v3  ;;  %v3400_v23 = vrot.slane %v3398_v14, 4  ;;  %v3428_v31 = vshrl.u32 %v19616_v41, 16  ;;  %v3715_v2 = vor.u32 %v3714_v11, %v3713_v38 }
 0x28c   : > { %10218 = vmatmul.mubr.msk.bf16.gmra.mxu0 %vm2056_vm9, %v13685_v12  ;;  %v11132_v12 = vld [vmem:[%s11299_s24 + $0xac] sm:$0xf]  ;;  %v13748_v15 = vrot.slane %v3394_v55, 5  ;;  %v3441_v37 = vor.u32 %v3440_v7, %v13723_v40  ;;  %v2457_v59 = vor.u32 %v2456_v35, %v2453_v10  ;;  %v4337_v7 = vrot.slane %v13646_v4, 5 }
 0x28d   : > { %10221 = vmatprep.mubr.msk.bf16.mxu0 %vm11191_vm0, %v19240_v61  ;;  %v13717_v1 = vsel %vm1870_vm13, %v11132_v12, -1.00492276e+30  ;;  %19614 = vst [vmem:[#allocation244_spill] sm:$0xff] %v13746_v24  ;;  %v3430_v24 = vrot.slane %v3428_v31, 4  ;;  %v13766_v10 = vsel %vm2981_vm2, %v3711_v49, %v3715_v2  ;;  %v3717_v31 = vrot.slane %v13444_v44, 4  ;;  %v19619_v35 = vld [vmem:[#allocation103_spill] sm:$0xff] }
 0x28e   : > { %19609 = vst [vmem:[#allocation239_spill] sm:$0xff] %v13717_v1  ;;  %v3404_v54 = vshll.u32 %v13717_v1, 16  ;;  %v3408_v12 = vshrl.u32 %v13717_v1, 16  ;;  %19615 = vst [vmem:[#allocation245_spill] sm:$0xff] %v13748_v15  ;;  %v3401_v21 = vor.u32 %v3400_v23, %v13748_v15  ;;  %v3442_v55 = vrot.slane %v3441_v37, 4  ;;  %v13783_v37 = vpop.f32.mrf.mxu0 }
 0x28f   : > { %10062 = vmatmul.mubr.msk.bf16.gmra.mxu1 %vm2056_vm9, %v13726_v25  ;;  %v13758_v14 = vsel %vm2387_vm14, %v2448_v45, %v2457_v59  ;;  %v2462_v25 = vrot.slane %v13190_v29, 3  ;;  %19618 = vst [vmem:[#allocation247_spill] sm:$0xff] %v13766_v10  ;;  %v3718_v23 = vrot.slane %v13447_v53, 5  ;;  %v4339_v53 = vrot.slane %v4337_v7, 4 }
 0x290   : > { %10065 = vmatprep.mubr.msk.bf16.mxu1 %vm11191_vm0, %v19240_v61  ;;  %v3406_v63 = vrot.slane %v3404_v54, 5  ;;  %v3410_v19 = vrot.slane %v3408_v12, 4  ;;  %19617 = vst [vmem:[#allocation246_spill] sm:$0xff] %v13758_v14  ;;  %v3402_v45 = vrot.slane %v3401_v21, 4  ;;  %v3431_v54 = vor.u32 %v3430_v24, %v19619_v35  ;;  %v19620_v12 = vld [vmem:[#allocation102_spill] sm:$0xff]  ;;  %v13785_v21 = vpop.f32.mrf.mxu1  ;;  %v10155_v35 = vpop.f32.mrf.mxu0 }
 0x291   : > { %v13778_v38 = vsel %vm12552_vm6, %v3442_v55, %v19620_v12  ;;  %19622 = vst [vmem:[#allocation102_spill] sm:$0xff] %v13783_v37  ;;  %19623 = vst [vmem:[#allocation248_spill] sm:$0xff] %v13785_v21  ;;  %v2489_v37 = vrot.slane %v13327_v42, 3 }
 0x292   : > { %v3411_v51 = vor.u32 %v3410_v19, %v3406_v63  ;;  %19621 = vst [vmem:[#allocation103_spill] sm:$0xff] %v13778_v38  ;;  %v3719_v19 = vor.u32 %v3718_v23, %v3717_v31  ;;  %v13789_v24 = vsel %vm12552_vm6, %v3402_v45, %v3406_v63  ;;  %v3624_v55 = vmax.bf16 %v13778_v38, %v13646_v4  ;;  %v9991_v44 = vpop.f32.mrf.mxu1  ;;  %v19627_v63 = vld [vmem:[#allocation96_spill] sm:$0xff] }
 0x293   : > { %19624 = vst [vmem:[#allocation249_spill] sm:$0xff] %v13789_v24  ;;  %v3432_v12 = vrot.slane %v3431_v54, 4  ;;  %v4328_v31 = vrot.slane %v13717_v1, 5  ;;  %v19626_v23 = vrot.slane %v13709_v26, 5  ;;  %v19630_v54 = vld [vmem:[#allocation97_spill] sm:$0xff]  ;;  %v3620_v21 = vmax.bf16 %v13789_v24, %v13709_v26 }
 0x294   : > { %10222 = vmatmul.mubr.msk.bf16.gmra.mxu0 %vm2056_vm9, %v13737_v46  ;;  %v2465_v46 = vrot.slane %v13193_v17, 4  ;;  %v3412_v11 = vrot.slane %v3411_v51, 4  ;;  %v2471_v51 = vrot.slane %v13245_v22, 3  ;;  %v19631_v35 = vrot.slane %v19630_v54, 5 }
 0x295   : > { %10225 = vmatprep.mubr.msk.bf16.mxu0 %vm11191_vm0, %v19240_v61  ;;  %v4327_v15 = vrot.slane %v19626_v23, 4  ;;  %v3722_v23 = vrot.slane %v13459_v62, 5  ;;  %v13847_v26 = vshll.u32 %v13138_v27, 16 }
 0x296   : > { %v2466_v49 = vor.u32 %v2465_v46, %v2462_v25  ;;  %v2474_v46 = vrot.slane %v13251_v9, 4  ;;  %v13804_v45 = vsel %vm12552_vm6, %v3412_v11, %v19627_v63  ;;  %v13814_v44 = vsel %vm12583_vm12, %v4339_v53, %v19631_v35  ;;  %v13823_v63 = vpop.f32.mrf.mxu1 }
 0x297   : > { %10066 = vmatmul.mubr.msk.bf16.gmra.mxu1 %vm2056_vm9, %v13758_v14  ;;  %19628 = vst [vmem:[#allocation96_spill] sm:$0xff] %v13804_v45  ;;  %19632 = vst [vmem:[#allocation252_spill] sm:$0xff] %v13814_v44  ;;  %v3721_v11 = vrot.slane %v13451_v3, 4  ;;  %v4467_v54 = vmax.bf16 %v13814_v44, %v3624_v55  ;;  %v3621_v24 = vmax.bf16 %v13804_v45, %v13717_v1  ;;  %v19640_v1 = vld [vmem:[#allocation90_spill] sm:$0xff]  ;;  %v19661_v14 = vld [vmem:[#allocation153_spill] sm:$0xff] }
 0x298   : > { %10069 = vmatprep.mubr.msk.bf16.mxu1 %vm11191_vm0, %v19240_v61  ;;  %v13794_v25 = vsel %vm2387_vm14, %v2457_v59, %v2466_v49  ;;  %v13808_v59 = vpop.f32.mrf.mxu0  ;;  %19634 = vst [vmem:[#allocation254_spill] sm:$0xff] %v13823_v63  ;;  %v2475_v62 = vor.u32 %v2474_v46, %v2471_v51  ;;  %v9992_v35 = vpop.f32.mrf.mxu1  ;;  %v4330_v63 = vrot.slane %v4328_v31, 4  ;;  %v13841_v55 = vsel %vm12583_vm12, %v4327_v15, %v4328_v31  ;;  %v19639_v46 = vld [vmem:[#allocation114_spill] sm:$0xff] }
 0x299   : > { %19625 = vst [vmem:[#allocation250_spill] sm:$0xff] %v13794_v25  ;;  %19629 = vst [vmem:[#allocation251_spill] sm:$0xff] %v13808_v59  ;;  %v4463_v51 = vmax.bf16 %v13841_v55, %v3620_v21  ;;  %v5011_v35 = vmax.bf16 %v4467_v54, %v19639_v46  ;;  %v19641_v15 = vrot.slane %v19640_v1, 5 }
 0x29a   : > { %v10156_v53 = vpop.f32.mrf.mxu0  ;;  %19636 = vst [vmem:[#allocation256_spill] sm:$0xff] %v13841_v55  ;;  %v13892_v55 = vshll.u32 %v13200_v32, 16 }
 0x29b   : > { %v13844_v53 = vshrl.u32 %v13138_v27, 16  ;;  %v13859_v31 = vsel %vm12583_vm12, %v4330_v63, %v19641_v15  ;;  %v3726_v63 = vrot.slane %v13847_v26, 5  ;;  %v5007_v15 = vmax.bf16 %v4463_v51, %v19616_v41 }
 0x29c   : > { %10226 = vmatmul.mubr.msk.bf16.gmra.mxu0 %vm2056_vm9, %v13766_v10  ;;  %v13817_v10 = vsel %vm2981_vm2, %v3715_v2, %v3719_v19  ;;  %v13833_v2 = vsel %vm12552_vm6, %v3432_v12, %v13723_v40  ;;  %v3723_v40 = vor.u32 %v3722_v23, %v3721_v11  ;;  %v19638_v12 = vrot.slane %v19616_v41, 5  ;;  %19642 = vst [vmem:[#allocation114_spill] sm:$0xff] %v13859_v31 }
 0x29d   : > { %10229 = vmatprep.mubr.msk.bf16.mxu0 %vm11191_vm0, %v19240_v61  ;;  %19633 = vst [vmem:[#allocation253_spill] sm:$0xff] %v13817_v10  ;;  %19635 = vst [vmem:[#allocation255_spill] sm:$0xff] %v13833_v2  ;;  %v3623_v45 = vmax.bf16 %v13833_v2, %v19616_v41  ;;  %v2480_v11 = vrot.slane %v13288_v52, 3  ;;  %v2483_v23 = vrot.slane %v13293_v0, 4  ;;  %v4464_v21 = vmax.bf16 %v13859_v31, %v3621_v24  ;;  %v19646_v31 = vld [vmem:[#allocation133_spill] sm:$0xff]  ;;  %v19648_v41 = vld [vmem:[#allocation104_spill] sm:$0xff] }
 0x29e   : > { %19637 = vst [vmem:[#allocation257_spill] sm:$0xff] %v13844_v53  ;;  %v4336_v36 = vrot.slane %v19638_v12, 4  ;;  %v13874_v12 = vsel %vm2981_vm2, %v3719_v19, %v3723_v40  ;;  %v5475_v1 = vmax.bf16 %v5011_v35, %v19646_v31  ;;  %v13889_v19 = vshrl.u32 %v13200_v32, 16 }
 0x29f   : > { %10070 = vmatmul.mubr.msk.bf16.gmra.mxu1 %vm2056_vm9, %v13794_v25  ;;  %19645 = vst [vmem:[#allocation260_spill] sm:$0xff] %v13874_v12  ;;  %v5471_v33 = vmax.bf16 %v5007_v15, %v13833_v2  ;;  %v19654_v15 = vld [vmem:[#allocation120_spill] sm:$0xff]  ;;  %v19656_v2 = vld [vmem:[#allocation119_spill] sm:$0xff]  ;;  %v13990_v32 = vshrl.u32 %v19687_v30, 16 }
 0x2a0   : > { %10073 = vmatprep.mubr.msk.bf16.mxu1 %vm11191_vm0, %v19240_v61  ;;  %v13871_v54 = vsel %vm12583_vm12, %v4336_v36, %v4337_v7  ;;  %v2484_v36 = vor.u32 %v2483_v23, %v2480_v11  ;;  %v5008_v7 = vmax.bf16 %v4464_v21, %v13646_v4  ;;  %19647 = vst [vmem:[#allocation133_spill] sm:$0xff] %v13889_v19  ;;  %v11133_v11 = vld [vmem:[%s18871_s3] ss:$0 sm:$0xff]  ;;  %v19650_v23 = vld [vmem:[#allocation121_spill] sm:$0xff] }
 0x2a1   : > { %19644 = vst [vmem:[#allocation259_spill] sm:$0xff] %v13871_v54  ;;  %v4466_v24 = vmax.bf16 %v13871_v54, %v3623_v45  ;;  %v965_v21 = vadd.f32 %v11133_v11, %v19650_v23 }
 0x2a2   : > { %v5472_v45 = vmax.bf16 %v5008_v7, %v13778_v38  ;;  %v13903_v4 = vsel %vm2387_vm14, %v2475_v62, %v2484_v36 }
 0x2a3   : > { %v5010_v35 = vmax.bf16 %v4466_v24, %v19648_v41  ;;  %19651 = vst [vmem:[#allocation104_spill] sm:$0xff] %v13903_v4  ;;  %v19653_v24 = vld [vmem:[#allocation124_spill] sm:$0xff] }
 0x2a4   : > { %10230 = vmatmul.mubr.msk.bf16.gmra.mxu0 %vm2056_vm9, %v13817_v10  ;;  %v13862_v10 = vsel %vm2387_vm14, %v2466_v49, %v2475_v62  ;;  %v3725_v49 = vrot.slane %v13844_v53, 4  ;;  %v19655_v38 = vmax.bf16 %v19653_v24, %v19654_v15  ;;  %v3729_v62 = vrot.slane %v13889_v19, 4 }
 0x2a5   : > { %10233 = vmatprep.mubr.msk.bf16.mxu0 %vm11191_vm0, %v19240_v61  ;;  %19643 = vst [vmem:[#allocation258_spill] sm:$0xff] %v13862_v10  ;;  %v6030_v3 = vmax.bf16 %v5472_v45, %v13814_v44  ;;  %v6029_v24 = vmax.bf16 %v5471_v33, %v13871_v54  ;;  %v13934_v45 = vshrl.u32 %v19662_v16, 16  ;;  %v13937_v33 = vshll.u32 %v19662_v16, 16 }
 0x2a6   : > { %v3727_v51 = vor.u32 %v3726_v63, %v3725_v49  ;;  %v2492_v49 = vrot.slane %v13330_v57, 4  ;;  %v19652_v63 = vld [vmem:[#allocation129_spill] sm:$0xff]  ;;  %v13948_v16 = vpop.f32.mrf.mxu0 }
 0x2a7   : > { %10074 = vmatmul.mubr.msk.bf16.gmra.mxu1 %vm2056_vm9, %v13862_v10  ;;  %v5474_v7 = vmax.bf16 %v5010_v35, %v19652_v63  ;;  %v962_v10 = vadd.f32 %v11133_v11, %v19656_v2  ;;  %v3730_v35 = vrot.slane %v13892_v55, 5  ;;  %v1035_v2 = vmax.f32 %v965_v21, 0.0  ;;  %19663 = vst [vmem:[#allocation129_spill] sm:$0xff] %v13934_v45  ;;  %19669 = vst [vmem:[#allocation120_spill] sm:$0xff] %v13948_v16 }
 0x2a8   : > { %10077 = vmatprep.mubr.msk.bf16.mxu1 %vm11191_vm0, %v19240_v61  ;;  %v13916_v23 = vsel %vm2981_vm2, %v3723_v40, %v3727_v51  ;;  %v2493_v40 = vor.u32 %v2492_v49, %v2489_v37  ;;  %v6433_v21 = vmax.bf16 %v6030_v3, %v19639_v46  ;;  %v6432_v54 = vmax.bf16 %v6029_v24, %v19648_v41  ;;  %v19664_v37 = vld [vmem:[#allocation143_spill] sm:$0xff]  ;;  %v19672_v3 = vld [vmem:[#allocation156_spill] sm:$0xff] }
 0x2a9   : > { %v19673_v41 = vld [vmem:[#allocation27_spill] sm:$0xff]  ;;  %v3734_v24 = vrot.slane %v13937_v33, 5 }
 0x2ac   : > { %10234 = vmatmul.mubr.msk.bf16.gmra.mxu0 %vm2056_vm9, %v13874_v12  ;;  %v19649_v12 = vld [vmem:[#allocation137_spill] sm:$0xff] }
 0x2ad   : > { %10237 = vmatprep.mubr.msk.bf16.mxu0 %vm11191_vm0, %v19240_v61  ;;  %v6033_v59 = vmax.bf16 %v5475_v1, %v19649_v12  ;;  %v6437_v1 = vmax.bf16 %v19655_v38, %v12747_v39  ;;  %19657 = vst [vmem:[#allocation137_spill] sm:$0xff] %v13916_v23  ;;  %v19658_v38 = vld [vmem:[#allocation123_spill] sm:$0xff]  ;;  %v13929_v39 = vpop.f32.mrf.mxu1 }
 0x2ae   : > { %19659 = vst [vmem:[#allocation121_spill] sm:$0xff] %v13929_v39 }
 0x2af   : > { %10078 = vmatmul.mubr.msk.bf16.gmra.mxu1 %vm2056_vm9, %v13903_v4  ;;  %v6436_v15 = vmax.bf16 %v6033_v59, %v19658_v38  ;;  %v19660_v4 = vld [vmem:[#allocation135_spill] sm:$0xff]  ;;  %v6865_v47 = vmax.bf16 %v6437_v1, %v19661_v14  ;;  %v1034_v59 = vmax.f32 %v962_v10, 0.0  ;;  %v3731_v38 = vor.u32 %v3730_v35, %v3729_v62  ;;  %v9995_v44 = vpop.f32.mrf.mxu1 }
 0x2b0   : > { %10081 = vmatprep.mubr.msk.bf16.mxu1 %vm11191_vm0, %v19240_v61  ;;  %v6032_v25 = vmax.bf16 %v5474_v7, %v19660_v4  ;;  %v13944_v7 = vsel %vm2387_vm14, %v2484_v36, %v2493_v40  ;;  %v19667_v1 = vld [vmem:[#allocation19_spill] sm:$0xff]  ;;  %v19671_v44 = vld [vmem:[#allocation116_spill] sm:$0xff]  ;;  %v3733_v35 = vrot.slane %v13934_v45, 4 }
 0x2b1   : > { %v6864_v49 = vmax.bf16 %v6436_v15, %v19664_v37  ;;  %19666 = vst [vmem:[#allocation124_spill] sm:$0xff] %v13944_v7  ;;  %v2498_v14 = vrot.slane %v19667_v1, 3  ;;  %v13950_v10 = vpop.f32.mrf.mxu1  ;;  %v7277_v46 = vmax.bf16 %v6865_v47, %v19672_v3  ;;  %v13958_v36 = vsel %vm2981_vm2, %v3727_v51, %v3731_v38  ;;  %v10159_v15 = vpop.f32.mrf.mxu0  ;;  %v19675_v47 = vld [vmem:[#allocation151_spill] sm:$0xff]  ;;  %v19676_v3 = vld [vmem:[#allocation126_spill] sm:$0xff] }
 0x2b2   : > { %19670 = vst [vmem:[#allocation119_spill] sm:$0xff] %v13950_v10  ;;  %v6435_v62 = vmax.bf16 %v6032_v25, %v19671_v44  ;;  %19674 = vst [vmem:[#allocation135_spill] sm:$0xff] %v13958_v36  ;;  %v6860_v25 = vmax.bf16 %v6432_v54, %v19652_v63  ;;  %v970_v37 = vadd.f32 %v11133_v11, %v19676_v3  ;;  %v19680_v54 = vld [vmem:[#allocation16_spill] sm:$0xff] }
 0x2b3   : > { %v7276_v44 = vmax.bf16 %v6864_v49, %v19675_v47  ;;  %v2502_v10 = vor.u32 %v2501_v48, %v2498_v14  ;;  %v13974_v16 = vpop.f32.mrf.mxu0  ;;  %v6861_v15 = vmax.bf16 %v6433_v21, %v19646_v31  ;;  %v13978_v63 = vshrl.u32 %v19680_v54, 16  ;;  %v19683_v3 = vld [vmem:[#allocation196_spill] sm:$0xff] }
 0x2b4   : > { %10238 = vmatmul.mubr.msk.bf16.gmra.mxu0 %vm2056_vm9, %v13916_v23  ;;  %v19665_v23 = vld [vmem:[#allocation28_spill] sm:$0xff]  ;;  %19679 = vst [vmem:[#allocation116_spill] sm:$0xff] %v13974_v16  ;;  %v13981_v49 = vshll.u32 %v19680_v54, 16  ;;  %v3735_v47 = vor.u32 %v3734_v24, %v3733_v35  ;;  %v7272_v16 = vmax.bf16 %v6860_v25, %v19660_v4  ;;  %v1036_v31 = vmax.f32 %v970_v37, 0.0  ;;  %v19690_v37 = vld [vmem:[#allocation127_spill] sm:$0xff] }
 0x2b5   : > { %10241 = vmatprep.mubr.msk.bf16.mxu0 %vm11191_vm0, %v19240_v61  ;;  %v1407_v39 = vmul.f32 %v19665_v23, %v1035_v2  ;;  %v1406_v23 = vmul.f32 %v19673_v41, %v1034_v59  ;;  %v9996_v2 = vpop.f32.mrf.mxu1  ;;  %v19678_v59 = vld [vmem:[#allocation130_spill] sm:$0xff]  ;;  %19681 = vst [vmem:[#allocation27_spill] sm:$0xff] %v13978_v63  ;;  %v7273_v48 = vmax.bf16 %v6861_v15, %v19649_v12  ;;  %v19686_v21 = vld [vmem:[#allocation144_spill] sm:$0xff]  ;;  %v3737_v12 = vrot.slane %v13978_v63, 4  ;;  %v19691_v35 = vld [vmem:[#allocation191_spill] sm:$0xff] }
 0x2b6   : > { %v973_v41 = vadd.f32 %v11133_v11, %v19678_v59  ;;  %19682 = vst [vmem:[#allocation126_spill] sm:$0xff] %v13981_v49  ;;  %v2507_v2 = vrot.slane %v19683_v3, 3  ;;  %v19685_v11 = vld [vmem:[#allocation197_spill] sm:$0xff]  ;;  %v9443_v14 = vcombine.low %v7276_v44, %v7277_v46  ;;  %19688 = vst [vmem:[#allocation130_spill] sm:$0xff] %v13990_v32  ;;  %v3738_v46 = vrot.slane %v13981_v49, 5 }
 0x2b7   : > { %10082 = vmatmul.mubr.msk.bf16.gmra.mxu1 %vm2056_vm9, %v13944_v7  ;;  %v13969_v51 = vpack.c.bf16 %v1407_v39, %v1406_v23  ;;  %v19684_v39 = vld [vmem:[#allocation140_spill] sm:$0xff]  ;;  %v2510_v59 = vrot.slane %v19685_v11, 4  ;;  %v9441_v4 = vcombine.low %v7272_v16, %v7273_v48  ;;  %v14002_v24 = vshrl.u32 %v19691_v35, 16  ;;  %v19695_v16 = vld [vmem:[#allocation2_spill] sm:$0xff] }
 0x2b8   : > { %10085 = vmatprep.mubr.msk.bf16.mxu1 %vm11191_vm0, %v19240_v61  ;;  %v6863_v23 = vmax.bf16 %v6435_v62, %v19684_v39  ;;  %v1037_v3 = vmax.f32 %v973_v41, 0.0  ;;  %v13994_v62 = vsel %vm2387_vm14, %v2493_v40, %v2502_v10  ;;  %v14005_v25 = vshll.u32 %v19691_v35, 16 }
 0x2b9   : > { %19677 = vst [vmem:[#allocation28_spill] sm:$0xff] %v13969_v51  ;;  %v19162_v54 = vshrl.u32 %v13969_v51, 16  ;;  %19689 = vst [vmem:[#allocation140_spill] sm:$0xff] %v13994_v62  ;;  %v14008_v44 = vsel %vm2981_vm2, %v3731_v38, %v3735_v47  ;;  %v14012_v40 = vor.u32 %v2510_v59, %v2507_v2  ;;  %v14015_v41 = vshll.u32 %v19687_v30, 16  ;;  %v19699_v59 = vld [vmem:[#allocation30_spill] sm:$0xff] }
 0x2ba   : > { %v7275_v7 = vmax.bf16 %v6863_v23, %v19686_v21  ;;  %19692 = vst [vmem:[#allocation144_spill] sm:$0xff] %v14002_v24  ;;  %19693 = vst [vmem:[#allocation127_spill] sm:$0xff] %v14008_v44  ;;  %v14018_v15 = vshrl.u32 %v19695_v16, 16  ;;  %v14024_v23 = vshll.u32 %v19695_v16, 16  ;;  %v14027_v38 = vshll.u32 %v13969_v51, 16 }
 0x2bb   : > { %19694 = vst [vmem:[#allocation261_spill] sm:$0xff] %v14015_v41  ;;  %v14031_v2 = vrot.slane %v19162_v54, 4  ;;  %v1409_v48 = vmul.f32 %v19699_v59, %v1037_v3  ;;  %v14036_v21 = vor.u32 %v3738_v46, %v3737_v12  ;;  %v2633_v16 = vrot.slane %v14002_v24, 3 }
 0x2bc   : > { %10242 = vmatmul.mubr.msk.bf16.gmra.mxu0 %vm2056_vm9, %v13958_v36  ;;  %v10160_v36 = vpop.f32.mrf.mxu0  ;;  %19698 = vst [vmem:[#allocation262_spill] sm:$0xff] %v14027_v38  ;;  %v2636_v54 = vrot.slane %v14005_v25, 4  ;;  %v3742_v3 = vrot.slane %v14015_v41, 5  ;;  %v7754_v35 = vshrl.u32 %v9443_v14, 16  ;;  %v7757_v30 = vshll.u32 %v9443_v14, 16 }
 0x2bd   : > { %10245 = vmatprep.mubr.msk.bf16.mxu0 %vm11191_vm0, %v19240_v61  ;;  %v9442_v36 = vcombine.low %v19690_v37, %v7275_v7  ;;  %v19696_v7 = vld [vmem:[#allocation29_spill] sm:$0xff]  ;;  %v7739_v37 = vshll.u32 %v9441_v4, 16  ;;  %v6047_v12 = vrot.slane %v14018_v15, 3  ;;  %v6048_v46 = vrot.slane %v14024_v23, 4 }
 0x2be   : > { %v1408_v39 = vmul.f32 %v19696_v7, %v1036_v31  ;;  %19697 = vst [vmem:[#allocation29_spill] sm:$0xff] %v14024_v23  ;;  %v7736_v31 = vshrl.u32 %v9441_v4, 16  ;;  %v6879_v11 = vrot.slane %v14024_v23, 5  ;;  %v14059_v14 = vor.u32 %v2636_v54, %v2633_v16 }
 0x2bf   : > { %10086 = vmatmul.mubr.msk.bf16.gmra.mxu1 %vm2056_vm9, %v13994_v62  ;;  %v7745_v7 = vshrl.u32 %v9442_v36, 16  ;;  %v3741_v62 = vrot.slane %v13990_v32, 4  ;;  %v7748_v59 = vshll.u32 %v9442_v36, 16  ;;  %v7741_v57 = vrot.slane %v7739_v37, 4 }
 0x2c0   : > { %10089 = vmatprep.mubr.msk.bf16.mxu1 %vm11191_vm0, %v19240_v61  ;;  %v7738_v1 = vrot.slane %v7736_v31, 3  ;;  %v14055_v36 = vsel %vm2981_vm2, %v3735_v47, %v14036_v21  ;;  %v14061_v4 = vor.u32 %v6048_v46, %v6047_v12  ;;  %v19703_v42 = vrot.slane %v14024_v23, 1  ;;  %v14068_v31 = vpop.f32.mrf.mxu1 }
 0x2c1   : > { %v7747_v27 = vrot.slane %v7745_v7, 3  ;;  %19701 = vst [vmem:[#allocation263_spill] sm:$0xff] %v14055_v36  ;;  %19704 = vst [vmem:[#allocation265_spill] sm:$0xff] %v14068_v31  ;;  %v7750_v47 = vrot.slane %v7748_v59, 4  ;;  %v7756_v7 = vrot.slane %v7754_v35, 3  ;;  %v7759_v0 = vrot.slane %v7757_v30, 4 }
 0x2c2   : > { %19702 = vst [vmem:[#allocation264_spill] sm:$0xff] %v14061_v4  ;;  %v14072_v52 = vpack.c.bf16 %v1409_v48, %v1408_v39  ;;  %v14079_v54 = vsel %vm2387_vm14, %v14059_v14, %v14061_v4  ;;  %v9999_v46 = vpop.f32.mrf.mxu1  ;;  %v19710_v30 = vld [vmem:[#allocation172_spill] sm:$0xff]  ;;  %v3743_v48 = vor.u32 %v3742_v3, %v3741_v62 }
 0x2c3   : > { %19707 = vst [vmem:[#allocation268_spill] sm:$0xff] %v14079_v54  ;;  %v7751_v59 = vor.u32 %v7750_v47, %v7747_v27  ;;  %v7760_v35 = vor.u32 %v7759_v0, %v7756_v7  ;;  %v7772_v39 = vshrl.u32 %v19710_v30, 16  ;;  %v7775_v23 = vshll.u32 %v19710_v30, 16 }
 0x2c4   : > { %10246 = vmatmul.mubr.msk.bf16.gmra.mxu0 %vm2056_vm9, %v14008_v44  ;;  %v14040_v44 = vsel %vm2387_vm14, %v2502_v10, %v14012_v40  ;;  %v6878_v10 = vrot.slane %v14018_v15, 4  ;;  %19706 = vst [vmem:[#allocation267_spill] sm:$0xff] %v14072_v52  ;;  %v14089_v4 = vpop.f32.mrf.mxu1  ;;  %v19181_v0 = vshrl.u32 %v14072_v52, 16  ;;  %v5573_v47 = vrot.slane %v14027_v38, 1 }
 0x2c5   : > { %10249 = vmatprep.mubr.msk.bf16.mxu0 %vm11191_vm0, %v19240_v61  ;;  %19700 = vst [vmem:[#allocation30_spill] sm:$0xff] %v14040_v44  ;;  %19711 = vst [vmem:[#allocation172_spill] sm:$0xff] %v14089_v4  ;;  %v7774_v27 = vrot.slane %v7772_v39, 3  ;;  %v6883_v7 = vrot.slane %v14027_v38, 5  ;;  %v14112_v30 = vsel %vm2981_vm2, %v14036_v21, %v3743_v48  ;;  %v2600_v4 = vrot.slane %v13892_v55, 4 }
 0x2c6   : > { %v14070_v37 = vor.u32 %v6879_v11, %v6878_v10  ;;  %v14083_v11 = vor.u32 %v7741_v57, %v7738_v1  ;;  %v14086_v10 = vpop.f32.mrf.mxu0  ;;  %v14096_v57 = vsel %vm2387_vm14, %v7751_v59, %v7760_v35  ;;  %v19714_v1 = vld [vmem:[#allocation205_spill] sm:$0xff]  ;;  %v2606_v38 = vrot.slane %v13934_v45, 3 }
 0x2c7   : > { %10090 = vmatmul.mubr.msk.bf16.gmra.mxu1 %vm2056_vm9, %v14040_v44  ;;  %v5569_v44 = vor.u32 %v19703_v42, %v14018_v15  ;;  %v19708_v42 = vld [vmem:[#allocation166_spill] sm:$0xff]  ;;  %19713 = vst [vmem:[#allocation270_spill] sm:$0xff] %v14096_v57  ;;  %v14102_v62 = vsel %vm2387_vm14, %v14012_v40, %v19714_v1  ;;  %19715 = vst [vmem:[#allocation205_spill] sm:$0xff] %v14112_v30  ;;  %v3746_v40 = vrot.slane %v14005_v25, 5 }
 0x2c8   : > { %10093 = vmatprep.mubr.msk.bf16.mxu1 %vm11191_vm0, %v19240_v61  ;;  %19705 = vst [vmem:[#allocation266_spill] sm:$0xff] %v14070_v37  ;;  %v7763_v16 = vshrl.u32 %v19708_v42, 16  ;;  %v7766_v12 = vshll.u32 %v19708_v42, 16  ;;  %19709 = vst [vmem:[#allocation166_spill] sm:$0xff] %v14083_v11  ;;  %v14093_v54 = vsel %vm2387_vm14, %v14083_v11, %v7751_v59  ;;  %v10163_v3 = vpop.f32.mrf.mxu0  ;;  %v19180_v42 = vshll.u32 %v14072_v52, 16 }
 0x2c9   : > { %19712 = vst [vmem:[#allocation269_spill] sm:$0xff] %v14093_v54  ;;  %v7777_v59 = vrot.slane %v7775_v23, 4  ;;  %v14120_v1 = vsel %vm5489_vm10, %v5569_v44, %v5573_v47  ;;  %v6884_v3 = vor.u32 %v6883_v7, %v14031_v2  ;;  %v19179_v47 = vrot.slane %v13969_v51, 4 }
 0x2ca   : > { %v7768_v31 = vrot.slane %v7766_v12, 4  ;;  %v10000_v12 = vpop.f32.mrf.mxu1  ;;  %v14117_v39 = vpop.f32.mrf.mxu0  ;;  %19716 = vst [vmem:[#allocation271_spill] sm:$0xff] %v14120_v1  ;;  %v2609_v51 = vrot.slane %v13937_v33, 4 }
 0x2cb   : > { %v14128_v21 = vor.u32 %v7777_v59, %v7774_v27  ;;  %v14135_v44 = vsel %vm2981_vm2, %v14070_v37, %v6884_v3  ;;  %v6887_v27 = vrot.slane %v19180_v42, 5  ;;  %v19723_v59 = vld [vmem:[#allocation206_spill] sm:$0xff] }
 0x2cc   : > { %10250 = vmatmul.mubr.msk.bf16.gmra.mxu0 %vm2056_vm9, %v14055_v36  ;;  %v7765_v36 = vrot.slane %v7763_v16, 3  ;;  %v3745_v16 = vrot.slane %v14002_v24, 4  ;;  %19719 = vst [vmem:[#allocation274_spill] sm:$0xff] %v14135_v44 }
 0x2cd   : > { %10253 = vmatprep.mubr.msk.bf16.mxu0 %vm11191_vm0, %v19240_v61  ;;  %19718 = vst [vmem:[#allocation273_spill] sm:$0xff] %v14128_v21 }
 0x2ce   : > { %v7769_v46 = vor.u32 %v7768_v31, %v7765_v36  ;;  %v6457_v36 = vrot.slane %v14072_v52, 4  ;;  %v10164_v31 = vpop.f32.mrf.mxu0  ;;  %v14146_v7 = vor.u32 %v3746_v40, %v3745_v16  ;;  %v14168_v40 = vpop.f32.mrf.mxu1 }
 0x2cf   : > { %10094 = vmatmul.mubr.msk.bf16.gmra.mxu1 %vm2056_vm9, %v14102_v62  ;;  %19726 = vst [vmem:[#allocation279_spill] sm:$0xff] %v14168_v40  ;;  %v2597_v40 = vrot.slane %v13889_v19, 3 }
 0x2d0   : > { %10097 = vmatprep.mubr.msk.bf16.mxu1 %vm11191_vm0, %v19240_v61  ;;  %v14126_v23 = vsel %vm2387_vm14, %v7760_v35, %v7769_v46  ;;  %v14139_v2 = vsel %vm2387_vm14, %v7769_v46, %v14128_v21  ;;  %v6886_v35 = vrot.slane %v19181_v0, 4  ;;  %19721 = vst [vmem:[#allocation276_spill] sm:$0xff] %v14146_v7  ;;  %v14151_v12 = vsel %vm1988_vm8, %v19179_v47, %v6457_v36  ;;  %v19727_v36 = vld [vmem:[#allocation207_spill] sm:$0xff] }
 0x2d1   : > { %19717 = vst [vmem:[#allocation272_spill] sm:$0xff] %v14126_v23  ;;  %19720 = vst [vmem:[#allocation275_spill] sm:$0xff] %v14139_v2  ;;  %v14157_v46 = vsel %vm2981_vm2, %v3743_v48, %v14146_v7  ;;  %v19731_v2 = vld [vmem:[#allocation208_spill] sm:$0xff] }
 0x2d2   : > { %19722 = vst [vmem:[#allocation277_spill] sm:$0xff] %v14151_v12  ;;  %19724 = vst [vmem:[#allocation206_spill] sm:$0xff] %v14157_v46  ;;  %v6888_v31 = vor.u32 %v6887_v27, %v6886_v35  ;;  %v19728_v35 = vld [vmem:[#allocation5_spill] sm:$0xff]  ;;  %v10003_v27 = vpop.f32.mrf.mxu1 }
 0x2d3   : > { %v19732_v27 = vld [vmem:[#allocation7_spill] sm:$0xff] }
 0x2d4   : > { %10254 = vmatmul.mubr.msk.bf16.gmra.mxu0 %vm2056_vm9, %v14112_v30  ;;  %v14166_v16 = vsel %vm2981_vm2, %v6884_v3, %v6888_v31  ;;  %v14180_v3 = vpop.f32.mrf.mxu1 }
 0x2d5   : > { %10257 = vmatprep.mubr.msk.bf16.mxu0 %vm11191_vm0, %v19240_v61  ;;  %19725 = vst [vmem:[#allocation278_spill] sm:$0xff] %v14166_v16  ;;  %19729 = vst [vmem:[#allocation207_spill] sm:$0xff] %v14180_v3 }
 0x2d6   : > { %v10004_v42 = vpop.f32.mrf.mxu1 }
 0x2d7   : > { %10098 = vmatmul.mubr.msk.bf16.gmra.mxu1 %vm2056_vm9, %v19723_v59 }
 0x2d8   : > { %10101 = vmatprep.mubr.msk.bf16.mxu1 %vm11191_vm0, %v19240_v61  ;;  %v14184_v21 = vpop.f32.mrf.mxu1 }
 0x2d9   : > { %19730 = vst [vmem:[#allocation5_spill] sm:$0xff] %v14184_v21 }
 0x2dc   : > { %10258 = vmatmul.mubr.msk.bf16.gmra.mxu0 %vm2056_vm9, %v14157_v46 }
 0x2dd   : > { %10377 = vmatprep.mubr.msk.bf16.mxu0 %vm11191_vm0, %v19240_v61 }
 0x2df   : > { %10102 = vmatmul.mubr.msk.bf16.gmra.mxu1 %vm2056_vm9, %v19727_v36 }
 0x2e0   : > { %10105 = vmatprep.mubr.msk.bf16.mxu1 %vm11191_vm0, %v19240_v61 }
 0x2e4   : > { %v14174_v48 = vpop.f32.mrf.mxu0  ;;  %10378 = vmatmul.mubr.msk.bf16.vlgmr.msra.gmra.mxu0 %vm2056_vm9, %v19728_v35 }
 0x2e5   : > { %10381 = vmatprep.mubr.msk.bf16.mxu0 %vm11191_vm0, %v19240_v61 }
 0x2e6   : > { %v10167_v47 = vpop.f32.mrf.mxu0 }
 0x2e7   : > { %10106 = vmatmul.mubr.msk.bf16.gmra.mxu1 %vm2056_vm9, %v19731_v2  ;;  %v10007_v47 = vpop.f32.mrf.mxu1 }
 0x2e8   : > { %v14182_v31 = vpop.f32.mrf.mxu0  ;;  %10109 = vmatprep.mubr.msk.bf16.mxu1 %vm11191_vm0, %v19240_v61  ;;  %v19735_v47 = vld [vmem:[#allocation8_spill] sm:$0xff] }
 0x2e9   : > { %v14196_v42 = vpop.f32.mrf.mxu1 }
 0x2ea   : > { %v10168_v0 = vpop.f32.mrf.mxu0  ;;  %19733 = vst [vmem:[#allocation208_spill] sm:$0xff] %v14196_v42 }
 0x2eb   : > { %v10008_v57 = vpop.f32.mrf.mxu1 }
 0x2ec   : > { %v14190_v35 = vpop.f32.mrf.mxu0  ;;  %10382 = vmatmul.mubr.msk.bf16.gmra.mxu0 %vm2056_vm9, %v19732_v27 }
 0x2ed   : > { %10385 = vmatprep.mubr.msk.bf16.mxu0 %vm11191_vm0, %v19240_v61 }
 0x2ee   : > { %v10171_v23 = vpop.f32.mrf.mxu0 }
 0x2ef   : > { %v14200_v11 = vpop.f32.mrf.mxu1  ;;  %10110 = vmatmul.mubr.msk.bf16.gmra.mxu1 %vm2056_vm9, %v13502_v34 }
 0x2f0   : > { %v14198_v0 = vpop.f32.mrf.mxu0  ;;  %19734 = vst [vmem:[#allocation7_spill] sm:$0xff] %v14200_v11  ;;  %10113 = vmatprep.mubr.msk.bf16.mxu1 %vm11191_vm0, %v19240_v61 }
 0x2f1   : > { %v10011_v23 = vpop.f32.mrf.mxu1 }
 0x2f2   : > { %v10172_v54 = vpop.f32.mrf.mxu0  ;;  %v19740_v23 = vld [vmem:[#allocation4_spill] sm:$0xff] }
 0x2f3   : > { %v14212_v57 = vpop.f32.mrf.mxu1 }
 0x2f4   : > { %v14206_v27 = vpop.f32.mrf.mxu0  ;;  %10386 = vmatmul.mubr.msk.bf16.gmra.mxu0 %vm2056_vm9, %v19735_v47  ;;  %19736 = vst [vmem:[#allocation8_spill] sm:$0xff] %v14212_v57  ;;  %v2591_v57 = vrot.slane %v13847_v26, 4 }
 0x2f5   : > { %10389 = vmatprep.mubr.msk.bf16.mxu0 %vm11191_vm0, %v19240_v61  ;;  %v10012_v16 = vpop.f32.mrf.mxu1 }
 0x2f6   : > { %v10175_v12 = vpop.f32.mrf.mxu0 }
 0x2f7   : > { %v14216_v7 = vpop.f32.mrf.mxu1  ;;  %10114 = vmatmul.mubr.msk.bf16.gmra.mxu1 %vm2056_vm9, %v13512_v60 }
 0x2f8   : > { %v14214_v54 = vpop.f32.mrf.mxu0  ;;  %19738 = vst [vmem:[#allocation281_spill] sm:$0xff] %v14216_v7  ;;  %10117 = vmatprep.mubr.msk.bf16.mxu1 %vm11191_vm0, %v19240_v61  ;;  %v2588_v7 = vrot.slane %v13844_v53, 3 }
 0x2f9   : > { %19737 = vst [vmem:[#allocation280_spill] sm:$0xff] %v14214_v54  ;;  %v10015_v12 = vpop.f32.mrf.mxu1 }
 0x2fa   : > { %v10176_v44 = vpop.f32.mrf.mxu0  ;;  %v19745_v12 = vld [vmem:[#allocation6_spill] sm:$0xff] }
 0x2fb   : > { %v14228_v16 = vpop.f32.mrf.mxu1 }
 0x2fc   : > { %v14222_v47 = vpop.f32.mrf.mxu0  ;;  %10390 = vmatmul.mubr.msk.bf16.gmra.mxu0 %vm2056_vm9, %v19740_v23  ;;  %19741 = vst [vmem:[#allocation4_spill] sm:$0xff] %v14228_v16 }
 0x2fd   : > { %19739 = vst [vmem:[#allocation282_spill] sm:$0xff] %v14222_v47  ;;  %10393 = vmatprep.mubr.msk.bf16.mxu0 %vm11191_vm0, %v19240_v61  ;;  %v10016_v46 = vpop.f32.mrf.mxu1  ;;  %v4492_v47 = vrot.slane %v13035_v6, 7  ;;  %v4495_v6 = vrot.slane %v13080_v8, 7  ;;  %v4498_v8 = vrot.slane %v13133_v28, 7  ;;  %v4501_v28 = vrot.slane %v13190_v29, 7 }
 0x2fe   : > { %v10179_v37 = vpop.f32.mrf.mxu0  ;;  %v4504_v29 = vrot.slane %v13245_v22, 7  ;;  %v19815_v22 = vld [vmem:[#allocation24_spill] sm:$0xff] }
 0x2ff   : > { %v14232_v1 = vpop.f32.mrf.mxu1  ;;  %10118 = vmatmul.mubr.msk.bf16.gmra.mxu1 %vm2056_vm9, %v13524_v43 }
 0x300   : > { %v14230_v44 = vpop.f32.mrf.mxu0  ;;  %19743 = vst [vmem:[#allocation284_spill] sm:$0xff] %v14232_v1  ;;  %10121 = vmatprep.mubr.msk.bf16.mxu1 %vm11191_vm0, %v19240_v61 }
 0x301   : > { %19742 = vst [vmem:[#allocation283_spill] sm:$0xff] %v14230_v44  ;;  %v10019_v37 = vpop.f32.mrf.mxu1 }
 0x302   : > { %v10180_v30 = vpop.f32.mrf.mxu0 }
 0x303   : > { %v14244_v46 = vpop.f32.mrf.mxu1 }
 0x304   : > { %v14238_v23 = vpop.f32.mrf.mxu0  ;;  %10394 = vmatmul.mubr.msk.bf16.gmra.mxu0 %vm2056_vm9, %v19745_v12  ;;  %19746 = vst [vmem:[#allocation6_spill] sm:$0xff] %v14244_v46 }
 0x305   : > { %19744 = vst [vmem:[#allocation285_spill] sm:$0xff] %v14238_v23  ;;  %10397 = vmatprep.mubr.msk.bf16.mxu0 %vm11191_vm0, %v19240_v61  ;;  %v10020_v1 = vpop.f32.mrf.mxu1 }
 0x306   : > { %v10183_v16 = vpop.f32.mrf.mxu0  ;;  %v2592_v1 = vor.u32 %v2591_v57, %v2588_v7  ;;  %v2601_v57 = vor.u32 %v2600_v4, %v2597_v40  ;;  %v19762_v40 = vld [vmem:[#allocation25_spill] sm:$0xff] }
 0x307   : > { %v14250_v42 = vpop.f32.mrf.mxu1  ;;  %10122 = vmatmul.mubr.msk.bf16.gmra.mxu1 %vm2056_vm9, %v13528_v56  ;;  %v19750_v16 = vld [vmem:[#allocation22_spill] sm:$0xff] }
 0x308   : > { %v14246_v30 = vpop.f32.mrf.mxu0  ;;  %19748 = vst [vmem:[#allocation287_spill] sm:$0xff] %v14250_v42  ;;  %10125 = vmatprep.mubr.msk.bf16.mxu1 %vm11191_vm0, %v19240_v61  ;;  %v14268_v3 = vsel %vm2387_vm14, %v13506_v5, %v2592_v1  ;;  %v14289_v52 = vsel %vm2387_vm14, %v2592_v1, %v2601_v57 }
 0x309   : > { %19747 = vst [vmem:[#allocation286_spill] sm:$0xff] %v14246_v30  ;;  %v10023_v37 = vpop.f32.mrf.mxu1  ;;  %19753 = vst [vmem:[#allocation290_spill] sm:$0xff] %v14268_v3 }
 0x30a   : > { %v10184_v11 = vpop.f32.mrf.mxu0  ;;  %19759 = vst [vmem:[#allocation294_spill] sm:$0xff] %v14289_v52 }
 0x30b   : > { %v14262_v11 = vpop.f32.mrf.mxu1 }
 0x30c   : > { %v14256_v12 = vpop.f32.mrf.mxu0  ;;  %10398 = vmatmul.mubr.msk.bf16.gmra.mxu0 %vm2056_vm9, %v19750_v16  ;;  %19751 = vst [vmem:[#allocation22_spill] sm:$0xff] %v14262_v11 }
 0x30d   : > { %19749 = vst [vmem:[#allocation288_spill] sm:$0xff] %v14256_v12  ;;  %10401 = vmatprep.mubr.msk.bf16.mxu0 %vm11191_vm0, %v19240_v61  ;;  %v10024_v21 = vpop.f32.mrf.mxu1 }
 0x30e   : > { %v10187_v46 = vpop.f32.mrf.mxu0  ;;  %v19756_v21 = vld [vmem:[#allocation23_spill] sm:$0xff] }
 0x30f   : > { %v14272_v37 = vpop.f32.mrf.mxu1  ;;  %10126 = vmatmul.mubr.msk.bf16.gmra.mxu1 %vm2056_vm9, %v14268_v3 }
 0x310   : > { %v14264_v42 = vpop.f32.mrf.mxu0  ;;  %19754 = vst [vmem:[#allocation291_spill] sm:$0xff] %v14272_v37  ;;  %10129 = vmatprep.mubr.msk.bf16.mxu1 %vm11191_vm0, %v19240_v61 }
 0x311   : > { %19752 = vst [vmem:[#allocation289_spill] sm:$0xff] %v14264_v42  ;;  %v10027_v5 = vpop.f32.mrf.mxu1  ;;  %v11106_v42 = vld [vmem:[%s18872_s4 + $0x58] sm:$0xff]  }
 0x312   : > { %v10188_v16 = vpop.f32.mrf.mxu0 }
 0x313   : > { %v14284_v16 = vpop.f32.mrf.mxu1 }
 0x314   : > { %v14278_v7 = vpop.f32.mrf.mxu0  ;;  %10402 = vmatmul.mubr.msk.bf16.gmra.mxu0 %vm2056_vm9, %v19756_v21  ;;  %19757 = vst [vmem:[#allocation23_spill] sm:$0xff] %v14284_v16 }
 0x315   : > { %19755 = vst [vmem:[#allocation292_spill] sm:$0xff] %v14278_v7  ;;  %10405 = vmatprep.mubr.msk.bf16.mxu0 %vm11191_vm0, %v19240_v61  ;;  %v10028_v11 = vpop.f32.mrf.mxu1 }
 0x316   : > { %v10191_v46 = vpop.f32.mrf.mxu0  ;;  %v2610_v11 = vor.u32 %v2609_v51, %v2606_v38  ;;  %v19768_v38 = vld [vmem:[#allocation32_spill] sm:$0xff] }
 0x317   : > { %v14293_v21 = vpop.f32.mrf.mxu1  ;;  %10130 = vmatmul.mubr.msk.bf16.gmra.mxu1 %vm2056_vm9, %v14289_v52  ;;  %v2615_v52 = vrot.slane %v13978_v63, 3 }
 0x318   : > { %v14286_v37 = vpop.f32.mrf.mxu0  ;;  %19760 = vst [vmem:[#allocation295_spill] sm:$0xff] %v14293_v21  ;;  %10133 = vmatprep.mubr.msk.bf16.mxu1 %vm11191_vm0, %v19240_v61  ;;  %v14310_v16 = vsel %vm2387_vm14, %v2601_v57, %v2610_v11 }
 0x319   : > { %19758 = vst [vmem:[#allocation293_spill] sm:$0xff] %v14286_v37  ;;  %v10031_v1 = vpop.f32.mrf.mxu1  ;;  %19765 = vst [vmem:[#allocation298_spill] sm:$0xff] %v14310_v16 }
 0x31a   : > { %v10192_v3 = vpop.f32.mrf.mxu0 }
 0x31b   : > { %v14305_v3 = vpop.f32.mrf.mxu1 }
 0x31c   : > { %v14299_v4 = vpop.f32.mrf.mxu0  ;;  %10406 = vmatmul.mubr.msk.bf16.gmra.mxu0 %vm2056_vm9, %v19762_v40  ;;  %19763 = vst [vmem:[#allocation25_spill] sm:$0xff] %v14305_v3 }
 0x31d   : > { %19761 = vst [vmem:[#allocation296_spill] sm:$0xff] %v14299_v4  ;;  %10409 = vmatprep.mubr.msk.bf16.mxu0 %vm11191_vm0, %v19240_v61  ;;  %v10032_v21 = vpop.f32.mrf.mxu1  ;;  %v2618_v4 = vrot.slane %v13981_v49, 4 }
 0x31e   : > { %v10195_v5 = vpop.f32.mrf.mxu0 }
 0x31f   : > { %v14314_v40 = vpop.f32.mrf.mxu1  ;;  %10134 = vmatmul.mubr.msk.bf16.gmra.mxu1 %vm2056_vm9, %v14310_v16  ;;  %v2619_v21 = vor.u32 %v2618_v4, %v2615_v52  ;;  %v2624_v16 = vrot.slane %v13990_v32, 3  ;;  %v19773_v4 = vld [vmem:[#allocation60_spill] sm:$0xff] }
 0x320   : > { %v14307_v46 = vpop.f32.mrf.mxu0  ;;  %19766 = vst [vmem:[#allocation299_spill] sm:$0xff] %v14314_v40  ;;  %10137 = vmatprep.mubr.msk.bf16.mxu1 %vm11191_vm0, %v19240_v61 }
 0x321   : > { %19764 = vst [vmem:[#allocation297_spill] sm:$0xff] %v14307_v46  ;;  %v10035_v57 = vpop.f32.mrf.mxu1  ;;  %v14331_v3 = vsel %vm2387_vm14, %v2610_v11, %v2619_v21 }
 0x322   : > { %v10196_v37 = vpop.f32.mrf.mxu0  ;;  %19771 = vst [vmem:[#allocation302_spill] sm:$0xff] %v14331_v3 }
 0x323   : > { %v14326_v37 = vpop.f32.mrf.mxu1 }
 0x324   : > { %v14320_v51 = vpop.f32.mrf.mxu0  ;;  %10410 = vmatmul.mubr.msk.bf16.gmra.mxu0 %vm2056_vm9, %v19768_v38  ;;  %19769 = vst [vmem:[#allocation32_spill] sm:$0xff] %v14326_v37 }
 0x325   : > { %19767 = vst [vmem:[#allocation300_spill] sm:$0xff] %v14320_v51  ;;  %10413 = vmatprep.mubr.msk.bf16.mxu0 %vm11191_vm0, %v19240_v61  ;;  %v10036_v40 = vpop.f32.mrf.mxu1  ;;  %v2627_v51 = vrot.slane %v14015_v41, 4 }
 0x326   : > { %v10199_v1 = vpop.f32.mrf.mxu0 }
 0x327   : > { %v14335_v38 = vpop.f32.mrf.mxu1  ;;  %10138 = vmatmul.mubr.msk.bf16.gmra.mxu1 %vm2056_vm9, %v14331_v3  ;;  %v2628_v40 = vor.u32 %v2627_v51, %v2624_v16  ;;  %v11107_v1 = vld [vmem:[%s18872_s4 + $0x68] sm:$0xff]   ;;  %v19777_v51 = vld [vmem:[#allocation61_spill] sm:$0xff] }
 0x328   : > { %v14328_v5 = vpop.f32.mrf.mxu0  ;;  %10141 = vmatprep.mubr.msk.bf16.mxu1 %vm11191_vm0, %v19240_v61  ;;  %10598 = vmatpush3.bf16.msra.mxu0 %v11107_v1 }
 0x329   : > { %19770 = vst [vmem:[#allocation301_spill] sm:$0xff] %v14328_v5  ;;  %v10043_v11 = vpop.f32.mrf.mxu1  ;;  %10599 = vmatprep.subr.bf16.mxu0 %v19240_v61 }
 0x32a   : > { %v10200_v46 = vpop.f32.mrf.mxu0 }
 0x32b   : > { %v14347_v46 = vpop.f32.mrf.mxu1 }
 0x32c   : > { %v14341_v52 = vpop.f32.mrf.mxu0  ;;  %10414 = vmatmul.mubr.msk.bf16.gmra.mxu0 %vm2056_vm9, %v19773_v4 }
 0x32d   : > { %19772 = vst [vmem:[#allocation303_spill] sm:$0xff] %v14341_v52  ;;  %10417 = vmatprep.mubr.msk.bf16.mxu0 %vm11191_vm0, %v19240_v61  ;;  %v10044_v3 = vpop.f32.mrf.mxu1  ;;  %v14355_v52 = vsel %vm2387_vm14, %v2619_v21, %v2628_v40 }
 0x32e   : > { %v10203_v57 = vpop.f32.mrf.mxu0  ;;  %19775 = vst [vmem:[#allocation304_spill] sm:$0xff] %v14355_v52 }
 0x32f   : > { %v14358_v11 = vpop.f32.mrf.mxu1  ;;  %10142 = vmatmul.mubr.msk.bf16.gmra.mxu1 %vm2056_vm9, %v14355_v52  ;;  %v11109_v52 = vld [vmem:[%s18872_s4 + $0x60] sm:$0xff]  }
 0x330   : > { %v14352_v37 = vpop.f32.mrf.mxu0  ;;  %10145 = vmatprep.mubr.msk.bf16.mxu1 %vm11191_vm0, %v19240_v61  ;;  %10600 = vmatpush3.bf16.msra.mxu0 %v11109_v52  ;;  %v19784_v52 = vld [vmem:[#allocation100_spill] sm:$0xff] }
 0x331   : > { %19774 = vst [vmem:[#allocation60_spill] sm:$0xff] %v14352_v37  ;;  %v10047_v3 = vpop.f32.mrf.mxu1  ;;  %v19780_v37 = vld [vmem:[#allocation122_spill] sm:$0xff]  ;;  %10821 = vmatprep.subr.bf16.mxu0 %v19240_v61 }
 0x332   : > { %v10204_v4 = vpop.f32.mrf.mxu0 }
 0x333   : > { %v14370_v57 = vpop.f32.mrf.mxu1 }
 0x334   : > { %v14364_v16 = vpop.f32.mrf.mxu0  ;;  %10418 = vmatmul.mubr.msk.bf16.gmra.mxu0 %vm2056_vm9, %v19777_v51  ;;  %v4483_v51 = vrot.slane %v19780_v37, 7 }
 0x335   : > { %19776 = vst [vmem:[#allocation305_spill] sm:$0xff] %v14364_v16  ;;  %10421 = vmatprep.mubr.msk.bf16.mxu0 %vm11191_vm0, %v19240_v61  ;;  %v10048_v4 = vpop.f32.mrf.mxu1  ;;  %v14379_v16 = vsel %vm2387_vm14, %v2628_v40, %v14059_v14  ;;  %v19783_v40 = vld [vmem:[#allocation128_spill] sm:$0xff] }
 0x336   : > { %v10207_v21 = vpop.f32.mrf.mxu0  ;;  %19779 = vst [vmem:[#allocation306_spill] sm:$0xff] %v14379_v16  ;;  %v19782_v4 = vld [vmem:[#allocation71_spill] sm:$0xff] }
 0x337   : > { %v14382_v5 = vpop.f32.mrf.mxu1  ;;  %10146 = vmatmul.mubr.msk.bf16.gmra.mxu1 %vm2056_vm9, %v14379_v16  ;;  %v4482_v16 = vrot.slane %v19784_v52, 7 }
 0x338   : > { %v14372_v1 = vpop.f32.mrf.mxu0  ;;  %10265 = vmatprep.mubr.msk.bf16.mxu1 %vm11191_vm0, %v19240_v61 }
 0x339   : > { %19778 = vst [vmem:[#allocation61_spill] sm:$0xff] %v14372_v1  ;;  %v10051_v14 = vpop.f32.mrf.mxu1 }
 0x33a   : > { %v10208_v3 = vpop.f32.mrf.mxu0  ;;  %v19786_v14 = vld [vmem:[#allocation141_spill] sm:$0xff] }
 0x33b   : > { %v4484_v3 = vor.u32 %v4483_v51, %v19783_v40  ;;  %v14396_v7 = vpop.f32.mrf.mxu1  ;;  %v4486_v12 = vrot.slane %v19786_v14, 7 }
 0x33c   : > { %v14389_v21 = vpop.f32.mrf.mxu0  ;;  %10422 = vmatmul.mubr.msk.bf16.gmra.mxu0 %vm2056_vm9, %v19782_v4 }
 0x33d   : > { %19781 = vst [vmem:[#allocation122_spill] sm:$0xff] %v14389_v21  ;;  %10425 = vmatprep.mubr.msk.bf16.mxu0 %vm11191_vm0, %v19240_v61  ;;  %v10052_v21 = vpop.f32.mrf.mxu1  ;;  %v4485_v4 = vsel %vm4481_vm15, %v4482_v16, %v4484_v3 }
 0x33e   : > { %v10211_v1 = vpop.f32.mrf.mxu0  ;;  %v19788_v21 = vld [vmem:[#allocation82_spill] sm:$0xff] }
 0x33f   : > { %v14406_v43 = vpop.f32.mrf.mxu1  ;;  %10266 = vmatmul.mubr.msk.bf16.vlgmr.msra.gmra.mxu1 %vm2056_vm9, %v4485_v4  ;;  %v11108_v1 = vld [vmem:[%s18872_s4 + $0x50] sm:$0xff]  }
 0x340   : > { %v14402_v56 = vpop.f32.mrf.mxu0  ;;  %10486 = vmatpush3.bf16.msra.mxu1 %v11106_v42  ;;  %10269 = vmatprep.mubr.msk.bf16.mxu1 %vm11191_vm0, %v19240_v61 }
 0x341   : > { %19785 = vst [vmem:[#allocation71_spill] sm:$0xff] %v14402_v56  ;;  %v10055_v16 = vpop.f32.mrf.mxu1  ;;  %10487 = vmatprep.subr.bf16.mxu1 %v19240_v61 }
 0x342   : > { %v10212_v30 = vpop.f32.mrf.mxu0 }
 0x343   : > { %v19789_v30 = vld [vmem:[#allocation148_spill] sm:$0xff]  ;;  %v14422_v4 = vpop.f32.mrf.mxu1 }
 0x344   : > { %v14414_v52 = vpop.f32.mrf.mxu0  ;;  %10426 = vmatmul.mubr.msk.bf16.gmra.mxu0 %vm2056_vm9, %v19788_v21  ;;  %v4487_v42 = vor.u32 %v4486_v12, %v19789_v30  ;;  %10488 = vmatpush3.bf16.msra.mxu1 %v11108_v1  ;;  %v4489_v21 = vrot.slane %v13022_v58, 7  ;;  %v19792_v1 = vld [vmem:[#allocation89_spill] sm:$0xff] }
 0x345   : > { %19787 = vst [vmem:[#allocation128_spill] sm:$0xff] %v14414_v52  ;;  %10429 = vmatprep.mubr.msk.bf16.mxu0 %vm11191_vm0, %v19240_v61  ;;  %v10056_v23 = vpop.f32.mrf.mxu1  ;;  %10709 = vmatprep.subr.bf16.mxu1 %v19240_v61 }
 0x346   : > { %v10215_v3 = vpop.f32.mrf.mxu0  ;;  %v4488_v52 = vsel %vm4481_vm15, %v4483_v51, %v4487_v42  ;;  %v4490_v51 = vor.u32 %v4489_v21, %v13025_v13 }
 0x347   : > { %v14429_v44 = vpop.f32.mrf.mxu1  ;;  %10270 = vmatmul.mubr.msk.bf16.gmra.mxu1 %vm2056_vm9, %v4488_v52 }
 0x348   : > { %v14424_v56 = vpop.f32.mrf.mxu0  ;;  %10273 = vmatprep.mubr.msk.bf16.mxu1 %vm11191_vm0, %v19240_v61  ;;  %v4491_v60 = vsel %vm4481_vm15, %v4486_v12, %v4490_v51  ;;  %v4493_v12 = vor.u32 %v4492_v47, %v13038_v20 }
 0x349   : > { %19790 = vst [vmem:[#allocation100_spill] sm:$0xff] %v14424_v56  ;;  %v10059_v23 = vpop.f32.mrf.mxu1 }
 0x34a   : > { %v10216_v16 = vpop.f32.mrf.mxu0  ;;  %v19795_v23 = vld [vmem:[#allocation108_spill] sm:$0xff] }
 0x34b   : > { %v14441_v16 = vpop.f32.mrf.mxu1 }
 0x34c   : > { %v14434_v3 = vpop.f32.mrf.mxu0  ;;  %10430 = vmatmul.mubr.msk.bf16.gmra.mxu0 %vm2056_vm9, %v19792_v1 }
 0x34d   : > { %19791 = vst [vmem:[#allocation141_spill] sm:$0xff] %v14434_v3  ;;  %10433 = vmatprep.mubr.msk.bf16.mxu0 %vm11191_vm0, %v19240_v61  ;;  %v10060_v52 = vpop.f32.mrf.mxu1 }
 0x34e   : > { %v10219_v42 = vpop.f32.mrf.mxu0 }
 0x34f   : > { %v14447_v54 = vpop.f32.mrf.mxu1  ;;  %10274 = vmatmul.mubr.msk.bf16.gmra.mxu1 %vm2056_vm9, %v4491_v60 }
 0x350   : > { %v14443_v56 = vpop.f32.mrf.mxu0  ;;  %10277 = vmatprep.mubr.msk.bf16.mxu1 %vm11191_vm0, %v19240_v61 }
 0x351   : > { %19793 = vst [vmem:[#allocation82_spill] sm:$0xff] %v14443_v56  ;;  %v10063_v42 = vpop.f32.mrf.mxu1  ;;  %v4494_v56 = vsel %vm4481_vm15, %v4489_v21, %v4493_v12  ;;  %v4496_v21 = vor.u32 %v4495_v6, %v13086_v50 }
 0x352   : > { %v10220_v3 = vpop.f32.mrf.mxu0  ;;  %v19799_v42 = vld [vmem:[#allocation125_spill] sm:$0xff] }
 0x353   : > { %v14459_v3 = vpop.f32.mrf.mxu1 }
 0x354   : > { %v14452_v1 = vpop.f32.mrf.mxu0  ;;  %10434 = vmatmul.mubr.msk.bf16.gmra.mxu0 %vm2056_vm9, %v19795_v23 }
 0x355   : > { %19794 = vst [vmem:[#allocation148_spill] sm:$0xff] %v14452_v1  ;;  %10437 = vmatprep.mubr.msk.bf16.mxu0 %vm11191_vm0, %v19240_v61  ;;  %v10064_v60 = vpop.f32.mrf.mxu1 }
 0x356   : > { %v10223_v51 = vpop.f32.mrf.mxu0 }
 0x357   : > { %v14465_v34 = vpop.f32.mrf.mxu1  ;;  %10278 = vmatmul.mubr.msk.bf16.gmra.mxu1 %vm2056_vm9, %v4494_v56 }
 0x358   : > { %v14461_v52 = vpop.f32.mrf.mxu0  ;;  %19797 = vst [vmem:[#allocation108_spill] sm:$0xff] %v14465_v34  ;;  %10281 = vmatprep.mubr.msk.bf16.mxu1 %vm11191_vm0, %v19240_v61 }
 0x359   : > { %19796 = vst [vmem:[#allocation89_spill] sm:$0xff] %v14461_v52  ;;  %v10067_v51 = vpop.f32.mrf.mxu1  ;;  %v4497_v52 = vsel %vm4481_vm15, %v4492_v47, %v4496_v21  ;;  %v4499_v47 = vor.u32 %v4498_v8, %v13136_v18 }
 0x35a   : > { %v10224_v1 = vpop.f32.mrf.mxu0  ;;  %v19803_v51 = vld [vmem:[#allocation149_spill] sm:$0xff] }
 0x35b   : > { %v14477_v1 = vpop.f32.mrf.mxu1 }
 0x35c   : > { %v14470_v23 = vpop.f32.mrf.mxu0  ;;  %10438 = vmatmul.mubr.msk.bf16.gmra.mxu0 %vm2056_vm9, %v19799_v42 }
 0x35d   : > { %19798 = vst [vmem:[#allocation307_spill] sm:$0xff] %v14470_v23  ;;  %10441 = vmatprep.mubr.msk.bf16.mxu0 %vm11191_vm0, %v19240_v61  ;;  %v10068_v56 = vpop.f32.mrf.mxu1 }
 0x35e   : > { %v10227_v12 = vpop.f32.mrf.mxu0 }
 0x35f   : > { %v14483_v34 = vpop.f32.mrf.mxu1  ;;  %10282 = vmatmul.mubr.msk.bf16.gmra.mxu1 %vm2056_vm9, %v4497_v52 }
 0x360   : > { %v14479_v60 = vpop.f32.mrf.mxu0  ;;  %19801 = vst [vmem:[#allocation308_spill] sm:$0xff] %v14483_v34  ;;  %10285 = vmatprep.mubr.msk.bf16.mxu1 %vm11191_vm0, %v19240_v61 }
 0x361   : > { %19800 = vst [vmem:[#allocation125_spill] sm:$0xff] %v14479_v60  ;;  %v10071_v12 = vpop.f32.mrf.mxu1  ;;  %v4500_v60 = vsel %vm4481_vm15, %v4495_v6, %v4499_v47  ;;  %v4502_v6 = vor.u32 %v4501_v28, %v13193_v17 }
 0x362   : > { %v10228_v23 = vpop.f32.mrf.mxu0  ;;  %v19807_v12 = vld [vmem:[#allocation171_spill] sm:$0xff] }
 0x363   : > { %v14495_v23 = vpop.f32.mrf.mxu1 }
 0x364   : > { %v14488_v42 = vpop.f32.mrf.mxu0  ;;  %10442 = vmatmul.mubr.msk.bf16.gmra.mxu0 %vm2056_vm9, %v19803_v51 }
 0x365   : > { %19802 = vst [vmem:[#allocation309_spill] sm:$0xff] %v14488_v42  ;;  %10445 = vmatprep.mubr.msk.bf16.mxu0 %vm11191_vm0, %v19240_v61  ;;  %v10072_v52 = vpop.f32.mrf.mxu1 }
 0x366   : > { %v10231_v21 = vpop.f32.mrf.mxu0 }
 0x367   : > { %v14501_v34 = vpop.f32.mrf.mxu1  ;;  %10286 = vmatmul.mubr.msk.bf16.gmra.mxu1 %vm2056_vm9, %v4500_v60 }
 0x368   : > { %v14497_v56 = vpop.f32.mrf.mxu0  ;;  %19805 = vst [vmem:[#allocation310_spill] sm:$0xff] %v14501_v34  ;;  %10289 = vmatprep.mubr.msk.bf16.mxu1 %vm11191_vm0, %v19240_v61 }
 0x369   : > { %19804 = vst [vmem:[#allocation149_spill] sm:$0xff] %v14497_v56  ;;  %v10075_v21 = vpop.f32.mrf.mxu1  ;;  %v4503_v56 = vsel %vm4481_vm15, %v4498_v8, %v4502_v6  ;;  %v4505_v8 = vor.u32 %v4504_v29, %v13251_v9 }
 0x36a   : > { %v10232_v42 = vpop.f32.mrf.mxu0  ;;  %v19812_v21 = vld [vmem:[#allocation174_spill] sm:$0xff] }
 0x36b   : > { %v14513_v42 = vpop.f32.mrf.mxu1 }
 0x36c   : > { %v14506_v51 = vpop.f32.mrf.mxu0  ;;  %10446 = vmatmul.mubr.msk.bf16.gmra.mxu0 %vm2056_vm9, %v19807_v12  ;;  %19808 = vst [vmem:[#allocation171_spill] sm:$0xff] %v14513_v42 }
 0x36d   : > { %19806 = vst [vmem:[#allocation311_spill] sm:$0xff] %v14506_v51  ;;  %10449 = vmatprep.mubr.msk.bf16.mxu0 %vm11191_vm0, %v19240_v61  ;;  %v10076_v60 = vpop.f32.mrf.mxu1 }
 0x36e   : > { %v10235_v47 = vpop.f32.mrf.mxu0 }
 0x36f   : > { %v14519_v34 = vpop.f32.mrf.mxu1  ;;  %10290 = vmatmul.mubr.msk.bf16.gmra.mxu1 %vm2056_vm9, %v4503_v56 }
 0x370   : > { %v14515_v52 = vpop.f32.mrf.mxu0  ;;  %19810 = vst [vmem:[#allocation313_spill] sm:$0xff] %v14519_v34  ;;  %10293 = vmatprep.mubr.msk.bf16.mxu1 %vm11191_vm0, %v19240_v61  ;;  %v4507_v34 = vrot.slane %v19815_v22, 7 }
 0x371   : > { %19809 = vst [vmem:[#allocation312_spill] sm:$0xff] %v14515_v52  ;;  %v10079_v47 = vpop.f32.mrf.mxu1  ;;  %v4506_v52 = vsel %vm4481_vm15, %v4501_v28, %v4505_v8  ;;  %v19819_v28 = vld [vmem:[#allocation15_spill] sm:$0xff] }
 0x372   : > { %v10236_v51 = vpop.f32.mrf.mxu0  ;;  %v19818_v47 = vld [vmem:[#allocation180_spill] sm:$0xff]  ;;  %v4508_v8 = vor.u32 %v4507_v34, %v19819_v28 }
 0x373   : > { %v14531_v51 = vpop.f32.mrf.mxu1 }
 0x374   : > { %v14524_v12 = vpop.f32.mrf.mxu0  ;;  %10450 = vmatmul.mubr.msk.bf16.gmra.mxu0 %vm2056_vm9, %v19812_v21  ;;  %19813 = vst [vmem:[#allocation174_spill] sm:$0xff] %v14531_v51  ;;  %v4509_v22 = vsel %vm4481_vm15, %v4504_v29, %v4508_v8  ;;  %v19826_v29 = vld [vmem:[#allocation187_spill] sm:$0xff] }
 0x375   : > { %19811 = vst [vmem:[#allocation314_spill] sm:$0xff] %v14524_v12  ;;  %10453 = vmatprep.mubr.msk.bf16.mxu0 %vm11191_vm0, %v19240_v61  ;;  %v10080_v56 = vpop.f32.mrf.mxu1 }
 0x376   : > { %v10239_v6 = vpop.f32.mrf.mxu0 }
 0x377   : > { %v14537_v42 = vpop.f32.mrf.mxu1  ;;  %10294 = vmatmul.mubr.msk.bf16.gmra.mxu1 %vm2056_vm9, %v4506_v52 }
 0x378   : > { %v14533_v60 = vpop.f32.mrf.mxu0  ;;  %19816 = vst [vmem:[#allocation316_spill] sm:$0xff] %v14537_v42  ;;  %10297 = vmatprep.mubr.msk.bf16.mxu1 %vm11191_vm0, %v19240_v61  ;;  %v19822_v42 = vld [vmem:[#allocation18_spill] sm:$0xff] }
 0x379   : > { %19814 = vst [vmem:[#allocation315_spill] sm:$0xff] %v14533_v60  ;;  %v10083_v6 = vpop.f32.mrf.mxu1  ;;  %v4510_v51 = vrot.slane %v19822_v42, 7 }
 0x37a   : > { %v10240_v12 = vpop.f32.mrf.mxu0  ;;  %v19825_v6 = vld [vmem:[#allocation91_spill] sm:$0xff] }
 0x37b   : > { %v14549_v12 = vpop.f32.mrf.mxu1  ;;  %v4511_v8 = vor.u32 %v4510_v51, %v19826_v29 }
 0x37c   : > { %v14542_v21 = vpop.f32.mrf.mxu0  ;;  %10454 = vmatmul.mubr.msk.bf16.gmra.mxu0 %vm2056_vm9, %v19818_v47  ;;  %19820 = vst [vmem:[#allocation180_spill] sm:$0xff] %v14549_v12 }
 0x37d   : > { %19817 = vst [vmem:[#allocation317_spill] sm:$0xff] %v14542_v21  ;;  %10457 = vmatprep.mubr.msk.bf16.mxu0 %vm11191_vm0, %v19240_v61  ;;  %v10084_v52 = vpop.f32.mrf.mxu1  ;;  %v4512_v42 = vsel %vm4481_vm15, %v4507_v34, %v4511_v8  ;;  %v19833_v34 = vld [vmem:[#allocation20_spill] sm:$0xff] }
 0x37e   : > { %v10243_v56 = vpop.f32.mrf.mxu0 }
 0x37f   : > { %v14555_v9 = vpop.f32.mrf.mxu1  ;;  %10298 = vmatmul.mubr.msk.bf16.gmra.mxu1 %vm2056_vm9, %v4509_v22 }
 0x380   : > { %v14551_v60 = vpop.f32.mrf.mxu0  ;;  %19823 = vst [vmem:[#allocation319_spill] sm:$0xff] %v14555_v9  ;;  %10301 = vmatprep.mubr.msk.bf16.mxu1 %vm11191_vm0, %v19240_v61  ;;  %v19829_v9 = vld [vmem:[#allocation19_spill] sm:$0xff] }
 0x381   : > { %19821 = vst [vmem:[#allocation318_spill] sm:$0xff] %v14551_v60  ;;  %v10087_v56 = vpop.f32.mrf.mxu1  ;;  %v4513_v12 = vrot.slane %v19829_v9, 7 }
 0x382   : > { %v10244_v21 = vpop.f32.mrf.mxu0  ;;  %v19832_v56 = vld [vmem:[#allocation106_spill] sm:$0xff] }
 0x383   : > { %v14567_v21 = vpop.f32.mrf.mxu1  ;;  %v4514_v8 = vor.u32 %v4513_v12, %v19833_v34 }
 0x384   : > { %v14560_v47 = vpop.f32.mrf.mxu0  ;;  %10458 = vmatmul.mubr.msk.bf16.gmra.mxu0 %vm2056_vm9, %v19825_v6  ;;  %19827 = vst [vmem:[#allocation91_spill] sm:$0xff] %v14567_v21 }
 0x385   : > { %19824 = vst [vmem:[#allocation320_spill] sm:$0xff] %v14560_v47  ;;  %10461 = vmatprep.mubr.msk.bf16.mxu0 %vm11191_vm0, %v19240_v61  ;;  %v10088_v22 = vpop.f32.mrf.mxu1  ;;  %v4515_v9 = vsel %vm4481_vm15, %v4510_v51, %v4514_v8  ;;  %v19840_v51 = vld [vmem:[#allocation197_spill] sm:$0xff] }
 0x386   : > { %v10247_v52 = vpop.f32.mrf.mxu0 }
 0x387   : > { %v14573_v28 = vpop.f32.mrf.mxu1  ;;  %10302 = vmatmul.mubr.msk.bf16.gmra.mxu1 %vm2056_vm9, %v4512_v42 }
 0x388   : > { %v14569_v60 = vpop.f32.mrf.mxu0  ;;  %19830 = vst [vmem:[#allocation322_spill] sm:$0xff] %v14573_v28  ;;  %10305 = vmatprep.mubr.msk.bf16.mxu1 %vm11191_vm0, %v19240_v61  ;;  %v19836_v28 = vld [vmem:[#allocation196_spill] sm:$0xff] }
 0x389   : > { %19828 = vst [vmem:[#allocation321_spill] sm:$0xff] %v14569_v60  ;;  %v10091_v52 = vpop.f32.mrf.mxu1  ;;  %v4516_v21 = vrot.slane %v19836_v28, 7 }
 0x38a   : > { %v10248_v47 = vpop.f32.mrf.mxu0  ;;  %v19839_v52 = vld [vmem:[#allocation3_spill] sm:$0xff] }
 0x38b   : > { %v14585_v47 = vpop.f32.mrf.mxu1  ;;  %v4517_v8 = vor.u32 %v4516_v21, %v19840_v51 }
 0x38c   : > { %v14578_v6 = vpop.f32.mrf.mxu0  ;;  %10462 = vmatmul.mubr.msk.bf16.gmra.mxu0 %vm2056_vm9, %v19832_v56  ;;  %19834 = vst [vmem:[#allocation106_spill] sm:$0xff] %v14585_v47 }
 0x38d   : > { %19831 = vst [vmem:[#allocation323_spill] sm:$0xff] %v14578_v6  ;;  %10465 = vmatprep.mubr.msk.bf16.mxu0 %vm11191_vm0, %v19240_v61  ;;  %v10092_v42 = vpop.f32.mrf.mxu1  ;;  %v4518_v28 = vsel %vm4481_vm15, %v4513_v12, %v4517_v8  ;;  %v19847_v12 = vld [vmem:[#allocation194_spill] sm:$0xff] }
 0x38e   : > { %v10251_v22 = vpop.f32.mrf.mxu0 }
 0x38f   : > { %v14591_v29 = vpop.f32.mrf.mxu1  ;;  %10306 = vmatmul.mubr.msk.bf16.gmra.mxu1 %vm2056_vm9, %v4515_v9 }
 0x390   : > { %v14587_v60 = vpop.f32.mrf.mxu0  ;;  %19837 = vst [vmem:[#allocation325_spill] sm:$0xff] %v14591_v29  ;;  %10309 = vmatprep.mubr.msk.bf16.mxu1 %vm11191_vm0, %v19240_v61  ;;  %v19843_v29 = vld [vmem:[#allocation193_spill] sm:$0xff] }
 0x391   : > { %19835 = vst [vmem:[#allocation324_spill] sm:$0xff] %v14587_v60  ;;  %v10095_v22 = vpop.f32.mrf.mxu1  ;;  %v4519_v47 = vrot.slane %v19843_v29, 7 }
 0x392   : > { %v10252_v6 = vpop.f32.mrf.mxu0  ;;  %v19846_v22 = vld [vmem:[#allocation16_spill] sm:$0xff] }
 0x393   : > { %v14603_v6 = vpop.f32.mrf.mxu1  ;;  %v4520_v8 = vor.u32 %v4519_v47, %v19847_v12 }
 0x394   : > { %v14596_v56 = vpop.f32.mrf.mxu0  ;;  %10466 = vmatmul.mubr.msk.bf16.gmra.mxu0 %vm2056_vm9, %v19839_v52  ;;  %19841 = vst [vmem:[#allocation3_spill] sm:$0xff] %v14603_v6 }
 0x395   : > { %19838 = vst [vmem:[#allocation326_spill] sm:$0xff] %v14596_v56  ;;  %10469 = vmatprep.mubr.msk.bf16.mxu0 %vm11191_vm0, %v19240_v61  ;;  %v10096_v9 = vpop.f32.mrf.mxu1 }
 0x396   : > { %v10255_v42 = vpop.f32.mrf.mxu0 }
 0x397   : > { %v14609_v34 = vpop.f32.mrf.mxu1  ;;  %10310 = vmatmul.mubr.msk.bf16.gmra.mxu1 %vm2056_vm9, %v4518_v28 }
 0x398   : > { %v14605_v60 = vpop.f32.mrf.mxu0  ;;  %19844 = vst [vmem:[#allocation193_spill] sm:$0xff] %v14609_v34  ;;  %10313 = vmatprep.mubr.msk.bf16.mxu1 %vm11191_vm0, %v19240_v61 }
 0x399   : > { %19842 = vst [vmem:[#allocation197_spill] sm:$0xff] %v14605_v60  ;;  %v10099_v42 = vpop.f32.mrf.mxu1  ;;  %v4521_v60 = vsel %vm4481_vm15, %v4516_v21, %v4520_v8  ;;  %v19854_v8 = vld [vmem:[#allocation217_spill] sm:$0xff] }
 0x39a   : > { %v10256_v56 = vpop.f32.mrf.mxu0  ;;  %v19851_v42 = vld [vmem:[#allocation188_spill] sm:$0xff] }
 0x39b   : > { %v14621_v56 = vpop.f32.mrf.mxu1 }
 0x39c   : > { %v14614_v52 = vpop.f32.mrf.mxu0  ;;  %10470 = vmatmul.mubr.msk.bf16.gmra.mxu0 %vm2056_vm9, %v19846_v22 }
 0x39d   : > { %19845 = vst [vmem:[#allocation327_spill] sm:$0xff] %v14614_v52  ;;  %10473 = vmatprep.mubr.msk.bf16.mxu0 %vm11191_vm0, %v19240_v61  ;;  %v10100_v28 = vpop.f32.mrf.mxu1 }
 0x39e   : > { %v10259_v29 = vpop.f32.mrf.mxu0 }
 0x39f   : > { %v14626_v6 = vpop.f32.mrf.mxu1  ;;  %10314 = vmatmul.mubr.msk.bf16.gmra.mxu1 %vm2056_vm9, %v4521_v60  ;;  %v4524_v60 = vsel %vm4481_vm15, %v4519_v47, %v19854_v8 }
 0x3a0   : > { %v14623_v9 = vpop.f32.mrf.mxu0  ;;  %19849 = vst [vmem:[#allocation194_spill] sm:$0xff] %v14626_v6  ;;  %10317 = vmatprep.mubr.msk.bf16.mxu1 %vm11191_vm0, %v19240_v61 }
 0x3a1   : > { %19848 = vst [vmem:[#allocation16_spill] sm:$0xff] %v14623_v9  ;;  %v10103_v29 = vpop.f32.mrf.mxu1 }
 0x3a2   : > { %v10260_v34 = vpop.f32.mrf.mxu0  ;;  %v19857_v29 = vld [vmem:[#allocation191_spill] sm:$0xff] }
 0x3a3   : > { %v14637_v9 = vpop.f32.mrf.mxu1 }
 0x3a4   : > { %v14631_v22 = vpop.f32.mrf.mxu0  ;;  %10474 = vmatmul.mubr.msk.bf16.gmra.mxu0 %vm2056_vm9, %v19851_v42  ;;  %19852 = vst [vmem:[#allocation188_spill] sm:$0xff] %v14637_v9 }
 0x3a5   : > { %19850 = vst [vmem:[#allocation328_spill] sm:$0xff] %v14631_v22  ;;  %10477 = vmatprep.mubr.msk.bf16.mxu0 %vm11191_vm0, %v19240_v61  ;;  %v10104_v34 = vpop.f32.mrf.mxu1  ;;  %v19861_v22 = vld [vmem:[#allocation218_spill] sm:$0xff] }
 0x3a6   : > { %v10379_v28 = vpop.f32.mrf.mxu0 }
 0x3a7   : > { %v14643_v6 = vpop.f32.mrf.mxu1  ;;  %10318 = vmatmul.mubr.msk.bf16.gmra.mxu1 %vm2056_vm9, %v4524_v60 }
 0x3a8   : > { %v14639_v21 = vpop.f32.mrf.mxu0  ;;  %19855 = vst [vmem:[#allocation217_spill] sm:$0xff] %v14643_v6  ;;  %10321 = vmatprep.mubr.msk.bf16.mxu1 %vm11191_vm0, %v19240_v61  ;;  %v19891_v6 = vld [vmem:[#allocation88_spill] sm:$0xff] }
 0x3a9   : > { %19853 = vst [vmem:[#allocation329_spill] sm:$0xff] %v14639_v21  ;;  %v10107_v28 = vpop.f32.mrf.mxu1 }
 0x3aa   : > { %v10380_v52 = vpop.f32.mrf.mxu0  ;;  %v19863_v28 = vld [vmem:[#allocation2_spill] sm:$0xff] }
 0x3ab   : > { %v14654_v21 = vpop.f32.mrf.mxu1 }
 0x3ac   : > { %v14648_v42 = vpop.f32.mrf.mxu0  ;;  %10478 = vmatmul.mubr.msk.bf16.gmra.mxu0 %vm2056_vm9, %v19857_v29  ;;  %19858 = vst [vmem:[#allocation331_spill] sm:$0xff] %v14654_v21  ;;  %v19867_v21 = vld [vmem:[#allocation220_spill] sm:$0xff] }
 0x3ad   : > { %19856 = vst [vmem:[#allocation330_spill] sm:$0xff] %v14648_v42  ;;  %10481 = vmatprep.mubr.msk.bf16.mxu0 %vm11191_vm0, %v19240_v61  ;;  %v10108_v52 = vpop.f32.mrf.mxu1 }
 0x3ae   : > { %v10383_v34 = vpop.f32.mrf.mxu0 }
 0x3af   : > { %v14658_v60 = vpop.f32.mrf.mxu1  ;;  %10322 = vmatmul.mubr.msk.bf16.gmra.mxu1 %vm2056_vm9, %v19861_v22 }
 0x3b0   : > { %v14656_v47 = vpop.f32.mrf.mxu0  ;;  %19860 = vst [vmem:[#allocation333_spill] sm:$0xff] %v14658_v60  ;;  %10325 = vmatprep.mubr.msk.bf16.mxu1 %vm11191_vm0, %v19240_v61 }
 0x3b1   : > { %19859 = vst [vmem:[#allocation332_spill] sm:$0xff] %v14656_v47  ;;  %v10111_v34 = vpop.f32.mrf.mxu1 }
 0x3b2   : > { %v10384_v8 = vpop.f32.mrf.mxu0  ;;  %v19869_v34 = vld [vmem:[#allocation93_spill] sm:$0xff] }
 0x3b3   : > { %v14670_v52 = vpop.f32.mrf.mxu1 }
 0x3b4   : > { %v14664_v29 = vpop.f32.mrf.mxu0  ;;  %10482 = vmatmul.mubr.msk.bf16.gmra.mxu0 %vm2056_vm9, %v19863_v28  ;;  %19864 = vst [vmem:[#allocation334_spill] sm:$0xff] %v14670_v52  ;;  %v19873_v52 = vld [vmem:[#allocation222_spill] sm:$0xff] }
 0x3b5   : > { %19862 = vst [vmem:[#allocation218_spill] sm:$0xff] %v14664_v29  ;;  %10601 = vmatprep.mubr.msk.bf16.mxu0 %vm11191_vm0, %v19240_v61  ;;  %v10112_v42 = vpop.f32.mrf.mxu1 }
 0x3b6   : > { %v10387_v47 = vpop.f32.mrf.mxu0 }
 0x3b7   : > { %v14674_v22 = vpop.f32.mrf.mxu1  ;;  %10326 = vmatmul.mubr.msk.bf16.gmra.mxu1 %vm2056_vm9, %v19867_v21 }
 0x3b8   : > { %v14672_v8 = vpop.f32.mrf.mxu0  ;;  %19866 = vst [vmem:[#allocation336_spill] sm:$0xff] %v14674_v22  ;;  %10329 = vmatprep.mubr.msk.bf16.mxu1 %vm11191_vm0, %v19240_v61 }
 0x3b9   : > { %19865 = vst [vmem:[#allocation335_spill] sm:$0xff] %v14672_v8  ;;  %v10115_v47 = vpop.f32.mrf.mxu1 }
 0x3ba   : > { %v10388_v60 = vpop.f32.mrf.mxu0  ;;  %v19875_v47 = vld [vmem:[#allocation230_spill] sm:$0xff] }
 0x3bb   : > { %v14686_v42 = vpop.f32.mrf.mxu1 }
 0x3bc   : > { %v14680_v28 = vpop.f32.mrf.mxu0  ;;  %10602 = vmatmul.mubr.msk.bf16.vlgmr.msra.gmra.mxu0 %vm2056_vm9, %v19869_v34  ;;  %19870 = vst [vmem:[#allocation93_spill] sm:$0xff] %v14686_v42  ;;  %v19879_v42 = vld [vmem:[#allocation224_spill] sm:$0xff] }
 0x3bd   : > { %19868 = vst [vmem:[#allocation220_spill] sm:$0xff] %v14680_v28  ;;  %10605 = vmatprep.mubr.msk.bf16.mxu0 %vm11191_vm0, %v19240_v61  ;;  %v10116_v29 = vpop.f32.mrf.mxu1 }
 0x3be   : > { %v10391_v8 = vpop.f32.mrf.mxu0 }
 0x3bf   : > { %v14690_v21 = vpop.f32.mrf.mxu1  ;;  %10330 = vmatmul.mubr.msk.bf16.gmra.mxu1 %vm2056_vm9, %v19873_v52 }
 0x3c0   : > { %v14688_v60 = vpop.f32.mrf.mxu0  ;;  %19872 = vst [vmem:[#allocation338_spill] sm:$0xff] %v14690_v21  ;;  %10333 = vmatprep.mubr.msk.bf16.mxu1 %vm11191_vm0, %v19240_v61 }
 0x3c1   : > { %19871 = vst [vmem:[#allocation337_spill] sm:$0xff] %v14688_v60  ;;  %v10119_v8 = vpop.f32.mrf.mxu1 }
 0x3c2   : > { %v10392_v22 = vpop.f32.mrf.mxu0  ;;  %v19881_v8 = vld [vmem:[#allocation241_spill] sm:$0xff] }
 0x3c3   : > { %v14702_v29 = vpop.f32.mrf.mxu1 }
 0x3c4   : > { %v14696_v34 = vpop.f32.mrf.mxu0  ;;  %10606 = vmatmul.mubr.msk.bf16.gmra.mxu0 %vm2056_vm9, %v19875_v47  ;;  %19876 = vst [vmem:[#allocation230_spill] sm:$0xff] %v14702_v29  ;;  %v19885_v29 = vld [vmem:[#allocation225_spill] sm:$0xff] }
 0x3c5   : > { %19874 = vst [vmem:[#allocation222_spill] sm:$0xff] %v14696_v34  ;;  %10609 = vmatprep.mubr.msk.bf16.mxu0 %vm11191_vm0, %v19240_v61  ;;  %v10120_v28 = vpop.f32.mrf.mxu1 }
 0x3c6   : > { %v10395_v60 = vpop.f32.mrf.mxu0 }
 0x3c7   : > { %v14706_v52 = vpop.f32.mrf.mxu1  ;;  %10334 = vmatmul.mubr.msk.bf16.gmra.mxu1 %vm2056_vm9, %v19879_v42 }
 0x3c8   : > { %v14704_v22 = vpop.f32.mrf.mxu0  ;;  %19878 = vst [vmem:[#allocation340_spill] sm:$0xff] %v14706_v52  ;;  %10337 = vmatprep.mubr.msk.bf16.mxu1 %vm11191_vm0, %v19240_v61 }
 0x3c9   : > { %19877 = vst [vmem:[#allocation339_spill] sm:$0xff] %v14704_v22  ;;  %v10123_v60 = vpop.f32.mrf.mxu1 }
 0x3ca   : > { %v10396_v21 = vpop.f32.mrf.mxu0  ;;  %v19887_v60 = vld [vmem:[#allocation246_spill] sm:$0xff] }
 0x3cb   : > { %v14718_v28 = vpop.f32.mrf.mxu1 }
 0x3cc   : > { %v14712_v47 = vpop.f32.mrf.mxu0  ;;  %10610 = vmatmul.mubr.msk.bf16.gmra.mxu0 %vm2056_vm9, %v19881_v8  ;;  %19882 = vst [vmem:[#allocation241_spill] sm:$0xff] %v14718_v28 }
 0x3cd   : > { %19880 = vst [vmem:[#allocation224_spill] sm:$0xff] %v14712_v47  ;;  %10613 = vmatprep.mubr.msk.bf16.mxu0 %vm11191_vm0, %v19240_v61  ;;  %v10124_v34 = vpop.f32.mrf.mxu1 }
 0x3ce   : > { %v10399_v22 = vpop.f32.mrf.mxu0 }
 0x3cf   : > { %v14722_v42 = vpop.f32.mrf.mxu1  ;;  %10338 = vmatmul.mubr.msk.bf16.gmra.mxu1 %vm2056_vm9, %v19885_v29  ;;  %v4543_v29 = vrot.slane %v13844_v53, 7  ;;  %v19895_v53 = vld [vmem:[#allocation201_spill] sm:$0xff] }
 0x3d0   : > { %v14720_v21 = vpop.f32.mrf.mxu0  ;;  %19884 = vst [vmem:[#allocation342_spill] sm:$0xff] %v14722_v42  ;;  %10341 = vmatprep.mubr.msk.bf16.mxu1 %vm11191_vm0, %v19240_v61 }
 0x3d1   : > { %19883 = vst [vmem:[#allocation341_spill] sm:$0xff] %v14720_v21  ;;  %v10127_v22 = vpop.f32.mrf.mxu1 }
 0x3d2   : > { %v10400_v52 = vpop.f32.mrf.mxu0  ;;  %v19893_v22 = vld [vmem:[#allocation250_spill] sm:$0xff] }
 0x3d3   : > { %v14734_v34 = vpop.f32.mrf.mxu1 }
 0x3d4   : > { %v14728_v8 = vpop.f32.mrf.mxu0  ;;  %10614 = vmatmul.mubr.msk.bf16.gmra.mxu0 %vm2056_vm9, %v19887_v60  ;;  %19888 = vst [vmem:[#allocation246_spill] sm:$0xff] %v14734_v34 }
 0x3d5   : > { %19886 = vst [vmem:[#allocation225_spill] sm:$0xff] %v14728_v8  ;;  %10617 = vmatprep.mubr.msk.bf16.mxu0 %vm11191_vm0, %v19240_v61  ;;  %v10128_v47 = vpop.f32.mrf.mxu1 }
 0x3d6   : > { %v10403_v21 = vpop.f32.mrf.mxu0  ;;  %v4544_v47 = vor.u32 %v4543_v29, %v13847_v26 }
 0x3d7   : > { %v14739_v28 = vpop.f32.mrf.mxu1  ;;  %10342 = vmatmul.mubr.msk.bf16.gmra.mxu1 %vm2056_vm9, %v19891_v6 }
 0x3d8   : > { %v14736_v52 = vpop.f32.mrf.mxu0  ;;  %19890 = vst [vmem:[#allocation344_spill] sm:$0xff] %v14739_v28  ;;  %10345 = vmatprep.mubr.msk.bf16.mxu1 %vm11191_vm0, %v19240_v61  ;;  %v19896_v28 = vrot.slane %v19895_v53, 7 }
 0x3d9   : > { %19889 = vst [vmem:[#allocation343_spill] sm:$0xff] %v14736_v52  ;;  %v10131_v21 = vpop.f32.mrf.mxu1 }
 0x3da   : > { %v10404_v42 = vpop.f32.mrf.mxu0  ;;  %v4545_v34 = vsel %vm4481_vm15, %v19896_v28, %v4544_v47 }
 0x3db   : > { %v14752_v52 = vpop.f32.mrf.mxu1 }
 0x3dc   : > { %v14745_v60 = vpop.f32.mrf.mxu0  ;;  %10618 = vmatmul.mubr.msk.bf16.gmra.mxu0 %vm2056_vm9, %v19893_v22 }
 0x3dd   : > { %19892 = vst [vmem:[#allocation88_spill] sm:$0xff] %v14745_v60  ;;  %10621 = vmatprep.mubr.msk.bf16.mxu0 %vm11191_vm0, %v19240_v61  ;;  %v10132_v6 = vpop.f32.mrf.mxu1  ;;  %v4546_v60 = vrot.slane %v13889_v19, 7  ;;  %v4549_v19 = vrot.slane %v13934_v45, 7  ;;  %v4552_v45 = vrot.slane %v13978_v63, 7  ;;  %v4555_v63 = vrot.slane %v13990_v32, 7 }
 0x3de   : > { %v10407_v42 = vpop.f32.mrf.mxu0 }
 0x3df   : > { %v14760_v22 = vpop.f32.mrf.mxu1  ;;  %10346 = vmatmul.mubr.msk.bf16.gmra.mxu1 %vm2056_vm9, %v4545_v34  ;;  %v19899_v42 = vld [vmem:[#allocation258_spill] sm:$0xff]  ;;  %v4547_v53 = vor.u32 %v4546_v60, %v13892_v55 }
 0x3e0   : > { %v14754_v8 = vpop.f32.mrf.mxu0  ;;  %19897 = vst [vmem:[#allocation201_spill] sm:$0xff] %v14760_v22  ;;  %10349 = vmatprep.mubr.msk.bf16.mxu1 %vm11191_vm0, %v19240_v61 }
 0x3e1   : > { %19894 = vst [vmem:[#allocation250_spill] sm:$0xff] %v14754_v8  ;;  %v10135_v6 = vpop.f32.mrf.mxu1  ;;  %v4548_v8 = vsel %vm4481_vm15, %v4543_v29, %v4547_v53  ;;  %v4550_v29 = vor.u32 %v4549_v19, %v13937_v33 }
 0x3e2   : > { %v10408_v9 = vpop.f32.mrf.mxu0  ;;  %v19903_v6 = vld [vmem:[#allocation104_spill] sm:$0xff] }
 0x3e3   : > { %v14772_v9 = vpop.f32.mrf.mxu1 }
 0x3e4   : > { %v14765_v21 = vpop.f32.mrf.mxu0  ;;  %10622 = vmatmul.mubr.msk.bf16.gmra.mxu0 %vm2056_vm9, %v19899_v42 }
 0x3e5   : > { %19898 = vst [vmem:[#allocation345_spill] sm:$0xff] %v14765_v21  ;;  %10625 = vmatprep.mubr.msk.bf16.mxu0 %vm11191_vm0, %v19240_v61  ;;  %v10136_v34 = vpop.f32.mrf.mxu1 }
 0x3e6   : > { %v10411_v28 = vpop.f32.mrf.mxu0 }
 0x3e7   : > { %v14778_v22 = vpop.f32.mrf.mxu1  ;;  %10350 = vmatmul.mubr.msk.bf16.gmra.mxu1 %vm2056_vm9, %v4548_v8 }
 0x3e8   : > { %v14774_v47 = vpop.f32.mrf.mxu0  ;;  %19901 = vst [vmem:[#allocation346_spill] sm:$0xff] %v14778_v22  ;;  %10353 = vmatprep.mubr.msk.bf16.mxu1 %vm11191_vm0, %v19240_v61 }
 0x3e9   : > { %19900 = vst [vmem:[#allocation258_spill] sm:$0xff] %v14774_v47  ;;  %v10139_v28 = vpop.f32.mrf.mxu1  ;;  %v4551_v47 = vsel %vm4481_vm15, %v4546_v60, %v4550_v29  ;;  %v4553_v60 = vor.u32 %v4552_v45, %v13981_v49 }
 0x3ea   : > { %v10412_v21 = vpop.f32.mrf.mxu0  ;;  %v19907_v28 = vld [vmem:[#allocation124_spill] sm:$0xff] }
 0x3eb   : > { %v14790_v21 = vpop.f32.mrf.mxu1 }
 0x3ec   : > { %v14783_v42 = vpop.f32.mrf.mxu0  ;;  %10626 = vmatmul.mubr.msk.bf16.gmra.mxu0 %vm2056_vm9, %v19903_v6 }
 0x3ed   : > { %19902 = vst [vmem:[#allocation347_spill] sm:$0xff] %v14783_v42  ;;  %10629 = vmatprep.mubr.msk.bf16.mxu0 %vm11191_vm0, %v19240_v61  ;;  %v10140_v8 = vpop.f32.mrf.mxu1 }
 0x3ee   : > { %v10415_v53 = vpop.f32.mrf.mxu0 }
 0x3ef   : > { %v14796_v22 = vpop.f32.mrf.mxu1  ;;  %10354 = vmatmul.mubr.msk.bf16.gmra.mxu1 %vm2056_vm9, %v4551_v47 }
 0x3f0   : > { %v14792_v34 = vpop.f32.mrf.mxu0  ;;  %19905 = vst [vmem:[#allocation348_spill] sm:$0xff] %v14796_v22  ;;  %10357 = vmatprep.mubr.msk.bf16.mxu1 %vm11191_vm0, %v19240_v61 }
 0x3f1   : > { %19904 = vst [vmem:[#allocation104_spill] sm:$0xff] %v14792_v34  ;;  %v10143_v53 = vpop.f32.mrf.mxu1  ;;  %v4554_v34 = vsel %vm4481_vm15, %v4549_v19, %v4553_v60  ;;  %v4556_v19 = vor.u32 %v4555_v63, %v14015_v41 }
 0x3f2   : > { %v10416_v42 = vpop.f32.mrf.mxu0  ;;  %v19912_v53 = vld [vmem:[#allocation140_spill] sm:$0xff] }
 0x3f3   : > { %v14808_v42 = vpop.f32.mrf.mxu1 }
 0x3f4   : > { %v14801_v6 = vpop.f32.mrf.mxu0  ;;  %10630 = vmatmul.mubr.msk.bf16.gmra.mxu0 %vm2056_vm9, %v19907_v28  ;;  %19908 = vst [vmem:[#allocation124_spill] sm:$0xff] %v14808_v42  ;;  %v19916_v42 = vld [vmem:[#allocation102_spill] sm:$0xff] }
 0x3f5   : > { %19906 = vst [vmem:[#allocation349_spill] sm:$0xff] %v14801_v6  ;;  %10633 = vmatprep.mubr.msk.bf16.mxu0 %vm11191_vm0, %v19240_v61  ;;  %v10144_v47 = vpop.f32.mrf.mxu1 }
 0x3f6   : > { %v10419_v29 = vpop.f32.mrf.mxu0 }
 0x3f7   : > { %v14814_v22 = vpop.f32.mrf.mxu1  ;;  %10358 = vmatmul.mubr.msk.bf16.gmra.mxu1 %vm2056_vm9, %v4554_v34 }
 0x3f8   : > { %v14810_v8 = vpop.f32.mrf.mxu0  ;;  %19910 = vst [vmem:[#allocation351_spill] sm:$0xff] %v14814_v22  ;;  %10361 = vmatprep.mubr.msk.bf16.mxu1 %vm11191_vm0, %v19240_v61  ;;  %v19915_v22 = vld [vmem:[#allocation138_spill] sm:$0xff] }
 0x3f9   : > { %19909 = vst [vmem:[#allocation350_spill] sm:$0xff] %v14810_v8  ;;  %v10147_v29 = vpop.f32.mrf.mxu1  ;;  %v19913_v8 = vld [vmem:[#allocation134_spill] sm:$0xff] }
 0x3fa   : > { %v10420_v6 = vpop.f32.mrf.mxu0  ;;  %v2767_v47 = vadd.f32 %v14335_v38, %v19913_v8  ;;  %v4557_v29 = vsel %vm4481_vm15, %v4552_v45, %v4556_v19  ;;  %v4558_v38 = vrot.slane %v14002_v24, 7 }
 0x3fb   : > { %v14828_v60 = vpop.f32.mrf.mxu1 }
 0x3fc   : > { %v14819_v28 = vpop.f32.mrf.mxu0  ;;  %10634 = vmatmul.mubr.msk.bf16.gmra.mxu0 %vm2056_vm9, %v19912_v53  ;;  %v4091_v53 = vadd.f32 %v19916_v42, %v2767_v47  ;;  %v19920_v42 = vld [vmem:[#allocation251_spill] sm:$0xff] }
 0x3fd   : > { %19911 = vst [vmem:[#allocation352_spill] sm:$0xff] %v14819_v28  ;;  %10637 = vmatprep.mubr.msk.bf16.mxu0 %vm11191_vm0, %v19240_v61  ;;  %v10148_v32 = vpop.f32.mrf.mxu1  ;;  %v2770_v28 = vadd.f32 %v14347_v46, %v19915_v22  ;;  %v19919_v22 = vld [vmem:[#allocation142_spill] sm:$0xff] }
 0x3fe   : > { %v10423_v6 = vpop.f32.mrf.mxu0  ;;  %v19918_v32 = vld [vmem:[#allocation30_spill] sm:$0xff]  ;;  %v2775_v45 = vadd.f32 %v14358_v11, %v19919_v22  ;;  %v19922_v22 = vld [vmem:[#allocation120_spill] sm:$0xff] }
 0x3ff   : > { %v4696_v49 = vpop.f32.mrf.mxu1  ;;  %10362 = vmatmul.mubr.msk.bf16.gmra.mxu1 %vm2056_vm9, %v4557_v29  ;;  %v4092_v47 = vadd.f32 %v19920_v42, %v2770_v28  ;;  %v11111_v29 = vld [vmem:[%s18872_s4 + $0x88] sm:$0xff]   ;;  %v19921_v11 = vld [vmem:[#allocation146_spill] sm:$0xff] }
 0x400   : > { %v14830_v34 = vpop.f32.mrf.mxu0  ;;  %v14838_v41 = vadd.f32 %v4696_v49, %v4091_v53  ;;  %10365 = vmatprep.mubr.msk.bf16.mxu1 %vm11191_vm0, %v19240_v61  ;;  %v4559_v49 = vor.u32 %v4558_v38, %v14005_v25  ;;  %10822 = vmatpush3.bf16.msra.mxu0 %v11111_v29  ;;  %v2778_v28 = vadd.f32 %v14370_v57, %v19921_v11 }
 0x401   : > { %19914 = vst [vmem:[#allocation140_spill] sm:$0xff] %v14830_v34  ;;  %v10267_v46 = vpop.f32.mrf.mxu1  ;;  %v4093_v42 = vadd.f32 %v19922_v22, %v2775_v45  ;;  %10823 = vmatprep.subr.bf16.mxu0 %v19240_v61  ;;  %v19924_v45 = vld [vmem:[#allocation116_spill] sm:$0xff] }
 0x402   : > { %v10424_v8 = vpop.f32.mrf.mxu0 }
 0x403   : > { %v4699_v53 = vpop.f32.mrf.mxu1 }
 0x404   : > { %v14842_v6 = vpop.f32.mrf.mxu0  ;;  %10638 = vmatmul.mubr.msk.bf16.gmra.mxu0 %vm2056_vm9, %v19918_v32  ;;  %v14855_v8 = vadd.f32 %v4699_v53, %v4092_v47 }
 0x405   : > { %19917 = vst [vmem:[#allocation134_spill] sm:$0xff] %v14842_v6  ;;  %10641 = vmatprep.mubr.msk.bf16.mxu0 %vm11191_vm0, %v19240_v61  ;;  %v10268_v46 = vpop.f32.mrf.mxu1  ;;  %v4560_v6 = vsel %vm4481_vm15, %v4555_v63, %v4559_v49  ;;  %v19923_v63 = vld [vmem:[#allocation152_spill] sm:$0xff]  ;;  %v4094_v49 = vadd.f32 %v19924_v45, %v2778_v28 }
 0x406   : > { %v10427_v19 = vpop.f32.mrf.mxu0 }
 0x407   : > { %v4564_v19 = vrot.slane %v14018_v15, 7  ;;  %v4704_v24 = vpop.f32.mrf.mxu1  ;;  %10366 = vmatmul.mubr.msk.bf16.gmra.mxu1 %vm2056_vm9, %v4560_v6  ;;  %v2783_v15 = vadd.f32 %v14382_v5, %v19923_v63 }
 0x408   : > { %v14857_v32 = vpop.f32.mrf.mxu0  ;;  %v14866_v47 = vadd.f32 %v4704_v24, %v4093_v42  ;;  %10369 = vmatprep.mubr.msk.bf16.mxu1 %vm11191_vm0, %v19240_v61  ;;  %v19926_v42 = vld [vmem:[#allocation154_spill] sm:$0xff] }
 0x409   : > { %v10271_v57 = vpop.f32.mrf.mxu1  ;;  %v2786_v5 = vadd.f32 %v14396_v7, %v19926_v42  ;;  %v4095_v28 = vadd.f32 %v14086_v10, %v2783_v15  ;;  %v19927_v7 = vld [vmem:[#allocation158_spill] sm:$0xff] }
 0x40a   : > { %v10428_v34 = vpop.f32.mrf.mxu0 }
 0x40b   : > { %v19925_v34 = vld [vmem:[#allocation29_spill] sm:$0xff]  ;;  %v4707_v29 = vpop.f32.mrf.mxu1  ;;  %v4096_v15 = vadd.f32 %v14117_v39, %v2786_v5 }
 0x40c   : > { %v14870_v53 = vpop.f32.mrf.mxu0  ;;  %10642 = vmatmul.mubr.msk.bf16.gmra.mxu0 %vm2056_vm9, %v14102_v62  ;;  %v4567_v24 = vor.u32 %v19925_v34, %v4564_v19  ;;  %v14880_v46 = vadd.f32 %v4707_v29, %v4094_v49  ;;  %v11113_v62 = vld [vmem:[%s18872_s4 + $0x80] sm:$0xff]   ;;  %v5490_v49 = vrot.slane %v19783_v40, 1 }
 0x40d   : > { %10645 = vmatprep.mubr.msk.bf16.mxu0 %vm11191_vm0, %v19240_v61  ;;  %v10272_v22 = vpop.f32.mrf.mxu1  ;;  %10824 = vmatpush3.bf16.msra.mxu0 %v11113_v62 }
 0x40e   : > { %v10431_v6 = vpop.f32.mrf.mxu0  ;;  %v4568_v57 = vsel %vm4481_vm15, %v4558_v38, %v4567_v24  ;;  %v2791_v38 = vadd.f32 %v14406_v43, %v19927_v7  ;;  %v5492_v24 = vrot.slane %v19789_v30, 1  ;;  %v5491_v40 = vor.u32 %v5490_v49, %v19780_v37  ;;  %v11112_v37 = vld [vmem:[%s18872_s4 + $0x70] sm:$0xff]  }
 0x40f   : > { %v4712_v19 = vpop.f32.mrf.mxu1  ;;  %10370 = vmatmul.mubr.msk.bf16.gmra.mxu1 %vm2056_vm9, %v4568_v57 }
 0x410   : > { %v14882_v11 = vpop.f32.mrf.mxu0  ;;  %v14892_v45 = vadd.f32 %v4712_v19, %v4095_v28  ;;  %10489 = vmatprep.mubr.msk.bf16.mxu1 %vm11191_vm0, %v19240_v61  ;;  %v19929_v28 = vld [vmem:[#allocation162_spill] sm:$0xff]  ;;  %v4097_v5 = vadd.f32 %v14174_v48, %v2791_v38  ;;  %v5493_v30 = vsel %vm5489_vm10, %v5491_v40, %v5492_v24  ;;  %v5495_v38 = vrot.slane %v13025_v13, 1 }
 0x411   : > { %v10275_v10 = vpop.f32.mrf.mxu1  ;;  %v2794_v39 = vadd.f32 %v14422_v4, %v19929_v28  ;;  %v19931_v4 = vld [vmem:[#allocation167_spill] sm:$0xff]  ;;  %v5494_v40 = vor.u32 %v5492_v24, %v19786_v14 }
 0x412   : > { %v10432_v63 = vpop.f32.mrf.mxu0  ;;  %v2799_v10 = vadd.f32 %v14429_v44, %v19931_v4  ;;  %v19933_v44 = vld [vmem:[#allocation170_spill] sm:$0xff]  ;;  %v5497_v4 = vor.u32 %v5495_v38, %v13022_v58 }
 0x413   : > { %v4715_v22 = vpop.f32.mrf.mxu1  ;;  %v4098_v7 = vadd.f32 %v14182_v31, %v2794_v39  ;;  %v2802_v31 = vadd.f32 %v14441_v16, %v19933_v44  ;;  %v5496_v28 = vsel %vm5489_vm10, %v5494_v40, %v5495_v38  ;;  %v19935_v16 = vld [vmem:[#allocation175_spill] sm:$0xff]  ;;  %v19939_v38 = vld [vmem:[#allocation209_spill] sm:$0xff]  ;;  %v19941_v44 = vld [vmem:[#allocation108_spill] sm:$0xff] }
 0x414   : > { %v14897_v6 = vpop.f32.mrf.mxu0  ;;  %10646 = vmatmul.mubr.msk.bf16.gmra.mxu0 %vm2056_vm9, %v19723_v59  ;;  %v14907_v62 = vadd.f32 %v4715_v22, %v4096_v15  ;;  %v11110_v59 = vld [vmem:[%s18872_s4 + $0x78] sm:$0xff]  }
 0x415   : > { %10649 = vmatprep.mubr.msk.bf16.mxu0 %vm11191_vm0, %v19240_v61  ;;  %v10276_v43 = vpop.f32.mrf.mxu1 }
 0x416   : > { %v10435_v29 = vpop.f32.mrf.mxu0  ;;  %v4099_v43 = vadd.f32 %v14190_v35, %v2799_v10  ;;  %v2807_v35 = vadd.f32 %v14447_v54, %v19935_v16  ;;  %v19943_v16 = vld [vmem:[#allocation173_spill] sm:$0xff] }
 0x417   : > { %v4720_v63 = vpop.f32.mrf.mxu1  ;;  %10490 = vmatmul.mubr.msk.bf16.vlgmr.msra.gmra.mxu1 %vm2056_vm9, %v5493_v30  ;;  %v4100_v30 = vadd.f32 %v14198_v0, %v2802_v31  ;;  %v19942_v31 = vld [vmem:[#allocation280_spill] sm:$0xff] }
 0x418   : > { %v14913_v42 = vpop.f32.mrf.mxu0  ;;  %v14920_v19 = vadd.f32 %v4720_v63, %v4097_v5  ;;  %10710 = vmatpush3.bf16.msra.mxu1 %v11110_v59  ;;  %10493 = vmatprep.mubr.msk.bf16.mxu1 %vm11191_vm0, %v19240_v61  ;;  %v4101_v54 = vadd.f32 %v14206_v27, %v2807_v35 }
 0x419   : > { %19928 = vst [vmem:[#allocation138_spill] sm:$0xff] %v14913_v42  ;;  %v10279_v48 = vpop.f32.mrf.mxu1  ;;  %10711 = vmatprep.subr.bf16.mxu1 %v19240_v61 }
 0x41a   : > { %v10436_v57 = vpop.f32.mrf.mxu0 }
 0x41b   : > { %v4723_v29 = vpop.f32.mrf.mxu1  ;;  %v5498_v57 = vrot.slane %v13038_v20, 1 }
 0x41c   : > { %v14927_v49 = vpop.f32.mrf.mxu0  ;;  %10650 = vmatmul.mubr.msk.bf16.gmra.mxu0 %vm2056_vm9, %v19727_v36  ;;  %v14938_v22 = vadd.f32 %v4723_v29, %v4098_v7  ;;  %10712 = vmatpush3.bf16.msra.mxu1 %v11112_v37  ;;  %v19937_v7 = vld [vmem:[#allocation177_spill] sm:$0xff] }
 0x41d   : > { %19930 = vst [vmem:[#allocation102_spill] sm:$0xff] %v14927_v49  ;;  %10653 = vmatprep.mubr.msk.bf16.mxu0 %vm11191_vm0, %v19240_v61  ;;  %v10280_v59 = vpop.f32.mrf.mxu1  ;;  %10933 = vmatprep.subr.bf16.mxu1 %v19240_v61  ;;  %v5499_v0 = vsel %vm5489_vm10, %v5497_v4, %v5498_v57  ;;  %v5500_v35 = vor.u32 %v5498_v57, %v19943_v16  ;;  %v20053_v49 = vld [vmem:[#allocation331_spill] sm:$0xff] }
 0x41e   : > { %v10439_v15 = vpop.f32.mrf.mxu0 }
 0x41f   : > { %v4728_v39 = vpop.f32.mrf.mxu1  ;;  %10494 = vmatmul.mubr.msk.bf16.gmra.mxu1 %vm2056_vm9, %v5496_v28  ;;  %v2810_v15 = vadd.f32 %v14459_v3, %v19937_v7  ;;  %v19940_v3 = vld [vmem:[#allocation95_spill] sm:$0xff]  ;;  %v5501_v28 = vrot.slane %v13086_v50, 1 }
 0x420   : > { %v14941_v36 = vpop.f32.mrf.mxu0  ;;  %v14949_v5 = vadd.f32 %v4728_v39, %v4099_v43  ;;  %10497 = vmatprep.mubr.msk.bf16.mxu1 %vm11191_vm0, %v19240_v61  ;;  %v2815_v27 = vadd.f32 %v19941_v44, %v19940_v3  ;;  %v19951_v3 = vld [vmem:[#allocation283_spill] sm:$0xff] }
 0x421   : > { %19932 = vst [vmem:[#allocation30_spill] sm:$0xff] %v14941_v36  ;;  %v10283_v24 = vpop.f32.mrf.mxu1  ;;  %v4102_v43 = vadd.f32 %v19942_v31, %v2810_v15  ;;  %v5502_v15 = vsel %vm5489_vm10, %v5500_v35, %v5501_v28  ;;  %v20052_v36 = vld [vmem:[#allocation119_spill] sm:$0xff] }
 0x422   : > { %v10440_v13 = vpop.f32.mrf.mxu0 }
 0x423   : > { %v4731_v37 = vpop.f32.mrf.mxu1 }
 0x424   : > { %v14953_v14 = vpop.f32.mrf.mxu0  ;;  %10654 = vmatmul.mubr.msk.bf16.gmra.mxu0 %vm2056_vm9, %v19731_v2  ;;  %v14963_v48 = vadd.f32 %v4731_v37, %v4100_v30  ;;  %v19945_v37 = vld [vmem:[#allocation11_spill] sm:$0xff] }
 0x425   : > { %19934 = vst [vmem:[#allocation142_spill] sm:$0xff] %v14953_v14  ;;  %10657 = vmatprep.mubr.msk.bf16.mxu0 %vm11191_vm0, %v19240_v61  ;;  %v10284_v2 = vpop.f32.mrf.mxu1  ;;  %v2818_v4 = vadd.f32 %v14477_v1, %v19945_v37  ;;  %v19949_v1 = vld [vmem:[#allocation26_spill] sm:$0xff]  ;;  %v19954_v37 = vld [vmem:[#allocation185_spill] sm:$0xff] }
 0x426   : > { %v10443_v63 = vpop.f32.mrf.mxu0  ;;  %v19946_v2 = vld [vmem:[#allocation282_spill] sm:$0xff] }
 0x427   : > { %v4736_v40 = vpop.f32.mrf.mxu1  ;;  %10498 = vmatmul.mubr.msk.bf16.gmra.mxu1 %vm2056_vm9, %v5499_v0  ;;  %v4103_v7 = vadd.f32 %v19946_v2, %v2815_v27  ;;  %v4104_v44 = vadd.f32 %v19951_v3, %v2818_v4  ;;  %v5504_v27 = vrot.slane %v13136_v18, 1  ;;  %v2826_v2 = vadd.f32 %v14495_v23, %v19954_v37  ;;  %v19958_v23 = vld [vmem:[#allocation198_spill] sm:$0xff] }
 0x428   : > { %v14966_v10 = vpop.f32.mrf.mxu0  ;;  %v14973_v20 = vadd.f32 %v4736_v40, %v4101_v54  ;;  %10501 = vmatprep.mubr.msk.bf16.mxu1 %vm11191_vm0, %v19240_v61 }
 0x429   : > { %19936 = vst [vmem:[#allocation251_spill] sm:$0xff] %v14966_v10  ;;  %v10287_v59 = vpop.f32.mrf.mxu1 }
 0x42a   : > { %v10444_v29 = vpop.f32.mrf.mxu0 }
 0x42b   : > { %v4739_v39 = vpop.f32.mrf.mxu1  ;;  %v19948_v29 = vld [vmem:[#allocation210_spill] sm:$0xff] }
 0x42c   : > { %v14977_v58 = vpop.f32.mrf.mxu0  ;;  %10658 = vmatmul.mubr.msk.bf16.gmra.mxu0 %vm2056_vm9, %v19939_v38  ;;  %v14987_v24 = vadd.f32 %v4739_v39, %v4102_v43  ;;  %v19950_v38 = vld [vmem:[#allocation308_spill] sm:$0xff]  ;;  %v19952_v39 = vld [vmem:[#allocation179_spill] sm:$0xff] }
 0x42d   : > { %19938 = vst [vmem:[#allocation146_spill] sm:$0xff] %v14977_v58  ;;  %10661 = vmatprep.mubr.msk.bf16.mxu0 %vm11191_vm0, %v19240_v61  ;;  %v10288_v63 = vpop.f32.mrf.mxu1  ;;  %v2823_v59 = vadd.f32 %v19950_v38, %v19949_v1  ;;  %v5503_v16 = vor.u32 %v5501_v28, %v19952_v39  ;;  %v19959_v1 = vld [vmem:[#allocation310_spill] sm:$0xff] }
 0x42e   : > { %v10447_v13 = vpop.f32.mrf.mxu0  ;;  %v2831_v38 = vadd.f32 %v19959_v1, %v19958_v23  ;;  %v19967_v1 = vld [vmem:[#allocation213_spill] sm:$0xff] }
 0x42f   : > { %v4744_v0 = vpop.f32.mrf.mxu1  ;;  %10502 = vmatmul.mubr.msk.bf16.gmra.mxu1 %vm2056_vm9, %v5502_v15  ;;  %v5505_v4 = vsel %vm5489_vm10, %v5503_v16, %v5504_v27  ;;  %v19961_v16 = vld [vmem:[#allocation9_spill] sm:$0xff] }
 0x430   : > { %v14990_v30 = vpop.f32.mrf.mxu0  ;;  %v14997_v50 = vadd.f32 %v4744_v0, %v4103_v7  ;;  %10505 = vmatprep.mubr.msk.bf16.mxu1 %vm11191_vm0, %v19240_v61  ;;  %v19955_v7 = vld [vmem:[#allocation285_spill] sm:$0xff] }
 0x431   : > { %19944 = vst [vmem:[#allocation120_spill] sm:$0xff] %v14990_v30  ;;  %v10291_v40 = vpop.f32.mrf.mxu1  ;;  %v4105_v15 = vadd.f32 %v19955_v7, %v2823_v59  ;;  %v19960_v59 = vld [vmem:[#allocation286_spill] sm:$0xff] }
 0x432   : > { %v10448_v54 = vpop.f32.mrf.mxu0  ;;  %v4106_v3 = vadd.f32 %v19960_v59, %v2826_v2 }
 0x433   : > { %v4747_v43 = vpop.f32.mrf.mxu1 }
 0x434   : > { %v15001_v57 = vpop.f32.mrf.mxu0  ;;  %10662 = vmatmul.mubr.msk.bf16.gmra.mxu0 %vm2056_vm9, %v19948_v29  ;;  %v15011_v13 = vadd.f32 %v4747_v43, %v4104_v44  ;;  %v19957_v29 = vld [vmem:[#allocation212_spill] sm:$0xff]  ;;  %v5507_v44 = vrot.slane %v13193_v17, 1 }
 0x435   : > { %19947 = vst [vmem:[#allocation152_spill] sm:$0xff] %v15001_v57  ;;  %10665 = vmatprep.mubr.msk.bf16.mxu0 %vm11191_vm0, %v19240_v61  ;;  %v10292_v63 = vpop.f32.mrf.mxu1 }
 0x436   : > { %v10451_v31 = vpop.f32.mrf.mxu0  ;;  %v5506_v63 = vor.u32 %v5504_v27, %v19961_v16 }
 0x437   : > { %v4752_v0 = vpop.f32.mrf.mxu1  ;;  %10506 = vmatmul.mubr.msk.bf16.gmra.mxu1 %vm2056_vm9, %v5505_v4  ;;  %v19964_v4 = vld [vmem:[#allocation171_spill] sm:$0xff] }
 0x438   : > { %v15014_v35 = vpop.f32.mrf.mxu0  ;;  %v15021_v18 = vadd.f32 %v4752_v0, %v4105_v15  ;;  %10509 = vmatprep.mubr.msk.bf16.mxu1 %vm11191_vm0, %v19240_v61  ;;  %v19963_v15 = vld [vmem:[#allocation202_spill] sm:$0xff]  ;;  %v19965_v0 = vld [vmem:[#allocation288_spill] sm:$0xff]  ;;  %v5508_v2 = vsel %vm5489_vm10, %v5506_v63, %v5507_v44  ;;  %v19971_v63 = vld [vmem:[#allocation117_spill] sm:$0xff] }
 0x439   : > { %19953 = vst [vmem:[#allocation116_spill] sm:$0xff] %v15014_v35  ;;  %v10295_v40 = vpop.f32.mrf.mxu1 }
 0x43a   : > { %v10452_v54 = vpop.f32.mrf.mxu0 }
 0x43b   : > { %v4755_v43 = vpop.f32.mrf.mxu1  ;;  %v2834_v54 = vadd.f32 %v19964_v4, %v19963_v15 }
 0x43c   : > { %v15025_v28 = vpop.f32.mrf.mxu0  ;;  %10666 = vmatmul.mubr.msk.bf16.gmra.mxu0 %vm2056_vm9, %v19957_v29  ;;  %v15035_v39 = vadd.f32 %v4755_v43, %v4106_v3  ;;  %v4107_v29 = vadd.f32 %v19965_v0, %v2831_v38  ;;  %v19968_v3 = vld [vmem:[#allocation215_spill] sm:$0xff]  ;;  %v19970_v43 = vld [vmem:[#allocation289_spill] sm:$0xff] }
 0x43d   : > { %19956 = vst [vmem:[#allocation29_spill] sm:$0xff] %v15025_v28  ;;  %10669 = vmatprep.mubr.msk.bf16.mxu0 %vm11191_vm0, %v19240_v61  ;;  %v10296_v7 = vpop.f32.mrf.mxu1  ;;  %v4108_v16 = vadd.f32 %v19970_v43, %v2834_v54 }
 0x43e   : > { %v10455_v31 = vpop.f32.mrf.mxu0  ;;  %v5510_v7 = vrot.slane %v19971_v63, 1 }
 0x43f   : > { %v4760_v23 = vpop.f32.mrf.mxu1  ;;  %10510 = vmatmul.mubr.msk.bf16.gmra.mxu1 %vm2056_vm9, %v5508_v2  ;;  %v19969_v31 = vld [vmem:[#allocation313_spill] sm:$0xff] }
 0x440   : > { %v15038_v37 = vpop.f32.mrf.mxu0  ;;  %v15045_v17 = vadd.f32 %v4760_v23, %v4107_v29  ;;  %10513 = vmatprep.mubr.msk.bf16.mxu1 %vm11191_vm0, %v19240_v61  ;;  %v2839_v38 = vadd.f32 %v19969_v31, %v19968_v3  ;;  %v19972_v29 = vld [vmem:[#allocation101_spill] sm:$0xff]  ;;  %v19976_v3 = vld [vmem:[#allocation292_spill] sm:$0xff] }
 0x441   : > { %19962 = vst [vmem:[#allocation154_spill] sm:$0xff] %v15038_v37  ;;  %v10299_v59 = vpop.f32.mrf.mxu1  ;;  %v5509_v2 = vor.u32 %v5507_v44, %v19972_v29  ;;  %v19980_v29 = vld [vmem:[#allocation316_spill] sm:$0xff] }
 0x442   : > { %v10456_v40 = vpop.f32.mrf.mxu0  ;;  %v19975_v59 = vld [vmem:[#allocation174_spill] sm:$0xff]  ;;  %v4109_v31 = vadd.f32 %v19976_v3, %v2839_v38 }
 0x443   : > { %v4763_v4 = vpop.f32.mrf.mxu1  ;;  %v5511_v54 = vsel %vm5489_vm10, %v5509_v2, %v5510_v7 }
 0x444   : > { %v15049_v27 = vpop.f32.mrf.mxu0  ;;  %10670 = vmatmul.mubr.msk.bf16.gmra.mxu0 %vm2056_vm9, %v19967_v1  ;;  %v15059_v0 = vadd.f32 %v4763_v4, %v4108_v16  ;;  %v19974_v1 = vld [vmem:[#allocation219_spill] sm:$0xff]  ;;  %v19978_v16 = vld [vmem:[#allocation290_spill] sm:$0xff]  ;;  %v19979_v4 = vld [vmem:[#allocation228_spill] sm:$0xff] }
 0x445   : > { %19966 = vst [vmem:[#allocation158_spill] sm:$0xff] %v15049_v27  ;;  %10673 = vmatprep.mubr.msk.bf16.mxu0 %vm11191_vm0, %v19240_v61  ;;  %v10300_v23 = vpop.f32.mrf.mxu1  ;;  %v2842_v27 = vadd.f32 %v19975_v59, %v19974_v1  ;;  %v2847_v38 = vadd.f32 %v19980_v29, %v19979_v4  ;;  %v19982_v1 = vld [vmem:[#allocation15_spill] sm:$0xff]  ;;  %v19987_v4 = vld [vmem:[#allocation296_spill] sm:$0xff] }
 0x446   : > { %v10459_v15 = vpop.f32.mrf.mxu0  ;;  %v19981_v23 = vld [vmem:[#allocation293_spill] sm:$0xff] }
 0x447   : > { %v4768_v37 = vpop.f32.mrf.mxu1  ;;  %10514 = vmatmul.mubr.msk.bf16.gmra.mxu1 %vm2056_vm9, %v5511_v54  ;;  %v4110_v2 = vadd.f32 %v19981_v23, %v2842_v27  ;;  %v19983_v54 = vld [vmem:[#allocation113_spill] sm:$0xff]  ;;  %v4111_v29 = vadd.f32 %v19987_v4, %v2847_v38 }
 0x448   : > { %v15062_v40 = vpop.f32.mrf.mxu0  ;;  %v15069_v63 = vadd.f32 %v4768_v37, %v4109_v31  ;;  %10517 = vmatprep.mubr.msk.bf16.mxu1 %vm11191_vm0, %v19240_v61  ;;  %v5513_v37 = vrot.slane %v19982_v1, 1 }
 0x449   : > { %19973 = vst [vmem:[#allocation162_spill] sm:$0xff] %v15062_v40  ;;  %v10303_v15 = vpop.f32.mrf.mxu1  ;;  %v19986_v40 = vld [vmem:[#allocation180_spill] sm:$0xff] }
 0x44a   : > { %v10460_v43 = vpop.f32.mrf.mxu0  ;;  %v19985_v15 = vld [vmem:[#allocation235_spill] sm:$0xff] }
 0x44b   : > { %v4771_v3 = vpop.f32.mrf.mxu1  ;;  %v5512_v43 = vor.u32 %v5510_v7, %v19983_v54  ;;  %v2850_v28 = vadd.f32 %v19986_v40, %v19985_v15  ;;  %v19990_v40 = vld [vmem:[#allocation184_spill] sm:$0xff]  ;;  %v19992_v54 = vld [vmem:[#allocation297_spill] sm:$0xff] }
 0x44c   : > { %v15073_v44 = vpop.f32.mrf.mxu0  ;;  %10674 = vmatmul.mubr.msk.bf16.gmra.mxu0 %vm2056_vm9, %v19978_v16  ;;  %v15083_v31 = vadd.f32 %v4771_v3, %v4110_v2  ;;  %v19989_v2 = vld [vmem:[#allocation294_spill] sm:$0xff]  ;;  %v19991_v3 = vld [vmem:[#allocation319_spill] sm:$0xff] }
 0x44d   : > { %19977 = vst [vmem:[#allocation167_spill] sm:$0xff] %v15073_v44  ;;  %10677 = vmatprep.mubr.msk.bf16.mxu0 %vm11191_vm0, %v19240_v61  ;;  %v10304_v16 = vpop.f32.mrf.mxu1  ;;  %v5514_v27 = vsel %vm5489_vm10, %v5512_v43, %v5513_v37  ;;  %v2855_v38 = vadd.f32 %v19991_v3, %v19990_v40  ;;  %v4112_v43 = vadd.f32 %v19992_v54, %v2850_v28  ;;  %v19998_v40 = vld [vmem:[#allocation300_spill] sm:$0xff] }
 0x44e   : > { %v10463_v59 = vpop.f32.mrf.mxu0  ;;  %v19993_v16 = vld [vmem:[#allocation187_spill] sm:$0xff] }
 0x44f   : > { %v4776_v35 = vpop.f32.mrf.mxu1  ;;  %10518 = vmatmul.mubr.msk.bf16.gmra.mxu1 %vm2056_vm9, %v5514_v27  ;;  %v19994_v27 = vld [vmem:[#allocation24_spill] sm:$0xff]  ;;  %v4113_v3 = vadd.f32 %v19998_v40, %v2855_v38 }
 0x450   : > { %v15086_v44 = vpop.f32.mrf.mxu0  ;;  %v15093_v1 = vadd.f32 %v4776_v35, %v4111_v29  ;;  %10521 = vmatprep.mubr.msk.bf16.mxu1 %vm11191_vm0, %v19240_v61  ;;  %v5516_v35 = vrot.slane %v19993_v16, 1 }
 0x451   : > { %19984 = vst [vmem:[#allocation170_spill] sm:$0xff] %v15086_v44  ;;  %v10307_v59 = vpop.f32.mrf.mxu1  ;;  %v19997_v44 = vld [vmem:[#allocation91_spill] sm:$0xff] }
 0x452   : > { %v10464_v23 = vpop.f32.mrf.mxu0  ;;  %v19996_v59 = vld [vmem:[#allocation17_spill] sm:$0xff] }
 0x453   : > { %v4779_v4 = vpop.f32.mrf.mxu1  ;;  %v5515_v23 = vor.u32 %v5513_v37, %v19994_v27  ;;  %v2858_v57 = vadd.f32 %v19997_v44, %v19996_v59  ;;  %v20001_v44 = vld [vmem:[#allocation199_spill] sm:$0xff]  ;;  %v20003_v27 = vld [vmem:[#allocation301_spill] sm:$0xff] }
 0x454   : > { %v15097_v7 = vpop.f32.mrf.mxu0  ;;  %10678 = vmatmul.mubr.msk.bf16.gmra.mxu0 %vm2056_vm9, %v19989_v2  ;;  %v15107_v29 = vadd.f32 %v4779_v4, %v4112_v43  ;;  %v20000_v43 = vld [vmem:[#allocation298_spill] sm:$0xff] }
 0x455   : > { %19988 = vst [vmem:[#allocation175_spill] sm:$0xff] %v15097_v7  ;;  %10681 = vmatprep.mubr.msk.bf16.mxu0 %vm11191_vm0, %v19240_v61  ;;  %v10308_v2 = vpop.f32.mrf.mxu1  ;;  %v5517_v28 = vsel %vm5489_vm10, %v5515_v23, %v5516_v35  ;;  %v20002_v4 = vld [vmem:[#allocation322_spill] sm:$0xff]  ;;  %v4114_v23 = vadd.f32 %v20003_v27, %v2858_v57 }
 0x456   : > { %v10467_v15 = vpop.f32.mrf.mxu0  ;;  %v2863_v38 = vadd.f32 %v20002_v4, %v20001_v44  ;;  %v20004_v2 = vld [vmem:[#allocation20_spill] sm:$0xff]  ;;  %v20009_v44 = vld [vmem:[#allocation303_spill] sm:$0xff] }
 0x457   : > { %v4784_v30 = vpop.f32.mrf.mxu1  ;;  %10522 = vmatmul.mubr.msk.bf16.gmra.mxu1 %vm2056_vm9, %v5517_v28  ;;  %v20005_v28 = vld [vmem:[#allocation18_spill] sm:$0xff] }
 0x458   : > { %v15110_v7 = vpop.f32.mrf.mxu0  ;;  %v15117_v16 = vadd.f32 %v4784_v30, %v4113_v3  ;;  %10525 = vmatprep.mubr.msk.bf16.mxu1 %vm11191_vm0, %v19240_v61  ;;  %v5519_v30 = vrot.slane %v20004_v2, 1  ;;  %v4115_v4 = vadd.f32 %v20009_v44, %v2863_v38 }
 0x459   : > { %19995 = vst [vmem:[#allocation177_spill] sm:$0xff] %v15110_v7  ;;  %v10311_v15 = vpop.f32.mrf.mxu1  ;;  %v20008_v7 = vld [vmem:[#allocation106_spill] sm:$0xff] }
 0x45a   : > { %v10468_v54 = vpop.f32.mrf.mxu0  ;;  %v20007_v15 = vld [vmem:[#allocation204_spill] sm:$0xff] }
 0x45b   : > { %v4787_v40 = vpop.f32.mrf.mxu1  ;;  %v5518_v54 = vor.u32 %v5516_v35, %v20005_v28  ;;  %v2866_v58 = vadd.f32 %v20008_v7, %v20007_v15  ;;  %v20012_v7 = vld [vmem:[#allocation216_spill] sm:$0xff] }
 0x45c   : > { %v15121_v37 = vpop.f32.mrf.mxu0  ;;  %10682 = vmatmul.mubr.msk.bf16.gmra.mxu0 %vm2056_vm9, %v20000_v43  ;;  %v15131_v3 = vadd.f32 %v4787_v40, %v4114_v23  ;;  %v20011_v23 = vld [vmem:[#allocation302_spill] sm:$0xff]  ;;  %v20013_v40 = vld [vmem:[#allocation325_spill] sm:$0xff]  ;;  %v20014_v28 = vld [vmem:[#allocation60_spill] sm:$0xff] }
 0x45d   : > { %19999 = vst [vmem:[#allocation209_spill] sm:$0xff] %v15121_v37  ;;  %10685 = vmatprep.mubr.msk.bf16.mxu0 %vm11191_vm0, %v19240_v61  ;;  %v10312_v43 = vpop.f32.mrf.mxu1  ;;  %v5520_v57 = vsel %vm5489_vm10, %v5518_v54, %v5519_v30  ;;  %v2871_v38 = vadd.f32 %v20013_v40, %v20012_v7  ;;  %v4116_v54 = vadd.f32 %v20014_v28, %v2866_v58  ;;  %v20019_v7 = vld [vmem:[#allocation305_spill] sm:$0xff] }
 0x45e   : > { %v10471_v59 = vpop.f32.mrf.mxu0 }
 0x45f   : > { %v4792_v10 = vpop.f32.mrf.mxu1  ;;  %10526 = vmatmul.mubr.msk.bf16.gmra.mxu1 %vm2056_vm9, %v5520_v57  ;;  %v4117_v40 = vadd.f32 %v20019_v7, %v2871_v38  ;;  %v20025_v7 = vld [vmem:[#allocation196_spill] sm:$0xff] }
 0x460   : > { %v15134_v37 = vpop.f32.mrf.mxu0  ;;  %v15141_v2 = vadd.f32 %v4792_v10, %v4115_v4  ;;  %10529 = vmatprep.mubr.msk.bf16.mxu1 %vm11191_vm0, %v19240_v61  ;;  %v5522_v10 = vrot.slane %v19840_v51, 1  ;;  %v20015_v4 = vld [vmem:[#allocation19_spill] sm:$0xff] }
 0x461   : > { %20006 = vst [vmem:[#allocation95_spill] sm:$0xff] %v15134_v37  ;;  %v10315_v59 = vpop.f32.mrf.mxu1  ;;  %v5521_v57 = vor.u32 %v5519_v30, %v20015_v4  ;;  %v20024_v4 = vld [vmem:[#allocation61_spill] sm:$0xff] }
 0x462   : > { %v10472_v27 = vpop.f32.mrf.mxu0  ;;  %v20017_v59 = vld [vmem:[#allocation221_spill] sm:$0xff] }
 0x463   : > { %v4795_v15 = vpop.f32.mrf.mxu1  ;;  %v5523_v58 = vsel %vm5489_vm10, %v5521_v57, %v5522_v10 }
 0x464   : > { %v15145_v35 = vpop.f32.mrf.mxu0  ;;  %10686 = vmatmul.mubr.msk.bf16.gmra.mxu0 %vm2056_vm9, %v20011_v23  ;;  %v15155_v44 = vadd.f32 %v4795_v15, %v4116_v54  ;;  %v20021_v54 = vld [vmem:[#allocation304_spill] sm:$0xff]  ;;  %v20023_v15 = vld [vmem:[#allocation193_spill] sm:$0xff] }
 0x465   : > { %20010 = vst [vmem:[#allocation108_spill] sm:$0xff] %v15145_v35  ;;  %10689 = vmatprep.mubr.msk.bf16.mxu0 %vm11191_vm0, %v19240_v61  ;;  %v10316_v23 = vpop.f32.mrf.mxu1  ;;  %v20018_v35 = vld [vmem:[#allocation3_spill] sm:$0xff] }
 0x466   : > { %v10475_v43 = vpop.f32.mrf.mxu0  ;;  %v2874_v37 = vadd.f32 %v20018_v35, %v20017_v59  ;;  %v20022_v35 = vld [vmem:[#allocation234_spill] sm:$0xff] }
 0x467   : > { %v4800_v14 = vpop.f32.mrf.mxu1  ;;  %10530 = vmatmul.mubr.msk.bf16.gmra.mxu1 %vm2056_vm9, %v5523_v58  ;;  %v2879_v38 = vadd.f32 %v20023_v15, %v20022_v35  ;;  %v20029_v35 = vrot.slane %v19847_v12, 1 }
 0x468   : > { %v15158_v27 = vpop.f32.mrf.mxu0  ;;  %v15165_v51 = vadd.f32 %v4800_v14, %v4117_v40  ;;  %10533 = vmatprep.mubr.msk.bf16.mxu1 %vm11191_vm0, %v19240_v61  ;;  %v4118_v57 = vadd.f32 %v20024_v4, %v2874_v37  ;;  %v5524_v40 = vor.u32 %v5522_v10, %v20025_v7 }
 0x469   : > { %20016 = vst [vmem:[#allocation280_spill] sm:$0xff] %v15158_v27  ;;  %v10319_v43 = vpop.f32.mrf.mxu1 }
 0x46a   : > { %v10476_v28 = vpop.f32.mrf.mxu0  ;;  %v20028_v43 = vld [vmem:[#allocation122_spill] sm:$0xff]  ;;  %v5526_v37 = vsel %vm5489_vm10, %v5524_v40, %v20029_v35 }
 0x46b   : > { %v4803_v14 = vpop.f32.mrf.mxu1  ;;  %v4119_v27 = vadd.f32 %v20028_v43, %v2879_v38  ;;  %v20033_v38 = vld [vmem:[#allocation194_spill] sm:$0xff] }
 0x46c   : > { %v15169_v30 = vpop.f32.mrf.mxu0  ;;  %10690 = vmatmul.mubr.msk.bf16.gmra.mxu0 %vm2056_vm9, %v20021_v54  ;;  %v15178_v59 = vadd.f32 %v4803_v14, %v4118_v57  ;;  %v20034_v14 = vld [vmem:[#allocation71_spill] sm:$0xff] }
 0x46d   : > { %20020 = vst [vmem:[#allocation173_spill] sm:$0xff] %v15169_v30  ;;  %10693 = vmatprep.mubr.msk.bf16.mxu0 %vm11191_vm0, %v19240_v61  ;;  %v10320_v28 = vpop.f32.mrf.mxu1  ;;  %v20027_v30 = vld [vmem:[#allocation240_spill] sm:$0xff] }
 0x46e   : > { %v10479_v23 = vpop.f32.mrf.mxu0  ;;  %v2882_v54 = vadd.f32 %v14621_v56, %v20027_v30  ;;  %v20032_v30 = vld [vmem:[#allocation248_spill] sm:$0xff] }
 0x46f   : > { %v4808_v4 = vpop.f32.mrf.mxu1  ;;  %10534 = vmatmul.mubr.msk.bf16.gmra.mxu1 %vm2056_vm9, %v5526_v37  ;;  %v20031_v23 = vld [vmem:[#allocation306_spill] sm:$0xff]  ;;  %v2887_v12 = vadd.f32 %v20033_v38, %v20032_v30  ;;  %v20040_v30 = vld [vmem:[#allocation227_spill] sm:$0xff] }
 0x470   : > { %v15181_v58 = vpop.f32.mrf.mxu0  ;;  %v15190_v57 = vadd.f32 %v4808_v4, %v4119_v27  ;;  %10537 = vmatprep.mubr.msk.bf16.mxu1 %vm11191_vm0, %v19240_v61  ;;  %v4120_v7 = vadd.f32 %v20034_v14, %v2882_v54  ;;  %v20037_v37 = vld [vmem:[#allocation254_spill] sm:$0xff]  ;;  %v20041_v54 = vld [vmem:[#allocation28_spill] sm:$0xff] }
 0x471   : > { %20026 = vst [vmem:[#allocation11_spill] sm:$0xff] %v15181_v58  ;;  %v10323_v56 = vpop.f32.mrf.mxu1  ;;  %v20042_v38 = vshrl.u32 %v20041_v54, 16 }
 0x472   : > { %v10480_v15 = vpop.f32.mrf.mxu0 }
 0x473   : > { %v4811_v27 = vpop.f32.mrf.mxu1  ;;  %v20038_v15 = vld [vmem:[#allocation188_spill] sm:$0xff]  ;;  %v6053_v14 = vrot.slane %v20042_v38, 3 }
 0x474   : > { %v15194_v10 = vpop.f32.mrf.mxu0  ;;  %10694 = vmatmul.mubr.msk.bf16.gmra.mxu0 %vm2056_vm9, %v20031_v23  ;;  %v15203_v28 = vadd.f32 %v4811_v27, %v4120_v7  ;;  %v2890_v4 = vadd.f32 %v20038_v15, %v20037_v37  ;;  %v20039_v23 = vld [vmem:[#allocation128_spill] sm:$0xff]  ;;  %v20044_v7 = vld [vmem:[#allocation262_spill] sm:$0xff]  ;;  %v20048_v15 = vld [vmem:[#allocation217_spill] sm:$0xff] }
 0x475   : > { %20030 = vst [vmem:[#allocation282_spill] sm:$0xff] %v15194_v10  ;;  %10697 = vmatprep.mubr.msk.bf16.mxu0 %vm11191_vm0, %v19240_v61  ;;  %v10324_v35 = vpop.f32.mrf.mxu1  ;;  %v4121_v56 = vadd.f32 %v20039_v23, %v2887_v12  ;;  %v6054_v27 = vrot.slane %v20044_v7, 4  ;;  %v20046_v37 = vld [vmem:[#allocation268_spill] sm:$0xff]  ;;  %v20047_v12 = vld [vmem:[#allocation121_spill] sm:$0xff] }
 0x476   : > { %v10483_v40 = vpop.f32.mrf.mxu0  ;;  %20035 = vst [vmem:[#allocation210_spill] sm:$0xff] %v15203_v28  ;;  %v2895_v23 = vadd.f32 %v20048_v15, %v20047_v12  ;;  %v20055_v15 = vld [vmem:[#allocation229_spill] sm:$0xff] }
 0x477   : > { %v4816_v58 = vpop.f32.mrf.mxu1  ;;  %10538 = vmatmul.mubr.msk.bf16.gmra.mxu1 %vm2056_vm9, %v20040_v30  ;;  %v20049_v30 = vld [vmem:[#allocation100_spill] sm:$0xff]  ;;  %v6055_v54 = vor.u32 %v6054_v27, %v6053_v14 }
 0x478   : > { %v15205_v43 = vpop.f32.mrf.mxu0  ;;  %v15214_v40 = vadd.f32 %v4816_v58, %v4121_v56  ;;  %10541 = vmatprep.mubr.msk.bf16.mxu1 %vm11191_vm0, %v19240_v61  ;;  %v20060_v27 = vld [vmem:[#allocation264_spill] sm:$0xff] }
 0x479   : > { %20036 = vst [vmem:[#allocation26_spill] sm:$0xff] %v15205_v43  ;;  %v4122_v43 = vadd.f32 %v20049_v30, %v2890_v4  ;;  %v20056_v4 = vld [vmem:[#allocation267_spill] sm:$0xff] }
 0x47a   : > { %v10484_v10 = vpop.f32.mrf.mxu0  ;;  %20043 = vst [vmem:[#allocation308_spill] sm:$0xff] %v15214_v40  ;;  %v20057_v30 = vshrl.u32 %v20056_v4, 16 }
 0x47b   : > { %v10327_v10 = vpop.f32.mrf.mxu1 }
 0x47c   : > { %v15219_v35 = vpop.f32.mrf.mxu0  ;;  %10698 = vmatmul.mubr.msk.bf16.gmra.mxu0 %vm2056_vm9, %v20046_v37  ;;  %v2898_v37 = vadd.f32 %v20053_v49, %v20052_v36  ;;  %v20054_v10 = vld [vmem:[#allocation141_spill] sm:$0xff] }
 0x47d   : > { %20045 = vst [vmem:[#allocation283_spill] sm:$0xff] %v15219_v35  ;;  %10701 = vmatprep.mubr.msk.bf16.mxu0 %vm11191_vm0, %v19240_v61  ;;  %v4819_v56 = vpop.f32.mrf.mxu1  ;;  %v4123_v40 = vadd.f32 %v20054_v10, %v2895_v23  ;;  %v20062_v36 = vld [vmem:[#allocation265_spill] sm:$0xff] }
 0x47e   : > { %v10603_v58 = vpop.f32.mrf.mxu0  ;;  %v15228_v38 = vadd.f32 %v4819_v56, %v4122_v43  ;;  %v20058_v43 = vshll.u32 %v20056_v4, 16  ;;  %v20063_v23 = vld [vmem:[#allocation333_spill] sm:$0xff] }
 0x47f   : > { %v10328_v35 = vpop.f32.mrf.mxu1  ;;  %10542 = vmatmul.mubr.msk.bf16.gmra.mxu1 %vm2056_vm9, %v20055_v15  ;;  %v6060_v58 = vrot.slane %v20057_v30, 3  ;;  %v2903_v10 = vadd.f32 %v20063_v23, %v20062_v36  ;;  %v20064_v15 = vld [vmem:[#allocation82_spill] sm:$0xff]  ;;  %v20069_v23 = vld [vmem:[#allocation231_spill] sm:$0xff] }
 0x480   : > { %20050 = vst [vmem:[#allocation179_spill] sm:$0xff] %v15228_v38  ;;  %v15230_v7 = vpop.f32.mrf.mxu0  ;;  %v6063_v56 = vrot.slane %v20058_v43, 4  ;;  %v6056_v35 = vsel %vm2387_vm14, %v20060_v27, %v6055_v54  ;;  %10545 = vmatprep.mubr.msk.bf16.mxu1 %vm11191_vm0, %v19240_v61  ;;  %v4124_v30 = vadd.f32 %v20064_v15, %v2898_v37 }
 0x481   : > { %20051 = vst [vmem:[#allocation185_spill] sm:$0xff] %v15230_v7  ;;  %v4824_v12 = vpop.f32.mrf.mxu1 }
 0x482   : > { %v10604_v42 = vpop.f32.mrf.mxu0  ;;  %v15241_v14 = vadd.f32 %v4824_v12, %v4123_v40  ;;  %v6064_v43 = vor.u32 %v6063_v56, %v6060_v58  ;;  %v20071_v56 = vld [vmem:[#allocation279_spill] sm:$0xff] }
 0x483   : > { %v10331_v42 = vpop.f32.mrf.mxu1 }
 0x484   : > { %20059 = vst [vmem:[#allocation285_spill] sm:$0xff] %v15241_v14  ;;  %v15247_v49 = vpop.f32.mrf.mxu0  ;;  %10702 = vmatmul.mubr.msk.bf16.gmra.mxu0 %vm2056_vm9, %v6056_v35  ;;  %v20067_v14 = vld [vmem:[#allocation334_spill] sm:$0xff]  ;;  %v20068_v42 = vld [vmem:[#allocation148_spill] sm:$0xff]  ;;  %v6065_v15 = vsel %vm2387_vm14, %v6055_v54, %v6064_v43  ;;  %v20075_v43 = vld [vmem:[#allocation207_spill] sm:$0xff] }
 0x485   : > { %20061 = vst [vmem:[#allocation212_spill] sm:$0xff] %v15247_v49  ;;  %10705 = vmatprep.mubr.msk.bf16.mxu0 %vm11191_vm0, %v19240_v61  ;;  %v4827_v12 = vpop.f32.mrf.mxu1  ;;  %v20066_v49 = vld [vmem:[#allocation172_spill] sm:$0xff]  ;;  %v4125_v38 = vadd.f32 %v20068_v42, %v2903_v10  ;;  %v20076_v42 = vld [vmem:[#allocation93_spill] sm:$0xff] }
 0x486   : > { %v10607_v40 = vpop.f32.mrf.mxu0  ;;  %v15255_v4 = vadd.f32 %v4827_v12, %v4124_v30  ;;  %v2906_v35 = vadd.f32 %v20067_v14, %v20066_v49  ;;  %v20072_v14 = vld [vmem:[#allocation336_spill] sm:$0xff] }
 0x487   : > { %v10332_v7 = vpop.f32.mrf.mxu1  ;;  %10546 = vmatmul.mubr.msk.bf16.gmra.mxu1 %vm2056_vm9, %v20069_v23  ;;  %v2911_v49 = vadd.f32 %v20072_v14, %v20071_v56  ;;  %v20077_v23 = vld [vmem:[#allocation307_spill] sm:$0xff]  ;;  %v20078_v56 = vld [vmem:[#allocation232_spill] sm:$0xff] }
 0x488   : > { %v15257_v27 = vpop.f32.mrf.mxu0  ;;  %10549 = vmatprep.mubr.msk.bf16.mxu1 %vm11191_vm0, %v19240_v61 }
 0x489   : > { %20065 = vst [vmem:[#allocation198_spill] sm:$0xff] %v15257_v27  ;;  %v4832_v36 = vpop.f32.mrf.mxu1 }
 0x48a   : > { %v10608_v28 = vpop.f32.mrf.mxu0  ;;  %v15264_v37 = vadd.f32 %v4832_v36, %v4125_v38  ;;  %v2914_v36 = vadd.f32 %v20076_v42, %v20075_v43 }
 0x48b   : > { %v10335_v7 = vpop.f32.mrf.mxu1  ;;  %v20073_v28 = vld [vmem:[#allocation89_spill] sm:$0xff] }
 0x48c   : > { %v15269_v58 = vpop.f32.mrf.mxu0  ;;  %10706 = vmatmul.mubr.msk.bf16.gmra.mxu0 %vm2056_vm9, %v6065_v15  ;;  %v4126_v10 = vadd.f32 %v20073_v28, %v2906_v35  ;;  %v4127_v15 = vadd.f32 %v20077_v23, %v2911_v49  ;;  %v20081_v28 = vld [vmem:[#allocation178_spill] sm:$0xff]  ;;  %v20084_v49 = vld [vmem:[#allocation125_spill] sm:$0xff] }
 0x48d   : > { %20070 = vst [vmem:[#allocation310_spill] sm:$0xff] %v15269_v58  ;;  %10825 = vmatprep.mubr.msk.bf16.mxu0 %vm11191_vm0, %v19240_v61  ;;  %v4835_v30 = vpop.f32.mrf.mxu1  ;;  %v4128_v43 = vadd.f32 %v20084_v49, %v2914_v36  ;;  %v20093_v49 = vld [vmem:[#allocation182_spill] sm:$0xff] }
 0x48e   : > { %v10611_v38 = vpop.f32.mrf.mxu0  ;;  %v15277_v40 = vadd.f32 %v4835_v30, %v4126_v10  ;;  %v20083_v30 = vld [vmem:[#allocation338_spill] sm:$0xff] }
 0x48f   : > { %v10336_v12 = vpop.f32.mrf.mxu1  ;;  %10550 = vmatmul.mubr.msk.bf16.gmra.mxu1 %vm2056_vm9, %v20078_v56  ;;  %v20082_v38 = vld [vmem:[#allocation5_spill] sm:$0xff]  ;;  %v20087_v56 = vld [vmem:[#allocation208_spill] sm:$0xff] }
 0x490   : > { %v15279_v54 = vpop.f32.mrf.mxu0  ;;  %10553 = vmatprep.mubr.msk.bf16.mxu1 %vm11191_vm0, %v19240_v61  ;;  %v2919_v12 = vadd.f32 %v20083_v30, %v20082_v38  ;;  %v20090_v38 = vld [vmem:[#allocation236_spill] sm:$0xff] }
 0x491   : > { %20074 = vst [vmem:[#allocation286_spill] sm:$0xff] %v15279_v54  ;;  %v4840_v58 = vpop.f32.mrf.mxu1 }
 0x492   : > { %v10612_v7 = vpop.f32.mrf.mxu0  ;;  %v15286_v35 = vadd.f32 %v4840_v58, %v4127_v15 }
 0x493   : > { %v10339_v10 = vpop.f32.mrf.mxu1 }
 0x494   : > { %20079 = vst [vmem:[#allocation9_spill] sm:$0xff] %v15286_v35  ;;  %v15290_v14 = vpop.f32.mrf.mxu0  ;;  %10826 = vmatmul.mubr.msk.bf16.vlgmr.msra.gmra.mxu0 %vm2056_vm9, %v20081_v28  ;;  %v20089_v28 = vld [vmem:[#allocation309_spill] sm:$0xff] }
 0x495   : > { %20080 = vst [vmem:[#allocation202_spill] sm:$0xff] %v15290_v14  ;;  %10829 = vmatprep.mubr.msk.bf16.mxu0 %vm11191_vm0, %v19240_v61  ;;  %v4843_v58 = vpop.f32.mrf.mxu1  ;;  %v20088_v14 = vld [vmem:[#allocation230_spill] sm:$0xff]  ;;  %v4129_v10 = vadd.f32 %v20089_v28, %v2919_v12  ;;  %v20096_v12 = vld [vmem:[#allocation149_spill] sm:$0xff] }
 0x496   : > { %v10615_v42 = vpop.f32.mrf.mxu0  ;;  %v15299_v23 = vadd.f32 %v4843_v58, %v4128_v43  ;;  %v2922_v54 = vadd.f32 %v20088_v14, %v20087_v56  ;;  %v20095_v14 = vld [vmem:[#allocation340_spill] sm:$0xff] }
 0x497   : > { %v10340_v7 = vpop.f32.mrf.mxu1  ;;  %10554 = vmatmul.mubr.msk.bf16.gmra.mxu1 %vm2056_vm9, %v20090_v38  ;;  %v20094_v42 = vld [vmem:[#allocation7_spill] sm:$0xff]  ;;  %v20099_v38 = vld [vmem:[#allocation8_spill] sm:$0xff] }
 0x498   : > { %20085 = vst [vmem:[#allocation171_spill] sm:$0xff] %v15299_v23  ;;  %v15301_v15 = vpop.f32.mrf.mxu0  ;;  %10557 = vmatprep.mubr.msk.bf16.mxu1 %vm11191_vm0, %v19240_v61  ;;  %v2927_v58 = vadd.f32 %v20095_v14, %v20094_v42  ;;  %v20102_v42 = vld [vmem:[#allocation238_spill] sm:$0xff] }
 0x499   : > { %20086 = vst [vmem:[#allocation288_spill] sm:$0xff] %v15301_v15  ;;  %v4848_v35 = vpop.f32.mrf.mxu1 }
 0x49a   : > { %v10616_v27 = vpop.f32.mrf.mxu0  ;;  %v15308_v36 = vadd.f32 %v4848_v35, %v4129_v10 }
 0x49b   : > { %v10343_v43 = vpop.f32.mrf.mxu1  ;;  %v4130_v27 = vadd.f32 %v20096_v12, %v2922_v54  ;;  %v20105_v12 = vld [vmem:[#allocation99_spill] sm:$0xff] }
 0x49c   : > { %20091 = vst [vmem:[#allocation213_spill] sm:$0xff] %v15308_v36  ;;  %v15312_v30 = vpop.f32.mrf.mxu0  ;;  %10830 = vmatmul.mubr.msk.bf16.gmra.mxu0 %vm2056_vm9, %v20093_v49  ;;  %v20101_v49 = vld [vmem:[#allocation311_spill] sm:$0xff] }
 0x49d   : > { %20092 = vst [vmem:[#allocation215_spill] sm:$0xff] %v15312_v30  ;;  %10833 = vmatprep.mubr.msk.bf16.mxu0 %vm11191_vm0, %v19240_v61  ;;  %v4851_v35 = vpop.f32.mrf.mxu1  ;;  %v20100_v30 = vld [vmem:[#allocation241_spill] sm:$0xff]  ;;  %v4131_v43 = vadd.f32 %v20101_v49, %v2927_v58  ;;  %v20108_v58 = vld [vmem:[#allocation312_spill] sm:$0xff] }
 0x49e   : > { %v10619_v7 = vpop.f32.mrf.mxu0  ;;  %v15321_v56 = vadd.f32 %v4851_v35, %v4130_v27  ;;  %v2930_v15 = vadd.f32 %v20100_v30, %v20099_v38  ;;  %v20107_v30 = vld [vmem:[#allocation342_spill] sm:$0xff] }
 0x49f   : > { %v10344_v10 = vpop.f32.mrf.mxu1  ;;  %10558 = vmatmul.mubr.msk.bf16.gmra.mxu1 %vm2056_vm9, %v20102_v42  ;;  %v20106_v7 = vld [vmem:[#allocation281_spill] sm:$0xff]  ;;  %v20110_v42 = vld [vmem:[#allocation4_spill] sm:$0xff] }
 0x4a0   : > { %20097 = vst [vmem:[#allocation313_spill] sm:$0xff] %v15321_v56  ;;  %v15323_v28 = vpop.f32.mrf.mxu0  ;;  %10561 = vmatprep.mubr.msk.bf16.mxu1 %vm11191_vm0, %v19240_v61  ;;  %v2935_v35 = vadd.f32 %v20107_v30, %v20106_v7  ;;  %v20113_v7 = vld [vmem:[#allocation243_spill] sm:$0xff] }
 0x4a1   : > { %20098 = vst [vmem:[#allocation289_spill] sm:$0xff] %v15323_v28  ;;  %v4856_v23 = vpop.f32.mrf.mxu1 }
 0x4a2   : > { %v10620_v36 = vpop.f32.mrf.mxu0  ;;  %v15330_v54 = vadd.f32 %v4856_v23, %v4131_v43 }
 0x4a3   : > { %v10347_v27 = vpop.f32.mrf.mxu1  ;;  %v4132_v36 = vadd.f32 %v20108_v58, %v2930_v15  ;;  %v20115_v58 = vld [vmem:[#allocation109_spill] sm:$0xff] }
 0x4a4   : > { %20103 = vst [vmem:[#allocation117_spill] sm:$0xff] %v15330_v54  ;;  %v15334_v14 = vpop.f32.mrf.mxu0  ;;  %10834 = vmatmul.mubr.msk.bf16.gmra.mxu0 %vm2056_vm9, %v20105_v12  ;;  %v20112_v12 = vld [vmem:[#allocation314_spill] sm:$0xff] }
 0x4a5   : > { %20104 = vst [vmem:[#allocation101_spill] sm:$0xff] %v15334_v14  ;;  %10837 = vmatprep.mubr.msk.bf16.mxu0 %vm11191_vm0, %v19240_v61  ;;  %v4859_v23 = vpop.f32.mrf.mxu1  ;;  %v20111_v14 = vld [vmem:[#allocation246_spill] sm:$0xff]  ;;  %v4133_v27 = vadd.f32 %v20112_v12, %v2935_v35  ;;  %v20118_v35 = vld [vmem:[#allocation315_spill] sm:$0xff] }
 0x4a6   : > { %v10623_v10 = vpop.f32.mrf.mxu0  ;;  %v15343_v38 = vadd.f32 %v4859_v23, %v4132_v36  ;;  %v2938_v28 = vadd.f32 %v20111_v14, %v20110_v42  ;;  %v20117_v14 = vld [vmem:[#allocation344_spill] sm:$0xff] }
 0x4a7   : > { %v10348_v43 = vpop.f32.mrf.mxu1  ;;  %10562 = vmatmul.mubr.msk.bf16.gmra.mxu1 %vm2056_vm9, %v20113_v7  ;;  %v20116_v10 = vld [vmem:[#allocation284_spill] sm:$0xff] }
 0x4a8   : > { %v15345_v49 = vpop.f32.mrf.mxu0  ;;  %10565 = vmatprep.mubr.msk.bf16.mxu1 %vm11191_vm0, %v19240_v61  ;;  %v2943_v23 = vadd.f32 %v20117_v14, %v20116_v10  ;;  %v20123_v10 = vld [vmem:[#allocation244_spill] sm:$0xff] }
 0x4a9   : > { %20109 = vst [vmem:[#allocation219_spill] sm:$0xff] %v15345_v49  ;;  %v4864_v56 = vpop.f32.mrf.mxu1 }
 0x4aa   : > { %v10624_v54 = vpop.f32.mrf.mxu0  ;;  %v15352_v15 = vadd.f32 %v4864_v56, %v4133_v27  ;;  %v5549_v56 = vrot.slane %v13847_v26, 1 }
 0x4ab   : > { %v10351_v36 = vpop.f32.mrf.mxu1  ;;  %v4134_v54 = vadd.f32 %v20118_v35, %v2938_v28 }
 0x4ac   : > { %v15356_v30 = vpop.f32.mrf.mxu0  ;;  %10838 = vmatmul.mubr.msk.bf16.gmra.mxu0 %vm2056_vm9, %v20115_v58  ;;  %v20122_v36 = vld [vmem:[#allocation317_spill] sm:$0xff]  ;;  %v5550_v28 = vsel %vm5489_vm10, %v20123_v10, %v5549_v56 }
 0x4ad   : > { %20114 = vst [vmem:[#allocation174_spill] sm:$0xff] %v15356_v30  ;;  %10841 = vmatprep.mubr.msk.bf16.mxu0 %vm11191_vm0, %v19240_v61  ;;  %v4867_v42 = vpop.f32.mrf.mxu1  ;;  %v20121_v30 = vld [vmem:[#allocation6_spill] sm:$0xff]  ;;  %v4135_v49 = vadd.f32 %v20122_v36, %v2943_v23  ;;  %v20128_v23 = vld [vmem:[#allocation201_spill] sm:$0xff] }
 0x4ae   : > { %v10627_v43 = vpop.f32.mrf.mxu0  ;;  %v15366_v12 = vadd.f32 %v4867_v42, %v4134_v54  ;;  %v2946_v58 = vadd.f32 %v14752_v52, %v20121_v30  ;;  %v20127_v30 = vld [vmem:[#allocation287_spill] sm:$0xff] }
 0x4af   : > { %v10352_v7 = vpop.f32.mrf.mxu1  ;;  %10566 = vmatmul.mubr.msk.bf16.gmra.mxu1 %vm2056_vm9, %v5550_v28  ;;  %v20126_v43 = vld [vmem:[#allocation14_spill] sm:$0xff]  ;;  %v2951_v42 = vadd.f32 %v20128_v23, %v20127_v30  ;;  %v20133_v30 = vld [vmem:[#allocation320_spill] sm:$0xff] }
 0x4b0   : > { %20119 = vst [vmem:[#allocation292_spill] sm:$0xff] %v15366_v12  ;;  %v15368_v27 = vpop.f32.mrf.mxu0  ;;  %10569 = vmatprep.mubr.msk.bf16.mxu1 %vm11191_vm0, %v19240_v61  ;;  %v20129_v7 = vld [vmem:[#allocation318_spill] sm:$0xff] }
 0x4b1   : > { %20120 = vst [vmem:[#allocation290_spill] sm:$0xff] %v15368_v27  ;;  %v4872_v35 = vpop.f32.mrf.mxu1  ;;  %v4136_v36 = vadd.f32 %v20129_v7, %v2946_v58  ;;  %v4137_v23 = vadd.f32 %v20133_v30, %v2951_v42 }
 0x4b2   : > { %v10628_v14 = vpop.f32.mrf.mxu0  ;;  %v15376_v26 = vadd.f32 %v4872_v35, %v4135_v49  ;;  %v5552_v49 = vrot.slane %v13892_v55, 1  ;;  %v20130_v35 = vld [vmem:[#allocation257_spill] sm:$0xff] }
 0x4b3   : > { %v10355_v52 = vpop.f32.mrf.mxu1 }
 0x4b4   : > { %20124 = vst [vmem:[#allocation228_spill] sm:$0xff] %v15376_v26  ;;  %v15380_v54 = vpop.f32.mrf.mxu0  ;;  %10842 = vmatmul.mubr.msk.bf16.gmra.mxu0 %vm2056_vm9, %v20126_v43  ;;  %v20132_v52 = vld [vmem:[#allocation22_spill] sm:$0xff] }
 0x4b5   : > { %20125 = vst [vmem:[#allocation316_spill] sm:$0xff] %v15380_v54  ;;  %10845 = vmatprep.mubr.msk.bf16.mxu0 %vm11191_vm0, %v19240_v61  ;;  %v4875_v28 = vpop.f32.mrf.mxu1  ;;  %v5551_v54 = vor.u32 %v5549_v56, %v20130_v35  ;;  %v2954_v26 = vadd.f32 %v14772_v9, %v20132_v52  ;;  %v20136_v9 = vld [vmem:[#allocation291_spill] sm:$0xff]  ;;  %v20138_v35 = vld [vmem:[#allocation321_spill] sm:$0xff] }
 0x4b6   : > { %v10631_v10 = vpop.f32.mrf.mxu0  ;;  %v15390_v14 = vadd.f32 %v4875_v28, %v4136_v36  ;;  %v20135_v36 = vld [vmem:[#allocation186_spill] sm:$0xff] }
 0x4b7   : > { %v10356_v43 = vpop.f32.mrf.mxu1  ;;  %v5553_v58 = vsel %vm5489_vm10, %v5551_v54, %v5552_v49  ;;  %v20137_v28 = vld [vmem:[#allocation346_spill] sm:$0xff]  ;;  %v4138_v54 = vadd.f32 %v20138_v35, %v2954_v26 }
 0x4b8   : > { %v15393_v27 = vpop.f32.mrf.mxu0  ;;  %10570 = vmatmul.mubr.msk.bf16.gmra.mxu1 %vm2056_vm9, %v5553_v58  ;;  %v2959_v42 = vadd.f32 %v20137_v28, %v20136_v9  ;;  %v20143_v9 = vld [vmem:[#allocation323_spill] sm:$0xff] }
 0x4b9   : > { %20131 = vst [vmem:[#allocation293_spill] sm:$0xff] %v15393_v27  ;;  %v4880_v12 = vpop.f32.mrf.mxu1  ;;  %10573 = vmatprep.mubr.msk.bf16.mxu1 %vm11191_vm0, %v19240_v61 }
 0x4ba   : > { %v10632_v7 = vpop.f32.mrf.mxu0  ;;  %v15400_v55 = vadd.f32 %v4880_v12, %v4137_v23  ;;  %v5555_v12 = vrot.slane %v13937_v33, 1  ;;  %v20140_v23 = vld [vmem:[#allocation133_spill] sm:$0xff]  ;;  %v4139_v28 = vadd.f32 %v20143_v9, %v2959_v42 }
 0x4bb   : > { %v10359_v10 = vpop.f32.mrf.mxu1  ;;  %v5554_v58 = vor.u32 %v5552_v49, %v20140_v23  ;;  %v20149_v23 = vld [vmem:[#allocation324_spill] sm:$0xff] }
 0x4bc   : > { %v15404_v56 = vpop.f32.mrf.mxu0  ;;  %10846 = vmatmul.mubr.msk.bf16.gmra.mxu0 %vm2056_vm9, %v20135_v36  ;;  %v20142_v10 = vld [vmem:[#allocation23_spill] sm:$0xff] }
 0x4bd   : > { %20134 = vst [vmem:[#allocation15_spill] sm:$0xff] %v15404_v56  ;;  %10849 = vmatprep.mubr.msk.bf16.mxu0 %vm11191_vm0, %v19240_v61  ;;  %v4883_v52 = vpop.f32.mrf.mxu1  ;;  %v2962_v56 = vadd.f32 %v14790_v21, %v20142_v10  ;;  %v5556_v26 = vsel %vm5489_vm10, %v5554_v58, %v5555_v12  ;;  %v20147_v21 = vld [vmem:[#allocation295_spill] sm:$0xff] }
 0x4be   : > { %v10635_v43 = vpop.f32.mrf.mxu0  ;;  %v15414_v30 = vadd.f32 %v4883_v52, %v4138_v54  ;;  %v20146_v54 = vld [vmem:[#allocation190_spill] sm:$0xff]  ;;  %v20148_v52 = vld [vmem:[#allocation348_spill] sm:$0xff] }
 0x4bf   : > { %v10360_v36 = vpop.f32.mrf.mxu1  ;;  %v2967_v42 = vadd.f32 %v20148_v52, %v20147_v21  ;;  %v4140_v58 = vadd.f32 %v20149_v23, %v2962_v56  ;;  %v20155_v21 = vld [vmem:[#allocation326_spill] sm:$0xff] }
 0x4c0   : > { %20139 = vst [vmem:[#allocation113_spill] sm:$0xff] %v15414_v30  ;;  %v15417_v7 = vpop.f32.mrf.mxu0  ;;  %10574 = vmatmul.mubr.msk.bf16.gmra.mxu1 %vm2056_vm9, %v5556_v26  ;;  %v20150_v36 = vld [vmem:[#allocation126_spill] sm:$0xff]  ;;  %v20151_v26 = vld [vmem:[#allocation129_spill] sm:$0xff] }
 0x4c1   : > { %20141 = vst [vmem:[#allocation235_spill] sm:$0xff] %v15417_v7  ;;  %v4888_v27 = vpop.f32.mrf.mxu1  ;;  %10577 = vmatprep.mubr.msk.bf16.mxu1 %vm11191_vm0, %v19240_v61  ;;  %v20154_v7 = vld [vmem:[#allocation124_spill] sm:$0xff]  ;;  %v4141_v52 = vadd.f32 %v20155_v21, %v2967_v42 }
 0x4c2   : > { %v10636_v35 = vpop.f32.mrf.mxu0  ;;  %v15424_v33 = vadd.f32 %v4888_v27, %v4139_v28  ;;  %v5558_v27 = vrot.slane %v20150_v36, 1 }
 0x4c3   : > { %v10363_v43 = vpop.f32.mrf.mxu1  ;;  %v5557_v35 = vor.u32 %v5555_v12, %v20151_v26  ;;  %v20161_v26 = vld [vmem:[#allocation197_spill] sm:$0xff] }
 0x4c4   : > { %20144 = vst [vmem:[#allocation180_spill] sm:$0xff] %v15424_v33  ;;  %v15428_v49 = vpop.f32.mrf.mxu0  ;;  %10850 = vmatmul.mubr.msk.bf16.gmra.mxu0 %vm2056_vm9, %v20146_v54  ;;  %v20153_v43 = vld [vmem:[#allocation25_spill] sm:$0xff] }
 0x4c5   : > { %20145 = vst [vmem:[#allocation296_spill] sm:$0xff] %v15428_v49  ;;  %10853 = vmatprep.mubr.msk.bf16.mxu0 %vm11191_vm0, %v19240_v61  ;;  %v4891_v9 = vpop.f32.mrf.mxu1  ;;  %v2970_v33 = vadd.f32 %v20154_v7, %v20153_v43  ;;  %v5559_v56 = vsel %vm5489_vm10, %v5557_v35, %v5558_v27  ;;  %v20159_v7 = vld [vmem:[#allocation299_spill] sm:$0xff] }
 0x4c6   : > { %v10639_v10 = vpop.f32.mrf.mxu0  ;;  %v15438_v28 = vadd.f32 %v4891_v9, %v4140_v58  ;;  %v20158_v58 = vld [vmem:[#allocation195_spill] sm:$0xff] }
 0x4c7   : > { %v10364_v54 = vpop.f32.mrf.mxu1  ;;  %v20160_v9 = vld [vmem:[#allocation351_spill] sm:$0xff]  ;;  %v4142_v35 = vadd.f32 %v20161_v26, %v2970_v33 }
 0x4c8   : > { %v15441_v49 = vpop.f32.mrf.mxu0  ;;  %10578 = vmatmul.mubr.msk.bf16.gmra.mxu1 %vm2056_vm9, %v5559_v56  ;;  %v2975_v42 = vadd.f32 %v20160_v9, %v20159_v7  ;;  %v20162_v54 = vld [vmem:[#allocation261_spill] sm:$0xff]  ;;  %v20163_v56 = vld [vmem:[#allocation27_spill] sm:$0xff] }
 0x4c9   : > { %20152 = vst [vmem:[#allocation294_spill] sm:$0xff] %v15441_v49  ;;  %v4896_v30 = vpop.f32.mrf.mxu1  ;;  %10581 = vmatprep.mubr.msk.bf16.mxu1 %vm11191_vm0, %v19240_v61  ;;  %v20166_v7 = vld [vmem:[#allocation327_spill] sm:$0xff] }
 0x4ca   : > { %v10640_v23 = vpop.f32.mrf.mxu0  ;;  %v15448_v36 = vadd.f32 %v4896_v30, %v4141_v52  ;;  %v5561_v30 = vrot.slane %v20162_v54, 1  ;;  %v4143_v9 = vadd.f32 %v20166_v7, %v2975_v42  ;;  %v5564_v42 = vrot.slane %v14005_v25, 1 }
 0x4cb   : > { %v10367_v10 = vpop.f32.mrf.mxu1  ;;  %v5560_v23 = vor.u32 %v5558_v27, %v20163_v56 }
 0x4cc   : > { %20156 = vst [vmem:[#allocation184_spill] sm:$0xff] %v15448_v36  ;;  %v15452_v12 = vpop.f32.mrf.mxu0  ;;  %10854 = vmatmul.mubr.msk.bf16.gmra.mxu0 %vm2056_vm9, %v20158_v58  ;;  %v20165_v10 = vld [vmem:[#allocation32_spill] sm:$0xff] }
 0x4cd   : > { %20157 = vst [vmem:[#allocation319_spill] sm:$0xff] %v15452_v12  ;;  %10857 = vmatprep.mubr.msk.bf16.mxu0 %vm11191_vm0, %v19240_v61  ;;  %v4899_v21 = vpop.f32.mrf.mxu1  ;;  %v2978_v49 = vadd.f32 %v14828_v60, %v20165_v10  ;;  %v5562_v33 = vsel %vm5489_vm10, %v5560_v23, %v5561_v30  ;;  %v20169_v60 = vld [vmem:[#allocation16_spill] sm:$0xff] }
 0x4ce   : > { %v10643_v43 = vpop.f32.mrf.mxu0  ;;  %v15462_v52 = vadd.f32 %v4899_v21, %v4142_v35  ;;  %v20168_v35 = vld [vmem:[#allocation203_spill] sm:$0xff] }
 0x4cf   : > { %v10368_v58 = vpop.f32.mrf.mxu1  ;;  %v4144_v21 = vadd.f32 %v20169_v60, %v2978_v49 }
 0x4d0   : > { %v15465_v12 = vpop.f32.mrf.mxu0  ;;  %10582 = vmatmul.mubr.msk.bf16.gmra.mxu1 %vm2056_vm9, %v5562_v33  ;;  %v20170_v58 = vld [vmem:[#allocation130_spill] sm:$0xff]  ;;  %v20172_v33 = vld [vmem:[#allocation328_spill] sm:$0xff] }
 0x4d1   : > { %20164 = vst [vmem:[#allocation297_spill] sm:$0xff] %v15465_v12  ;;  %v4904_v36 = vpop.f32.mrf.mxu1  ;;  %10585 = vmatprep.mubr.msk.bf16.mxu1 %vm11191_vm0, %v19240_v61  ;;  %v5563_v10 = vor.u32 %v5561_v30, %v20170_v58  ;;  %v20174_v30 = vld [vmem:[#allocation211_spill] sm:$0xff]  ;;  %v20233_v12 = vld [vmem:[#allocation38_spill] sm:$0xff] }
 0x4d2   : > { %v10644_v26 = vpop.f32.mrf.mxu0  ;;  %v15472_v54 = vadd.f32 %v4904_v36, %v4143_v9 }
 0x4d3   : > { %v10371_v43 = vpop.f32.mrf.mxu1  ;;  %v5340_v26 = vadd.f32 %v20172_v33, %v14838_v41 }
 0x4d4   : > { %v15476_v27 = vpop.f32.mrf.mxu0  ;;  %10858 = vmatmul.mubr.msk.bf16.gmra.mxu0 %vm2056_vm9, %v20168_v35  ;;  %v5565_v35 = vsel %vm5489_vm10, %v5563_v10, %v5564_v42 }
 0x4d5   : > { %20167 = vst [vmem:[#allocation187_spill] sm:$0xff] %v15476_v27  ;;  %10861 = vmatprep.mubr.msk.bf16.mxu0 %vm11191_vm0, %v19240_v61  ;;  %v4907_v23 = vpop.f32.mrf.mxu1  ;;  %v20232_v27 = vld [vmem:[#allocation64_spill] sm:$0xff] }
 0x4d6   : > { %v10647_v56 = vpop.f32.mrf.mxu0  ;;  %v15484_v36 = vadd.f32 %v4907_v23, %v4144_v21 }
 0x4d7   : > { %v10372_v9 = vpop.f32.mrf.mxu1  ;;  %v20175_v56 = vld [vmem:[#allocation329_spill] sm:$0xff] }
 0x4d8   : > { %v15487_v7 = vpop.f32.mrf.mxu0  ;;  %10586 = vmatmul.mubr.msk.bf16.gmra.mxu1 %vm2056_vm9, %v5565_v35  ;;  %v5341_v41 = vadd.f32 %v20175_v56, %v14855_v8  ;;  %v20176_v9 = vld [vmem:[#allocation144_spill] sm:$0xff] }
 0x4d9   : > { %20171 = vst [vmem:[#allocation24_spill] sm:$0xff] %v15487_v7  ;;  %v5702_v43 = vpop.f32.mrf.mxu1  ;;  %10589 = vmatprep.mubr.msk.bf16.mxu1 %vm11191_vm0, %v19240_v61  ;;  %v5566_v33 = vor.u32 %v5564_v42, %v20176_v9 }
 0x4da   : > { %v10648_v49 = vpop.f32.mrf.mxu0  ;;  %v15493_v60 = vadd.f32 %v5702_v43, %v5340_v26 }
 0x4db   : > { %v10491_v21 = vpop.f32.mrf.mxu1  ;;  %v20178_v49 = vld [vmem:[#allocation330_spill] sm:$0xff] }
 0x4dc   : > { %v15497_v25 = vpop.f32.mrf.mxu0  ;;  %10862 = vmatmul.mubr.msk.bf16.gmra.mxu0 %vm2056_vm9, %v20174_v30  ;;  %v5342_v43 = vadd.f32 %v20178_v49, %v14866_v47  ;;  %v20179_v30 = vrot.slane %v19925_v34, 1  ;;  %v20183_v47 = vld [vmem:[#allocation332_spill] sm:$0xff] }
 0x4dd   : > { %20173 = vst [vmem:[#allocation17_spill] sm:$0xff] %v15497_v25  ;;  %10865 = vmatprep.mubr.msk.bf16.mxu0 %vm11191_vm0, %v19240_v61  ;;  %v5705_v58 = vpop.f32.mrf.mxu1  ;;  %v5343_v34 = vadd.f32 %v20183_v47, %v14880_v46  ;;  %v20190_v47 = vld [vmem:[#allocation223_spill] sm:$0xff] }
 0x4de   : > { %v10651_v23 = vpop.f32.mrf.mxu0  ;;  %v15505_v10 = vadd.f32 %v5705_v58, %v5341_v41  ;;  %v5568_v21 = vsel %vm5489_vm10, %v5566_v33, %v20179_v30  ;;  %v20182_v41 = vld [vmem:[#allocation214_spill] sm:$0xff] }
 0x4df   : > { %v10492_v35 = vpop.f32.mrf.mxu1  ;;  %v20186_v30 = vld [vmem:[#allocation218_spill] sm:$0xff] }
 0x4e0   : > { %v15508_v26 = vpop.f32.mrf.mxu0  ;;  %10590 = vmatmul.mubr.msk.bf16.gmra.mxu1 %vm2056_vm9, %v5568_v21  ;;  %v5344_v21 = vadd.f32 %v20186_v30, %v14892_v45 }
 0x4e1   : > { %20177 = vst [vmem:[#allocation91_spill] sm:$0xff] %v15508_v26  ;;  %v5710_v56 = vpop.f32.mrf.mxu1  ;;  %10593 = vmatprep.mubr.msk.bf16.mxu1 %vm11191_vm0, %v19240_v61  ;;  %v20229_v26 = vld [vmem:[#allocation31_spill] sm:$0xff] }
 0x4e2   : > { %v10652_v8 = vpop.f32.mrf.mxu0  ;;  %v15516_v23 = vadd.f32 %v5710_v56, %v5342_v43  ;;  %vm1761_vm13 = vcmp.eq.s32.totalorder %v20229_v26, 1 }
 0x4e3   : > { %v10495_v58 = vpop.f32.mrf.mxu1 }
 0x4e4   : > { %20180 = vst [vmem:[#allocation300_spill] sm:$0xff] %v15516_v23  ;;  %v15520_v42 = vpop.f32.mrf.mxu0  ;;  %10866 = vmatmul.mubr.msk.bf16.gmra.mxu0 %vm2056_vm9, %v20182_v41  ;;  %v20187_v41 = vld [vmem:[#allocation271_spill] sm:$0xff] }
 0x4e5   : > { %20181 = vst [vmem:[#allocation298_spill] sm:$0xff] %v15520_v42  ;;  %10869 = vmatprep.mubr.msk.bf16.mxu0 %vm11191_vm0, %v19240_v61  ;;  %v5713_v33 = vpop.f32.mrf.mxu1 }
 0x4e6   : > { %v10655_v9 = vpop.f32.mrf.mxu0  ;;  %v15528_v35 = vadd.f32 %v5713_v33, %v5343_v34 }
 0x4e7   : > { %v10496_v43 = vpop.f32.mrf.mxu1  ;;  %v20191_v9 = vld [vmem:[#allocation335_spill] sm:$0xff] }
 0x4e8   : > { %20184 = vst [vmem:[#allocation199_spill] sm:$0xff] %v15528_v35  ;;  %v15530_v49 = vpop.f32.mrf.mxu0  ;;  %10594 = vmatmul.mubr.msk.bf16.gmra.mxu1 %vm2056_vm9, %v20187_v41  ;;  %v5345_v33 = vadd.f32 %v20191_v9, %v14907_v62  ;;  %v20194_v41 = vld [vmem:[#allocation220_spill] sm:$0xff]  ;;  %v20195_v62 = vld [vmem:[#allocation21_spill] sm:$0xff] }
 0x4e9   : > { %20185 = vst [vmem:[#allocation322_spill] sm:$0xff] %v15530_v49  ;;  %v5718_v56 = vpop.f32.mrf.mxu1  ;;  %10713 = vmatprep.mubr.msk.bf16.mxu1 %vm11191_vm0, %v19240_v61  ;;  %v20254_v35 = vld [vmem:[#allocation40_spill] sm:$0xff] }
 0x4ea   : > { %v10656_v8 = vpop.f32.mrf.mxu0  ;;  %v15536_v58 = vadd.f32 %v5718_v56, %v5344_v21  ;;  %v11114_v21 = vld [vmem:[%s18874_s6] sm:$0xff]  }
 0x4eb   : > { %v10499_v34 = vpop.f32.mrf.mxu1 }
 0x4ec   : > { %20188 = vst [vmem:[#allocation301_spill] sm:$0xff] %v15536_v58  ;;  %v15540_v46 = vpop.f32.mrf.mxu0  ;;  %10870 = vmatmul.mubr.msk.bf16.gmra.mxu0 %vm2056_vm9, %v20190_v47  ;;  %v5346_v47 = vadd.f32 %v20194_v41, %v14920_v19 }
 0x4ed   : > { %20189 = vst [vmem:[#allocation20_spill] sm:$0xff] %v15540_v46  ;;  %10873 = vmatprep.mubr.msk.bf16.mxu0 %vm11191_vm0, %v19240_v61  ;;  %v5721_v43 = vpop.f32.mrf.mxu1 }
 0x4ee   : > { %v10659_v45 = vpop.f32.mrf.mxu0  ;;  %v15548_v30 = vadd.f32 %v5721_v43, %v5345_v33 }
 0x4ef   : > { %v10500_v56 = vpop.f32.mrf.mxu1  ;;  %v20198_v45 = vld [vmem:[#allocation226_spill] sm:$0xff] }
 0x4f0   : > { %20192 = vst [vmem:[#allocation18_spill] sm:$0xff] %v15548_v30  ;;  %v15553_v8 = vpop.f32.mrf.mxu0  ;;  %10714 = vmatmul.mubr.msk.bf16.vlgmr.msra.gmra.mxu1 %vm2056_vm9, %v20195_v62  ;;  %v20199_v56 = vld [vmem:[#allocation337_spill] sm:$0xff]  ;;  %v20202_v62 = vld [vmem:[#allocation222_spill] sm:$0xff] }
 0x4f1   : > { %20193 = vst [vmem:[#allocation204_spill] sm:$0xff] %v15553_v8  ;;  %v5726_v46 = vpop.f32.mrf.mxu1  ;;  %10934 = vmatpush3.bf16.msra.mxu1 %v11114_v21  ;;  %10717 = vmatprep.mubr.msk.bf16.mxu1 %vm11191_vm0, %v19240_v61  ;;  %v5347_v19 = vadd.f32 %v20199_v56, %v14938_v22  ;;  %v20206_v56 = vld [vmem:[#allocation233_spill] sm:$0xff] }
 0x4f2   : > { %v10660_v34 = vpop.f32.mrf.mxu0  ;;  %v15559_v9 = vadd.f32 %v5726_v46, %v5346_v47 }
 0x4f3   : > { %v10503_v43 = vpop.f32.mrf.mxu1 }
 0x4f4   : > { %20196 = vst [vmem:[#allocation106_spill] sm:$0xff] %v15559_v9  ;;  %v15563_v33 = vpop.f32.mrf.mxu0  ;;  %10874 = vmatmul.mubr.msk.bf16.gmra.mxu0 %vm2056_vm9, %v20198_v45  ;;  %v20203_v45 = vld [vmem:[#allocation37_spill] sm:$0xff] }
 0x4f5   : > { %20197 = vst [vmem:[#allocation303_spill] sm:$0xff] %v15563_v33  ;;  %10877 = vmatprep.mubr.msk.bf16.mxu0 %vm11191_vm0, %v19240_v61  ;;  %v5729_v34 = vpop.f32.mrf.mxu1  ;;  %v5348_v33 = vadd.f32 %v20202_v62, %v14949_v5  ;;  %v20210_v62 = vld [vmem:[#allocation224_spill] sm:$0xff]  ;;  %v20242_v9 = vld [vmem:[#allocation345_spill] sm:$0xff] }
 0x4f6   : > { %v10663_v41 = vpop.f32.mrf.mxu0  ;;  %v15571_v46 = vadd.f32 %v5729_v34, %v5347_v19 }
 0x4f7   : > { %v10504_v47 = vpop.f32.mrf.mxu1  ;;  %v20207_v41 = vld [vmem:[#allocation339_spill] sm:$0xff] }
 0x4f8   : > { %20200 = vst [vmem:[#allocation302_spill] sm:$0xff] %v15571_v46  ;;  %v15573_v21 = vpop.f32.mrf.mxu0  ;;  %10718 = vmatmul.mubr.msk.bf16.gmra.mxu1 %vm2056_vm9, %v20203_v45  ;;  %v5349_v34 = vadd.f32 %v20207_v41, %v14963_v48  ;;  %v5350_v45 = vadd.f32 %v20210_v62, %v14973_v20  ;;  %v20216_v20 = vld [vmem:[#allocation341_spill] sm:$0xff]  ;;  %v20218_v62 = vld [vmem:[#allocation34_spill] sm:$0xff] }
 0x4f9   : > { %20201 = vst [vmem:[#allocation216_spill] sm:$0xff] %v15573_v21  ;;  %v5734_v49 = vpop.f32.mrf.mxu1  ;;  %10721 = vmatprep.mubr.msk.bf16.mxu1 %vm11191_vm0, %v19240_v61  ;;  %vm1763_vm4 = vcmp.eq.s32.totalorder %v20218_v62, 1 }
 0x4fa   : > { %v10664_v8 = vpop.f32.mrf.mxu0  ;;  %v15579_v43 = vadd.f32 %v5734_v49, %v5348_v33  ;;  %vm1829_vm7 = vmpackc.low %vm1763_vm4, %vm1763_vm4 }
 0x4fb   : > { %v10507_v19 = vpop.f32.mrf.mxu1  ;;  %vm15670_vm4 = vmpackc.low %vm1761_vm13, %vm1761_vm13 }
 0x4fc   : > { %20204 = vst [vmem:[#allocation325_spill] sm:$0xff] %v15579_v43  ;;  %v15583_v22 = vpop.f32.mrf.mxu0  ;;  %10878 = vmatmul.mubr.msk.bf16.gmra.mxu0 %vm2056_vm9, %v20206_v56  ;;  %v20211_v56 = vld [vmem:[#allocation45_spill] sm:$0xff]  ;;  %v11139_v43 = vld [vmem:[%s11299_s24 + $0x14] sm:$0xf] }
 0x4fd   : > { %20205 = vst [vmem:[#allocation60_spill] sm:$0xff] %v15583_v22  ;;  %10881 = vmatprep.mubr.msk.bf16.mxu0 %vm11191_vm0, %v19240_v61  ;;  %v5737_v8 = vpop.f32.mrf.mxu1  ;;  %v20212_v19 = vld [vmem:[#allocation33_spill] sm:$0xff] }
 0x4fe   : > { %v10667_v5 = vpop.f32.mrf.mxu0  ;;  %v15591_v47 = vadd.f32 %v5737_v8, %v5349_v34  ;;  %vm1762_vm15 = vcmp.eq.s32.totalorder %v20212_v19, 1  ;;  %v20215_v34 = vld [vmem:[#allocation242_spill] sm:$0xff] }
 0x4ff   : > { %v10508_v33 = vpop.f32.mrf.mxu1  ;;  %vm1828_vm3 = vmpackc.low %vm1762_vm15, %vm1762_vm15  ;;  %v11134_v19 = vld [vmem:[%s11299_s24 + $0x4] sm:$0xf] }
 0x500   : > { %20208 = vst [vmem:[#allocation19_spill] sm:$0xff] %v15591_v47  ;;  %v15593_v49 = vpop.f32.mrf.mxu0  ;;  %10722 = vmatmul.mubr.msk.bf16.gmra.mxu1 %vm2056_vm9, %v20211_v56 }
 0x501   : > { %20209 = vst [vmem:[#allocation221_spill] sm:$0xff] %v15593_v49  ;;  %v5742_v21 = vpop.f32.mrf.mxu1  ;;  %10725 = vmatprep.mubr.msk.bf16.mxu1 %vm11191_vm0, %v19240_v61 }
 0x502   : > { %v10668_v22 = vpop.f32.mrf.mxu0  ;;  %v15600_v48 = vadd.f32 %v5742_v21, %v5350_v45 }
 0x503   : > { %v10511_v5 = vpop.f32.mrf.mxu1  ;;  %v5351_v22 = vadd.f32 %v20216_v20, %v14987_v24  ;;  %v20221_v24 = vld [vmem:[#allocation225_spill] sm:$0xff] }
 0x504   : > { %20213 = vst [vmem:[#allocation3_spill] sm:$0xff] %v15600_v48  ;;  %v15604_v41 = vpop.f32.mrf.mxu0  ;;  %10882 = vmatmul.mubr.msk.bf16.gmra.mxu0 %vm2056_vm9, %v20215_v34  ;;  %v20220_v34 = vld [vmem:[#allocation35_spill] sm:$0xff]  ;;  %v5352_v5 = vadd.f32 %v20221_v24, %v14997_v50 }
 0x505   : > { %20214 = vst [vmem:[#allocation305_spill] sm:$0xff] %v15604_v41  ;;  %10885 = vmatprep.mubr.msk.bf16.mxu0 %vm11191_vm0, %v19240_v61  ;;  %v5745_v33 = vpop.f32.mrf.mxu1  ;;  %v15618_v41 = vsel %vm1828_vm3, %v11134_v19, -1.00492276e+30  ;;  %vm1764_vm5 = vcmp.eq.s32.totalorder %v20220_v34, 1  ;;  %v20226_v34 = vld [vmem:[#allocation36_spill] sm:$0xff]  ;;  %v20227_v24 = vld [vmem:[#allocation343_spill] sm:$0xff] }
 0x506   : > { %v10671_v8 = vpop.f32.mrf.mxu0  ;;  %v15612_v21 = vadd.f32 %v5745_v33, %v5351_v22  ;;  %v2988_v33 = vshrl.u32 %v15618_v41, 16  ;;  %vm1830_vm10 = vmpackc.low %vm1764_vm5, %vm1764_vm5  ;;  %v2985_v19 = vshll.u32 %v15618_v41, 16  ;;  %vm1765_vm11 = vcmp.eq.s32.totalorder %v20226_v34, 1 }
 0x507   : > { %v10512_v56 = vpop.f32.mrf.mxu1  ;;  %v20222_v8 = vld [vmem:[#allocation53_spill] sm:$0xff]  ;;  %vm1831_vm15 = vmpackc.low %vm1765_vm11, %vm1765_vm11  ;;  %vm1766_vm3 = vcmp.eq.s32.totalorder %v20233_v12, 1  ;;  %v4203_v26 = vrot.slane %v15618_v41, 5  ;;  %vm1768_vm11 = vcmp.eq.s32.totalorder %v20254_v35, 1 }
 0x508   : > { %20217 = vst [vmem:[#allocation304_spill] sm:$0xff] %v15612_v21  ;;  %v15615_v45 = vpop.f32.mrf.mxu0  ;;  %10726 = vmatmul.mubr.msk.bf16.gmra.mxu1 %vm2056_vm9, %v20222_v8  ;;  %v20225_v56 = vld [vmem:[#allocation247_spill] sm:$0xff]  ;;  %vm1832_vm5 = vmpackc.low %vm1766_vm3, %vm1766_vm3 }
 0x509   : > { %20219 = vst [vmem:[#allocation234_spill] sm:$0xff] %v15615_v45  ;;  %v5750_v49 = vpop.f32.mrf.mxu1  ;;  %10729 = vmatprep.mubr.msk.bf16.mxu1 %vm11191_vm0, %v19240_v61  ;;  %v15693_v46 = vsel %vm1832_vm5, %v11139_v43, -1.00492276e+30  ;;  %vm15762_vm3 = vmpackc.low %vm1768_vm11, %vm1768_vm11 }
 0x50a   : > { %v10672_v20 = vpop.f32.mrf.mxu0  ;;  %v15625_v22 = vadd.f32 %v5750_v49, %v5352_v5  ;;  %v5353_v49 = vadd.f32 %v20227_v24, %v15011_v13  ;;  %v11135_v5 = vld [vmem:[%s11299_s24 + $0x8] sm:$0xf]  ;;  %v2987_v24 = vrot.slane %v2985_v19, 5 }
 0x50b   : > { %v10515_v50 = vpop.f32.mrf.mxu1  ;;  %v15641_v20 = vsel %vm1829_vm7, %v11135_v5, -1.00492276e+30 }
 0x50c   : > { %20223 = vst [vmem:[#allocation193_spill] sm:$0xff] %v15625_v22  ;;  %v15630_v62 = vpop.f32.mrf.mxu0  ;;  %10886 = vmatmul.mubr.msk.bf16.gmra.mxu0 %vm2056_vm9, %v20225_v56  ;;  %v2990_v50 = vrot.slane %v2988_v33, 4  ;;  %v2994_v25 = vshll.u32 %v15641_v20, 16  ;;  %v2998_v5 = vshrl.u32 %v15641_v20, 16 }
 0x50d   : > { %20224 = vst [vmem:[#allocation61_spill] sm:$0xff] %v15630_v62  ;;  %10889 = vmatprep.mubr.msk.bf16.mxu0 %vm11191_vm0, %v19240_v61  ;;  %v5753_v45 = vpop.f32.mrf.mxu1  ;;  %v11136_v62 = vld [vmem:[%s11299_s24 + $0xc] sm:$0xf] }
 0x50e   : > { %v10675_v8 = vpop.f32.mrf.mxu0  ;;  %v15644_v42 = vsel %vm1830_vm10, %v11136_v62, -1.00492276e+30  ;;  %v15646_v56 = vadd.f32 %v5753_v45, %v5353_v49 }
 0x50f   : > { %v10516_v13 = vpop.f32.mrf.mxu1  ;;  %v20231_v8 = vld [vmem:[#allocation88_spill] sm:$0xff]  ;;  %v3004_v62 = vshll.u32 %v15644_v42, 16  ;;  %v3008_v33 = vshrl.u32 %v15644_v42, 16 }
 0x510   : > { %20228 = vst [vmem:[#allocation196_spill] sm:$0xff] %v15646_v56  ;;  %v15649_v34 = vpop.f32.mrf.mxu0  ;;  %v5354_v7 = vadd.f32 %v20231_v8, %v15021_v18  ;;  %10730 = vmatmul.mubr.msk.bf16.gmra.mxu1 %vm2056_vm9, %v20232_v27  ;;  %v11137_v13 = vld [vmem:[%s11299_s24 + $0x10] sm:$0xf]  ;;  %v20238_v8 = vld [vmem:[#allocation253_spill] sm:$0xff] }
 0x511   : > { %20230 = vst [vmem:[#allocation240_spill] sm:$0xff] %v15649_v34  ;;  %v5758_v49 = vpop.f32.mrf.mxu1  ;;  %v15661_v19 = vsel %vm1831_vm15, %v11137_v13, -1.00492276e+30  ;;  %10733 = vmatprep.mubr.msk.bf16.mxu1 %vm11191_vm0, %v19240_v61  ;;  %v20239_v13 = vld [vmem:[#allocation250_spill] sm:$0xff] }
 0x512   : > { %v10676_v45 = vpop.f32.mrf.mxu0  ;;  %v15663_v34 = vadd.f32 %v5758_v49, %v5354_v7  ;;  %v2996_v7 = vrot.slane %v2994_v25, 5  ;;  %v3000_v49 = vrot.slane %v2998_v5, 4  ;;  %v3014_v56 = vshll.u32 %v15661_v19, 16 }
 0x513   : > { %v10519_v12 = vpop.f32.mrf.mxu1  ;;  %v2991_v45 = vor.u32 %v2990_v50, %v2987_v24  ;;  %v3006_v50 = vrot.slane %v3004_v62, 5  ;;  %v3010_v5 = vrot.slane %v3008_v33, 4  ;;  %v20243_v33 = vld [vmem:[#allocation74_spill] sm:$0xff] }
 0x514   : > { %20234 = vst [vmem:[#allocation122_spill] sm:$0xff] %v15663_v34  ;;  %v15674_v27 = vpop.f32.mrf.mxu0  ;;  %10890 = vmatmul.mubr.msk.bf16.gmra.mxu0 %vm2056_vm9, %v20238_v8  ;;  %v5355_v34 = vadd.f32 %v20239_v13, %v15035_v39  ;;  %v11138_v12 = vld [vmem:[%s11299_s24] sm:$0xf]  ;;  %v3001_v47 = vor.u32 %v3000_v49, %v2996_v7  ;;  %v15697_v58 = vrot.slane %v3014_v56, 5  ;;  %v20246_v56 = vld [vmem:[#allocation260_spill] sm:$0xff] }
 0x515   : > { %20237 = vst [vmem:[#allocation306_spill] sm:$0xff] %v15674_v27  ;;  %10893 = vmatprep.mubr.msk.bf16.mxu0 %vm11191_vm0, %v19240_v61  ;;  %v3018_v27 = vshrl.u32 %v15661_v19, 16  ;;  %v5761_v8 = vpop.f32.mrf.mxu1  ;;  %v1889_v25 = vsel %vm15670_vm4, %v11138_v12, -1.00492276e+30  ;;  %v2992_v48 = vrot.slane %v2991_v45, 4 }
 0x516   : > { %v10679_v22 = vpop.f32.mrf.mxu0  ;;  %v15688_v39 = vadd.f32 %v5761_v8, %v5355_v34  ;;  %v3578_v30 = vmax.bf16 %v2987_v24, %v1889_v25  ;;  %v4204_v34 = vrot.slane %v4203_v26, 4  ;;  %v3011_v8 = vor.u32 %v3010_v5, %v3006_v50  ;;  %v20248_v5 = vld [vmem:[#allocation258_spill] sm:$0xff] }
 0x517   : > { %v10520_v21 = vpop.f32.mrf.mxu1  ;;  %v5356_v22 = vadd.f32 %v20242_v9, %v15045_v17  ;;  %v3020_v18 = vrot.slane %v3018_v27, 4  ;;  %v3024_v17 = vshll.u32 %v15693_v46, 16  ;;  %v3028_v9 = vshrl.u32 %v15693_v46, 16 }
 0x518   : > { %20240 = vst [vmem:[#allocation248_spill] sm:$0xff] %v15688_v39  ;;  %v15690_v13 = vpop.f32.mrf.mxu0  ;;  %10734 = vmatmul.mubr.msk.bf16.gmra.mxu1 %vm2056_vm9, %v20243_v33  ;;  %v4205_v21 = vrot.slane %v15641_v20, 5  ;;  %v2997_v49 = vsel %vm12552_vm6, %v2992_v48, %v2996_v7  ;;  %v3002_v25 = vrot.slane %v3001_v47, 4 }
 0x519   : > { %20241 = vst [vmem:[#allocation194_spill] sm:$0xff] %v15690_v13  ;;  %v5766_v62 = vpop.f32.mrf.mxu1  ;;  %10737 = vmatprep.mubr.msk.bf16.mxu1 %vm11191_vm0, %v19240_v61  ;;  %v3021_v33 = vor.u32 %v3020_v18, %v15697_v58  ;;  %v3030_v39 = vrot.slane %v3028_v9, 4 }
 0x51a   : > { %v10680_v12 = vpop.f32.mrf.mxu0  ;;  %v15702_v45 = vadd.f32 %v5766_v62, %v5356_v22  ;;  %v5357_v22 = vadd.f32 %v20248_v5, %v15059_v0  ;;  %v4208_v62 = vrot.slane %v15644_v42, 5  ;;  %v4206_v48 = vsel %vm12583_vm12, %v4204_v34, %v4205_v21 }
 0x51b   : > { %v10523_v24 = vpop.f32.mrf.mxu1  ;;  %v4421_v12 = vmax.bf16 %v4203_v26, %v3578_v30  ;;  %v4207_v47 = vrot.slane %v4205_v21, 4  ;;  %v3579_v0 = vmax.bf16 %v2997_v49, %v15618_v41  ;;  %v3026_v5 = vrot.slane %v3024_v17, 5  ;;  %v20252_v30 = vld [vmem:[#allocation41_spill] sm:$0xff]  ;;  %v20257_v41 = vld [vmem:[#allocation347_spill] sm:$0xff] }
 0x51c   : > { %20244 = vst [vmem:[#allocation71_spill] sm:$0xff] %v15702_v45  ;;  %v15708_v43 = vpop.f32.mrf.mxu0  ;;  %10894 = vmatmul.mubr.msk.bf16.gmra.mxu0 %vm2056_vm9, %v20246_v56  ;;  %v3012_v24 = vrot.slane %v3011_v8, 4  ;;  %vm1769_vm10 = vcmp.eq.s32.totalorder %v20252_v30, 1  ;;  %v4214_v8 = vrot.slane %v15693_v46, 5  ;;  %v5358_v21 = vadd.f32 %v20257_v41, %v15069_v63 }
 0x51d   : > { %20245 = vst [vmem:[#allocation254_spill] sm:$0xff] %v15708_v43  ;;  %10897 = vmatprep.mubr.msk.bf16.mxu0 %vm11191_vm0, %v19240_v61  ;;  %v20249_v43 = vld [vmem:[#allocation39_spill] sm:$0xff]  ;;  %v5769_v56 = vpop.f32.mrf.mxu1  ;;  %v15742_v17 = vrot.slane %v4208_v62, 4  ;;  %v3022_v9 = vrot.slane %v3021_v33, 4  ;;  %vm15750_vm15 = vmpackc.low %vm1769_vm10, %vm1769_vm10  ;;  %v3031_v33 = vor.u32 %v3030_v39, %v3026_v5  ;;  %v4209_v35 = vsel %vm12583_vm12, %v4207_v47, %v4208_v62 }
 0x51e   : > { %vm1767_vm7 = vcmp.eq.s32.totalorder %v20249_v43, 1  ;;  %v10683_v13 = vpop.f32.mrf.mxu0  ;;  %v15723_v7 = vadd.f32 %v5769_v56, %v5357_v22  ;;  %v20258_v22 = vld [vmem:[#allocation85_spill] sm:$0xff]  ;;  %v4965_v43 = vmax.bf16 %v4421_v12, %v15644_v42  ;;  %v15777_v39 = vrot.slane %v4214_v8, 4 }
 0x51f   : > { %v10524_v18 = vpop.f32.mrf.mxu1  ;;  %v3007_v13 = vsel %vm12552_vm6, %v3002_v25, %v3006_v50  ;;  %vm15736_vm13 = vmpackc.low %vm1767_vm7, %vm1767_vm7  ;;  %v15745_v50 = vrot.slane %v15661_v19, 5  ;;  %v11140_v12 = vld [vmem:[%s11299_s24 + $0x18] sm:$0xf]  ;;  %v3027_v34 = vsel %vm12552_vm6, %v3022_v9, %v3026_v5 }
 0x520   : > { %20251 = vst [vmem:[#allocation188_spill] sm:$0xff] %v15723_v7  ;;  %v15727_v26 = vpop.f32.mrf.mxu0  ;;  %10738 = vmatmul.mubr.msk.bf16.gmra.mxu1 %vm2056_vm9, %v20258_v22  ;;  %v3580_v63 = vmax.bf16 %v3007_v13, %v15641_v20  ;;  %v4422_v18 = vmax.bf16 %v4206_v48, %v3579_v0  ;;  %v3017_v48 = vsel %vm12552_vm6, %v3012_v24, %v15697_v58  ;;  %v20266_v0 = vld [vmem:[#allocation104_spill] sm:$0xff]  ;;  %v11141_v22 = vld [vmem:[%s11299_s24 + $0x20] sm:$0xf]  ;;  %v20270_v7 = vld [vmem:[#allocation349_spill] sm:$0xff] }
 0x521   : > { %20253 = vst [vmem:[#allocation128_spill] sm:$0xff] %v15727_v26  ;;  %v5774_v25 = vpop.f32.mrf.mxu1  ;;  %10741 = vmatprep.mubr.msk.bf16.mxu1 %vm11191_vm0, %v19240_v61  ;;  %v5359_v13 = vadd.f32 %v20266_v0, %v15083_v31  ;;  %v4212_v62 = vsel %vm12583_vm12, %v15742_v17, %v15745_v50  ;;  %v4213_v47 = vrot.slane %v15745_v50, 4  ;;  %v15796_v24 = vsel %vm15750_vm15, %v11141_v22, -1.00492276e+30 }
 0x522   : > { %v10684_v49 = vpop.f32.mrf.mxu0  ;;  %v15754_v30 = vadd.f32 %v5774_v25, %v5358_v21  ;;  %v15769_v21 = vsel %vm15736_vm13, %v11140_v12, -1.00492276e+30  ;;  %v20265_v25 = vld [vmem:[#allocation137_spill] sm:$0xff]  ;;  %v4423_v17 = vmax.bf16 %v4209_v35, %v3580_v63  ;;  %v4966_v26 = vmax.bf16 %v4422_v18, %v15661_v19  ;;  %v20271_v35 = vld [vmem:[#allocation92_spill] sm:$0xff] }
 0x523   : > { %v10527_v20 = vpop.f32.mrf.mxu1  ;;  %v3034_v5 = vshll.u32 %v15769_v21, 16  ;;  %v3038_v9 = vshrl.u32 %v15769_v21, 16  ;;  %v5429_v56 = vmax.bf16 %v4965_v43, %v15697_v58  ;;  %v3054_v41 = vshll.u32 %v15796_v24, 16 }
 0x524   : > { %20261 = vst [vmem:[#allocation227_spill] sm:$0xff] %v15754_v30  ;;  %v15771_v49 = vpop.f32.mrf.mxu0  ;;  %10898 = vmatmul.mubr.msk.bf16.gmra.mxu0 %vm2056_vm9, %v20265_v25  ;;  %v11142_v25 = vld [vmem:[%s11299_s24 + $0x1c] sm:$0xf]  ;;  %v20269_v30 = vld [vmem:[#allocation42_spill] sm:$0xff]  ;;  %v5360_v23 = vadd.f32 %v20270_v7, %v15093_v1  ;;  %v3582_v63 = vmax.bf16 %v3027_v34, %v15661_v19  ;;  %v15829_v1 = vmax.bf16 %v4423_v17, %v15693_v46 }
 0x525   : > { %20264 = vst [vmem:[#allocation262_spill] sm:$0xff] %v15771_v49  ;;  %10901 = vmatprep.mubr.msk.bf16.mxu0 %vm11191_vm0, %v19240_v61  ;;  %v5777_v31 = vpop.f32.mrf.mxu1  ;;  %v15801_v20 = vsel %vm15762_vm3, %v11142_v25, -1.00492276e+30  ;;  %v3032_v49 = vrot.slane %v3031_v33, 4  ;;  %vm1770_vm4 = vcmp.eq.s32.totalorder %v20269_v30, 1  ;;  %v3058_v25 = vshrl.u32 %v15796_v24, 16 }
 0x526   : > { %v10687_v12 = vpop.f32.mrf.mxu0  ;;  %v15805_v0 = vadd.f32 %v5777_v31, %v5359_v13  ;;  %v3581_v13 = vmax.bf16 %v3017_v48, %v15644_v42  ;;  %v3044_v33 = vshll.u32 %v15801_v20, 16  ;;  %v3048_v58 = vshrl.u32 %v15801_v20, 16  ;;  %vm15838_vm5 = vmpackc.low %vm1770_vm4, %vm1770_vm4  ;;  %v20276_v48 = vld [vmem:[#allocation135_spill] sm:$0xff]  ;;  %v20277_v30 = vld [vmem:[#allocation350_spill] sm:$0xff] }
 0x527   : > { %v10528_v12 = vpop.f32.mrf.mxu1  ;;  %v4215_v31 = vsel %vm12583_vm12, %v4213_v47, %v4214_v8  ;;  %v5430_v42 = vmax.bf16 %v4966_v26, %v3027_v34  ;;  %v5987_v19 = vmax.bf16 %v5429_v56, %v15745_v50  ;;  %v15833_v7 = vrot.slane %v15801_v20, 5 }
 0x528   : > { %20267 = vst [vmem:[#allocation268_spill] sm:$0xff] %v15805_v0  ;;  %v15809_v22 = vpop.f32.mrf.mxu0  ;;  %10742 = vmatmul.mubr.msk.bf16.gmra.mxu1 %vm2056_vm9, %v20271_v35  ;;  %v3036_v12 = vrot.slane %v3034_v5, 5  ;;  %v15850_v50 = vrot.slane %v3054_v41, 5  ;;  %v3060_v34 = vrot.slane %v3058_v25, 4  ;;  %v5361_v5 = vadd.f32 %v20277_v30, %v15107_v29 }
 0x529   : > { %20268 = vst [vmem:[#allocation121_spill] sm:$0xff] %v15809_v22  ;;  %v5782_v18 = vpop.f32.mrf.mxu1  ;;  %v3040_v22 = vrot.slane %v3038_v9, 4  ;;  %10745 = vmatprep.mubr.msk.bf16.mxu1 %vm11191_vm0, %v19240_v61  ;;  %v15856_v9 = vmax.bf16 %v4215_v31, %v3582_v63  ;;  %v15858_v17 = vrot.slane %v3044_v33, 5  ;;  %v3050_v56 = vrot.slane %v3048_v58, 4  ;;  %v20286_v63 = vld [vmem:[#allocation44_spill] sm:$0xff] }
 0x52a   : > { %v10688_v43 = vpop.f32.mrf.mxu0  ;;  %v15824_v0 = vadd.f32 %v5782_v18, %v5360_v23  ;;  %v15848_v26 = vsel %vm12552_vm6, %v3032_v49, %v3036_v12  ;;  %v4217_v41 = vrot.slane %v15769_v21, 5  ;;  %v4424_v33 = vmax.bf16 %v4212_v62, %v3581_v13 }
 0x52b   : > { %v10531_v47 = vpop.f32.mrf.mxu1  ;;  %v20278_v43 = vld [vmem:[#allocation43_spill] sm:$0xff]  ;;  %v3041_v49 = vor.u32 %v3040_v22, %v3036_v12  ;;  %v3583_v58 = vmax.bf16 %v15848_v26, %v15693_v46  ;;  %v6390_v12 = vmax.bf16 %v5987_v19, %v15769_v21  ;;  %v20283_v46 = vld [vmem:[#allocation352_spill] sm:$0xff]  ;;  %v3051_v13 = vor.u32 %v3050_v56, %v15858_v17 }
 0x52c   : > { %20272 = vst [vmem:[#allocation217_spill] sm:$0xff] %v15824_v0  ;;  %v15842_v23 = vpop.f32.mrf.mxu0  ;;  %10902 = vmatmul.mubr.msk.bf16.gmra.mxu0 %vm2056_vm9, %v20276_v48  ;;  %vm1771_vm7 = vcmp.eq.s32.totalorder %v20278_v43, 1  ;;  %v11143_v48 = vld [vmem:[%s11299_s24 + $0x24] sm:$0xf]  ;;  %v15869_v47 = vmax.bf16 %v5430_v42, %v4215_v31  ;;  %v4218_v8 = vsel %vm12583_vm12, %v15777_v39, %v4217_v41  ;;  %v5362_v62 = vadd.f32 %v20283_v46, %v15117_v16  ;;  %v20284_v43 = vld [vmem:[#allocation65_spill] sm:$0xff] }
 0x52d   : > { %20275 = vst [vmem:[#allocation100_spill] sm:$0xff] %v15842_v23  ;;  %10905 = vmatprep.mubr.msk.bf16.mxu0 %vm11191_vm0, %v19240_v61  ;;  %v5785_v35 = vpop.f32.mrf.mxu1  ;;  %v15865_v25 = vsel %vm15838_vm5, %v11143_v48, -1.00492276e+30  ;;  %vm15884_vm10 = vmpackc.low %vm1771_vm7, %vm1771_vm7  ;;  %v4219_v48 = vrot.slane %v4217_v41, 4  ;;  %v4426_v56 = vmax.bf16 %v4218_v8, %v3583_v58  ;;  %v5431_v46 = vmax.bf16 %v15829_v1, %v15848_v26  ;;  %v20288_v41 = vld [vmem:[#allocation127_spill] sm:$0xff]  ;;  %v20289_v1 = vld [vmem:[#allocation140_spill] sm:$0xff] }
 0x52e   : > { %v10691_v18 = vpop.f32.mrf.mxu0  ;;  %v15867_v29 = vadd.f32 %v5785_v35, %v5361_v5  ;;  %v3064_v19 = vshll.u32 %v15865_v25, 16  ;;  %v3068_v39 = vshrl.u32 %v15865_v25, 16  ;;  %v3042_v35 = vrot.slane %v3041_v49, 4 }
 0x52f   : > { %v10532_v22 = vpop.f32.mrf.mxu1  ;;  %v3061_v18 = vor.u32 %v3060_v34, %v15850_v50  ;;  %vm1772_vm11 = vcmp.eq.s32.totalorder %v20286_v63, 1  ;;  %v6818_v58 = vmax.bf16 %v6390_v12, %v15858_v17  ;;  %v5363_v26 = vadd.f32 %v20289_v1, %v15131_v3 }
 0x530   : > { %20279 = vst [vmem:[#allocation119_spill] sm:$0xff] %v15867_v29  ;;  %v15874_v30 = vpop.f32.mrf.mxu0  ;;  %10746 = vmatmul.mubr.msk.bf16.gmra.mxu1 %vm2056_vm9, %v20284_v43  ;;  %v3052_v31 = vrot.slane %v3051_v13, 4  ;;  %v3066_v22 = vrot.slane %v3064_v19, 5  ;;  %vm15928_vm13 = vmpackc.low %vm1772_vm11, %vm1772_vm11  ;;  %v4970_v63 = vmax.bf16 %v4426_v56, %v15796_v24  ;;  %v5989_v19 = vmax.bf16 %v5431_v46, %v4218_v8  ;;  %v11145_v56 = vld [vmem:[%s11299_s24 + $0x2c] sm:$0xf] }
 0x531   : > { %20280 = vst [vmem:[#allocation331_spill] sm:$0xff] %v15874_v30  ;;  %v5790_v5 = vpop.f32.mrf.mxu1  ;;  %10749 = vmatprep.mubr.msk.bf16.mxu1 %vm11191_vm0, %v19240_v61  ;;  %v3062_v43 = vrot.slane %v3061_v18, 4  ;;  %v15945_v1 = vmax.bf16 %v6818_v58, %v15833_v7  ;;  %v15956_v8 = vsel %vm15928_vm13, %v11145_v56, -1.00492276e+30  ;;  %v20301_v56 = vmax.bf16 %v15856_v9, %v15801_v20 }
 0x532   : > { %v10692_v34 = vpop.f32.mrf.mxu0  ;;  %v15898_v16 = vadd.f32 %v5790_v5, %v5362_v62  ;;  %v4226_v5 = vrot.slane %v15865_v25, 5  ;;  %v20304_v9 = vrot.slane %v15833_v7, 4 }
 0x533   : > { %v11144_v34 = vld [vmem:[%s11299_s24 + $0x28] sm:$0xf]  ;;  %v10535_v62 = vpop.f32.mrf.mxu1 }
 0x534   : > { %20285 = vst [vmem:[#allocation141_spill] sm:$0xff] %v15898_v16  ;;  %v15908_v42 = vsel %vm15884_vm10, %v11144_v34, -1.00492276e+30  ;;  %v15910_v49 = vpop.f32.mrf.mxu0  ;;  %10906 = vmatmul.mubr.msk.bf16.gmra.mxu0 %vm2056_vm9, %v20288_v41  ;;  %v4968_v34 = vmax.bf16 %v4424_v33, %v15769_v21  ;;  %v3047_v62 = vsel %vm12552_vm6, %v3042_v35, %v15858_v17  ;;  %v20293_v17 = vrot.slane %v15796_v24, 5 }
 0x535   : > { %20287 = vst [vmem:[#allocation229_spill] sm:$0xff] %v15910_v49  ;;  %10909 = vmatprep.mubr.msk.bf16.mxu0 %vm11191_vm0, %v19240_v61  ;;  %v3070_v49 = vrot.slane %v3068_v39, 4  ;;  %v5793_v41 = vpop.f32.mrf.mxu1  ;;  %v3074_v3 = vshll.u32 %v15908_v42, 16  ;;  %v3078_v33 = vshrl.u32 %v15908_v42, 16  ;;  %v3584_v23 = vmax.bf16 %v3047_v62, %v15769_v21 }
 0x536   : > { %v10695_v30 = vpop.f32.mrf.mxu0  ;;  %v15934_v18 = vadd.f32 %v5793_v41, %v5363_v26  ;;  %v4225_v13 = vrot.slane %v20293_v17, 4  ;;  %v3067_v26 = vsel %vm12552_vm6, %v3062_v43, %v3066_v22  ;;  %v20295_v41 = vld [vmem:[#allocation134_spill] sm:$0xff]  ;;  %v5432_v17 = vmax.bf16 %v4968_v34, %v3047_v62 }
 0x537   : > { %v4221_v30 = vsel %vm12583_vm12, %v4219_v48, %v15833_v7  ;;  %v10536_v35 = vpop.f32.mrf.mxu1  ;;  %v5364_v48 = vadd.f32 %v20295_v41, %v15141_v2  ;;  %v3057_v43 = vsel %vm12552_vm6, %v3052_v31, %v15850_v50  ;;  %v3080_v2 = vrot.slane %v3078_v33, 4  ;;  %v20299_v50 = vld [vmem:[#allocation263_spill] sm:$0xff]  ;;  %v20300_v41 = vld [vmem:[#allocation46_spill] sm:$0xff] }
 0x538   : > { %20292 = vst [vmem:[#allocation267_spill] sm:$0xff] %v15934_v18  ;;  %v15942_v39 = vpop.f32.mrf.mxu0  ;;  %v3071_v18 = vor.u32 %v3070_v49, %v3066_v22  ;;  %v20296_v35 = vld [vmem:[#allocation75_spill] sm:$0xff]  ;;  %v3586_v22 = vmax.bf16 %v3067_v26, %v15796_v24  ;;  %v15972_v49 = vsel %vm12583_vm12, %v4225_v13, %v4226_v5  ;;  %v5434_v34 = vmax.bf16 %v4970_v63, %v3067_v26 }
 0x539   : > { %20294 = vst [vmem:[#allocation264_spill] sm:$0xff] %v15942_v39  ;;  %v5798_v58 = vpop.f32.mrf.mxu1  ;;  %10750 = vmatmul.mubr.msk.bf16.gmra.mxu1 %vm2056_vm9, %v20296_v35  ;;  %v15963_v39 = vrot.slane %v3074_v3, 5  ;;  %v6392_v62 = vmax.bf16 %v5989_v19, %v15796_v24  ;;  %v3084_v3 = vshll.u32 %v15956_v8, 16  ;;  %v3088_v33 = vshrl.u32 %v15956_v8, 16 }
 0x53a   : > { %v10696_v46 = vpop.f32.mrf.mxu0  ;;  %v15965_v21 = vadd.f32 %v5798_v58, %v5364_v48  ;;  %10753 = vmatprep.mubr.msk.bf16.mxu1 %vm11191_vm0, %v19240_v61  ;;  %vm1773_vm15 = vcmp.eq.s32.totalorder %v20300_v41, 1  ;;  %v5365_v48 = vadd.f32 %v14857_v32, %v15155_v44  ;;  %v15986_v13 = vrot.slane %v4226_v5, 4 }
 0x53b   : > { %v10539_v31 = vpop.f32.mrf.mxu1  ;;  %v15988_v63 = vmax.bf16 %v4221_v30, %v3584_v23  ;;  %v5990_v19 = vmax.bf16 %v5432_v17, %v4221_v30  ;;  %v5433_v46 = vmax.bf16 %v20301_v56, %v3057_v43  ;;  %v15997_v44 = vmax.bf16 %v6392_v62, %v3067_v26  ;;  %vm16014_vm3 = vmpackc.low %vm1773_vm15, %vm1773_vm15 }
 0x53c   : > { %20297 = vst [vmem:[#allocation265_spill] sm:$0xff] %v15965_v21  ;;  %v15975_v12 = vpop.f32.mrf.mxu0  ;;  %10910 = vmatmul.mubr.msk.bf16.gmra.mxu0 %vm2056_vm9, %v20299_v50  ;;  %v3072_v50 = vrot.slane %v3071_v18, 4  ;;  %v3081_v31 = vor.u32 %v3080_v2, %v15963_v39  ;;  %v19217_v5 = vrot.slane %v15956_v8, 5  ;;  %v16001_v23 = vmax.bf16 %v15972_v49, %v3586_v22 }
 0x53d   : > { %20298 = vst [vmem:[#allocation333_spill] sm:$0xff] %v15975_v12  ;;  %10913 = vmatprep.mubr.msk.bf16.mxu0 %vm11191_vm0, %v19240_v61  ;;  %v5801_v35 = vpop.f32.mrf.mxu1  ;;  %v3585_v12 = vmax.bf16 %v3057_v43, %v15801_v20  ;;  %v20303_v30 = vrot.slane %v15796_v24, 5  ;;  %v16020_v22 = vrot.slane %v3084_v3, 5  ;;  %v16022_v24 = vrot.slane %v3088_v33, 4 }
 0x53e   : > { %v10699_v58 = vpop.f32.mrf.mxu0  ;;  %v15995_v32 = vadd.f32 %v5801_v35, %v5365_v48  ;;  %v5992_v7 = vmax.bf16 %v5434_v34, %v15972_v49  ;;  %v5366_v62 = vadd.f32 %v14870_v53, %v15165_v51  ;;  %v16030_v48 = vmax.bf16 %v5990_v19, %v15865_v25 }
 0x53f   : > { %v16009_v18 = vsel %vm12583_vm12, %v20304_v9, %v20303_v30  ;;  %v10540_v2 = vpop.f32.mrf.mxu1  ;;  %v20308_v58 = vld [vmem:[#allocation47_spill] sm:$0xff]  ;;  %v20309_v30 = vld [vmem:[#allocation86_spill] sm:$0xff]  ;;  %v3082_v33 = vrot.slane %v3081_v31, 4  ;;  %v4229_v34 = vrot.slane %v15908_v42, 5  ;;  %v11146_v9 = vld [vmem:[%s11299_s24 + $0x30] sm:$0xf]  ;;  %v20311_v19 = vmax.bf16 %v15869_v47, %v15801_v20 }
 0x540   : > { %20302 = vst [vmem:[#allocation82_spill] sm:$0xff] %v15995_v32  ;;  %v16018_v26 = vpop.f32.mrf.mxu0  ;;  %v5991_v56 = vmax.bf16 %v5433_v46, %v16009_v18  ;;  %vm1774_vm4 = vcmp.eq.s32.totalorder %v20308_v58, 1  ;;  %v16040_v53 = vsel %vm16014_vm3, %v11146_v9, -1.00492276e+30  ;;  %v16053_v31 = vrot.slane %v19217_v5, 4 }
 0x541   : > { %20307 = vst [vmem:[#allocation172_spill] sm:$0xff] %v16018_v26  ;;  %v5806_v3 = vpop.f32.mrf.mxu1  ;;  %10754 = vmatmul.mubr.msk.bf16.gmra.mxu1 %vm2056_vm9, %v20309_v30  ;;  %v6819_v46 = vmax.bf16 %v20311_v19, %v3057_v43  ;;  %v4428_v17 = vmax.bf16 %v16009_v18, %v3585_v12  ;;  %v3091_v30 = vor.u32 %v16022_v24, %v16020_v22  ;;  %vm16070_vm5 = vmpackc.low %vm1774_vm4, %vm1774_vm4  ;;  %v3094_v58 = vshll.u32 %v16040_v53, 16  ;;  %v20337_v26 = vld [vmem:[#allocation112_spill] sm:$0xff] }
 0x542   : > { %v10700_v35 = vpop.f32.mrf.mxu0  ;;  %v16042_v51 = vadd.f32 %v5806_v3, %v5366_v62  ;;  %10757 = vmatprep.mubr.msk.bf16.mxu1 %vm11191_vm0, %v19240_v61  ;;  %v20313_v62 = vld [vmem:[#allocation205_spill] sm:$0xff]  ;;  %v16065_v47 = vmax.bf16 %v5992_v7, %v15956_v8  ;;  %v5367_v12 = vadd.f32 %v14882_v11, %v15178_v59  ;;  %v3077_v24 = vsel %vm12552_vm6, %v3072_v50, %v15963_v39  ;;  %v20316_v59 = vld [vmem:[#allocation48_spill] sm:$0xff] }
 0x543   : > { %v10543_v3 = vpop.f32.mrf.mxu1  ;;  %v6394_v7 = vmax.bf16 %v5991_v56, %v15908_v42  ;;  %v3098_v9 = vshrl.u32 %v16040_v53, 16  ;;  %v4231_v11 = vrot.slane %v4229_v34, 4  ;;  %vm1775_vm7 = vcmp.eq.s32.totalorder %v20316_v59, 1  ;;  %v11147_v56 = vld [vmem:[%s11299_s24 + $0x34] sm:$0xf] }
 0x544   : > { %20310 = vst [vmem:[#allocation334_spill] sm:$0xff] %v16042_v51  ;;  %v16056_v35 = vpop.f32.mrf.mxu0  ;;  %10914 = vmatmul.mubr.msk.bf16.gmra.mxu0 %vm2056_vm9, %v20313_v62  ;;  %v3087_v3 = vsel %vm12552_vm6, %v3082_v33, %v16020_v22  ;;  %v4972_v20 = vmax.bf16 %v4428_v17, %v15908_v42  ;;  %v6821_v39 = vmax.bf16 %v16030_v48, %v3077_v24  ;;  %v20319_v17 = vld [vmem:[#allocation49_spill] sm:$0xff]  ;;  %v3096_v43 = vrot.slane %v3094_v58, 5  ;;  %vm16113_vm11 = vmpackc.low %vm1775_vm7, %vm1775_vm7 }
 0x545   : > { %20312 = vst [vmem:[#allocation148_spill] sm:$0xff] %v16056_v35  ;;  %10917 = vmatprep.mubr.msk.bf16.mxu0 %vm11191_vm0, %v19240_v61  ;;  %v5809_v62 = vpop.f32.mrf.mxu1  ;;  %v7231_v50 = vmax.bf16 %v6819_v46, %v16009_v18  ;;  %v3587_v22 = vmax.bf16 %v3077_v24, %v15865_v25  ;;  %v16104_v33 = vsel %vm12583_vm12, %v15986_v13, %v4229_v34  ;;  %vm1776_vm10 = vcmp.eq.s32.totalorder %v20319_v17, 1  ;;  %v20322_v34 = vld [vmem:[#allocation94_spill] sm:$0xff]  ;;  %v11149_v59 = vld [vmem:[%s11299_s24 + $0x3c] sm:$0xf] }
 0x546   : > { %v10703_v19 = vpop.f32.mrf.mxu0  ;;  %v16088_v2 = vadd.f32 %v5809_v62, %v5367_v12  ;;  %v5368_v18 = vadd.f32 %v14897_v6, %v15190_v57  ;;  %v3588_v48 = vmax.bf16 %v3087_v3, %v15908_v42  ;;  %v6822_v46 = vmax.bf16 %v6394_v7, %v3087_v3  ;;  %vm16141_vm13 = vmpackc.low %vm1776_vm10, %vm1776_vm10  ;;  %v20331_v17 = vld [vmem:[#allocation138_spill] sm:$0xff] }
 0x547   : > { %v16096_v19 = vsel %vm16070_vm5, %v11147_v56, -1.00492276e+30  ;;  %v10544_v5 = vpop.f32.mrf.mxu1  ;;  %v3100_v12 = vrot.slane %v3098_v9, 4  ;;  %v20323_v56 = vrot.slane %v15956_v8, 5  ;;  %v3092_v58 = vrot.slane %v3091_v30, 4 }
 0x548   : > { %20317 = vst [vmem:[#allocation231_spill] sm:$0xff] %v16088_v2  ;;  %v16098_v41 = vpop.f32.mrf.mxu0  ;;  %v3104_v57 = vshll.u32 %v16096_v19, 16  ;;  %v3108_v42 = vshrl.u32 %v16096_v19, 16  ;;  %v16132_v9 = vcombine.low %v15945_v1, %v7231_v50  ;;  %v16149_v30 = vmax.bf16 %v4972_v20, %v3087_v3  ;;  %v20344_v2 = vld [vmem:[#allocation51_spill] sm:$0xff] }
 0x549   : > { %20318 = vst [vmem:[#allocation279_spill] sm:$0xff] %v16098_v41  ;;  %v5814_v13 = vpop.f32.mrf.mxu1  ;;  %10758 = vmatmul.mubr.msk.bf16.gmra.mxu1 %vm2056_vm9, %v20322_v34  ;;  %v16123_v6 = vsel %vm12583_vm12, %v4231_v11, %v20323_v56  ;;  %v16152_v50 = vmax.bf16 %v16104_v33, %v3587_v22  ;;  %v3101_v3 = vor.u32 %v3100_v12, %v3096_v43  ;;  %v4235_v34 = vrot.slane %v16040_v53, 5 }
 0x54a   : > { %v10704_v62 = vpop.f32.mrf.mxu0  ;;  %v16127_v7 = vadd.f32 %v5814_v13, %v5368_v18  ;;  %10761 = vmatprep.mubr.msk.bf16.mxu1 %vm11191_vm0, %v19240_v61  ;;  %v20329_v13 = vld [vmem:[#allocation206_spill] sm:$0xff]  ;;  %v16167_v20 = vmax.bf16 %v16123_v6, %v3588_v48  ;;  %v7233_v22 = vmax.bf16 %v6821_v39, %v16104_v33  ;;  %v3106_v5 = vrot.slane %v3104_v57, 5 }
 0x54b   : > { %v20325_v62 = vmax.bf16 %v15988_v63, %v15865_v25  ;;  %v10547_v1 = vpop.f32.mrf.mxu1  ;;  %v11148_v25 = vld [vmem:[%s11299_s24 + $0x38] sm:$0xf]  ;;  %v16183_v48 = vsel %vm12552_vm6, %v3092_v58, %v3096_v43  ;;  %v3102_v58 = vrot.slane %v3101_v3, 4 }
 0x54c   : > { %20324 = vst [vmem:[#allocation336_spill] sm:$0xff] %v16127_v7  ;;  %v16145_v18 = vpop.f32.mrf.mxu0  ;;  %10918 = vmatmul.mubr.msk.bf16.gmra.mxu0 %vm2056_vm9, %v20329_v13  ;;  %v16157_v63 = vsel %vm16113_vm11, %v11148_v25, -1.00492276e+30  ;;  %v3110_v25 = vrot.slane %v3108_v42, 4 }
 0x54d   : > { %v5435_v11 = vmax.bf16 %v20325_v62, %v3077_v24  ;;  %20328 = vst [vmem:[#allocation89_spill] sm:$0xff] %v16145_v18  ;;  %v20330_v24 = vld [vmem:[#allocation210_spill] sm:$0xff]  ;;  %10921 = vmatprep.mubr.msk.bf16.mxu0 %vm11191_vm0, %v19240_v61  ;;  %v16164_v62 = vmax.bf16 %v6822_v46, %v16123_v6  ;;  %v5817_v1 = vpop.f32.mrf.mxu1  ;;  %v20333_v46 = vrot.slane %v16096_v19, 5  ;;  %v3114_v39 = vshll.u32 %v16157_v63, 16 }
 0x54e   : > { %v5369_v56 = vadd.f32 %v20331_v17, %v20330_v24  ;;  %v10707_v13 = vpop.f32.mrf.mxu0  ;;  %v16173_v24 = vsel %vm16141_vm13, %v11149_v59, -1.00492276e+30  ;;  %v3118_v12 = vshrl.u32 %v16157_v63, 16  ;;  %v5994_v59 = vmax.bf16 %v16149_v30, %v16123_v6  ;;  %v20340_v30 = vld [vmem:[#allocation266_spill] sm:$0xff] }
 0x54f   : > { %v16179_v18 = vrot.slane %v20333_v46, 4  ;;  %v10548_v42 = vpop.f32.mrf.mxu1  ;;  %v20335_v13 = vld [vmem:[#allocation308_spill] sm:$0xff]  ;;  %v3124_v41 = vshll.u32 %v16173_v24, 16  ;;  %v3128_v35 = vshrl.u32 %v16173_v24, 16  ;;  %v3589_v6 = vmax.bf16 %v16183_v48, %v15956_v8 }
 0x550   : > { %v16175_v17 = vadd.f32 %v5817_v1, %v5369_v56  ;;  %v16187_v57 = vpop.f32.mrf.mxu0  ;;  %v5993_v56 = vmax.bf16 %v5435_v11, %v16104_v33  ;;  %v20336_v1 = vld [vmem:[#allocation102_spill] sm:$0xff]  ;;  %v3120_v43 = vrot.slane %v3118_v12, 4 }
 0x551   : > { %20334 = vst [vmem:[#allocation93_spill] sm:$0xff] %v16187_v57  ;;  %v5370_v46 = vadd.f32 %v20336_v1, %v20335_v13  ;;  %v5822_v42 = vpop.f32.mrf.mxu1  ;;  %10762 = vmatmul.mubr.msk.bf16.gmra.mxu1 %vm2056_vm9, %v20337_v26  ;;  %v20338_v33 = vld [vmem:[#allocation50_spill] sm:$0xff]  ;;  %v20341_v13 = vld [vmem:[#allocation276_spill] sm:$0xff]  ;;  %v3111_v1 = vor.u32 %v3110_v25, %v3106_v5  ;;  %v16214_v26 = vsel %vm12583_vm12, %v16053_v31, %v4235_v34  ;;  %v3126_v12 = vrot.slane %v3124_v41, 5 }
 0x552   : > { %20332 = vst [vmem:[#allocation207_spill] sm:$0xff] %v16175_v17  ;;  %v10708_v57 = vpop.f32.mrf.mxu0  ;;  %vm1777_vm15 = vcmp.eq.s32.totalorder %v20338_v33, 1  ;;  %v6881_v3 = vsel %vm2981_vm2, %v20341_v13, %v20340_v30  ;;  %10765 = vmatprep.mubr.msk.bf16.mxu1 %vm11191_vm0, %v19240_v61  ;;  %v4974_v30 = vmax.bf16 %v16152_v50, %v16040_v53  ;;  %v6396_v13 = vmax.bf16 %v5993_v56, %v16040_v53  ;;  %v20343_v25 = vld [vmem:[#allocation30_spill] sm:$0xff] }
 0x553   : > { %v16204_v11 = vadd.f32 %v5822_v42, %v5370_v46  ;;  %v3116_v57 = vrot.slane %v3114_v39, 5  ;;  %v10551_v46 = vpop.f32.mrf.mxu1  ;;  %v4237_v42 = vrot.slane %v4235_v34, 4  ;;  %v3107_v31 = vsel %vm12552_vm6, %v3102_v58, %v3106_v5  ;;  %vm16232_vm3 = vmpackc.low %vm1777_vm15, %vm1777_vm15 }
 0x554   : > { %v16216_v17 = vpop.f32.mrf.mxu0  ;;  %10922 = vmatmul.mubr.msk.bf16.gmra.mxu0 %vm2056_vm9, %v6881_v3  ;;  %v3130_v7 = vrot.slane %v3128_v35, 4  ;;  %vm1778_vm2 = vcmp.eq.s32.totalorder %v20344_v2, 1  ;;  %v16238_v3 = vmax.bf16 %v16214_v26, %v3589_v6  ;;  %v20347_v41 = vmax.bf16 %v16001_v23, %v15956_v8  ;;  %v11150_v23 = vld [vmem:[%s11299_s24 + $0x40] sm:$0xf]  ;;  %v20361_v8 = vld [vmem:[#allocation251_spill] sm:$0xff] }
 0x555   : > { %20339 = vst [vmem:[#allocation307_spill] sm:$0xff] %v16204_v11  ;;  %v20342_v11 = vld [vmem:[#allocation179_spill] sm:$0xff]  ;;  %10925 = vmatprep.mubr.msk.bf16.mxu0 %vm11191_vm0, %v19240_v61  ;;  %v5825_v56 = vpop.f32.mrf.mxu1  ;;  %v3112_v58 = vrot.slane %v3111_v1, 4  ;;  %v16247_v33 = vmax.bf16 %v5994_v59, %v16096_v19  ;;  %v20349_v46 = vmax.bf16 %v15997_v44, %v15972_v49  ;;  %v3590_v51 = vmax.bf16 %v3107_v31, %v16040_v53  ;;  %vm16260_vm4 = vmpackc.low %vm1778_vm2, %vm1778_vm2  ;;  %v20352_v44 = vld [vmem:[#allocation285_spill] sm:$0xff] }
 0x556   : > { %v5371_v39 = vadd.f32 %v20343_v25, %v20342_v11  ;;  %v10827_v34 = vpop.f32.mrf.mxu0  ;;  %v5437_v35 = vmax.bf16 %v20347_v41, %v16183_v48  ;;  %v6824_v32 = vmax.bf16 %v6396_v13, %v3107_v31  ;;  %v16267_v49 = vsel %vm16232_vm3, %v11150_v23, -1.00492276e+30  ;;  %v20355_v41 = vld [vmem:[#allocation132_spill] sm:$0xff] }
 0x557   : > { %v16252_v25 = vcombine.low %v20349_v46, %v7233_v22  ;;  %v3121_v34 = vor.u32 %v3120_v43, %v3116_v57  ;;  %v10552_v6 = vpop.f32.mrf.mxu1  ;;  %v20353_v22 = vld [vmem:[#allocation142_spill] sm:$0xff]  ;;  %v20354_v43 = vrot.slane %v16096_v19, 5  ;;  %v5438_v2 = vmax.bf16 %v4974_v30, %v3107_v31 }
 0x558   : > { %v16244_v5 = vadd.f32 %v5825_v56, %v5371_v39  ;;  %v16254_v11 = vpop.f32.mrf.mxu0  ;;  %v5372_v59 = vadd.f32 %v20353_v22, %v20352_v44  ;;  %v3131_v1 = vor.u32 %v3130_v7, %v3126_v12  ;;  %v4241_v13 = vrot.slane %v16157_v63, 5 }
 0x559   : > { %v4239_v53 = vsel %vm12583_vm12, %v4237_v42, %v20354_v43  ;;  %v5830_v56 = vpop.f32.mrf.mxu1  ;;  %10766 = vmatmul.mubr.msk.bf16.gmra.mxu1 %vm2056_vm9, %v20355_v41  ;;  %v20356_v50 = vrot.slane %v16173_v24, 5  ;;  %v4976_v6 = vmax.bf16 %v16238_v3, %v16157_v63  ;;  %v5995_v23 = vmax.bf16 %v5437_v35, %v16214_v26  ;;  %v11151_v42 = vld [vmem:[%s11299_s24 + $0x44] sm:$0xf] }
 0x55a   : > { %20348 = vst [vmem:[#allocation232_spill] sm:$0xff] %v16244_v5  ;;  %v10828_v39 = vpop.f32.mrf.mxu0  ;;  %v16285_v44 = vadd.f32 %v5830_v56, %v5372_v59  ;;  %10769 = vmatprep.mubr.msk.bf16.mxu1 %vm11191_vm0, %v19240_v61  ;;  %v3122_v7 = vrot.slane %v3121_v34, 4  ;;  %v16292_v30 = vsel %vm16260_vm4, %v11151_v42, -1.00492276e+30  ;;  %v3134_v31 = vshll.u32 %v16267_v49, 16  ;;  %v20358_v3 = vld [vmem:[#allocation274_spill] sm:$0xff] }
 0x55b   : > { %v16280_v46 = vrot.slane %v20356_v50, 4  ;;  %v3138_v22 = vshrl.u32 %v16267_v49, 16  ;;  %v10555_v35 = vpop.f32.mrf.mxu1  ;;  %v16300_v59 = vmax.bf16 %v6824_v32, %v4239_v53  ;;  %v16302_v39 = vmax.bf16 %v4239_v53, %v3590_v51  ;;  %v20360_v34 = vld [vmem:[#allocation52_spill] sm:$0xff] }
 0x55c   : > { %20357 = vst [vmem:[#allocation178_spill] sm:$0xff] %v16285_v44  ;;  %v16296_v43 = vpop.f32.mrf.mxu0  ;;  %10926 = vmatmul.mubr.msk.bf16.gmra.mxu0 %vm2056_vm9, %v20358_v3  ;;  %vm1779_vm5 = vcmp.eq.s32.totalorder %v20360_v34, 1  ;;  %v5373_v56 = vadd.f32 %v20361_v8, %v15255_v4  ;;  %v3132_v41 = vrot.slane %v3131_v1, 4  ;;  %v5996_v50 = vmax.bf16 %v5438_v2, %v4239_v53  ;;  %v20363_v2 = vld [vmem:[#allocation54_spill] sm:$0xff]  ;;  %v20370_v8 = vld [vmem:[#allocation155_spill] sm:$0xff] }
 0x55d   : > { %20359 = vst [vmem:[#allocation5_spill] sm:$0xff] %v16300_v59  ;;  %10929 = vmatprep.mubr.msk.bf16.mxu0 %vm11191_vm0, %v19240_v61  ;;  %v16311_v42 = vsel %vm12552_vm6, %v3112_v58, %v3116_v57  ;;  %v4243_v3 = vrot.slane %v4241_v13, 4  ;;  %v5833_v32 = vpop.f32.mrf.mxu1  ;;  %v6398_v51 = vmax.bf16 %v5995_v23, %v16157_v63  ;;  %v3144_v44 = vshll.u32 %v16292_v30, 16  ;;  %vm16324_vm10 = vmpackc.low %vm1779_vm5, %vm1779_vm5 }
 0x55e   : > { %v10831_v35 = vpop.f32.mrf.mxu0  ;;  %v3148_v5 = vshrl.u32 %v16292_v30, 16  ;;  %v16316_v21 = vadd.f32 %v5833_v32, %v5373_v56  ;;  %v3127_v4 = vsel %vm12552_vm6, %v3122_v7, %v3126_v12  ;;  %v3136_v1 = vrot.slane %v3134_v31, 5 }
 0x55f   : > { %v3140_v53 = vrot.slane %v3138_v22, 4  ;;  %vm1780_vm7 = vcmp.eq.s32.totalorder %v20363_v2, 1  ;;  %v10556_v23 = vpop.f32.mrf.mxu1  ;;  %v3591_v12 = vmax.bf16 %v16311_v42, %v16096_v19  ;;  %v20366_v7 = vmax.bf16 %v16167_v20, %v16096_v19  ;;  %v20367_v22 = vld [vmem:[#allocation146_spill] sm:$0xff] }
 0x560   : > { %20362 = vst [vmem:[#allocation338_spill] sm:$0xff] %v16316_v21  ;;  %v16328_v58 = vpop.f32.mrf.mxu0  ;;  %v5374_v34 = vadd.f32 %v20367_v22, %v15264_v37  ;;  %v16344_v35 = vmax.bf16 %v5996_v50, %v16173_v24  ;;  %v20369_v32 = vrot.slane %v16173_v24, 5  ;;  %v16353_v19 = vsel %vm12583_vm12, %v16179_v18, %v4241_v13  ;;  %vm16361_vm11 = vmpackc.low %vm1780_vm7, %vm1780_vm7 }
 0x561   : > { %v16337_v31 = vmax.bf16 %v20366_v7, %v16311_v42  ;;  %v5838_v7 = vpop.f32.mrf.mxu1  ;;  %10770 = vmatmul.mubr.msk.bf16.gmra.mxu1 %vm2056_vm9, %v20370_v8  ;;  %v3592_v37 = vmax.bf16 %v3127_v4, %v16157_v63  ;;  %v5440_v22 = vmax.bf16 %v4976_v6, %v3127_v4  ;;  %v6826_v63 = vmax.bf16 %v6398_v51, %v3127_v4  ;;  %v20377_v51 = vld [vmem:[#allocation120_spill] sm:$0xff]  ;;  %v11153_v4 = vld [vmem:[%s11299_s24 + $0x4c] sm:$0xf] }
 0x562   : > { %20368 = vst [vmem:[#allocation125_spill] sm:$0xff] %v16344_v35  ;;  %v4245_v23 = vsel %vm12583_vm12, %v4243_v3, %v20369_v32  ;;  %v10832_v20 = vpop.f32.mrf.mxu0  ;;  %v11152_v3 = vld [vmem:[%s11299_s24 + $0x48] sm:$0xf]  ;;  %v16370_v13 = vadd.f32 %v5838_v7, %v5374_v34  ;;  %10773 = vmatprep.mubr.msk.bf16.mxu1 %vm11191_vm0, %v19240_v61  ;;  %v3146_v6 = vrot.slane %v3144_v44, 5  ;;  %v3150_v8 = vrot.slane %v3148_v5, 4  ;;  %v20384_v35 = vld [vmem:[#allocation9_spill] sm:$0xff] }
 0x563   : > { %v16368_v18 = vsel %vm16324_vm10, %v11152_v3, -1.00492276e+30  ;;  %v3141_v2 = vor.u32 %v3140_v53, %v3136_v1  ;;  %v20375_v20 = vld [vmem:[#allocation278_spill] sm:$0xff]  ;;  %v10559_v56 = vpop.f32.mrf.mxu1  ;;  %v20376_v57 = vrot.slane %v16292_v30, 5  ;;  %v4434_v34 = vmax.bf16 %v16353_v19, %v3591_v12 }
 0x564   : > { %20373 = vst [vmem:[#allocation208_spill] sm:$0xff] %v16370_v13  ;;  %v16374_v32 = vpop.f32.mrf.mxu0  ;;  %10930 = vmatmul.mubr.msk.bf16.gmra.mxu0 %vm2056_vm9, %v20375_v20  ;;  %v5997_v7 = vmax.bf16 %v16337_v31, %v16353_v19  ;;  %v5375_v44 = vadd.f32 %v20377_v51, %v15277_v40  ;;  %v4247_v5 = vrot.slane %v16267_v49, 5  ;;  %v16391_v53 = vsel %vm16361_vm11, %v11153_v4, -1.00492276e+30  ;;  %v20378_v31 = vld [vmem:[#allocation55_spill] sm:$0xff] }
 0x565   : > { %20374 = vst [vmem:[#allocation230_spill] sm:$0xff] %v16374_v32  ;;  %v16380_v21 = vrot.slane %v20376_v57, 4  ;;  %v3154_v56 = vshll.u32 %v16368_v18, 16  ;;  %v3158_v3 = vshrl.u32 %v16368_v18, 16  ;;  %v5841_v57 = vpop.f32.mrf.mxu1  ;;  %v16395_v12 = vmax.bf16 %v4245_v23, %v3592_v37 }
 0x566   : > { %v10835_v20 = vpop.f32.mrf.mxu0  ;;  %v5998_v13 = vmax.bf16 %v5440_v22, %v4245_v23  ;;  %vm1781_vm13 = vcmp.eq.s32.totalorder %v20378_v31, 1  ;;  %v16398_v16 = vadd.f32 %v5841_v57, %v5375_v44  ;;  %v16400_v40 = vmax.bf16 %v6826_v63, %v4245_v23  ;;  %v20383_v22 = vld [vmem:[#allocation56_spill] sm:$0xff] }
 0x567   : > { %v3151_v51 = vor.u32 %v3150_v8, %v3146_v6  ;;  %v16404_v50 = vsel %vm12552_vm6, %v3132_v41, %v3136_v1  ;;  %v3142_v4 = vrot.slane %v3141_v2, 4  ;;  %v10560_v0 = vpop.f32.mrf.mxu1  ;;  %v3164_v20 = vshll.u32 %v16391_v53, 16  ;;  %v20385_v44 = vld [vmem:[#allocation152_spill] sm:$0xff]  ;;  %vm16419_vm2 = vmpackc.low %vm1781_vm13, %vm1781_vm13 }
 0x568   : > { %20379 = vst [vmem:[#allocation309_spill] sm:$0xff] %v16398_v16  ;;  %20380 = vst [vmem:[#allocation236_spill] sm:$0xff] %v16400_v40  ;;  %v16406_v29 = vpop.f32.mrf.mxu0  ;;  %v3168_v37 = vshrl.u32 %v16391_v53, 16  ;;  %vm1782_vm15 = vcmp.eq.s32.totalorder %v20383_v22, 1  ;;  %v5376_v57 = vadd.f32 %v20385_v44, %v20384_v35  ;;  %v4249_v23 = vrot.slane %v4247_v5, 4  ;;  %v20388_v16 = vld [vmem:[#allocation176_spill] sm:$0xff] }
 0x569   : > { %20381 = vst [vmem:[#allocation182_spill] sm:$0xff] %v16404_v50  ;;  %20382 = vst [vmem:[#allocation7_spill] sm:$0xff] %v16406_v29  ;;  %v4978_v63 = vmax.bf16 %v4434_v34, %v16267_v49  ;;  %v16414_v8 = vrot.slane %v3154_v56, 5  ;;  %v3160_v41 = vrot.slane %v3158_v3, 4  ;;  %v5846_v2 = vpop.f32.mrf.mxu1  ;;  %10774 = vmatmul.mubr.msk.bf16.gmra.mxu1 %vm2056_vm9, %v20388_v16  ;;  %v16428_v34 = vmax.bf16 %v5998_v13, %v16292_v30  ;;  %v20401_v29 = vld [vmem:[#allocation213_spill] sm:$0xff] }
 0x56a   : > { %v10836_v1 = vpop.f32.mrf.mxu0  ;;  %v3593_v56 = vmax.bf16 %v16404_v50, %v16173_v24  ;;  %v16432_v3 = vadd.f32 %v5846_v2, %v5376_v57  ;;  %10777 = vmatprep.mubr.msk.bf16.mxu1 %vm11191_vm0, %v19240_v61  ;;  %v3147_v31 = vsel %vm12552_vm6, %v3142_v4, %v3146_v6  ;;  %v6400_v44 = vmax.bf16 %v5997_v7, %v16267_v49  ;;  %vm16451_vm3 = vmpackc.low %vm1782_vm15, %vm1782_vm15  ;;  %v20402_v57 = vld [vmem:[#allocation29_spill] sm:$0xff] }
 0x56b   : > { %20389 = vst [vmem:[#allocation340_spill] sm:$0xff] %v16428_v34  ;;  %v16442_v16 = vsel %vm12583_vm12, %v16280_v46, %v4247_v5  ;;  %v20392_v13 = vmax.bf16 %v16302_v39, %v16173_v24  ;;  %v10563_v7 = vpop.f32.mrf.mxu1  ;;  %v3166_v4 = vrot.slane %v3164_v20, 5  ;;  %v3170_v2 = vrot.slane %v3168_v37, 4  ;;  %v11154_v46 = vld [vmem:[%s11299_s24 + $0x50] sm:$0xf]  ;;  %v20396_v24 = vld [vmem:[#allocation171_spill] sm:$0xff] }
 0x56c   : > { %20390 = vst [vmem:[#allocation149_spill] sm:$0xff] %v16432_v3  ;;  %20391 = vst [vmem:[#allocation8_spill] sm:$0xff] %v16442_v16  ;;  %v16455_v6 = vpop.f32.mrf.mxu0  ;;  %v16460_v5 = vsel %vm16419_vm2, %v11154_v46, -1.00492276e+30  ;;  %v20397_v39 = vld [vmem:[#allocation116_spill] sm:$0xff]  ;;  %v3152_v22 = vrot.slane %v3151_v51, 4  ;;  %v3161_v7 = vor.u32 %v3160_v41, %v16414_v8  ;;  %v3594_v40 = vmax.bf16 %v3147_v31, %v16267_v49 }
 0x56d   : > { %v5441_v1 = vmax.bf16 %v20392_v13, %v16404_v50  ;;  %20395 = vst [vmem:[#allocation241_spill] sm:$0xff] %v16455_v6  ;;  %v5377_v13 = vadd.f32 %v20397_v39, %v20396_v24  ;;  %v20398_v35 = vrot.slane %v16292_v30, 5  ;;  %v5849_v37 = vpop.f32.mrf.mxu1  ;;  %v4436_v0 = vmax.bf16 %v16442_v16, %v3593_v56  ;;  %v11155_v46 = vld [vmem:[%s11299_s24 + $0x54] sm:$0xf] }
 0x56e   : > { %v10839_v20 = vpop.f32.mrf.mxu0  ;;  %v16475_v24 = vsel %vm16451_vm3, %v11155_v46, -1.00492276e+30  ;;  %v5442_v39 = vmax.bf16 %v4978_v63, %v3147_v31  ;;  %v6828_v6 = vmax.bf16 %v6400_v44, %v3147_v31  ;;  %v3171_v34 = vor.u32 %v3170_v2, %v3166_v4  ;;  %v20403_v31 = vld [vmem:[#allocation57_spill] sm:$0xff] }
 0x56f   : > { %v4251_v3 = vsel %vm12583_vm12, %v4249_v23, %v20398_v35  ;;  %v16477_v51 = vadd.f32 %v5849_v37, %v5377_v13  ;;  %v3174_v23 = vshll.u32 %v16460_v5, 16  ;;  %v3178_v35 = vshrl.u32 %v16460_v5, 16  ;;  %v10564_v20 = vpop.f32.mrf.mxu1 }
 0x570   : > { %v16481_v41 = vpop.f32.mrf.mxu0  ;;  %v4253_v49 = vrot.slane %v16368_v18, 5  ;;  %v5999_v56 = vmax.bf16 %v5441_v1, %v16442_v16  ;;  %v5378_v46 = vadd.f32 %v20402_v57, %v20401_v29  ;;  %v3162_v50 = vrot.slane %v3161_v7, 4 }
 0x571   : > { %20399 = vst [vmem:[#allocation311_spill] sm:$0xff] %v16477_v51  ;;  %20400 = vst [vmem:[#allocation238_spill] sm:$0xff] %v16481_v41  ;;  %v3184_v13 = vshll.u32 %v16475_v24, 16  ;;  %v3188_v63 = vshrl.u32 %v16475_v24, 16  ;;  %vm1783_vm4 = vcmp.eq.s32.totalorder %v20403_v31, 1  ;;  %v5854_v37 = vpop.f32.mrf.mxu1  ;;  %v20404_v51 = vld [vmem:[#allocation181_spill] sm:$0xff]  ;;  %v16496_v1 = vmax.bf16 %v4251_v3, %v3594_v40 }
 0x572   : > { %v10840_v44 = vpop.f32.mrf.mxu0  ;;  %10778 = vmatmul.mubr.msk.bf16.gmra.mxu1 %vm2056_vm9, %v20404_v51  ;;  %v20405_v2 = vrot.slane %v16391_v53, 5  ;;  %v4980_v29 = vmax.bf16 %v4436_v0, %v16368_v18  ;;  %v16499_v7 = vadd.f32 %v5854_v37, %v5378_v46  ;;  %v16503_v57 = vmax.bf16 %v6828_v6, %v4251_v3  ;;  %vm16515_vm5 = vmpackc.low %vm1783_vm4, %vm1783_vm4 }
 0x573   : > { %10781 = vmatprep.mubr.msk.bf16.mxu1 %vm11191_vm0, %v19240_v61  ;;  %v6000_v44 = vmax.bf16 %v5442_v39, %v4251_v3  ;;  %v3176_v41 = vrot.slane %v3174_v23, 5  ;;  %v3180_v16 = vrot.slane %v3178_v35, 4  ;;  %v10567_v51 = vpop.f32.mrf.mxu1  ;;  %v3172_v32 = vrot.slane %v3171_v34, 4  ;;  %v20412_v3 = vld [vmem:[#allocation313_spill] sm:$0xff]  ;;  %v20413_v39 = vld [vmem:[#allocation154_spill] sm:$0xff] }
 0x574   : > { %v16494_v20 = vrot.slane %v20405_v2, 4  ;;  %20406 = vst [vmem:[#allocation99_spill] sm:$0xff] %v16499_v7  ;;  %20407 = vst [vmem:[#allocation281_spill] sm:$0xff] %v16503_v57  ;;  %v16505_v59 = vpop.f32.mrf.mxu0  ;;  %v16510_v40 = vsel %vm12552_vm6, %v3152_v22, %v16414_v8  ;;  %v4255_v0 = vrot.slane %v4253_v49, 4  ;;  %v5379_v23 = vadd.f32 %v20413_v39, %v20412_v3  ;;  %v20414_v51 = vld [vmem:[#allocation58_spill] sm:$0xff] }
 0x575   : > { %20408 = vst [vmem:[#allocation342_spill] sm:$0xff] %v16505_v59  ;;  %20409 = vst [vmem:[#allocation312_spill] sm:$0xff] %v16510_v40  ;;  %v3167_v34 = vsel %vm12552_vm6, %v3162_v50, %v3166_v4  ;;  %v6402_v35 = vmax.bf16 %v5999_v56, %v16368_v18  ;;  %v3186_v46 = vrot.slane %v3184_v13, 5  ;;  %v3190_v8 = vrot.slane %v3188_v63, 4  ;;  %v5857_v37 = vpop.f32.mrf.mxu1  ;;  %v11156_v4 = vld [vmem:[%s11299_s24 + $0x58] sm:$0xf] }
 0x576   : > { %v10843_v22 = vpop.f32.mrf.mxu0  ;;  %v4262_v2 = vrot.slane %v16475_v24, 5  ;;  %vm1784_vm7 = vcmp.eq.s32.totalorder %v20414_v51, 1  ;;  %v16528_v7 = vadd.f32 %v5857_v37, %v5379_v23  ;;  %v16531_v3 = vmax.bf16 %v6000_v44, %v16391_v53  ;;  %v20420_v23 = vld [vmem:[#allocation158_spill] sm:$0xff] }
 0x577   : > { %v3181_v39 = vor.u32 %v3180_v16, %v3176_v41  ;;  %v3595_v50 = vmax.bf16 %v16510_v40, %v16292_v30  ;;  %v16538_v56 = vsel %vm16515_vm5, %v11156_v4, -1.00492276e+30  ;;  %v10568_v63 = vpop.f32.mrf.mxu1  ;;  %v3596_v22 = vmax.bf16 %v3167_v34, %v16368_v18  ;;  %v20419_v16 = vld [vmem:[#allocation117_spill] sm:$0xff]  ;;  %vm16558_vm10 = vmpackc.low %vm1784_vm7, %vm1784_vm7 }
 0x578   : > { %20415 = vst [vmem:[#allocation4_spill] sm:$0xff] %v16528_v7  ;;  %20416 = vst [vmem:[#allocation246_spill] sm:$0xff] %v16531_v3  ;;  %v16540_v13 = vpop.f32.mrf.mxu0  ;;  %v5444_v31 = vmax.bf16 %v4980_v29, %v3167_v34  ;;  %v16546_v44 = vsel %vm12583_vm12, %v16380_v21, %v4253_v49  ;;  %v5380_v37 = vadd.f32 %v20420_v23, %v20419_v16  ;;  %v20421_v7 = vrot.slane %v16391_v53, 5  ;;  %v20424_v29 = vld [vmem:[#allocation10_spill] sm:$0xff] }
 0x579   : > { %20417 = vst [vmem:[#allocation314_spill] sm:$0xff] %v16540_v13  ;;  %20418 = vst [vmem:[#allocation243_spill] sm:$0xff] %v16546_v44  ;;  %v6830_v4 = vmax.bf16 %v6402_v35, %v3167_v34  ;;  %v3191_v3 = vor.u32 %v3190_v8, %v3186_v46  ;;  %v4259_v63 = vrot.slane %v16460_v5, 5  ;;  %v5862_v49 = vpop.f32.mrf.mxu1  ;;  %v16564_v16 = vrot.slane %v4262_v2, 4 }
 0x57a   : > { %v4257_v6 = vsel %vm12583_vm12, %v4255_v0, %v20421_v7  ;;  %v10844_v21 = vpop.f32.mrf.mxu0  ;;  %10782 = vmatmul.mubr.msk.bf16.gmra.mxu1 %vm2056_vm9, %v20424_v29  ;;  %v3194_v7 = vshll.u32 %v16538_v56, 16  ;;  %v3198_v0 = vshrl.u32 %v16538_v56, 16  ;;  %v16568_v34 = vadd.f32 %v5862_v49, %v5380_v37  ;;  %v11157_v49 = vld [vmem:[%s11299_s24 + $0x5c] sm:$0xf] }
 0x57b   : > { %10785 = vmatprep.mubr.msk.bf16.mxu1 %vm11191_vm0, %v19240_v61  ;;  %v3182_v35 = vrot.slane %v3181_v39, 4  ;;  %v4438_v8 = vmax.bf16 %v16546_v44, %v3595_v50  ;;  %v20426_v51 = vmax.bf16 %v16395_v12, %v16292_v30  ;;  %v20427_v21 = vld [vmem:[#allocation59_spill] sm:$0xff]  ;;  %v10571_v13 = vpop.f32.mrf.mxu1  ;;  %v16580_v57 = vmax.bf16 %v4257_v6, %v3596_v22  ;;  %v20429_v39 = vld [vmem:[#allocation162_spill] sm:$0xff] }
 0x57c   : > { %20425 = vst [vmem:[#allocation109_spill] sm:$0xff] %v16568_v34  ;;  %vm1785_vm11 = vcmp.eq.s32.totalorder %v20427_v21, 1  ;;  %v16578_v29 = vpop.f32.mrf.mxu0  ;;  %v6002_v37 = vmax.bf16 %v5444_v31, %v4257_v6  ;;  %v16585_v34 = vsel %vm16558_vm10, %v11157_v49, -1.00492276e+30  ;;  %v5381_v50 = vadd.f32 %v20429_v39, %v15343_v38 }
 0x57d   : > { %v5443_v23 = vmax.bf16 %v20426_v51, %v16510_v40  ;;  %20428 = vst [vmem:[#allocation284_spill] sm:$0xff] %v16578_v29  ;;  %v16589_v59 = vmax.bf16 %v6830_v4, %v4257_v6  ;;  %v16591_v30 = vrot.slane %v3191_v3, 4  ;;  %v4261_v12 = vrot.slane %v4259_v63, 4  ;;  %v20431_v51 = vld [vmem:[#allocation62_spill] sm:$0xff]  ;;  %v5865_v13 = vpop.f32.mrf.mxu1  ;;  %vm16603_vm15 = vmpackc.low %vm1785_vm11, %vm1785_vm11 }
 0x57e   : > { %vm1786_vm13 = vcmp.eq.s32.totalorder %v20431_v51, 1  ;;  %v10847_v29 = vpop.f32.mrf.mxu0  ;;  %v16596_v31 = vsel %vm12552_vm6, %v3172_v32, %v3176_v41  ;;  %v16598_v22 = vrot.slane %v3194_v7, 5  ;;  %v3200_v18 = vrot.slane %v3198_v0, 4  ;;  %v11158_v51 = vld [vmem:[%s11299_s24 + $0x60] sm:$0xf] }
 0x57f   : > { %20430 = vst [vmem:[#allocation344_spill] sm:$0xff] %v16589_v59  ;;  %20432 = vst [vmem:[#allocation315_spill] sm:$0xff] %v16596_v31  ;;  %v16607_v3 = vadd.f32 %v5865_v13, %v5381_v50  ;;  %v16611_v6 = vsel %vm12552_vm6, %v3182_v35, %v3186_v46  ;;  %v6001_v32 = vmax.bf16 %v5443_v23, %v16546_v44  ;;  %v3204_v41 = vshll.u32 %v16585_v34, 16  ;;  %v10572_v0 = vpop.f32.mrf.mxu1  ;;  %v20440_v35 = vld [vmem:[#allocation167_spill] sm:$0xff] }
 0x580   : > { %v3208_v4 = vshrl.u32 %v16585_v34, 16  ;;  %v16616_v7 = vpop.f32.mrf.mxu0  ;;  %v16621_v29 = vmax.bf16 %v6002_v37, %v16475_v24  ;;  %v4982_v49 = vmax.bf16 %v4438_v8, %v16460_v5  ;;  %vm16627_vm2 = vmpackc.low %vm1786_vm13, %vm1786_vm13  ;;  %v5382_v23 = vadd.f32 %v20440_v35, %v15352_v15  ;;  %v20442_v35 = vld [vmem:[#allocation12_spill] sm:$0xff]  ;;  %v20449_v59 = vld [vmem:[#allocation63_spill] sm:$0xff] }
 0x581   : > { %20435 = vst [vmem:[#allocation6_spill] sm:$0xff] %v16607_v3  ;;  %20436 = vst [vmem:[#allocation317_spill] sm:$0xff] %v16616_v7  ;;  %v16635_v39 = vsel %vm12583_vm12, %v4261_v12, %v4262_v2  ;;  %v3597_v37 = vmax.bf16 %v16596_v31, %v16391_v53  ;;  %v20441_v8 = vmax.bf16 %v16496_v1, %v16391_v53  ;;  %v16646_v13 = vsel %vm16603_vm15, %v11158_v51, -1.00492276e+30  ;;  %v5870_v15 = vpop.f32.mrf.mxu1  ;;  %v20451_v44 = vld [vmem:[#allocation175_spill] sm:$0xff] }
 0x582   : > { %20437 = vst [vmem:[#allocation244_spill] sm:$0xff] %v16621_v29  ;;  %v10848_v0 = vpop.f32.mrf.mxu0  ;;  %10786 = vmatmul.mubr.msk.bf16.gmra.mxu1 %vm2056_vm9, %v20442_v35  ;;  %v3598_v2 = vmax.bf16 %v16611_v6, %v16460_v5  ;;  %v3201_v12 = vor.u32 %v3200_v18, %v16598_v22  ;;  %v16656_v53 = vsel %vm12583_vm12, %v16494_v20, %v4259_v63  ;;  %v3210_v51 = vrot.slane %v3208_v4, 4 }
 0x583   : > { %v5445_v50 = vmax.bf16 %v20441_v8, %v16596_v31  ;;  %20443 = vst [vmem:[#allocation14_spill] sm:$0xff] %v16656_v53  ;;  %v16658_v1 = vadd.f32 %v5870_v15, %v5382_v23  ;;  %10789 = vmatprep.mubr.msk.bf16.mxu1 %vm11191_vm0, %v19240_v61  ;;  %v6404_v38 = vmax.bf16 %v6001_v32, %v16460_v5  ;;  %v3206_v8 = vrot.slane %v3204_v41, 5  ;;  %v11159_v0 = vld [vmem:[%s11299_s24 + $0x64] sm:$0xf]  ;;  %v10575_v21 = vpop.f32.mrf.mxu1  ;;  %v20446_v15 = vld [vmem:[#allocation292_spill] sm:$0xff] }
 0x584   : > { %v16666_v35 = vsel %vm16627_vm2, %v11159_v0, -1.00492276e+30  ;;  %v16668_v18 = vpop.f32.mrf.mxu0  ;;  %v16671_v20 = vmax.bf16 %v4982_v49, %v16611_v6  ;;  %v3214_v63 = vshll.u32 %v16646_v13, 16  ;;  %v3218_v23 = vshrl.u32 %v16646_v13, 16  ;;  %v20450_v31 = vld [vmem:[#allocation228_spill] sm:$0xff] }
 0x585   : > { %20444 = vst [vmem:[#allocation287_spill] sm:$0xff] %v16658_v1  ;;  %20445 = vst [vmem:[#allocation201_spill] sm:$0xff] %v16668_v18  ;;  %v20447_v1 = vld [vmem:[#allocation170_spill] sm:$0xff]  ;;  %v4268_v32 = vrot.slane %v16585_v34, 5  ;;  %v4265_v41 = vrot.slane %v16538_v56, 5  ;;  %v4440_v4 = vmax.bf16 %v16656_v53, %v3597_v37  ;;  %v6003_v46 = vmax.bf16 %v5445_v50, %v16656_v53  ;;  %v5873_v21 = vpop.f32.mrf.mxu1 }
 0x586   : > { %v5383_v5 = vadd.f32 %v20447_v1, %v20446_v15  ;;  %v10851_v0 = vpop.f32.mrf.mxu0  ;;  %v3202_v3 = vrot.slane %v3201_v12, 4  ;;  %v3224_v49 = vshll.u32 %v16666_v35, 16  ;;  %v3228_v18 = vshrl.u32 %v16666_v35, 16 }
 0x587   : > { %v6832_v29 = vmax.bf16 %v6404_v38, %v16611_v6  ;;  %v3211_v1 = vor.u32 %v3210_v51, %v3206_v8  ;;  %v16687_v15 = vmax.bf16 %v16635_v39, %v3598_v2  ;;  %vm1787_vm3 = vcmp.eq.s32.totalorder %v20449_v59, 1  ;;  %v10576_v50 = vpop.f32.mrf.mxu1 }
 0x588   : > { %v16683_v7 = vadd.f32 %v5873_v21, %v5383_v5  ;;  %v16690_v37 = vpop.f32.mrf.mxu0  ;;  %v4267_v0 = vrot.slane %v4265_v41, 4  ;;  %v16692_v53 = vrot.slane %v3214_v63, 5  ;;  %v3220_v12 = vrot.slane %v3218_v23, 4  ;;  %vm16709_vm4 = vmpackc.low %vm1787_vm3, %vm1787_vm3 }
 0x589   : > { %v5384_v40 = vadd.f32 %v20451_v44, %v20450_v31  ;;  %v16696_v5 = vrot.slane %v4268_v32, 4  ;;  %v6004_v6 = vmax.bf16 %v16671_v20, %v16635_v39  ;;  %v4984_v2 = vmax.bf16 %v4440_v4, %v16538_v56  ;;  %v5878_v21 = vpop.f32.mrf.mxu1 }
 0x58a   : > { %20448 = vst [vmem:[#allocation318_spill] sm:$0xff] %v16683_v7  ;;  %v6406_v38 = vmax.bf16 %v6003_v46, %v16538_v56  ;;  %v10852_v51 = vpop.f32.mrf.mxu0  ;;  %v20452_v7 = vld [vmem:[#allocation13_spill] sm:$0xff]  ;;  %v3207_v63 = vsel %vm12552_vm6, %v3202_v3, %v3206_v8  ;;  %v3226_v23 = vrot.slane %v3224_v49, 5  ;;  %v3230_v50 = vrot.slane %v3228_v18, 4 }
 0x58b   : > { %10790 = vmatmul.mubr.msk.bf16.gmra.mxu1 %vm2056_vm9, %v20452_v7  ;;  %v16713_v31 = vadd.f32 %v5878_v21, %v5384_v40  ;;  %v16718_v7 = vmax.bf16 %v6832_v29, %v16635_v39  ;;  %v3212_v20 = vrot.slane %v3211_v1, 4  ;;  %v16726_v59 = vsel %vm12552_vm6, %v16591_v30, %v16598_v22  ;;  %v10579_v40 = vpop.f32.mrf.mxu1  ;;  %v20457_v29 = vld [vmem:[#allocation66_spill] sm:$0xff]  ;;  %v20458_v39 = vld [vmem:[#allocation177_spill] sm:$0xff]  ;;  %v11160_v30 = vld [vmem:[%s11299_s24 + $0x68] sm:$0xf] }
 0x58c   : > { %10793 = vmatprep.mubr.msk.bf16.mxu1 %vm11191_vm0, %v19240_v61  ;;  %v16728_v8 = vpop.f32.mrf.mxu0  ;;  %v4269_v18 = vsel %vm12583_vm12, %v4267_v0, %v4268_v32  ;;  %v3221_v4 = vor.u32 %v3220_v12, %v16692_v53  ;;  %vm1788_vm5 = vcmp.eq.s32.totalorder %v20457_v29, 1  ;;  %v5385_v46 = vadd.f32 %v20458_v39, %v15390_v14 }
 0x58d   : > { %20455 = vst [vmem:[#allocation257_spill] sm:$0xff] %v16713_v31  ;;  %20456 = vst [vmem:[#allocation22_spill] sm:$0xff] %v16728_v8  ;;  %v3600_v49 = vmax.bf16 %v3207_v63, %v16538_v56  ;;  %v6834_v1 = vmax.bf16 %v6406_v38, %v3207_v63  ;;  %v19224_v51 = vrot.slane %v16666_v35, 5  ;;  %v16741_v22 = vsel %vm16709_vm4, %v11160_v30, -1.00492276e+30  ;;  %v5881_v40 = vpop.f32.mrf.mxu1 }
 0x58e   : > { %v10855_v21 = vpop.f32.mrf.mxu0  ;;  %v5448_v32 = vmax.bf16 %v4984_v2, %v3207_v63  ;;  %v3231_v0 = vor.u32 %v3230_v50, %v3226_v23  ;;  %v20459_v12 = vmax.bf16 %v16580_v57, %v16475_v24  ;;  %v16747_v14 = vadd.f32 %v5881_v40, %v5385_v46  ;;  %vm16760_vm7 = vmpackc.low %vm1788_vm5, %vm1788_vm5  ;;  %v20463_v57 = vld [vmem:[#allocation67_spill] sm:$0xff] }
 0x58f   : > { %v3599_v56 = vmax.bf16 %v16726_v59, %v16475_v24  ;;  %v16754_v38 = vsel %vm12583_vm12, %v16564_v16, %v4265_v41  ;;  %vm1789_vm10 = vcmp.eq.s32.totalorder %v20463_v57, 1  ;;  %v10580_v24 = vpop.f32.mrf.mxu1  ;;  %v3222_v50 = vrot.slane %v3221_v4, 4  ;;  %v20465_v41 = vld [vmem:[#allocation209_spill] sm:$0xff] }
 0x590   : > { %v5447_v3 = vmax.bf16 %v20459_v12, %v16726_v59  ;;  %20460 = vst [vmem:[#allocation320_spill] sm:$0xff] %v16747_v14  ;;  %v16765_v63 = vpop.f32.mrf.mxu0  ;;  %v3234_v39 = vshll.u32 %v16741_v22, 16  ;;  %v3238_v16 = vshrl.u32 %v16741_v22, 16  ;;  %v5386_v46 = vadd.f32 %v20465_v41, %v15400_v55  ;;  %v20467_v24 = vld [vmem:[#allocation183_spill] sm:$0xff]  ;;  %vm16793_vm11 = vmpackc.low %vm1789_vm10, %vm1789_vm10 }
 0x591   : > { %20464 = vst [vmem:[#allocation186_spill] sm:$0xff] %v16765_v63  ;;  %v16772_v29 = vmax.bf16 %v6004_v6, %v16585_v34  ;;  %v16774_v30 = vmax.bf16 %v6834_v1, %v4269_v18  ;;  %v16778_v21 = vrot.slane %v19224_v51, 4  ;;  %v16780_v40 = vmax.bf16 %v4269_v18, %v3600_v49  ;;  %v5886_v4 = vpop.f32.mrf.mxu1  ;;  %v11161_v55 = vld [vmem:[%s11299_s24 + $0x6c] sm:$0xf]  ;;  %v20483_v1 = vld [vmem:[#allocation108_spill] sm:$0xff] }
 0x592   : > { %v10856_v12 = vpop.f32.mrf.mxu0  ;;  %v6006_v44 = vmax.bf16 %v5448_v32, %v4269_v18  ;;  %v6005_v14 = vmax.bf16 %v5447_v3, %v16754_v38  ;;  %v16788_v6 = vsel %vm16760_vm7, %v11161_v55, -1.00492276e+30  ;;  %v16797_v49 = vadd.f32 %v5886_v4, %v5386_v46  ;;  %v20473_v55 = vld [vmem:[#allocation113_spill] sm:$0xff] }
 0x593   : > { %20466 = vst [vmem:[#allocation291_spill] sm:$0xff] %v16774_v30  ;;  %10794 = vmatmul.mubr.msk.bf16.gmra.mxu1 %vm2056_vm9, %v20467_v24  ;;  %v3232_v18 = vrot.slane %v3231_v0, 4  ;;  %v16804_v3 = vsel %vm12552_vm6, %v3212_v20, %v16692_v53  ;;  %v20471_v32 = vrot.slane %v16646_v13, 5  ;;  %v4442_v57 = vmax.bf16 %v16754_v38, %v3599_v56  ;;  %v10583_v12 = vpop.f32.mrf.mxu1  ;;  %v20474_v0 = vld [vmem:[#allocation95_spill] sm:$0xff]  ;;  %v20475_v20 = vld [vmem:[#allocation68_spill] sm:$0xff] }
 0x594   : > { %20470 = vst [vmem:[#allocation346_spill] sm:$0xff] %v16797_v49  ;;  %10797 = vmatprep.mubr.msk.bf16.mxu1 %vm11191_vm0, %v19240_v61  ;;  %v16809_v41 = vpop.f32.mrf.mxu0  ;;  %v3227_v46 = vsel %vm12552_vm6, %v3222_v50, %v3226_v23  ;;  %v3236_v4 = vrot.slane %v3234_v39, 5  ;;  %v3240_v24 = vrot.slane %v3238_v16, 4  ;;  %v5387_v51 = vadd.f32 %v20474_v0, %v20473_v55 }
 0x595   : > { %v4273_v2 = vrot.slane %v20471_v32, 4  ;;  %20472 = vst [vmem:[#allocation321_spill] sm:$0xff] %v16809_v41  ;;  %v3244_v49 = vshll.u32 %v16788_v6, 16  ;;  %v3248_v53 = vshrl.u32 %v16788_v6, 16  ;;  %vm1790_vm13 = vcmp.eq.s32.totalorder %v20475_v20, 1  ;;  %v5889_v31 = vpop.f32.mrf.mxu1 }
 0x596   : > { %v11162_v32 = vld [vmem:[%s11299_s24 + $0x70] sm:$0xf]  ;;  %v10859_v12 = vpop.f32.mrf.mxu0  ;;  %v16826_v50 = vmax.bf16 %v6006_v44, %v16666_v35  ;;  %v6408_v39 = vmax.bf16 %v6005_v14, %v16646_v13  ;;  %v16829_v16 = vadd.f32 %v5889_v31, %v5387_v51  ;;  %v3602_v55 = vmax.bf16 %v3227_v46, %v16646_v13  ;;  %vm16843_vm15 = vmpackc.low %vm1790_vm13, %vm1790_vm13 }
 0x597   : > { %v16821_v56 = vsel %vm16793_vm11, %v11162_v32, -1.00492276e+30  ;;  %v4986_v0 = vmax.bf16 %v4442_v57, %v16646_v13  ;;  %v20478_v32 = vmax.bf16 %v16687_v15, %v16585_v34  ;;  %v10584_v23 = vpop.f32.mrf.mxu1  ;;  %v3241_v44 = vor.u32 %v3240_v24, %v3236_v4  ;;  %v20482_v57 = vld [vmem:[#allocation180_spill] sm:$0xff] }
 0x598   : > { %20476 = vst [vmem:[#allocation133_spill] sm:$0xff] %v16826_v50  ;;  %20477 = vst [vmem:[#allocation23_spill] sm:$0xff] %v16829_v16  ;;  %v16838_v41 = vpop.f32.mrf.mxu0  ;;  %v3254_v51 = vshll.u32 %v16821_v56, 16  ;;  %v3258_v14 = vshrl.u32 %v16821_v56, 16  ;;  %v5388_v16 = vadd.f32 %v20483_v1, %v20482_v57  ;;  %v20484_v15 = vrot.slane %v16666_v35, 5  ;;  %v20485_v50 = vld [vmem:[#allocation189_spill] sm:$0xff] }
 0x599   : > { %v5449_v12 = vmax.bf16 %v20478_v32, %v16804_v3  ;;  %20479 = vst [vmem:[#allocation323_spill] sm:$0xff] %v16838_v41  ;;  %v5450_v23 = vmax.bf16 %v4986_v0, %v3227_v46  ;;  %v3246_v20 = vrot.slane %v3244_v49, 5  ;;  %v3250_v32 = vrot.slane %v3248_v53, 4  ;;  %v5894_v63 = vpop.f32.mrf.mxu1  ;;  %v11163_v53 = vld [vmem:[%s11299_s24 + $0x74] sm:$0xf] }
 0x59a   : > { %v4275_v24 = vsel %vm12583_vm12, %v4273_v2, %v20484_v15  ;;  %v10860_v41 = vpop.f32.mrf.mxu0  ;;  %v6836_v30 = vmax.bf16 %v6408_v39, %v3227_v46  ;;  %v3601_v8 = vmax.bf16 %v16804_v3, %v16585_v34  ;;  %v20486_v1 = vrot.slane %v16646_v13, 5  ;;  %v20490_v0 = vld [vmem:[#allocation280_spill] sm:$0xff] }
 0x59b   : > { %10798 = vmatmul.mubr.msk.bf16.gmra.mxu1 %vm2056_vm9, %v20485_v50  ;;  %v16866_v2 = vadd.f32 %v5894_v63, %v5388_v16  ;;  %v20488_v49 = vrot.slane %v16788_v6, 5  ;;  %v16874_v46 = vmax.bf16 %v4275_v24, %v3602_v55  ;;  %v16880_v13 = vsel %vm16843_vm15, %v11163_v53, -1.00492276e+30  ;;  %v10587_v63 = vpop.f32.mrf.mxu1 }
 0x59c   : > { %v16864_v57 = vsel %vm12583_vm12, %v16696_v5, %v20486_v1  ;;  %10801 = vmatprep.mubr.msk.bf16.mxu1 %vm11191_vm0, %v19240_v61  ;;  %v16882_v5 = vpop.f32.mrf.mxu0  ;;  %v3242_v50 = vrot.slane %v3241_v44, 4  ;;  %v16884_v39 = vrot.slane %v3254_v51, 5  ;;  %v3260_v16 = vrot.slane %v3258_v14, 4  ;;  %v20492_v51 = vld [vmem:[#allocation70_spill] sm:$0xff] }
 0x59d   : > { %20487 = vst [vmem:[#allocation190_spill] sm:$0xff] %v16866_v2  ;;  %v16872_v41 = vrot.slane %v20488_v49, 4  ;;  %v6007_v34 = vmax.bf16 %v5449_v12, %v16864_v57  ;;  %20489 = vst [vmem:[#allocation295_spill] sm:$0xff] %v16882_v5  ;;  %v5389_v15 = vadd.f32 %v20490_v0, %v15438_v28  ;;  %v3251_v1 = vor.u32 %v3250_v32, %v3246_v20  ;;  %v5897_v53 = vpop.f32.mrf.mxu1  ;;  %v20496_v5 = vld [vmem:[#allocation69_spill] sm:$0xff] }
 0x59e   : > { %v6008_v55 = vmax.bf16 %v5450_v23, %v4275_v24  ;;  %v16890_v12 = vsel %vm12552_vm6, %v3232_v18, %v3236_v4  ;;  %v4277_v31 = vrot.slane %v16741_v22, 5  ;;  %v10863_v49 = vpop.f32.mrf.mxu0  ;;  %v3264_v2 = vshll.u32 %v16880_v13, 16 }
 0x59f   : > { %20491 = vst [vmem:[#allocation348_spill] sm:$0xff] %v16890_v12  ;;  %v3268_v44 = vshrl.u32 %v16880_v13, 16  ;;  %vm1792_vm2 = vcmp.eq.s32.totalorder %v20492_v51, 1  ;;  %v16896_v14 = vadd.f32 %v5897_v53, %v5389_v15  ;;  %v16898_v63 = vmax.bf16 %v6836_v30, %v4275_v24  ;;  %v10588_v32 = vpop.f32.mrf.mxu1  ;;  %v20497_v15 = vld [vmem:[#allocation184_spill] sm:$0xff]  ;;  %v20498_v30 = vld [vmem:[#allocation173_spill] sm:$0xff] }
 0x5a0   : > { %v4444_v18 = vmax.bf16 %v16864_v57, %v3601_v8  ;;  %v6410_v4 = vmax.bf16 %v6007_v34, %v16741_v22  ;;  %v16904_v23 = vpop.f32.mrf.mxu0  ;;  %v3247_v0 = vsel %vm12552_vm6, %v3242_v50, %v3246_v20  ;;  %v3261_v49 = vor.u32 %v3260_v16, %v16884_v39  ;;  %vm16920_vm4 = vmpackc.low %vm1792_vm2, %vm1792_vm2  ;;  %v20502_v32 = vld [vmem:[#allocation192_spill] sm:$0xff] }
 0x5a1   : > { %20493 = vst [vmem:[#allocation324_spill] sm:$0xff] %v16896_v14  ;;  %20494 = vst [vmem:[#allocation126_spill] sm:$0xff] %v16898_v63  ;;  %vm1791_vm3 = vcmp.eq.s32.totalorder %v20496_v5, 1  ;;  %v5390_v24 = vadd.f32 %v20498_v30, %v20497_v15  ;;  %v3252_v53 = vrot.slane %v3251_v1, 4  ;;  %v16913_v28 = vmax.bf16 %v6008_v55, %v16788_v6  ;;  %v5902_v16 = vpop.f32.mrf.mxu1  ;;  %v20509_v5 = vld [vmem:[#allocation11_spill] sm:$0xff] }
 0x5a2   : > { %20495 = vst [vmem:[#allocation129_spill] sm:$0xff] %v16904_v23  ;;  %v4279_v8 = vrot.slane %v4277_v31, 4  ;;  %v3603_v34 = vmax.bf16 %v16890_v12, %v16666_v35  ;;  %v10864_v50 = vpop.f32.mrf.mxu0  ;;  %v3266_v1 = vrot.slane %v3264_v2, 5  ;;  %v3270_v55 = vrot.slane %v3268_v44, 4  ;;  %vm16940_vm5 = vmpackc.low %vm1791_vm3, %vm1791_vm3  ;;  %v20514_v2 = vld [vmem:[#allocation282_spill] sm:$0xff] }
 0x5a3   : > { %20499 = vst [vmem:[#allocation25_spill] sm:$0xff] %v16913_v28  ;;  %10802 = vmatmul.mubr.msk.bf16.gmra.mxu1 %vm2056_vm9, %v20502_v32  ;;  %v20503_v15 = vmax.bf16 %v16780_v40, %v16666_v35  ;;  %v16930_v14 = vadd.f32 %v5902_v16, %v5390_v24  ;;  %v3604_v51 = vmax.bf16 %v3247_v0, %v16741_v22  ;;  %v4286_v28 = vrot.slane %v16880_v13, 5  ;;  %v10591_v40 = vpop.f32.mrf.mxu1 }
 0x5a4   : > { %10805 = vmatprep.mubr.msk.bf16.mxu1 %vm11191_vm0, %v19240_v61  ;;  %v4988_v50 = vmax.bf16 %v4444_v18, %v16741_v22  ;;  %v6838_v23 = vmax.bf16 %v6410_v4, %v3247_v0  ;;  %v16944_v35 = vpop.f32.mrf.mxu0  ;;  %v3262_v44 = vrot.slane %v3261_v49, 4  ;;  %v16949_v24 = vsel %vm12583_vm12, %v16778_v21, %v4277_v31  ;;  %v11164_v22 = vld [vmem:[%s11299_s24 + $0x7c] sm:$0xf] }
 0x5a5   : > { %v5451_v30 = vmax.bf16 %v20503_v15, %v16890_v12  ;;  %20504 = vst [vmem:[#allocation124_spill] sm:$0xff] %v16930_v14  ;;  %20507 = vst [vmem:[#allocation326_spill] sm:$0xff] %v16944_v35  ;;  %v16954_v18 = vsel %vm16920_vm4, %v11164_v22, -1.00492276e+30  ;;  %v5391_v4 = vadd.f32 %v20509_v5, %v15462_v52  ;;  %v20510_v16 = vrot.slane %v16788_v6, 5  ;;  %v5905_v40 = vpop.f32.mrf.mxu1  ;;  %v20515_v35 = vld [vmem:[#allocation200_spill] sm:$0xff] }
 0x5a6   : > { %20508 = vst [vmem:[#allocation195_spill] sm:$0xff] %v16949_v24  ;;  %v16964_v49 = vmax.bf16 %v4988_v50, %v3247_v0  ;;  %v4283_v15 = vrot.slane %v16821_v56, 5  ;;  %v4446_v21 = vmax.bf16 %v16949_v24, %v3603_v34  ;;  %v10867_v31 = vpop.f32.mrf.mxu0  ;;  %v3271_v20 = vor.u32 %v3270_v55, %v3266_v1  ;;  %v11165_v14 = vld [vmem:[%s11299_s24 + $0x78] sm:$0xf] }
 0x5a7   : > { %v16962_v32 = vsel %vm12583_vm12, %v4279_v8, %v20510_v16  ;;  %v6009_v22 = vmax.bf16 %v5451_v30, %v16949_v24  ;;  %v16972_v52 = vsel %vm16940_vm5, %v11165_v14, -1.00492276e+30  ;;  %v16974_v5 = vadd.f32 %v5905_v40, %v5391_v4  ;;  %v10592_v55 = vpop.f32.mrf.mxu1 }
 0x5a8   : > { %v16977_v8 = vmax.bf16 %v6838_v23, %v16962_v32  ;;  %v16979_v0 = vrot.slane %v4286_v28, 4  ;;  %v3284_v50 = vshll.u32 %v16954_v18, 16  ;;  %v3288_v34 = vshrl.u32 %v16954_v18, 16  ;;  %v16983_v16 = vpop.f32.mrf.mxu0 }
 0x5a9   : > { %20511 = vst [vmem:[#allocation299_spill] sm:$0xff] %v16974_v5  ;;  %20513 = vst [vmem:[#allocation197_spill] sm:$0xff] %v16983_v16  ;;  %v16986_v30 = vmax.bf16 %v16962_v32, %v3604_v51  ;;  %v16991_v14 = vsel %vm12552_vm6, %v3252_v53, %v16884_v39  ;;  %v3267_v23 = vsel %vm12552_vm6, %v3262_v44, %v3266_v1  ;;  %v4285_v31 = vrot.slane %v4283_v15, 4  ;;  %v5910_v16 = vpop.f32.mrf.mxu1 }
 0x5aa   : > { %20512 = vst [vmem:[#allocation351_spill] sm:$0xff] %v16977_v8  ;;  %v5392_v4 = vadd.f32 %v20514_v2, %v15472_v54  ;;  %v4990_v40 = vmax.bf16 %v4446_v21, %v16821_v56  ;;  %v3274_v5 = vshll.u32 %v16972_v52, 16  ;;  %v3278_v55 = vshrl.u32 %v16972_v52, 16  ;;  %v10868_v51 = vpop.f32.mrf.mxu0 }
 0x5ab   : > { %10806 = vmatmul.mubr.msk.bf16.gmra.mxu1 %vm2056_vm9, %v20515_v35  ;;  %v3272_v39 = vrot.slane %v3271_v20, 4  ;;  %v6010_v53 = vmax.bf16 %v16964_v49, %v16962_v32  ;;  %v6412_v1 = vmax.bf16 %v6009_v22, %v16821_v56  ;;  %v3606_v54 = vmax.bf16 %v3267_v23, %v16821_v56  ;;  %v10595_v35 = vpop.f32.mrf.mxu1  ;;  %v20518_v32 = vld [vmem:[#allocation73_spill] sm:$0xff]  ;;  %v20519_v49 = vld [vmem:[#allocation26_spill] sm:$0xff] }
 0x5ac   : > { %v17005_v44 = vadd.f32 %v5910_v16, %v5392_v4  ;;  %10809 = vmatprep.mubr.msk.bf16.mxu1 %vm11191_vm0, %v19240_v61  ;;  %v5454_v21 = vmax.bf16 %v4990_v40, %v3267_v23  ;;  %v17010_v2 = vrot.slane %v3284_v50, 5  ;;  %v3290_v51 = vrot.slane %v3288_v34, 4  ;;  %v17012_v8 = vpop.f32.mrf.mxu0  ;;  %v20520_v16 = vld [vmem:[#allocation2_spill] sm:$0xff] }
 0x5ad   : > { %20517 = vst [vmem:[#allocation27_spill] sm:$0xff] %v17012_v8  ;;  %v3605_v20 = vmax.bf16 %v16991_v14, %v16788_v6  ;;  %vm1794_vm7 = vcmp.eq.s32.totalorder %v20518_v32, 1  ;;  %v5393_v22 = vadd.f32 %v20519_v49, %v15484_v36  ;;  %v4287_v56 = vsel %vm12583_vm12, %v4285_v31, %v4286_v28  ;;  %v5913_v8 = vpop.f32.mrf.mxu1  ;;  %v20527_v31 = vld [vmem:[#allocation283_spill] sm:$0xff] }
 0x5ae   : > { %20516 = vst [vmem:[#allocation261_spill] sm:$0xff] %v17005_v44  ;;  %v3276_v40 = vrot.slane %v3274_v5, 5  ;;  %v3280_v50 = vrot.slane %v3278_v55, 4  ;;  %v4289_v34 = vrot.slane %v16972_v52, 5  ;;  %v10871_v44 = vpop.f32.mrf.mxu0  ;;  %v6840_v35 = vmax.bf16 %v6412_v1, %v3267_v23  ;;  %vm17041_vm10 = vmpackc.low %vm1794_vm7, %vm1794_vm7  ;;  %v20529_v55 = vld [vmem:[#allocation191_spill] sm:$0xff] }
 0x5af   : > { %v4292_v63 = vrot.slane %v16954_v18, 5  ;;  %v20521_v24 = vmax.bf16 %v16874_v46, %v16788_v6  ;;  %v17028_v36 = vadd.f32 %v5913_v8, %v5393_v22  ;;  %v3291_v49 = vor.u32 %v3290_v51, %v17010_v2  ;;  %v10596_v46 = vpop.f32.mrf.mxu1  ;;  %v20526_v8 = vld [vmem:[#allocation72_spill] sm:$0xff] }
 0x5b0   : > { %v17031_v4 = vmax.bf16 %v4287_v56, %v3606_v54  ;;  %v6012_v28 = vmax.bf16 %v5454_v21, %v4287_v56  ;;  %v17036_v5 = vsel %vm12583_vm12, %v16872_v41, %v4283_v15  ;;  %v17045_v6 = vpop.f32.mrf.mxu0  ;;  %vm1793_vm11 = vcmp.eq.s32.totalorder %v20526_v8, 1 }
 0x5b1   : > { %v5453_v12 = vmax.bf16 %v20521_v24, %v16991_v14  ;;  %20522 = vst [vmem:[#allocation32_spill] sm:$0xff] %v17028_v36  ;;  %20525 = vst [vmem:[#allocation327_spill] sm:$0xff] %v17045_v6  ;;  %v17048_v24 = vmax.bf16 %v17036_v5, %v3605_v20  ;;  %v6336_v41 = vadd.f32 %v20527_v31, %v15493_v60  ;;  %v20528_v15 = vrot.slane %v20520_v16, 4  ;;  %v6514_v22 = vpop.f32.mrf.mxu1  ;;  %v11166_v31 = vld [vmem:[%s11299_s24 + $0x84] sm:$0xf] }
 0x5b2   : > { %v20530_v1 = vrot.slane %v20529_v55, 4  ;;  %v17061_v21 = vmax.bf16 %v6010_v53, %v16880_v13  ;;  %v3281_v51 = vor.u32 %v3280_v50, %v3276_v40  ;;  %v4291_v20 = vrot.slane %v4289_v34, 4  ;;  %v10872_v32 = vpop.f32.mrf.mxu0  ;;  %vm17088_vm13 = vmpackc.low %vm1793_vm11, %vm1793_vm11 }
 0x5b3   : > { %v17066_v60 = vsel %vm12552_vm6, %v3272_v39, %v3276_v40  ;;  %v6011_v46 = vmax.bf16 %v5453_v12, %v17036_v5  ;;  %v6729_v55 = vadd.f32 %v6514_v22, %v6336_v41  ;;  %v17076_v53 = vmax.bf16 %v6840_v35, %v4287_v56  ;;  %v17095_v56 = vld [vmem:[%s18873_s5] ss:$0 sm:$0xff]  ;;  %v10715_v35 = vpop.f32.mrf.mxu1  ;;  %v20534_v41 = vld [vmem:[#allocation185_spill] sm:$0xff] }
 0x5b4   : > { %v6454_v44 = vsel %vm1988_vm8, %v20530_v1, %v20528_v15  ;;  %v17072_v15 = vsel %vm17041_vm10, %v11166_v31, -1.00492276e+30  ;;  %v17078_v50 = vrot.slane %v4292_v63, 4  ;;  %v17083_v39 = vmax.bf16 %v6012_v28, %v16954_v18  ;;  %v17097_v40 = vpop.f32.mrf.mxu0  ;;  %v20538_v35 = vld [vmem:[#allocation28_spill] sm:$0xff] }
 0x5b5   : > { %10810 = vmatmul.mubr.msk.bf16.gmra.mxu1 %vm2056_vm9, %v6454_v44  ;;  %20533 = vst [vmem:[#allocation203_spill] sm:$0xff] %v17097_v40  ;;  %v17099_v23 = vrot.slane %v3291_v49, 4  ;;  %v4992_v28 = vmax.bf16 %v17048_v24, %v16972_v52  ;;  %v7160_v8 = vadd.f32 %v16216_v17, %v6729_v55  ;;  %v6337_v44 = vadd.f32 %v20534_v41, %v15505_v10  ;;  %v6517_v1 = vpop.f32.mrf.mxu1  ;;  %v11167_v24 = vld [vmem:[%s11299_s24 + $0x80] sm:$0xf] }
 0x5b6   : > { %10813 = vmatprep.mubr.msk.bf16.mxu1 %vm11191_vm0, %v19240_v61  ;;  %v3282_v32 = vrot.slane %v3281_v51, 4  ;;  %v17108_v22 = vsel %vm12583_vm12, %v4291_v20, %v4292_v63  ;;  %v3304_v31 = vshll.u32 %v17072_v15, 16  ;;  %v10875_v49 = vpop.f32.mrf.mxu0  ;;  %v6414_v54 = vmax.bf16 %v6011_v46, %v16972_v52 }
 0x5b7   : > { %v17117_v17 = vsel %vm17088_vm13, %v11167_v24, -1.00492276e+30  ;;  %v7292_v10 = vadd.f32 %v17095_v56, %v7160_v8  ;;  %v6730_v51 = vadd.f32 %v6517_v1, %v6337_v44  ;;  %v3308_v63 = vshrl.u32 %v17072_v15, 16  ;;  %v10716_v46 = vpop.f32.mrf.mxu1  ;;  %v20536_v8 = vld [vmem:[#allocation300_spill] sm:$0xff] }
 0x5b8   : > { %v17125_v55 = vsel %vm12583_vm12, %v16979_v0, %v4289_v34  ;;  %v17127_v41 = vpop.f32.mrf.mxu0  ;;  %v6823_v12 = vmax.bf16 %v16065_v47, %v16183_v48  ;;  %v20537_v1 = vld [vmem:[#allocation212_spill] sm:$0xff]  ;;  %v20539_v36 = vrot.slane %v20538_v35, 4  ;;  %v20540_v20 = vrot.slane %v20520_v16, 4 }
 0x5b9   : > { %20535 = vst [vmem:[#allocation16_spill] sm:$0xff] %v17127_v41  ;;  %v7346_v49 = vmax.f32 %v7292_v10, 0.0  ;;  %v7161_v24 = vadd.f32 %v16254_v11, %v6730_v51  ;;  %v6338_v44 = vadd.f32 %v20537_v1, %v20536_v8  ;;  %v3287_v0 = vsel %vm12552_vm6, %v3282_v32, %v17010_v2  ;;  %v6522_v10 = vpop.f32.mrf.mxu1  ;;  %v20542_v1 = vld [vmem:[#allocation199_spill] sm:$0xff] }
 0x5ba   : > { %v6456_v40 = vsel %vm1988_vm8, %v20540_v20, %v20539_v36  ;;  %v17142_v34 = vrot.slane %v3304_v31, 5  ;;  %v3294_v47 = vshll.u32 %v17117_v17, 16  ;;  %v3298_v48 = vshrl.u32 %v17117_v17, 16  ;;  %v10876_v11 = vpop.f32.mrf.mxu0 }
 0x5bb   : > { %v7293_v35 = vadd.f32 %v17095_v56, %v7161_v24  ;;  %v6731_v51 = vadd.f32 %v6522_v10, %v6338_v44  ;;  %8458 = vrot.lane.b32.xlu0 %v7346_v49, %s11193_s14  ;;  %v7548_v2 = vshrl.u32 %v16132_v9, 16  ;;  %v7551_v16 = vshll.u32 %v16132_v9, 16  ;;  %v10719_v31 = vpop.f32.mrf.mxu1  ;;  %v20543_v44 = vld [vmem:[#allocation198_spill] sm:$0xff] }
 0x5bc   : > { %v17153_v36 = vrot.slane %v3308_v63, 4  ;;  %v17155_v32 = vpop.f32.mrf.mxu0  ;;  %v7559_v20 = vshll.u32 %v16252_v25, 16  ;;  %v7235_v46 = vmax.bf16 %v6823_v12, %v16214_v26  ;;  %v3608_v49 = vmax.bf16 %v3287_v0, %v16972_v52 }
 0x5bd   : > { %10814 = vmatmul.mubr.msk.bf16.gmra.mxu1 %vm2056_vm9, %v6456_v40  ;;  %20541 = vst [vmem:[#allocation130_spill] sm:$0xff] %v17155_v32  ;;  %v7556_v40 = vshrl.u32 %v16252_v25, 16  ;;  %v7347_v24 = vmax.f32 %v7293_v35, 0.0  ;;  %v7162_v8 = vadd.f32 %v16296_v43, %v6731_v51  ;;  %v6339_v11 = vadd.f32 %v20543_v44, %v20542_v1  ;;  %v6525_v41 = vpop.f32.mrf.mxu1 }
 0x5be   : > { %10817 = vmatprep.mubr.msk.bf16.mxu1 %vm11191_vm0, %v19240_v61  ;;  %v17164_v9 = vmax.bf16 %v4992_v28, %v3287_v0  ;;  %v6842_v63 = vmax.bf16 %v6414_v54, %v3287_v0  ;;  %v3296_v10 = vrot.slane %v3294_v47, 5  ;;  %v3300_v32 = vrot.slane %v3298_v48, 4  ;;  %v10879_v31 = vpop.f32.mrf.mxu0  ;;  %v20545_v48 = vld [vmem:[#allocation301_spill] sm:$0xff] }
 0x5bf   : > { %v7294_v6 = vadd.f32 %v17095_v56, %v7162_v8  ;;  %v6732_v25 = vadd.f32 %v6525_v41, %v6339_v11  ;;  %8460 = vrot.lane.b32.xlu1 %v7347_v24, %s11193_s14  ;;  %v7550_v26 = vrot.slane %v7548_v2, 3  ;;  %v7553_v52 = vrot.slane %v7551_v16, 4  ;;  %v10720_v43 = vpop.f32.mrf.mxu1  ;;  %v20546_v24 = vld [vmem:[#allocation310_spill] sm:$0xff] }
 0x5c0   : > { %v17168_v12 = vpop.f32.mrf.mxu0  ;;  %v7558_v35 = vrot.slane %v7556_v40, 3  ;;  %v7561_v51 = vrot.slane %v7559_v20, 4  ;;  %v9422_v28 = vcombine.low %v16164_v62, %v7235_v46  ;;  %v6825_v54 = vmax.bf16 %v16247_v33, %v16311_v42  ;;  %v20552_v43 = vld [vmem:[#allocation18_spill] sm:$0xff] }
 0x5c1   : > { %20544 = vst [vmem:[#allocation328_spill] sm:$0xff] %v17168_v12  ;;  %v3311_v0 = vor.u32 %v17153_v36, %v17142_v34  ;;  %v7348_v47 = vmax.f32 %v7294_v6, 0.0  ;;  %v7163_v41 = vadd.f32 %v16328_v58, %v6732_v25  ;;  %v6340_v2 = vadd.f32 %v20546_v24, %v20545_v48  ;;  %v6530_v36 = vpop.f32.mrf.mxu1  ;;  %v20548_v58 = vld [vmem:[#allocation277_spill] sm:$0xff]  ;;  %v20551_v25 = vld [vmem:[#allocation230_spill] sm:$0xff] }
 0x5c2   : > { %v17179_v16 = vmax.bf16 %v6842_v63, %v17108_v22  ;;  %v17182_v40 = vmax.bf16 %v17108_v22, %v3608_v49  ;;  %v6014_v62 = vmax.bf16 %v17164_v9, %v17108_v22  ;;  %v20547_v33 = vmax.bf16 %v16986_v30, %v16880_v13  ;;  %v10880_v6 = vpop.f32.mrf.mxu0  ;;  %v20594_v12 = vld [vmem:[#allocation101_spill] sm:$0xff] }
 0x5c3   : > { %v20549_v20 = vrot.slane %v17072_v15, 5  ;;  %v3301_v8 = vor.u32 %v3300_v32, %v3296_v10  ;;  %v7295_v49 = vadd.f32 %v17095_v56, %v7163_v41  ;;  %v6733_v1 = vadd.f32 %v6530_v36, %v6340_v2  ;;  %8462 = vrot.lane.b32.xlu0 %v7348_v47, %s11193_s14  ;;  %v10723_v22 = vpop.f32.mrf.mxu1  ;;  %v20553_v41 = vld [vmem:[#allocation286_spill] sm:$0xff] }
 0x5c4   : > { %v5455_v42 = vmax.bf16 %v20547_v33, %v17066_v60  ;;  %v17200_v30 = vpop.f32.mrf.mxu0  ;;  %v7554_v44 = vor.u32 %v7553_v52, %v7550_v26  ;;  %v17202_v11 = vor.u32 %v7561_v51, %v7558_v35  ;;  %v7565_v9 = vshrl.u32 %v9422_v28, 16  ;;  %v20559_v22 = vld [vmem:[#allocation7_spill] sm:$0xff] }
 0x5c5   : > { %10818 = vmatmul.mubr.msk.bf16.gmra.mxu1 %vm2056_vm9, %v20548_v58  ;;  %v17194_v46 = vrot.slane %v20549_v20, 4  ;;  %20550 = vst [vmem:[#allocation211_spill] sm:$0xff] %v17200_v30  ;;  %v7237_v63 = vmax.bf16 %v6825_v54, %v16353_v19  ;;  %v7349_v31 = vmax.f32 %v7295_v49, 0.0  ;;  %v7164_v32 = vadd.f32 %v20551_v25, %v6733_v1  ;;  %v6533_v35 = vpop.f32.mrf.mxu1  ;;  %v20554_v54 = vld [vmem:[#allocation77_spill] sm:$0xff]  ;;  %v20593_v30 = vld [vmem:[#allocation3_spill] sm:$0xff] }
 0x5c6   : > { %10935 = vmatprep.mubr.msk.bf16.mxu1 %vm11191_vm0, %v19240_v61  ;;  %v6341_v48 = vadd.f32 %v20553_v41, %v20552_v43  ;;  %v7568_v24 = vshll.u32 %v9422_v28, 16  ;;  %v17213_v2 = vsel %vm12552_vm6, %v17099_v23, %v3296_v10  ;;  %v19227_v26 = vrot.slane %v17117_v17, 5  ;;  %v10883_v19 = vpop.f32.mrf.mxu0  ;;  %v20556_v58 = vld [vmem:[#allocation5_spill] sm:$0xff]  ;;  %v20560_v43 = vld [vmem:[#allocation106_spill] sm:$0xff] }
 0x5c7   : > { %v6013_v52 = vmax.bf16 %v5455_v42, %v17125_v55  ;;  %v3302_v51 = vrot.slane %v3301_v8, 4  ;;  %vm1796_vm8 = vcmp.eq.s32.totalorder %v20554_v54, 1  ;;  %v7296_v33 = vadd.f32 %v17095_v56, %v7164_v32  ;;  %8464 = vrot.lane.b32.xlu1 %v7349_v31, %s11193_s14  ;;  %v10724_v36 = vpop.f32.mrf.mxu1  ;;  %v20557_v42 = vld [vmem:[#allocation182_spill] sm:$0xff]  ;;  %v20558_v49 = vld [vmem:[#allocation125_spill] sm:$0xff]  ;;  %v20570_v54 = vld [vmem:[#allocation288_spill] sm:$0xff] }
 0x5c8   : > { %v6734_v28 = vadd.f32 %v6533_v35, %v6341_v48  ;;  %v17220_v6 = vpop.f32.mrf.mxu0  ;;  %v7563_v23 = vsel %vm2387_vm14, %v7554_v44, %v17202_v11  ;;  %v7567_v10 = vrot.slane %v7565_v9, 3  ;;  %v9423_v20 = vcombine.low %v20556_v58, %v7237_v63  ;;  %v20561_v32 = vld [vmem:[#allocation202_spill] sm:$0xff]  ;;  %vm17253_vm15 = vmpackc.low %vm1796_vm8, %vm1796_vm8  ;;  %v20567_v58 = vld [vmem:[#allocation8_spill] sm:$0xff] }
 0x5c9   : > { %20555 = vst [vmem:[#allocation329_spill] sm:$0xff] %v17220_v6  ;;  %v6827_v1 = vmax.bf16 %v20558_v49, %v20557_v42  ;;  %v7350_v8 = vmax.f32 %v7296_v33, 0.0  ;;  %v6342_v41 = vadd.f32 %v20561_v32, %v20560_v43  ;;  %v7570_v48 = vrot.slane %v7568_v24, 4  ;;  %v6538_v33 = vpop.f32.mrf.mxu1 }
 0x5ca   : > { %v7165_v25 = vadd.f32 %v20559_v22, %v6734_v28  ;;  %v17231_v31 = vmax.bf16 %v6014_v62, %v17072_v15  ;;  %v4297_v19 = vrot.slane %v19227_v26, 4  ;;  %v20562_v44 = vmax.bf16 %v17066_v60, %v16880_v13  ;;  %v10884_v35 = vpop.f32.mrf.mxu0 }
 0x5cb   : > { %v6416_v63 = vmax.bf16 %v6013_v52, %v17117_v17  ;;  %v17241_v28 = vrot.slane %v3311_v0, 4  ;;  %v3307_v62 = vsel %vm12552_vm6, %v3302_v51, %v17142_v34  ;;  %v6735_v36 = vadd.f32 %v6538_v33, %v6342_v41  ;;  %8466 = vrot.lane.b32.xlu0 %v7350_v8, %s11193_s14  ;;  %v20565_v0 = vld [vmem:[#allocation76_spill] sm:$0xff]  ;;  %v10727_v34 = vpop.f32.mrf.mxu1  ;;  %v20568_v8 = vld [vmem:[#allocation241_spill] sm:$0xff] }
 0x5cc   : > { %v4450_v9 = vmax.bf16 %v17125_v55, %v20562_v44  ;;  %v7297_v24 = vadd.f32 %v17095_v56, %v7165_v25  ;;  %vm1795_vm2 = vcmp.eq.s32.totalorder %v20565_v0, 1  ;;  %v17258_v52 = vpop.f32.mrf.mxu0  ;;  %v7574_v51 = vshrl.u32 %v9423_v20, 16  ;;  %v20569_v25 = vld [vmem:[#allocation302_spill] sm:$0xff]  ;;  %v11168_v34 = vld [vmem:[%s11299_s24 + $0x8c] sm:$0xf]  ;;  %v20579_v0 = vld [vmem:[#allocation325_spill] sm:$0xff] }
 0x5cd   : > { %10936 = vmatmul.mubr.msk.bf16.vlgmr.msra.gmra.mxu1 %vm601_vm1, %v7563_v23  ;;  %20566 = vst [vmem:[#allocation144_spill] sm:$0xff] %v17258_v52  ;;  %v7577_v23 = vshll.u32 %v9423_v20, 16  ;;  %v7239_v42 = vmax.bf16 %v6827_v1, %v20567_v58  ;;  %v7166_v22 = vadd.f32 %v20568_v8, %v6735_v36  ;;  %v6343_v43 = vadd.f32 %v20570_v54, %v20569_v25  ;;  %vm17286_vm3 = vmpackc.low %vm1795_vm2, %vm1795_vm2  ;;  %v20575_v25 = vld [vmem:[#allocation236_spill] sm:$0xff] }
 0x5ce   : > { %10939 = vmatprep.mubr.msk.bf16.mxu1 %vm11191_vm0, %v19240_v61  ;;  %v7351_v49 = vmax.f32 %v7297_v24, 0.0  ;;  %v17264_v32 = vor.u32 %v7570_v48, %v7567_v10  ;;  %v3610_v41 = vmax.bf16 %v3307_v62, %v17117_v17  ;;  %v20571_v44 = vrot.slane %v17072_v15, 5  ;;  %v10887_v33 = vpop.f32.mrf.mxu0  ;;  %v6541_v24 = vpop.f32.mrf.mxu1 }
 0x5cf   : > { %v4994_v20 = vmax.bf16 %v4450_v9, %v17117_v17  ;;  %v6844_v36 = vmax.bf16 %v6416_v63, %v3307_v62  ;;  %v17279_v10 = vsel %vm17253_vm15, %v11168_v34, -1.00492276e+30  ;;  %v7298_v48 = vadd.f32 %v17095_v56, %v7166_v22  ;;  %v20577_v22 = vld [vmem:[#allocation340_spill] sm:$0xff]  ;;  %v20580_v34 = vld [vmem:[#allocation215_spill] sm:$0xff] }
 0x5d0   : > { %v17271_v35 = vsel %vm12583_vm12, %v4297_v19, %v20571_v44  ;;  %v6736_v58 = vadd.f32 %v6541_v24, %v6343_v43  ;;  %8468 = vrot.lane.b32.xlu1 %v7351_v49, %s11193_s14  ;;  %v17290_v9 = vpop.f32.mrf.mxu0  ;;  %v10728_v63 = vpop.f32.mrf.mxu1  ;;  %v7576_v8 = vrot.slane %v7574_v51, 3  ;;  %v7579_v13 = vrot.slane %v7577_v23, 4  ;;  %v20576_v44 = vld [vmem:[#allocation312_spill] sm:$0xff]  ;;  %v20578_v49 = vld [vmem:[#allocation238_spill] sm:$0xff] }
 0x5d1   : > { %20574 = vst [vmem:[#allocation330_spill] sm:$0xff] %v17290_v9  ;;  %v9424_v54 = vcombine.low %v20575_v25, %v7239_v42  ;;  %v6829_v43 = vmax.bf16 %v20577_v22, %v20576_v44  ;;  %v7352_v33 = vmax.f32 %v7298_v48, 0.0  ;;  %v6344_v47 = vadd.f32 %v20580_v34, %v20579_v0  ;;  %v20583_v0 = vld [vmem:[#allocation243_spill] sm:$0xff] }
 0x5d2   : > { %v7167_v24 = vadd.f32 %v20578_v49, %v6736_v58  ;;  %v7572_v1 = vsel %vm2387_vm14, %v17202_v11, %v17264_v32  ;;  %v5458_v26 = vmax.bf16 %v4994_v20, %v3307_v62  ;;  %v3324_v51 = vshll.u32 %v17279_v10, 16  ;;  %v10888_v63 = vpop.f32.mrf.mxu0  ;;  %v6546_v25 = vpop.f32.mrf.mxu1  ;;  %v11169_v58 = vld [vmem:[%s11299_s24 + $0x88] sm:$0xf] }
 0x5d3   : > { %v3328_v23 = vshrl.u32 %v17279_v10, 16  ;;  %v17306_v48 = vmax.bf16 %v6844_v36, %v17271_v35  ;;  %v17311_v44 = vsel %vm17286_vm3, %v11169_v58, -1.00492276e+30  ;;  %v6737_v62 = vadd.f32 %v6546_v25, %v6344_v47  ;;  %8470 = vrot.lane.b32.xlu0 %v7352_v33, %s11193_s14  ;;  %v20584_v63 = vld [vmem:[#allocation342_spill] sm:$0xff]  ;;  %v20586_v47 = vld [vmem:[#allocation289_spill] sm:$0xff] }
 0x5d4   : > { %v7299_v11 = vadd.f32 %v17095_v56, %v7167_v24  ;;  %v17318_v20 = vmax.bf16 %v17271_v35, %v3610_v41  ;;  %v10731_v36 = vpop.f32.mrf.mxu1  ;;  %v7583_v22 = vshrl.u32 %v9424_v54, 16  ;;  %v7586_v49 = vshll.u32 %v9424_v54, 16  ;;  %v20585_v24 = vld [vmem:[#allocation19_spill] sm:$0xff] }
 0x5d5   : > { %10940 = vmatmul.mubr.msk.bf16.gmra.mxu1 %vm601_vm1, %v7572_v1  ;;  %20581 = vst [vmem:[#allocation214_spill] sm:$0xff] %v17306_v48  ;;  %v17320_v1 = vpop.f32.mrf.mxu0  ;;  %v7241_v19 = vmax.bf16 %v6829_v43, %v20583_v0  ;;  %v7168_v58 = vadd.f32 %v20584_v63, %v6737_v62  ;;  %v6345_v25 = vadd.f32 %v20586_v47, %v20585_v24  ;;  %v17328_v42 = vrot.slane %v3324_v51, 5  ;;  %v20587_v43 = vld [vmem:[#allocation79_spill] sm:$0xff]  ;;  %v20591_v24 = vld [vmem:[#allocation246_spill] sm:$0xff] }
 0x5d6   : > { %10943 = vmatprep.mubr.msk.bf16.mxu1 %vm11191_vm0, %v19240_v61  ;;  %20582 = vst [vmem:[#allocation332_spill] sm:$0xff] %v17320_v1  ;;  %v7353_v34 = vmax.f32 %v7299_v11, 0.0  ;;  %v17326_v33 = vor.u32 %v7579_v13, %v7576_v8  ;;  %v6016_v41 = vmax.bf16 %v5458_v26, %v17271_v35  ;;  %v3314_v9 = vshll.u32 %v17311_v44, 16  ;;  %v6549_v54 = vpop.f32.mrf.mxu1  ;;  %v20589_v35 = vld [vmem:[#allocation281_spill] sm:$0xff]  ;;  %v20590_v63 = vld [vmem:[#allocation315_spill] sm:$0xff] }
 0x5d7   : > { %v3318_v36 = vshrl.u32 %v17311_v44, 16  ;;  %v10891_v1 = vpop.f32.mrf.mxu0  ;;  %v17333_v52 = vrot.slane %v3328_v23, 4  ;;  %vm1798_vm4 = vcmp.eq.s32.totalorder %v20587_v43, 1  ;;  %v7300_v11 = vadd.f32 %v17095_v56, %v7168_v58  ;;  %v20592_v23 = vld [vmem:[#allocation314_spill] sm:$0xff] }
 0x5d8   : > { %v6738_v62 = vadd.f32 %v6549_v54, %v6345_v25  ;;  %8472 = vrot.lane.b32.xlu1 %v7353_v34, %s11193_s14  ;;  %v10732_v13 = vpop.f32.mrf.mxu1  ;;  %v7585_v51 = vrot.slane %v7583_v22, 3  ;;  %v7588_v26 = vrot.slane %v7586_v49, 4  ;;  %v9425_v0 = vcombine.low %v20589_v35, %v7241_v19  ;;  %vm17374_vm5 = vmpackc.low %vm1798_vm4, %vm1798_vm4 }
 0x5d9   : > { %v17338_v8 = vpop.f32.mrf.mxu0  ;;  %v6831_v1 = vmax.bf16 %v20591_v24, %v20590_v63  ;;  %v7354_v47 = vmax.f32 %v7300_v11, 0.0  ;;  %v6346_v48 = vadd.f32 %v20594_v12, %v20593_v30  ;;  %v7581_v34 = vsel %vm2387_vm14, %v17264_v32, %v17326_v33  ;;  %v20601_v63 = vld [vmem:[#allocation14_spill] sm:$0xff] }
 0x5da   : > { %20588 = vst [vmem:[#allocation218_spill] sm:$0xff] %v17338_v8  ;;  %v7169_v6 = vadd.f32 %v20592_v23, %v6738_v62  ;;  %v3316_v22 = vrot.slane %v3314_v9, 5  ;;  %v3320_v49 = vrot.slane %v3318_v36, 4  ;;  %v19228_v19 = vrot.slane %v17311_v44, 5  ;;  %v6554_v54 = vpop.f32.mrf.mxu1  ;;  %v20612_v8 = vld [vmem:[#allocation174_spill] sm:$0xff] }
 0x5db   : > { %v10892_v25 = vpop.f32.mrf.mxu0  ;;  %v20595_v11 = vrot.slane %v17279_v10, 5  ;;  %v17358_v12 = vmax.bf16 %v6016_v41, %v17279_v10  ;;  %v6739_v32 = vadd.f32 %v6554_v54, %v6346_v48  ;;  %8474 = vrot.lane.b32.xlu0 %v7354_v47, %s11193_s14  ;;  %v20597_v9 = vrot.slane %v17117_v17, 5  ;;  %v20602_v47 = vld [vmem:[#allocation284_spill] sm:$0xff] }
 0x5dc   : > { %v7301_v30 = vadd.f32 %v17095_v56, %v7169_v6  ;;  %v10735_v48 = vpop.f32.mrf.mxu1  ;;  %v7592_v13 = vshrl.u32 %v9425_v0, 16  ;;  %v7595_v35 = vshll.u32 %v9425_v0, 16  ;;  %v7243_v17 = vmax.bf16 %v6831_v1, %v20601_v63  ;;  %v11170_v63 = vld [vmem:[%s11299_s24 + $0x94] sm:$0xf] }
 0x5dd   : > { %10944 = vmatmul.mubr.msk.bf16.gmra.mxu1 %vm601_vm1, %v7581_v34  ;;  %v17355_v62 = vrot.slane %v20595_v11, 4  ;;  %20596 = vst [vmem:[#allocation271_spill] sm:$0xff] %v17358_v12  ;;  %v17369_v36 = vsel %vm12583_vm12, %v17078_v50, %v20597_v9  ;;  %v17378_v6 = vpop.f32.mrf.mxu0  ;;  %v7170_v23 = vadd.f32 %v20602_v47, %v6739_v32  ;;  %v20603_v50 = vld [vmem:[#allocation304_spill] sm:$0xff]  ;;  %v20604_v34 = vld [vmem:[#allocation219_spill] sm:$0xff]  ;;  %v7589_v43 = vor.u32 %v7588_v26, %v7585_v51  ;;  %v20607_v26 = vld [vmem:[#allocation78_spill] sm:$0xff] }
 0x5de   : > { %10947 = vmatprep.mubr.msk.bf16.mxu1 %vm11191_vm0, %v19240_v61  ;;  %20600 = vst [vmem:[#allocation223_spill] sm:$0xff] %v17378_v6  ;;  %v7355_v24 = vmax.f32 %v7301_v30, 0.0  ;;  %v6347_v25 = vadd.f32 %v20604_v34, %v20603_v50  ;;  %v3321_v54 = vor.u32 %v3320_v49, %v3316_v22  ;;  %v4303_v11 = vrot.slane %v19228_v19, 4  ;;  %v6557_v32 = vpop.f32.mrf.mxu1  ;;  %v20611_v6 = vld [vmem:[#allocation193_spill] sm:$0xff] }
 0x5df   : > { %v20605_v9 = vmax.bf16 %v17213_v2, %v16954_v18  ;;  %v20606_v0 = vmax.bf16 %v17031_v4, %v16954_v18  ;;  %v10895_v30 = vpop.f32.mrf.mxu0  ;;  %v17399_v51 = vsel %vm17374_vm5, %v11170_v63, -1.00492276e+30  ;;  %vm1797_vm7 = vcmp.eq.s32.totalorder %v20607_v26, 1  ;;  %v20608_v4 = vld [vmem:[#allocation344_spill] sm:$0xff]  ;;  %v20610_v63 = vld [vmem:[#allocation317_spill] sm:$0xff] }
 0x5e0   : > { %v7302_v49 = vadd.f32 %v17095_v56, %v7170_v23  ;;  %v6740_v47 = vadd.f32 %v6557_v32, %v6347_v25  ;;  %8476 = vrot.lane.b32.xlu1 %v7355_v24, %s11193_s14  ;;  %v10736_v34 = vpop.f32.mrf.mxu1  ;;  %v7597_v18 = vrot.slane %v7595_v35, 4  ;;  %v20609_v30 = vld [vmem:[#allocation244_spill] sm:$0xff]  ;;  %v6348_v12 = vadd.f32 %v20612_v8, %v20611_v6  ;;  %vm17429_vm10 = vmpackc.low %vm1797_vm7, %vm1797_vm7 }
 0x5e1   : > { %v17390_v48 = vmax.bf16 %v17369_v36, %v20605_v9  ;;  %v5457_v1 = vmax.bf16 %v20606_v0, %v17213_v2  ;;  %v17404_v50 = vpop.f32.mrf.mxu0  ;;  %v7594_v9 = vrot.slane %v7592_v13, 3  ;;  %v9426_v0 = vcombine.low %v20608_v4, %v7243_v17  ;;  %v20617_v34 = vld [vmem:[#allocation196_spill] sm:$0xff]  ;;  %v20618_v4 = vld [vmem:[#allocation290_spill] sm:$0xff] }
 0x5e2   : > { %v6833_v58 = vmax.bf16 %v20609_v30, %v16726_v59  ;;  %v7356_v41 = vmax.f32 %v7302_v49, 0.0  ;;  %v7171_v19 = vadd.f32 %v20610_v63, %v6740_v47  ;;  %v7590_v23 = vsel %vm2387_vm14, %v17326_v33, %v7589_v43  ;;  %v6562_v25 = vpop.f32.mrf.mxu1  ;;  %v20616_v49 = vld [vmem:[#allocation201_spill] sm:$0xff] }
 0x5e3   : > { %v3331_v24 = vor.u32 %v17333_v52, %v17328_v42  ;;  %v17419_v13 = vsel %vm12552_vm6, %v17241_v28, %v3316_v22  ;;  %v4996_v59 = vmax.bf16 %v17390_v48, %v17311_v44  ;;  %v6015_v35 = vmax.bf16 %v5457_v1, %v17369_v36  ;;  %v10896_v17 = vpop.f32.mrf.mxu0 }
 0x5e4   : > { %v3322_v8 = vrot.slane %v3321_v54, 4  ;;  %v3344_v33 = vshll.u32 %v17399_v51, 16  ;;  %v7303_v28 = vadd.f32 %v17095_v56, %v7171_v19  ;;  %v6741_v22 = vadd.f32 %v6562_v25, %v6348_v12  ;;  %8478 = vrot.lane.b32.xlu0 %v7356_v41, %s11193_s14  ;;  %v10739_v1 = vpop.f32.mrf.mxu1  ;;  %v11171_v17 = vld [vmem:[%s11299_s24 + $0x90] sm:$0xf] }
 0x5e5   : > { %10948 = vmatmul.mubr.msk.bf16.gmra.mxu1 %vm601_vm1, %v7590_v23  ;;  %v20615_v6 = vrot.slane %v17279_v10, 5  ;;  %v17443_v48 = vpop.f32.mrf.mxu0  ;;  %v17445_v32 = vor.u32 %v7597_v18, %v7594_v9  ;;  %v7601_v26 = vshrl.u32 %v9426_v0, 16  ;;  %v7245_v19 = vmax.bf16 %v6833_v58, %v16754_v38 }
 0x5e6   : > { %10951 = vmatprep.mubr.msk.bf16.mxu1 %vm11191_vm0, %v19240_v61  ;;  %v7357_v12 = vmax.f32 %v7303_v28, 0.0  ;;  %v7172_v47 = vadd.f32 %v20616_v49, %v6741_v22  ;;  %v6349_v30 = vadd.f32 %v20618_v4, %v20617_v34  ;;  %v7604_v41 = vshll.u32 %v9426_v0, 16  ;;  %v6565_v38 = vpop.f32.mrf.mxu1 }
 0x5e7   : > { %v17441_v54 = vsel %vm12583_vm12, %v4303_v11, %v20615_v6  ;;  %v6418_v63 = vmax.bf16 %v6015_v35, %v17311_v44  ;;  %v3348_v11 = vshrl.u32 %v17399_v51, 16  ;;  %v19229_v23 = vrot.slane %v17399_v51, 5  ;;  %v10899_v18 = vpop.f32.mrf.mxu0 }
 0x5e8   : > { %v17457_v9 = vsel %vm17429_vm10, %v11171_v17, -1.00492276e+30  ;;  %v3327_v58 = vsel %vm12552_vm6, %v3322_v8, %v17328_v42  ;;  %v17462_v25 = vrot.slane %v3344_v33, 5  ;;  %v7304_v0 = vadd.f32 %v17095_v56, %v7172_v47  ;;  %8480 = vrot.lane.b32.xlu1 %v7357_v12, %s11193_s14  ;;  %v10740_v22 = vpop.f32.mrf.mxu1  ;;  %v20619_v33 = vld [vmem:[#allocation122_spill] sm:$0xff]  ;;  %v20620_v47 = vld [vmem:[#allocation316_spill] sm:$0xff] }
 0x5e9   : > { %v6742_v35 = vadd.f32 %v6565_v38, %v6349_v30  ;;  %v17466_v28 = vpop.f32.mrf.mxu0  ;;  %v7599_v52 = vsel %vm2387_vm14, %v7589_v43, %v17445_v32  ;;  %v7603_v6 = vrot.slane %v7601_v26, 3  ;;  %v9427_v1 = vcombine.low %v16718_v7, %v7245_v19 }
 0x5ea   : > { %v6835_v49 = vmax.bf16 %v16772_v29, %v16804_v3  ;;  %v7358_v42 = vmax.f32 %v7304_v0, 0.0  ;;  %v6350_v34 = vadd.f32 %v20620_v47, %v20619_v33  ;;  %v7606_v4 = vrot.slane %v7604_v41, 4  ;;  %v6570_v18 = vpop.f32.mrf.mxu1 }
 0x5eb   : > { %v7173_v8 = vadd.f32 %v16690_v37, %v6742_v35  ;;  %v3612_v12 = vmax.bf16 %v3327_v58, %v17311_v44  ;;  %v3350_v30 = vrot.slane %v3348_v11, 4  ;;  %v3334_v17 = vshll.u32 %v17457_v9, 16  ;;  %v10900_v26 = vpop.f32.mrf.mxu0 }
 0x5ec   : > { %v3338_v43 = vshrl.u32 %v17457_v9, 16  ;;  %v3332_v7 = vrot.slane %v3331_v24, 4  ;;  %v6846_v29 = vmax.bf16 %v6418_v63, %v3327_v58  ;;  %v6743_v37 = vadd.f32 %v6570_v18, %v6350_v34  ;;  %8482 = vrot.lane.b32.xlu0 %v7358_v42, %s11193_s14  ;;  %v10743_v11 = vpop.f32.mrf.mxu1  ;;  %v20622_v24 = vld [vmem:[#allocation22_spill] sm:$0xff] }
 0x5ed   : > { %10952 = vmatmul.mubr.msk.bf16.gmra.mxu1 %vm601_vm1, %v7599_v52  ;;  %v7305_v3 = vadd.f32 %v17095_v56, %v7173_v8  ;;  %v17484_v19 = vmax.bf16 %v4996_v59, %v3327_v58  ;;  %v17486_v41 = vpop.f32.mrf.mxu0  ;;  %v7610_v38 = vshrl.u32 %v9427_v1, 16  ;;  %v7613_v0 = vshll.u32 %v9427_v1, 16  ;;  %v20623_v52 = vld [vmem:[#allocation248_spill] sm:$0xff]  ;;  %v20624_v8 = vld [vmem:[#allocation293_spill] sm:$0xff] }
 0x5ee   : > { %10955 = vmatprep.mubr.msk.bf16.mxu1 %vm11191_vm0, %v19240_v61  ;;  %20621 = vst [vmem:[#allocation335_spill] sm:$0xff] %v17486_v41  ;;  %v7247_v35 = vmax.bf16 %v6835_v49, %v16864_v57  ;;  %v7174_v63 = vadd.f32 %v20622_v24, %v6743_v37  ;;  %v6351_v33 = vadd.f32 %v20624_v8, %v20623_v52  ;;  %v17497_v59 = vrot.slane %v19229_v23, 4  ;;  %v6573_v1 = vpop.f32.mrf.mxu1  ;;  %v20626_v11 = vld [vmem:[#allocation348_spill] sm:$0xff]  ;;  %v20627_v24 = vld [vmem:[#allocation133_spill] sm:$0xff]  ;;  %v20628_v8 = vld [vmem:[#allocation186_spill] sm:$0xff] }
 0x5ef   : > { %v7359_v22 = vmax.f32 %v7305_v3, 0.0  ;;  %v17492_v47 = vor.u32 %v7606_v4, %v7603_v6  ;;  %v3351_v42 = vor.u32 %v3350_v30, %v17462_v25  ;;  %v3336_v58 = vrot.slane %v3334_v17, 5  ;;  %v10903_v26 = vpop.f32.mrf.mxu0  ;;  %v20625_v17 = vld [vmem:[#allocation291_spill] sm:$0xff] }
 0x5f0   : > { %v3340_v34 = vrot.slane %v3338_v43, 4  ;;  %v17500_v57 = vmax.bf16 %v6846_v29, %v17441_v54  ;;  %v17503_v49 = vmax.bf16 %v17441_v54, %v3612_v12  ;;  %v7306_v18 = vadd.f32 %v17095_v56, %v7174_v63  ;;  %v10744_v30 = vpop.f32.mrf.mxu1  ;;  %v20629_v12 = vld [vmem:[#allocation71_spill] sm:$0xff] }
 0x5f1   : > { %v6744_v6 = vadd.f32 %v6573_v1, %v6351_v33  ;;  %8484 = vrot.lane.b32.xlu1 %v7359_v22, %s11193_s14  ;;  %v17507_v4 = vpop.f32.mrf.mxu0  ;;  %v7612_v3 = vrot.slane %v7610_v38, 3  ;;  %v7615_v37 = vrot.slane %v7613_v0, 4  ;;  %v9428_v43 = vcombine.low %v20625_v17, %v7247_v35  ;;  %v20630_v23 = vld [vmem:[#allocation15_spill] sm:$0xff] }
 0x5f2   : > { %v6837_v52 = vmax.bf16 %v20627_v24, %v20626_v11  ;;  %v7360_v29 = vmax.f32 %v7306_v18, 0.0  ;;  %v6352_v41 = vadd.f32 %v20630_v23, %v20629_v12  ;;  %v7608_v22 = vsel %vm2387_vm14, %v17445_v32, %v17492_v47  ;;  %v6578_v23 = vpop.f32.mrf.mxu1  ;;  %v20634_v17 = vld [vmem:[#allocation195_spill] sm:$0xff] }
 0x5f3   : > { %v7175_v26 = vadd.f32 %v20628_v8, %v6744_v6  ;;  %v6018_v63 = vmax.bf16 %v17484_v19, %v17441_v54  ;;  %v3341_v38 = vor.u32 %v3340_v34, %v3336_v58  ;;  %v3611_v0 = vmax.bf16 %v17419_v13, %v17072_v15  ;;  %v10904_v1 = vpop.f32.mrf.mxu0  ;;  %v20636_v8 = vld [vmem:[#allocation188_spill] sm:$0xff] }
 0x5f4   : > { %v20631_v35 = vrot.slane %v17311_v44, 5  ;;  %v17530_v18 = vrot.slane %v3351_v42, 4  ;;  %v20632_v54 = vmax.bf16 %v17182_v40, %v17072_v15  ;;  %v6745_v34 = vadd.f32 %v6578_v23, %v6352_v41  ;;  %8486 = vrot.lane.b32.xlu0 %v7360_v29, %s11193_s14  ;;  %v10747_v6 = vpop.f32.mrf.mxu1  ;;  %v20635_v15 = vld [vmem:[#allocation321_spill] sm:$0xff] }
 0x5f5   : > { %10956 = vmatmul.mubr.msk.bf16.gmra.mxu1 %vm601_vm1, %v7608_v22  ;;  %v7307_v19 = vadd.f32 %v17095_v56, %v7175_v26  ;;  %v17541_v44 = vpop.f32.mrf.mxu0  ;;  %v7619_v42 = vshrl.u32 %v9428_v43, 16  ;;  %v7622_v30 = vshll.u32 %v9428_v43, 16  ;;  %v7249_v11 = vmax.bf16 %v6837_v52, %v20634_v17  ;;  %v20637_v26 = vld [vmem:[#allocation235_spill] sm:$0xff]  ;;  %v20641_v6 = vld [vmem:[#allocation25_spill] sm:$0xff] }
 0x5f6   : > { %v17527_v33 = vsel %vm12583_vm12, %v17194_v46, %v20631_v35  ;;  %v5459_v32 = vmax.bf16 %v20632_v54, %v17419_v13  ;;  %10959 = vmatprep.mubr.msk.bf16.mxu1 %vm11191_vm0, %v19240_v61  ;;  %v20633_v46 = vld [vmem:[#allocation81_spill] sm:$0xff]  ;;  %v7176_v40 = vadd.f32 %v20635_v15, %v6745_v34  ;;  %v6353_v41 = vadd.f32 %v20637_v26, %v20636_v8  ;;  %v6581_v23 = vpop.f32.mrf.mxu1  ;;  %v20640_v34 = vld [vmem:[#allocation126_spill] sm:$0xff]  ;;  %v20644_v8 = vld [vmem:[#allocation296_spill] sm:$0xff] }
 0x5f7   : > { %vm1800_vm11 = vcmp.eq.s32.totalorder %v20633_v46, 1  ;;  %v7361_v24 = vmax.f32 %v7307_v19, 0.0  ;;  %v17547_v12 = vor.u32 %v7615_v37, %v7612_v3  ;;  %v17551_v29 = vsel %vm12552_vm6, %v3332_v7, %v3336_v58  ;;  %v10907_v43 = vpop.f32.mrf.mxu0  ;;  %v20643_v46 = vld [vmem:[#allocation227_spill] sm:$0xff] }
 0x5f8   : > { %v3342_v22 = vrot.slane %v3341_v38, 4  ;;  %v4307_v35 = vrot.slane %v17457_v9, 5  ;;  %v4454_v1 = vmax.bf16 %v17527_v33, %v3611_v0  ;;  %v6017_v54 = vmax.bf16 %v5459_v32, %v17527_v33  ;;  %vm17563_vm13 = vmpackc.low %vm1800_vm11, %vm1800_vm11  ;;  %v10748_v37 = vpop.f32.mrf.mxu1 }
 0x5f9   : > { %v7308_v19 = vadd.f32 %v17095_v56, %v7176_v40  ;;  %v6746_v3 = vadd.f32 %v6581_v23, %v6353_v41  ;;  %8488 = vrot.lane.b32.xlu1 %v7361_v24, %s11193_s14  ;;  %v17567_v58 = vpop.f32.mrf.mxu0  ;;  %v7621_v38 = vrot.slane %v7619_v42, 3  ;;  %v7624_v0 = vrot.slane %v7622_v30, 4  ;;  %v20642_v24 = vld [vmem:[#allocation323_spill] sm:$0xff] }
 0x5fa   : > { %v9429_v32 = vcombine.low %v20640_v34, %v7249_v11  ;;  %v6839_v17 = vmax.bf16 %v20641_v6, %v16991_v14  ;;  %v6354_v26 = vadd.f32 %v20644_v8, %v20643_v46  ;;  %v7617_v41 = vsel %vm2387_vm14, %v17492_v47, %v17547_v12  ;;  %v6586_v23 = vpop.f32.mrf.mxu1  ;;  %v11172_v47 = vld [vmem:[%s11299_s24 + $0x9c] sm:$0xf]  ;;  %v20647_v8 = vld [vmem:[#allocation268_spill] sm:$0xff] }
 0x5fb   : > { %v7362_v15 = vmax.f32 %v7308_v19, 0.0  ;;  %v7177_v40 = vadd.f32 %v20642_v24, %v6746_v3  ;;  %v17579_v43 = vmax.bf16 %v6018_v63, %v17399_v51  ;;  %v17584_v42 = vsel %vm12552_vm6, %v3342_v22, %v17462_v25  ;;  %v10908_v11 = vpop.f32.mrf.mxu0  ;;  %v20646_v24 = vld [vmem:[#allocation295_spill] sm:$0xff] }
 0x5fc   : > { %v4309_v14 = vrot.slane %v4307_v35, 4  ;;  %v4998_v30 = vmax.bf16 %v4454_v1, %v17457_v9  ;;  %v17591_v19 = vmax.bf16 %v6017_v54, %v17457_v9  ;;  %v17596_v63 = vsel %vm17563_vm13, %v11172_v47, -1.00492276e+30  ;;  %v20645_v1 = vld [vmem:[#allocation80_spill] sm:$0xff]  ;;  %v10751_v37 = vpop.f32.mrf.mxu1 }
 0x5fd   : > { %10960 = vmatmul.mubr.msk.bf16.gmra.mxu1 %vm601_vm1, %v7617_v41  ;;  %v7309_v25 = vadd.f32 %v17095_v56, %v7177_v40  ;;  %v6747_v22 = vadd.f32 %v6586_v23, %v6354_v26  ;;  %8490 = vrot.lane.b32.xlu0 %v7362_v15, %s11193_s14  ;;  %vm1799_vm8 = vcmp.eq.s32.totalorder %v20645_v1, 1  ;;  %v17603_v3 = vpop.f32.mrf.mxu0  ;;  %v7628_v54 = vshrl.u32 %v9429_v32, 16  ;;  %v20648_v40 = vld [vmem:[#allocation294_spill] sm:$0xff]  ;;  %v20654_v1 = vld [vmem:[#allocation217_spill] sm:$0xff] }
 0x5fe   : > { %10963 = vmatprep.mubr.msk.bf16.mxu1 %vm11191_vm0, %v19240_v61  ;;  %v7631_v34 = vshll.u32 %v9429_v32, 16  ;;  %v7251_v6 = vmax.bf16 %v6839_v17, %v17036_v5  ;;  %v6355_v26 = vadd.f32 %v20648_v40, %v20647_v8  ;;  %v17609_v41 = vor.u32 %v7624_v0, %v7621_v38  ;;  %v6589_v47 = vpop.f32.mrf.mxu1  ;;  %vm17631_vm15 = vmpackc.low %vm1799_vm8, %vm1799_vm8  ;;  %v20652_v40 = vld [vmem:[#allocation351_spill] sm:$0xff] }
 0x5ff   : > { %v7363_v7 = vmax.f32 %v7309_v25, 0.0  ;;  %v7178_v46 = vadd.f32 %v20646_v24, %v6747_v22  ;;  %v3614_v15 = vmax.bf16 %v17584_v42, %v17457_v9  ;;  %v20649_v11 = vrot.slane %v17399_v51, 5  ;;  %v10911_v17 = vpop.f32.mrf.mxu0 }
 0x600   : > { %v3364_v32 = vshll.u32 %v17596_v63, 16  ;;  %v3368_v5 = vshrl.u32 %v17596_v63, 16  ;;  %v17622_v25 = vmax.bf16 %v4998_v30, %v17584_v42  ;;  %v6848_v38 = vmax.bf16 %v17591_v19, %v17584_v42  ;;  %v10752_v24 = vpop.f32.mrf.mxu1 }
 0x601   : > { %v17617_v23 = vsel %vm12583_vm12, %v4309_v14, %v20649_v11  ;;  %v7310_v0 = vadd.f32 %v17095_v56, %v7178_v46  ;;  %v6748_v22 = vadd.f32 %v6589_v47, %v6355_v26  ;;  %8492 = vrot.lane.b32.xlu1 %v7363_v7, %s11193_s14  ;;  %v17635_v37 = vpop.f32.mrf.mxu0  ;;  %v7630_v30 = vrot.slane %v7628_v54, 3  ;;  %v20653_v7 = vld [vmem:[#allocation129_spill] sm:$0xff]  ;;  %v20655_v11 = vld [vmem:[#allocation319_spill] sm:$0xff] }
 0x602   : > { %v7633_v8 = vrot.slane %v7631_v34, 4  ;;  %v9430_v42 = vcombine.low %v20652_v40, %v7251_v6  ;;  %v6841_v19 = vmax.bf16 %v17061_v21, %v17066_v60  ;;  %v6356_v17 = vadd.f32 %v20655_v11, %v20654_v1  ;;  %v6594_v60 = vpop.f32.mrf.mxu1  ;;  %v20664_v6 = vld [vmem:[#allocation187_spill] sm:$0xff] }
 0x603   : > { %v7364_v46 = vmax.f32 %v7310_v0, 0.0  ;;  %v7179_v26 = vadd.f32 %v20653_v7, %v6748_v22  ;;  %v7626_v47 = vsel %vm2387_vm14, %v17547_v12, %v17609_v41  ;;  %v17646_v52 = vrot.slane %v3364_v32, 5  ;;  %v10912_v21 = vpop.f32.mrf.mxu0  ;;  %v11173_v22 = vld [vmem:[%s11299_s24 + $0x98] sm:$0xf] }
 0x604   : > { %v17648_v54 = vrot.slane %v3368_v5, 4  ;;  %v19230_v34 = vrot.slane %v17596_v63, 5  ;;  %v17655_v0 = vmax.bf16 %v17617_v23, %v3614_v15  ;;  %v17660_v12 = vsel %vm17631_vm15, %v11173_v22, -1.00492276e+30  ;;  %v10755_v15 = vpop.f32.mrf.mxu1 }
 0x605   : > { %10964 = vmatmul.mubr.msk.bf16.gmra.mxu1 %vm601_vm1, %v7626_v47  ;;  %v7311_v32 = vadd.f32 %v17095_v56, %v7179_v26  ;;  %v6749_v5 = vadd.f32 %v6594_v60, %v6356_v17  ;;  %8494 = vrot.lane.b32.xlu0 %v7364_v46, %s11193_s14  ;;  %v6020_v24 = vmax.bf16 %v17622_v25, %v17617_v23  ;;  %v17668_v40 = vpop.f32.mrf.mxu0  ;;  %v7637_v7 = vshrl.u32 %v9430_v42, 16  ;;  %v20657_v47 = vld [vmem:[#allocation326_spill] sm:$0xff]  ;;  %v20658_v26 = vld [vmem:[#allocation119_spill] sm:$0xff]  ;;  %v20659_v17 = vld [vmem:[#allocation297_spill] sm:$0xff] }
 0x606   : > { %10967 = vmatprep.mubr.msk.bf16.mxu1 %vm11191_vm0, %v19240_v61  ;;  %20656 = vst [vmem:[#allocation220_spill] sm:$0xff] %v17668_v40  ;;  %v7640_v1 = vshll.u32 %v9430_v42, 16  ;;  %v7253_v14 = vmax.bf16 %v6841_v19, %v17125_v55  ;;  %v6357_v60 = vadd.f32 %v20659_v17, %v20658_v26  ;;  %v7634_v46 = vor.u32 %v7633_v8, %v7630_v30  ;;  %v6597_v19 = vpop.f32.mrf.mxu1  ;;  %v20660_v8 = vld [vmem:[#allocation84_spill] sm:$0xff]  ;;  %v20662_v17 = vld [vmem:[#allocation197_spill] sm:$0xff] }
 0x607   : > { %v7365_v11 = vmax.f32 %v7311_v32, 0.0  ;;  %v7180_v21 = vadd.f32 %v20657_v47, %v6749_v5  ;;  %v17675_v22 = vmax.bf16 %v6848_v38, %v17617_v23  ;;  %v17679_v25 = vrot.slane %v19230_v34, 4  ;;  %v10915_v42 = vpop.f32.mrf.mxu0  ;;  %v20663_v34 = vld [vmem:[#allocation141_spill] sm:$0xff] }
 0x608   : > { %v3354_v15 = vshll.u32 %v17660_v12, 16  ;;  %v17687_v55 = vsel %vm12583_vm12, %v17355_v62, %v4307_v35  ;;  %v3358_v30 = vshrl.u32 %v17660_v12, 16  ;;  %vm1802_vm2 = vcmp.eq.s32.totalorder %v20660_v8, 1  ;;  %v10756_v5 = vpop.f32.mrf.mxu1  ;;  %v20670_v8 = vld [vmem:[#allocation267_spill] sm:$0xff] }
 0x609   : > { %v7312_v23 = vadd.f32 %v17095_v56, %v7180_v21  ;;  %v6750_v38 = vadd.f32 %v6597_v19, %v6357_v60  ;;  %8496 = vrot.lane.b32.xlu1 %v7365_v11, %s11193_s14  ;;  %v17693_v32 = vpop.f32.mrf.mxu0  ;;  %v7639_v9 = vrot.slane %v7637_v7, 3  ;;  %v7642_v47 = vrot.slane %v7640_v1, 4  ;;  %vm17719_vm3 = vmpackc.low %vm1802_vm2, %vm1802_vm2 }
 0x60a   : > { %20661 = vst [vmem:[#allocation21_spill] sm:$0xff] %v17693_v32  ;;  %v9431_v26 = vcombine.low %v17076_v53, %v7253_v14  ;;  %v6843_v62 = vmax.bf16 %v17083_v39, %v17213_v2  ;;  %v6358_v40 = vadd.f32 %v20664_v6, %v20663_v34  ;;  %v7635_v21 = vsel %vm2387_vm14, %v17609_v41, %v7634_v46  ;;  %v6602_v1 = vpop.f32.mrf.mxu1 }
 0x60b   : > { %v7366_v35 = vmax.f32 %v7312_v23, 0.0  ;;  %v7181_v42 = vadd.f32 %v20662_v17, %v6750_v38  ;;  %v3371_v11 = vor.u32 %v17648_v54, %v17646_v52  ;;  %v17708_v53 = vmax.bf16 %v6020_v24, %v17596_v63  ;;  %v10916_v2 = vpop.f32.mrf.mxu0  ;;  %v20667_v24 = vld [vmem:[#allocation83_spill] sm:$0xff] }
 0x60c   : > { %v19231_v39 = vrot.slane %v17660_v12, 5  ;;  %v3356_v14 = vrot.slane %v3354_v15, 5  ;;  %v3360_v34 = vrot.slane %v3358_v30, 4  ;;  %v6751_v41 = vadd.f32 %v6602_v1, %v6358_v40  ;;  %v10759_v15 = vpop.f32.mrf.mxu1  ;;  %v20669_v38 = vld [vmem:[#allocation27_spill] sm:$0xff] }
 0x60d   : > { %10968 = vmatmul.mubr.msk.bf16.gmra.mxu1 %vm601_vm1, %v7635_v21  ;;  %v7313_v6 = vadd.f32 %v17095_v56, %v7181_v42  ;;  %8498 = vrot.lane.b32.xlu0 %v7366_v35, %s11193_s14  ;;  %vm1801_vm4 = vcmp.eq.s32.totalorder %v20667_v24, 1  ;;  %v17724_v60 = vpop.f32.mrf.mxu0  ;;  %v17726_v19 = vor.u32 %v7642_v47, %v7639_v9  ;;  %v7646_v40 = vshrl.u32 %v9431_v26, 16  ;;  %v20671_v35 = vld [vmem:[#allocation24_spill] sm:$0xff]  ;;  %v17769_v24 = vpop.permute.xlu0 %1756 }
 0x60e   : > { %10971 = vmatprep.mubr.msk.bf16.mxu1 %vm11191_vm0, %v19240_v61  ;;  %20668 = vst [vmem:[#allocation226_spill] sm:$0xff] %v17724_v60  ;;  %v7255_v30 = vmax.bf16 %v6843_v62, %v17369_v36  ;;  %v7182_v5 = vadd.f32 %v20669_v38, %v6751_v41  ;;  %v6359_v17 = vadd.f32 %v20671_v35, %v20670_v8  ;;  %v7649_v42 = vshll.u32 %v9431_v26, 16  ;;  %v11174_v26 = vld [vmem:[%s11299_s24 + $0xa4] sm:$0xf]  ;;  %vm17756_vm5 = vmpackc.low %vm1801_vm4, %vm1801_vm4 }
 0x60f   : > { %v7367_v23 = vmax.f32 %v7313_v6, 0.0  ;;  %v17732_v21 = vrot.slane %v3371_v11, 4  ;;  %v4315_v2 = vrot.slane %v19231_v39, 4  ;;  %v20672_v1 = vmax.bf16 %v17551_v29, %v17279_v10  ;;  %v10919_v62 = vpop.f32.mrf.mxu0  ;;  %v6605_v6 = vpop.f32.mrf.mxu1  ;;  %v20690_v60 = vld [vmem:[#allocation334_spill] sm:$0xff] }
 0x610   : > { %v20673_v36 = vmax.bf16 %v17318_v20, %v17279_v10  ;;  %v3361_v41 = vor.u32 %v3360_v34, %v3356_v14  ;;  %v17749_v11 = vsel %vm17719_vm3, %v11174_v26, -1.00492276e+30  ;;  %v7314_v15 = vadd.f32 %v17095_v56, %v7182_v5  ;;  %v20679_v62 = vld [vmem:[#allocation17_spill] sm:$0xff] }
 0x611   : > { %v17740_v9 = vmax.bf16 %v17687_v55, %v20672_v1  ;;  %v6752_v38 = vadd.f32 %v6605_v6, %v6359_v17  ;;  %8500 = vrot.lane.b32.xlu1 %v7367_v23, %s11193_s14  ;;  %v17760_v10 = vpop.f32.mrf.mxu0  ;;  %v10760_v20 = vpop.f32.mrf.mxu1  ;;  %v7644_v34 = vsel %vm2387_vm14, %v7634_v46, %v17726_v19  ;;  %v7648_v54 = vrot.slane %v7646_v40, 3  ;;  %v20677_v17 = vld [vmem:[#allocation327_spill] sm:$0xff] }
 0x612   : > { %v5461_v47 = vmax.bf16 %v20673_v36, %v17551_v29  ;;  %20676 = vst [vmem:[#allocation337_spill] sm:$0xff] %v17760_v10  ;;  %v9432_v35 = vcombine.low %v17179_v16, %v7255_v30  ;;  %v6845_v56 = vmax.bf16 %v17231_v31, %v17419_v13  ;;  %v17767_v23 = vpop.permute.xlu1 %1753  ;;  %v7368_v5 = vmax.f32 %v7314_v15, 0.0  ;;  %v20678_v36 = vld [vmem:[#allocation265_spill] sm:$0xff]  ;;  %v20689_v10 = vld [vmem:[#allocation16_spill] sm:$0xff] }
 0x613   : > { %v7183_v1 = vadd.f32 %v20677_v17, %v6752_v38  ;;  %v6360_v6 = vadd.f32 %v20679_v62, %v20678_v36  ;;  %v7651_v26 = vrot.slane %v7649_v42, 4  ;;  %v17777_v46 = vsel %vm12552_vm6, %v17530_v18, %v3356_v14  ;;  %v10920_v40 = vpop.f32.mrf.mxu0  ;;  %v6610_v30 = vpop.f32.mrf.mxu1  ;;  %v11175_v38 = vld [vmem:[%s11299_s24 + $0xa0] sm:$0xf] }
 0x614   : > { %v6019_v31 = vmax.bf16 %v5461_v47, %v17687_v55  ;;  %v3384_v13 = vshll.u32 %v17749_v11, 16  ;;  %v3362_v15 = vrot.slane %v3361_v41, 4  ;;  %v17787_v42 = vsel %vm17756_vm5, %v11175_v38, -1.00492276e+30  ;;  %v17792_v18 = vld [vmem:[%s18873_s5] ss:$0 sm:$0xff]  ;;  %8502 = vrot.lane.b32.xlu0 %v7368_v5, %s11193_s14 }
 0x615   : > { %10972 = vmatmul.mubr.msk.bf16.gmra.mxu1 %vm601_vm1, %v7644_v34  ;;  %v7315_v14 = vadd.f32 %v17792_v18, %v7183_v1  ;;  %v6753_v47 = vadd.f32 %v6610_v30, %v6360_v6  ;;  %v20680_v41 = vrot.slane %v17596_v63, 5  ;;  %v17804_v20 = vpop.f32.mrf.mxu0  ;;  %v10763_v34 = vpop.f32.mrf.mxu1  ;;  %v7655_v17 = vshrl.u32 %v9432_v35, 16  ;;  %v20682_v6 = vld [vmem:[#allocation203_spill] sm:$0xff]  ;;  %v20683_v5 = vld [vmem:[#allocation82_spill] sm:$0xff] }
 0x616   : > { %10975 = vmatprep.mubr.msk.bf16.mxu1 %vm11191_vm0, %v19240_v61  ;;  %20681 = vst [vmem:[#allocation222_spill] sm:$0xff] %v17804_v20  ;;  %v7658_v36 = vshll.u32 %v9432_v35, 16  ;;  %v7257_v62 = vmax.bf16 %v6845_v56, %v17527_v33  ;;  %v20684_v30 = vld [vmem:[#allocation91_spill] sm:$0xff]  ;;  %v17810_v7 = vor.u32 %v7651_v26, %v7648_v54  ;;  %v6422_v16 = vmax.bf16 %v6019_v31, %v17660_v12  ;;  %v17825_v54 = vpop.permute.xlu0 %8242 }
 0x617   : > { %v17802_v8 = vsel %vm12583_vm12, %v4315_v2, %v20680_v41  ;;  %v7369_v1 = vmax.f32 %v7315_v14, 0.0  ;;  %v7184_v40 = vadd.f32 %v20682_v6, %v6753_v47  ;;  %v6361_v38 = vadd.f32 %v20684_v30, %v20683_v5  ;;  %v10923_v39 = vpop.f32.mrf.mxu0  ;;  %v6613_v35 = vpop.f32.mrf.mxu1  ;;  %20686 = vst [vmem:[#allocation233_spill] sm:$0xff] %v17825_v54  ;;  %v20687_v30 = vld [vmem:[#allocation214_spill] sm:$0xff] }
 0x618   : > { %v3388_v2 = vshrl.u32 %v17749_v11, 16  ;;  %v3374_v41 = vshll.u32 %v17787_v42, 16  ;;  %v3378_v34 = vshrl.u32 %v17787_v42, 16  ;;  %v17819_v33 = vsel %vm12552_vm6, %v3362_v15, %v17646_v52  ;;  %v17823_v14 = vpop.permute.xlu1 %1759  ;;  %v20688_v52 = vld [vmem:[#allocation271_spill] sm:$0xff]  ;;  %v20691_v54 = vld [vmem:[#allocation298_spill] sm:$0xff] }
 0x619   : > { %v17821_v56 = vrot.slane %v3384_v13, 5  ;;  %20685 = vst [vmem:[#allocation37_spill] sm:$0xff] %v17823_v14  ;;  %v7316_v26 = vadd.f32 %v17792_v18, %v7184_v40  ;;  %v6754_v31 = vadd.f32 %v6613_v35, %v6361_v38  ;;  %8504 = vrot.lane.b32.xlu1 %v7369_v1, %s11193_s14  ;;  %v17829_v47 = vpop.f32.mrf.mxu0  ;;  %v10764_v39 = vpop.f32.mrf.mxu1  ;;  %v7657_v6 = vrot.slane %v7655_v17, 3 }
 0x61a   : > { %v7660_v5 = vrot.slane %v7658_v36, 4  ;;  %v9433_v20 = vcombine.low %v20687_v30, %v7257_v62  ;;  %v6847_v13 = vmax.bf16 %v20688_v52, %v17551_v29  ;;  %v6362_v32 = vadd.f32 %v20691_v54, %v20690_v60  ;;  %v20693_v30 = vld [vmem:[#allocation130_spill] sm:$0xff] }
 0x61b   : > { %v7370_v15 = vmax.f32 %v7316_v26, 0.0  ;;  %v7185_v14 = vadd.f32 %v20689_v10, %v6754_v31  ;;  %v7653_v1 = vsel %vm2387_vm14, %v17726_v19, %v17810_v7  ;;  %v3390_v40 = vrot.slane %v3388_v2, 4  ;;  %v10924_v36 = vpop.f32.mrf.mxu0  ;;  %v6618_v62 = vpop.f32.mrf.mxu1 }
 0x61c   : > { %v3376_v38 = vrot.slane %v3374_v41, 5  ;;  %v3380_v35 = vrot.slane %v3378_v34, 4  ;;  %v3615_v17 = vmax.bf16 %v17777_v46, %v17399_v51  ;;  %v6850_v29 = vmax.bf16 %v6422_v16, %v17819_v33  ;;  %v17863_v31 = vpop.permute.xlu0 %8246 }
 0x61d   : > { %10976 = vmatmul.mubr.msk.bf16.gmra.mxu1 %vm601_vm1, %v7653_v1  ;;  %v4322_v10 = vrot.slane %v17749_v11, 5  ;;  %v7317_v60 = vadd.f32 %v17792_v18, %v7185_v14  ;;  %v6755_v54 = vadd.f32 %v6618_v62, %v6362_v32  ;;  %8506 = vrot.lane.b32.xlu0 %v7370_v15, %s11193_s14  ;;  %v20692_v19 = vrot.slane %v17660_v12, 5  ;;  %v17856_v41 = vpop.f32.mrf.mxu0  ;;  %v10767_v16 = vpop.f32.mrf.mxu1  ;;  %v20694_v15 = vld [vmem:[#allocation231_spill] sm:$0xff]  ;;  %v20695_v1 = vld [vmem:[#allocation322_spill] sm:$0xff] }
 0x61e   : > { %10979 = vmatprep.mubr.msk.bf16.mxu1 %vm11191_vm0, %v19240_v61  ;;  %v17858_v34 = vor.u32 %v7660_v5, %v7657_v6  ;;  %v7664_v26 = vshrl.u32 %v9433_v20, 16  ;;  %v7259_v32 = vmax.bf16 %v6847_v13, %v17687_v55  ;;  %v17861_v14 = vpop.permute.xlu1 %8244  ;;  %v6363_v36 = vadd.f32 %v20695_v1, %v20694_v15  ;;  %v20699_v1 = vld [vmem:[#allocation20_spill] sm:$0xff] }
 0x61f   : > { %v17854_v2 = vsel %vm12583_vm12, %v17497_v59, %v20692_v19  ;;  %v7371_v39 = vmax.f32 %v7317_v60, 0.0  ;;  %v7186_v52 = vadd.f32 %v20693_v30, %v6755_v54  ;;  %v7667_v59 = vshll.u32 %v9433_v20, 16  ;;  %v10927_v19 = vpop.f32.mrf.mxu0  ;;  %v6621_v16 = vpop.f32.mrf.mxu1 }
 0x620   : > { %v3616_v62 = vmax.bf16 %v17819_v33, %v17660_v12  ;;  %v20696_v6 = vmax.bf16 %v17740_v9, %v17660_v12  ;;  %v3391_v55 = vor.u32 %v3390_v40, %v17821_v56  ;;  %v3381_v13 = vor.u32 %v3380_v35, %v3376_v38 }
 0x621   : > { %v17876_v60 = vmax.bf16 %v6850_v29, %v17802_v8  ;;  %v17881_v20 = vsel %vm12552_vm6, %v17732_v21, %v3376_v38  ;;  %v7318_v54 = vadd.f32 %v17792_v18, %v7186_v52  ;;  %v6756_v30 = vadd.f32 %v6621_v16, %v6363_v36  ;;  %8508 = vrot.lane.b32.xlu1 %v7371_v39, %s11193_s14  ;;  %v17885_v12 = vpop.f32.mrf.mxu0  ;;  %v10768_v9 = vpop.f32.mrf.mxu1  ;;  %v20697_v38 = vld [vmem:[#allocation328_spill] sm:$0xff] }
 0x622   : > { %v5464_v5 = vmax.bf16 %v20696_v6, %v17819_v33  ;;  %v7662_v33 = vsel %vm2387_vm14, %v17810_v7, %v17858_v34  ;;  %v7666_v40 = vrot.slane %v7664_v26, 3  ;;  %v9434_v35 = vcombine.low %v17500_v57, %v7259_v32  ;;  %v20698_v52 = vld [vmem:[#allocation336_spill] sm:$0xff] }
 0x623   : > { %v6849_v29 = vmax.bf16 %v17579_v43, %v17777_v46  ;;  %v7372_v21 = vmax.f32 %v7318_v54, 0.0  ;;  %v7187_v15 = vadd.f32 %v20697_v38, %v6756_v30  ;;  %v6364_v36 = vadd.f32 %v20699_v1, %v20698_v52  ;;  %v10928_v26 = vpop.f32.mrf.mxu0  ;;  %v6626_v57 = vpop.f32.mrf.mxu1  ;;  %v20702_v1 = vld [vmem:[#allocation207_spill] sm:$0xff] }
 0x624   : > { %v7669_v39 = vrot.slane %v7667_v59, 4  ;;  %v17897_v6 = vmax.bf16 %v17802_v8, %v3616_v62  ;;  %v6022_v19 = vmax.bf16 %v5464_v5, %v17802_v8  ;;  %v3382_v16 = vrot.slane %v3381_v13, 4  ;;  %v17903_v54 = vpop.permute.xlu1 %8248  ;;  %v17905_v30 = vpop.permute.xlu0 %8250 }
 0x625   : > { %v4319_v7 = vrot.slane %v17787_v42, 5  ;;  %10980 = vmatmul.mubr.msk.bf16.gmra.mxu1 %vm601_vm1, %v7662_v33  ;;  %v3392_v43 = vrot.slane %v3391_v55, 4  ;;  %v4458_v32 = vmax.bf16 %v17854_v2, %v3615_v17  ;;  %v7319_v59 = vadd.f32 %v17792_v18, %v7187_v15  ;;  %8510 = vrot.lane.b32.xlu0 %v7372_v21, %s11193_s14  ;;  %v17915_v55 = vpop.f32.mrf.mxu0  ;;  %v10771_v17 = vpop.f32.mrf.mxu1  ;;  %v20701_v15 = vld [vmem:[#allocation211_spill] sm:$0xff]  ;;  %v20703_v21 = vld [vmem:[#allocation204_spill] sm:$0xff] }
 0x626   : > { %v6757_v62 = vadd.f32 %v6626_v57, %v6364_v36  ;;  %10983 = vmatprep.mubr.msk.bf16.mxu1 %vm11191_vm0, %v19240_v61  ;;  %v20700_v8 = vmax.bf16 %v17503_v49, %v17399_v51  ;;  %v7673_v13 = vshrl.u32 %v9434_v35, 16  ;;  %v7676_v9 = vshll.u32 %v9434_v35, 16  ;;  %v20716_v57 = vld [vmem:[#allocation60_spill] sm:$0xff] }
 0x627   : > { %v7261_v33 = vmax.bf16 %v6849_v29, %v17854_v2  ;;  %v7373_v38 = vmax.f32 %v7319_v59, 0.0  ;;  %v6365_v36 = vadd.f32 %v20703_v21, %v20702_v1  ;;  %v17921_v26 = vor.u32 %v7669_v39, %v7666_v40  ;;  %v10931_v35 = vpop.f32.mrf.mxu0  ;;  %v6629_v29 = vpop.f32.mrf.mxu1 }
 0x628   : > { %v5463_v5 = vmax.bf16 %v20700_v8, %v17777_v46  ;;  %v7188_v52 = vadd.f32 %v20701_v15, %v6757_v62  ;;  %v17926_v51 = vmax.bf16 %v6022_v19, %v17749_v11  ;;  %v17931_v49 = vsel %vm12552_vm6, %v3382_v16, %v17821_v56  ;;  %v17943_v1 = vpop.permute.xlu1 %8252  ;;  %v20704_v35 = vld [vmem:[#allocation329_spill] sm:$0xff] }
 0x629   : > { %v4321_v46 = vrot.slane %v4319_v7, 4  ;;  %v5002_v59 = vmax.bf16 %v4458_v32, %v17787_v42  ;;  %v3617_v40 = vmax.bf16 %v17881_v20, %v17596_v63  ;;  %v6758_v62 = vadd.f32 %v6629_v29, %v6365_v36  ;;  %8512 = vrot.lane.b32.xlu1 %v7373_v38, %s11193_s14  ;;  %v17938_v19 = vpop.f32.mrf.mxu0  ;;  %v10772_v8 = vpop.f32.mrf.mxu1  ;;  %v20705_v36 = vld [vmem:[#allocation307_spill] sm:$0xff] }
 0x62a   : > { %v7320_v39 = vadd.f32 %v17792_v18, %v7188_v52  ;;  %v7675_v17 = vrot.slane %v7673_v13, 3  ;;  %v7678_v15 = vrot.slane %v7676_v9, 4  ;;  %v9435_v56 = vcombine.low %v17675_v22, %v7261_v33  ;;  %v17945_v32 = vpop.permute.xlu0 %8254  ;;  %v20706_v29 = vld [vmem:[#allocation303_spill] sm:$0xff] }
 0x62b   : > { %v6851_v16 = vmax.bf16 %v17708_v53, %v17881_v20  ;;  %v7189_v52 = vadd.f32 %v20704_v35, %v6758_v62  ;;  %v6366_v38 = vadd.f32 %v20706_v29, %v20705_v36  ;;  %v7671_v13 = vsel %vm2387_vm14, %v17858_v34, %v17921_v26  ;;  %v6634_v62 = vpop.f32.mrf.mxu1  ;;  %v20708_v29 = vld [vmem:[#allocation144_spill] sm:$0xff] }
 0x62c   : > { %v7374_v21 = vmax.f32 %v7320_v39, 0.0  ;;  %v17957_v22 = vsel %vm12583_vm12, %v4321_v46, %v4322_v10  ;;  %v5466_v53 = vmax.bf16 %v5002_v59, %v17931_v49  ;;  %v6021_v9 = vmax.bf16 %v5463_v5, %v17854_v2  ;;  %v10932_v39 = vpop.f32.mrf.mxu0  ;;  %v20707_v2 = vld [vmem:[#allocation245_spill] sm:$0xff] }
 0x62d   : > { %v17964_v33 = vsel %vm12583_vm12, %v17679_v25, %v4319_v7  ;;  %10984 = vmatmul.mubr.msk.bf16.gmra.mxu1 %vm601_vm1, %v7671_v13  ;;  %v4324_v34 = vrot.slane %v4322_v10, 4  ;;  %v7321_v46 = vadd.f32 %v17792_v18, %v7189_v52  ;;  %v6759_v35 = vadd.f32 %v6634_v62, %v6366_v38  ;;  %v10775_v7 = vpop.f32.mrf.mxu1  ;;  %v20709_v13 = vld [vmem:[#allocation232_spill] sm:$0xff] }
 0x62e   : > { %v4460_v8 = vmax.bf16 %v17964_v33, %v3617_v40  ;;  %8514 = vrot.lane.b32.xlu0 %v7374_v21, %s11193_s14  ;;  %10987 = vmatprep.mubr.msk.bf16.mxu1 %vm11191_vm0, %v19240_v61  ;;  %v3397_v25 = vsel %vm12552_vm6, %v3392_v43, %v20707_v2  ;;  %v7682_v5 = vshrl.u32 %v9435_v56, 16  ;;  %v7685_v59 = vshll.u32 %v9435_v56, 16  ;;  %v20710_v52 = vld [vmem:[#allocation216_spill] sm:$0xff]  ;;  %v20712_v2 = vld [vmem:[#allocation237_spill] sm:$0xff] }
 0x62f   : > { %v7263_v36 = vmax.bf16 %v6851_v16, %v17964_v33  ;;  %v7375_v10 = vmax.f32 %v7321_v46, 0.0  ;;  %v7190_v40 = vadd.f32 %v20708_v29, %v6759_v35  ;;  %v6367_v38 = vadd.f32 %v20710_v52, %v20709_v13  ;;  %v6637_v46 = vpop.f32.mrf.mxu1  ;;  %v17993_v29 = vpop.permute.xlu1 %8256 }
 0x630   : > { %v17981_v39 = vor.u32 %v7678_v15, %v7675_v17  ;;  %v3618_v21 = vmax.bf16 %v17931_v49, %v17787_v42  ;;  %v6424_v62 = vmax.bf16 %v6021_v9, %v17787_v42  ;;  %v6024_v43 = vmax.bf16 %v5466_v53, %v17957_v22  ;;  %20713 = vst [vmem:[#allocation339_spill] sm:$0xff] %v17993_v29  ;;  %v17995_v17 = vpop.permute.xlu0 %8258 }
 0x631   : > { %v20711_v56 = vmax.bf16 %v17655_v0, %v17596_v63  ;;  %v5004_v35 = vmax.bf16 %v4460_v8, %v20712_v2  ;;  %v3619_v7 = vmax.bf16 %v3397_v25, %v17749_v11  ;;  %v7322_v15 = vadd.f32 %v17792_v18, %v7190_v40  ;;  %8516 = vrot.lane.b32.xlu1 %v7375_v10, %s11193_s14  ;;  %v10776_v42 = vpop.f32.mrf.mxu1  ;;  %v20714_v8 = vld [vmem:[#allocation330_spill] sm:$0xff]  ;;  %v20717_v10 = vld [vmem:[#allocation249_spill] sm:$0xff] }
 0x632   : > { %v6760_v13 = vadd.f32 %v6637_v46, %v6367_v38  ;;  %v7684_v53 = vrot.slane %v7682_v5, 3  ;;  %v7687_v9 = vrot.slane %v7685_v59, 4  ;;  %v9436_v63 = vcombine.low %v17876_v60, %v7263_v36 }
 0x633   : > { %v5465_v16 = vmax.bf16 %v20711_v56, %v17881_v20  ;;  %v6853_v0 = vmax.bf16 %v17926_v51, %v3397_v25  ;;  %v7376_v20 = vmax.f32 %v7322_v15, 0.0  ;;  %v20715_v56 = vld [vmem:[#allocation178_spill] sm:$0xff]  ;;  %v7680_v40 = vsel %vm2387_vm14, %v17921_v26, %v17981_v39  ;;  %v6642_v59 = vpop.f32.mrf.mxu1  ;;  %v20719_v26 = vld [vmem:[#allocation239_spill] sm:$0xff] }
 0x634   : > { %v7191_v52 = vadd.f32 %v20714_v8, %v6760_v13  ;;  %v6368_v29 = vadd.f32 %v20716_v57, %v20715_v56  ;;  %v6852_v38 = vmax.bf16 %v6424_v62, %v17931_v49  ;;  %v5468_v46 = vmax.bf16 %v5004_v35, %v20717_v10  ;;  %v18020_v13 = vpop.permute.xlu1 %8260 }
 0x635   : > { %v6023_v5 = vmax.bf16 %v5465_v16, %v17964_v33  ;;  %v20718_v60 = vrot.slane %v20712_v2, 5  ;;  %10988 = vmatmul.mubr.msk.bf16.gmra.mxu1 %vm601_vm1, %v7680_v40  ;;  %8518 = vrot.lane.b32.xlu0 %v7376_v20, %s11193_s14  ;;  %v6427_v49 = vmax.bf16 %v6024_v43, %v20719_v26  ;;  %v10779_v33 = vpop.f32.mrf.mxu1  ;;  %v7691_v62 = vshrl.u32 %v9436_v63, 16  ;;  %20720 = vst [vmem:[#allocation224_spill] sm:$0xff] %v18020_v13 }
 0x636   : > { %v7323_v57 = vadd.f32 %v17792_v18, %v7191_v52  ;;  %v6761_v15 = vadd.f32 %v6642_v59, %v6368_v29  ;;  %10991 = vmatprep.mubr.msk.bf16.mxu1 %vm11191_vm0, %v19240_v61  ;;  %v7694_v16 = vshll.u32 %v9436_v63, 16  ;;  %v20723_v52 = vld [vmem:[#allocation338_spill] sm:$0xff]  ;;  %v20724_v29 = vld [vmem:[#allocation221_spill] sm:$0xff]  ;;  %v7688_v20 = vor.u32 %v7687_v9, %v7684_v53  ;;  %v20726_v33 = vld [vmem:[#allocation256_spill] sm:$0xff] }
 0x637   : > { %v4326_v51 = vsel %vm12583_vm12, %v4324_v34, %v20718_v60  ;;  %v18022_v34 = vpop.permute.xlu0 %8262  ;;  %v6369_v56 = vadd.f32 %v20724_v29, %v20723_v52  ;;  %v7264_v40 = vmax.bf16 %v6852_v38, %v17957_v22  ;;  %v4461_v60 = vmax.bf16 %v17957_v22, %v3618_v21  ;;  %v6645_v59 = vpop.f32.mrf.mxu1  ;;  %v20728_v21 = vld [vmem:[#allocation96_spill] sm:$0xff]  ;;  %v20729_v52 = vld [vmem:[#allocation218_spill] sm:$0xff] }
 0x638   : > { %v4462_v36 = vmax.bf16 %v4326_v51, %v3619_v7  ;;  %v7265_v35 = vmax.bf16 %v6853_v0, %v4326_v51  ;;  %20721 = vst [vmem:[#allocation45_spill] sm:$0xff] %v18022_v34  ;;  %v7377_v42 = vmax.f32 %v7323_v57, 0.0  ;;  %v20722_v7 = vld [vmem:[#allocation332_spill] sm:$0xff]  ;;  %v6426_v43 = vmax.bf16 %v6023_v5, %v20712_v2  ;;  %v20727_v57 = vld [vmem:[#allocation90_spill] sm:$0xff] }
 0x639   : > { %v7192_v8 = vadd.f32 %v20722_v7, %v6761_v15  ;;  %v20725_v63 = vmax.bf16 %v17897_v6, %v17749_v11  ;;  %v6026_v34 = vmax.bf16 %v5468_v46, %v20726_v33  ;;  %v6762_v7 = vadd.f32 %v6645_v59, %v6369_v56  ;;  %v10780_v53 = vpop.f32.mrf.mxu1  ;;  %v20730_v6 = vld [vmem:[#allocation208_spill] sm:$0xff]  ;;  %v20735_v59 = vld [vmem:[#allocation223_spill] sm:$0xff] }
 0x63a   : > { %v5006_v13 = vmax.bf16 %v4462_v36, %v20727_v57  ;;  %8520 = vrot.lane.b32.xlu1 %v7377_v42, %s11193_s14  ;;  %v7693_v9 = vrot.slane %v7691_v62, 3  ;;  %v7696_v38 = vrot.slane %v7694_v16, 4  ;;  %v9437_v22 = vcombine.low %v7264_v40, %v7265_v35  ;;  %v20732_v62 = vld [vmem:[#allocation107_spill] sm:$0xff]  ;;  %v20737_v53 = vld [vmem:[#allocation234_spill] sm:$0xff] }
 0x63b   : > { %v5467_v0 = vmax.bf16 %v20725_v63, %v3397_v25  ;;  %v7324_v15 = vadd.f32 %v17792_v18, %v7192_v8  ;;  %v6855_v2 = vmax.bf16 %v6427_v49, %v20728_v21  ;;  %v7193_v11 = vadd.f32 %v20729_v52, %v6762_v7  ;;  %v20731_v25 = vld [vmem:[#allocation305_spill] sm:$0xff]  ;;  %v6650_v56 = vpop.f32.mrf.mxu1  ;;  %v18047_v49 = vpop.permute.xlu1 %8264 }
 0x63c   : > { %v6370_v29 = vadd.f32 %v20731_v25, %v20730_v6  ;;  %v7689_v46 = vsel %vm2387_vm14, %v17981_v39, %v7688_v20  ;;  %v5005_v36 = vmax.bf16 %v4461_v60, %v20719_v26  ;;  %v6854_v8 = vmax.bf16 %v6426_v43, %v20717_v10  ;;  %v18049_v35 = vpop.permute.xlu0 %8266  ;;  %v20733_v39 = vld [vmem:[#allocation98_spill] sm:$0xff]  ;;  %v20736_v7 = vld [vmem:[#allocation309_spill] sm:$0xff] }
 0x63d   : > { %v7378_v5 = vmax.f32 %v7324_v15, 0.0  ;;  %v6025_v42 = vmax.bf16 %v5467_v0, %v4326_v51  ;;  %10992 = vmatmul.mubr.msk.bf16.gmra.mxu1 %vm601_vm1, %v7689_v46  ;;  %v5470_v16 = vmax.bf16 %v5006_v13, %v20732_v62  ;;  %v7325_v40 = vadd.f32 %v17792_v18, %v7193_v11  ;;  %v10783_v51 = vpop.f32.mrf.mxu1  ;;  %v20734_v43 = vld [vmem:[#allocation114_spill] sm:$0xff] }
 0x63e   : > { %v6763_v63 = vadd.f32 %v6650_v56, %v6370_v29  ;;  %10995 = vmatprep.mubr.msk.bf16.mxu1 %vm11191_vm0, %v19240_v61  ;;  %v6429_v10 = vmax.bf16 %v6026_v34, %v20733_v39  ;;  %v7700_v26 = vshrl.u32 %v9437_v22, 16  ;;  %v7703_v60 = vshll.u32 %v9437_v22, 16  ;;  %v20738_v34 = vld [vmem:[#allocation111_spill] sm:$0xff] }
 0x63f   : > { %8522 = vrot.lane.b32.xlu0 %v7378_v5, %s11193_s14  ;;  %v7267_v0 = vmax.bf16 %v6855_v2, %v20734_v43  ;;  %v7379_v13 = vmax.f32 %v7325_v40, 0.0  ;;  %v6371_v52 = vadd.f32 %v20737_v53, %v20736_v7  ;;  %v7697_v11 = vor.u32 %v7696_v38, %v7693_v9  ;;  %v6653_v29 = vpop.f32.mrf.mxu1  ;;  %v20739_v51 = vld [vmem:[#allocation255_spill] sm:$0xff]  ;;  %v18067_v38 = vpop.permute.xlu1 %8268 }
 0x640   : > { %v7194_v15 = vadd.f32 %v20735_v59, %v6763_v63  ;;  %v7266_v6 = vmax.bf16 %v6854_v8, %v20726_v33  ;;  %v6428_v5 = vmax.bf16 %v6025_v42, %v20727_v57  ;;  %v5469_v25 = vmax.bf16 %v5005_v36, %v20728_v21  ;;  %v18069_v33 = vpop.permute.xlu0 %8270  ;;  %v20740_v36 = vld [vmem:[#allocation149_spill] sm:$0xff]  ;;  %v20743_v53 = vld [vmem:[#allocation259_spill] sm:$0xff] }
 0x641   : > { %v6028_v46 = vmax.bf16 %v5470_v16, %v20738_v34  ;;  %v6764_v56 = vadd.f32 %v6653_v29, %v6371_v52  ;;  %8524 = vrot.lane.b32.xlu1 %v7379_v13, %s11193_s14  ;;  %v10784_v2 = vpop.f32.mrf.mxu1  ;;  %v7702_v40 = vrot.slane %v7700_v26, 3  ;;  %v7705_v63 = vrot.slane %v7703_v60, 4  ;;  %v20741_v8 = vld [vmem:[#allocation61_spill] sm:$0xff] }
 0x642   : > { %v7326_v22 = vadd.f32 %v17792_v18, %v7194_v15  ;;  %v9438_v39 = vcombine.low %v7266_v6, %v7267_v0  ;;  %v6857_v9 = vmax.bf16 %v6429_v10, %v20739_v51  ;;  %v6372_v42 = vadd.f32 %v20741_v8, %v20740_v36  ;;  %v20744_v6 = vld [vmem:[#allocation311_spill] sm:$0xff] }
 0x643   : > { %v7195_v21 = vadd.f32 %v17404_v50, %v6764_v56  ;;  %v7698_v16 = vsel %vm2387_vm14, %v7688_v20, %v7697_v11  ;;  %v6856_v13 = vmax.bf16 %v6428_v5, %v20732_v62  ;;  %v6027_v26 = vmax.bf16 %v5469_v25, %v20734_v43  ;;  %v6658_v60 = vpop.f32.mrf.mxu1  ;;  %v20742_v50 = vld [vmem:[#allocation97_spill] sm:$0xff]  ;;  %v20745_v5 = vld [vmem:[#allocation240_spill] sm:$0xff]  ;;  %v20746_v56 = vld [vmem:[#allocation87_spill] sm:$0xff] }
 0x644   : > { %v7380_v57 = vmax.f32 %v7326_v22, 0.0  ;;  %v6765_v0 = vadd.f32 %v6658_v60, %v6372_v42  ;;  %v6431_v59 = vmax.bf16 %v6028_v46, %v20742_v50  ;;  %v7706_v7 = vor.u32 %v7705_v63, %v7702_v40  ;;  %v18091_v46 = vpop.permute.xlu0 %8274 }
 0x645   : > { %10996 = vmatmul.mubr.msk.bf16.gmra.mxu1 %vm601_vm1, %v7698_v16  ;;  %v7327_v10 = vadd.f32 %v17792_v18, %v7195_v21  ;;  %v10787_v15 = vpop.f32.mrf.mxu1  ;;  %v7709_v20 = vshrl.u32 %v9438_v39, 16  ;;  %v7269_v62 = vmax.bf16 %v6857_v9, %v20743_v53  ;;  %v6373_v25 = vadd.f32 %v20745_v5, %v20744_v6  ;;  %v20748_v16 = vld [vmem:[#allocation99_spill] sm:$0xff] }
 0x646   : > { %8526 = vrot.lane.b32.xlu0 %v7380_v57, %s11193_s14  ;;  %10999 = vmatprep.mubr.msk.bf16.mxu1 %vm11191_vm0, %v19240_v61  ;;  %v7196_v43 = vadd.f32 %v17443_v48, %v6765_v0  ;;  %v7712_v29 = vshll.u32 %v9438_v39, 16  ;;  %v7268_v22 = vmax.bf16 %v6856_v13, %v20738_v34  ;;  %v6430_v2 = vmax.bf16 %v6027_v26, %v20746_v56  ;;  %v18089_v57 = vpop.permute.xlu1 %8272  ;;  %v20747_v39 = vld [vmem:[#allocation115_spill] sm:$0xff]  ;;  %v20749_v13 = vld [vmem:[#allocation306_spill] sm:$0xff] }
 0x647   : > { %v7381_v52 = vmax.f32 %v7327_v10, 0.0  ;;  %v6661_v51 = vpop.f32.mrf.mxu1  ;;  %v7707_v48 = vsel %vm2387_vm14, %v7697_v11, %v7706_v7  ;;  %v7711_v21 = vrot.slane %v7709_v20, 3  ;;  %v6859_v8 = vmax.bf16 %v6431_v59, %v20747_v39  ;;  %v20750_v10 = vld [vmem:[#allocation103_spill] sm:$0xff]  ;;  %v20751_v20 = vld [vmem:[#allocation118_spill] sm:$0xff] }
 0x648   : > { %v7328_v40 = vadd.f32 %v17792_v18, %v7196_v43  ;;  %v6766_v63 = vadd.f32 %v6661_v51, %v6373_v25  ;;  %v9439_v36 = vcombine.low %v7268_v22, %v7269_v62  ;;  %v6374_v26 = vadd.f32 %v20749_v13, %v20748_v16  ;;  %v18109_v43 = vpop.permute.xlu0 %8278  ;;  %v20752_v5 = vld [vmem:[#allocation335_spill] sm:$0xff]  ;;  %v20754_v22 = vld [vmem:[#allocation194_spill] sm:$0xff]  ;;  %v20755_v51 = vld [vmem:[#allocation252_spill] sm:$0xff] }
 0x649   : > { %8528 = vrot.lane.b32.xlu1 %v7381_v52, %s11193_s14  ;;  %v10788_v9 = vpop.f32.mrf.mxu1  ;;  %v7714_v60 = vrot.slane %v7712_v29, 4  ;;  %v6858_v0 = vmax.bf16 %v6430_v2, %v20750_v10  ;;  %v7271_v62 = vmax.bf16 %v6859_v8, %v20751_v20  ;;  %v20753_v29 = vld [vmem:[#allocation4_spill] sm:$0xff]  ;;  %vm1820_vm7 = vcmp.eq.s32.totalorder %v17767_v23, 1  ;;  %v20764_v23 = vld [vmem:[#allocation123_spill] sm:$0xff] }
 0x64a   : > { %v7382_v34 = vmax.f32 %v7328_v40, 0.0  ;;  %v7197_v42 = vadd.f32 %v17466_v28, %v6766_v63  ;;  %v7718_v59 = vshrl.u32 %v9439_v36, 16  ;;  %v7721_v28 = vshll.u32 %v9439_v36, 16  ;;  %v18107_v52 = vpop.permute.xlu1 %8276  ;;  %vm1886_vm10 = vmpackc.low %vm1820_vm7, %vm1820_vm7 }
 0x64b   : > { %v6666_v50 = vpop.f32.mrf.mxu1  ;;  %v6375_v56 = vadd.f32 %v20754_v22, %v20753_v29  ;;  %v7715_v2 = vor.u32 %v7714_v60, %v7711_v21  ;;  %v7270_v40 = vmax.bf16 %v6858_v0, %v20755_v51  ;;  %v20756_v21 = vld [vmem:[#allocation109_spill] sm:$0xff]  ;;  %v20757_v60 = vld [vmem:[#allocation254_spill] sm:$0xff]  ;;  %vm1821_vm11 = vcmp.eq.s32.totalorder %v17769_v24, 1 }
 0x64c   : > { %v7329_v15 = vadd.f32 %v17792_v18, %v7197_v42  ;;  %v6767_v53 = vadd.f32 %v6666_v50, %v6374_v26  ;;  %8530 = vrot.lane.b32.xlu0 %v7382_v34, %s11193_s14  ;;  %v7720_v39 = vrot.slane %v7718_v59, 3  ;;  %v7723_v8 = vrot.slane %v7721_v28, 4  ;;  %v18119_v16 = vpop.permute.xlu0 %8282  ;;  %vm18199_vm13 = vmpackc.low %vm1821_vm11, %vm1821_vm11 }
 0x64d   : > { %11000 = vmatmul.mubr.msk.bf16.gmra.mxu1 %vm601_vm1, %v7707_v48  ;;  %v10791_v11 = vpop.f32.mrf.mxu1  ;;  %v9440_v34 = vcombine.low %v7270_v40, %v7271_v62  ;;  %v6376_v10 = vadd.f32 %v20757_v60, %v20756_v21  ;;  %v7716_v0 = vsel %vm2387_vm14, %v7706_v7, %v7715_v2 }
 0x64e   : > { %11003 = vmatprep.mubr.msk.bf16.mxu1 %vm11191_vm0, %v19240_v61  ;;  %v7383_v6 = vmax.f32 %v7329_v15, 0.0  ;;  %v7198_v25 = vadd.f32 %v20752_v5, %v6767_v53  ;;  %v18117_v42 = vpop.permute.xlu1 %8280  ;;  %v20759_v5 = vld [vmem:[#allocation128_spill] sm:$0xff]  ;;  %v7724_v29 = vor.u32 %v7723_v8, %v7720_v39 }
 0x64f   : > { %v6669_v63 = vpop.f32.mrf.mxu1  ;;  %v7727_v59 = vshrl.u32 %v9440_v34, 16  ;;  %v7730_v28 = vshll.u32 %v9440_v34, 16 }
 0x650   : > { %v7330_v9 = vadd.f32 %v17792_v18, %v7198_v25  ;;  %v6768_v48 = vadd.f32 %v6669_v63, %v6375_v56  ;;  %8532 = vrot.lane.b32.xlu1 %v7383_v6, %s11193_s14  ;;  %v18132_v20 = vpop.permute.xlu0 %8286  ;;  %v20758_v6 = vld [vmem:[#allocation6_spill] sm:$0xff]  ;;  %v7725_v39 = vsel %vm2387_vm14, %v7715_v2, %v7724_v29 }
 0x651   : > { %v10792_v36 = vpop.f32.mrf.mxu1  ;;  %v6377_v25 = vadd.f32 %v20759_v5, %v20758_v6  ;;  %v7729_v63 = vrot.slane %v7727_v59, 3  ;;  %v20765_v5 = vld [vmem:[#allocation143_spill] sm:$0xff] }
 0x652   : > { %v7384_v13 = vmax.f32 %v7330_v9, 0.0  ;;  %v7199_v26 = vadd.f32 %v17507_v4, %v6768_v48  ;;  %v18130_v4 = vpop.permute.xlu1 %8284  ;;  %v7732_v9 = vrot.slane %v7730_v28, 4 }
 0x653   : > { %v6674_v50 = vpop.f32.mrf.mxu1 }
 0x654   : > { %v7331_v15 = vadd.f32 %v17792_v18, %v7199_v26  ;;  %v6769_v53 = vadd.f32 %v6674_v50, %v6376_v10  ;;  %8534 = vrot.lane.b32.xlu0 %v7384_v13, %s11193_s14  ;;  %v18141_v36 = vpop.permute.xlu0 %8290  ;;  %v20760_v13 = vld [vmem:[#allocation287_spill] sm:$0xff]  ;;  %v20761_v26 = vld [vmem:[#allocation262_spill] sm:$0xff]  ;;  %v7733_v28 = vor.u32 %v7732_v9, %v7729_v63  ;;  %v20768_v63 = vld [vmem:[#allocation257_spill] sm:$0xff] }
 0x655   : > { %11004 = vmatmul.mubr.msk.bf16.gmra.mxu1 %vm601_vm1, %v7716_v0  ;;  %v10795_v11 = vpop.f32.mrf.mxu1  ;;  %v6378_v21 = vadd.f32 %v20761_v26, %v20760_v13  ;;  %v20769_v9 = vld [vmem:[#allocation100_spill] sm:$0xff]  ;;  %v20770_v13 = vld [vmem:[#allocation131_spill] sm:$0xff]  ;;  %v20771_v26 = vld [vmem:[#allocation153_spill] sm:$0xff] }
 0x656   : > { %11007 = vmatprep.mubr.msk.bf16.mxu1 %vm11191_vm0, %v19240_v61  ;;  %v7385_v62 = vmax.f32 %v7331_v15, 0.0  ;;  %v7200_v7 = vadd.f32 %v17541_v44, %v6769_v53  ;;  %v18139_v48 = vpop.permute.xlu1 %8288  ;;  %v20762_v53 = vld [vmem:[#allocation318_spill] sm:$0xff]  ;;  %v20763_v11 = vld [vmem:[#allocation121_spill] sm:$0xff] }
 0x657   : > { %v6677_v22 = vpop.f32.mrf.mxu1  ;;  %v6379_v59 = vadd.f32 %v20763_v11, %v20762_v53 }
 0x658   : > { %v7332_v56 = vadd.f32 %v17792_v18, %v7200_v7  ;;  %v6770_v51 = vadd.f32 %v6677_v22, %v6377_v25  ;;  %8536 = vrot.lane.b32.xlu1 %v7385_v62, %s11193_s14  ;;  %v18155_v50 = vpop.permute.xlu0 %8294  ;;  %v3630_v25 = vmax.bf16 %v20765_v5, %v20764_v23  ;;  %v20778_v5 = vld [vmem:[#allocation156_spill] sm:$0xff] }
 0x659   : > { %v10796_v40 = vpop.f32.mrf.mxu1 }
 0x65a   : > { %v7386_v34 = vmax.f32 %v7332_v56, 0.0  ;;  %v7201_v44 = vadd.f32 %v17567_v58, %v6770_v51  ;;  %v18153_v58 = vpop.permute.xlu1 %8292 }
 0x65b   : > { %v6682_v8 = vpop.f32.mrf.mxu1 }
 0x65c   : > { %v7333_v60 = vadd.f32 %v17792_v18, %v7201_v44  ;;  %v6771_v10 = vadd.f32 %v6682_v8, %v6378_v21  ;;  %8538 = vrot.lane.b32.xlu0 %v7386_v34, %s11193_s14  ;;  %v18166_v51 = vpop.permute.xlu0 %8298  ;;  %v6380_v34 = vadd.f32 %v20769_v9, %v20768_v63  ;;  %v7734_v44 = vsel %vm2387_vm14, %v7724_v29, %v7733_v28  ;;  %v11177_v8 = vld [vmem:[%s11299_s24 + $0xec] sm:$0xf] }
 0x65d   : > { %11008 = vmatmul.mubr.msk.bf16.gmra.mxu1 %vm601_vm1, %v7725_v39  ;;  %v10799_v0 = vpop.f32.mrf.mxu1  ;;  %20767 = vst [vmem:[#allocation242_spill] sm:$0xff] %v18166_v51  ;;  %v3631_v21 = vmax.bf16 %v20771_v26, %v20770_v13  ;;  %v20780_v13 = vld [vmem:[#allocation136_spill] sm:$0xff]  ;;  %v20781_v26 = vld [vmem:[#allocation150_spill] sm:$0xff] }
 0x65e   : > { %11011 = vmatprep.mubr.msk.bf16.mxu1 %vm11191_vm0, %v19240_v61  ;;  %v7387_v15 = vmax.f32 %v7333_v60, 0.0  ;;  %v7202_v2 = vadd.f32 %v17603_v3, %v6771_v10  ;;  %v18164_v56 = vpop.permute.xlu1 %8296  ;;  %v18176_v60 = vsel %vm1886_vm10, %v11177_v8, -1.00492276e+30 }
 0x65f   : > { %v6685_v62 = vpop.f32.mrf.mxu1  ;;  %20766 = vst [vmem:[#allocation33_spill] sm:$0xff] %v18164_v56 }
 0x660   : > { %v7334_v7 = vadd.f32 %v17792_v18, %v7202_v2  ;;  %v6772_v6 = vadd.f32 %v6685_v62, %v6379_v59  ;;  %8540 = vrot.lane.b32.xlu1 %v7387_v15, %s11193_s14  ;;  %v20772_v15 = vld [vmem:[#allocation151_spill] sm:$0xff]  ;;  %v18185_v53 = vpop.permute.xlu0 %8302  ;;  %v20775_v59 = vld [vmem:[#allocation220_spill] sm:$0xff] }
 0x661   : > { %v10800_v22 = vpop.f32.mrf.mxu1  ;;  %v4473_v29 = vmax.bf16 %v20772_v15, %v3630_v25  ;;  %20774 = vst [vmem:[#allocation34_spill] sm:$0xff] %v18185_v53  ;;  %v20779_v25 = vld [vmem:[#allocation159_spill] sm:$0xff]  ;;  %v20807_v53 = vld [vmem:[#allocation333_spill] sm:$0xff] }
 0x662   : > { %v7388_v3 = vmax.f32 %v7334_v7, 0.0  ;;  %v7203_v40 = vadd.f32 %v17635_v37, %v6772_v6  ;;  %v18183_v2 = vpop.permute.xlu1 %8300  ;;  %v20776_v7 = vld [vmem:[#allocation320_spill] sm:$0xff]  ;;  %v20777_v6 = vld [vmem:[#allocation331_spill] sm:$0xff]  ;;  %v4474_v22 = vmax.bf16 %v20778_v5, %v3631_v21  ;;  %v6788_v9 = vshrl.u32 %v20779_v25, 16 }
 0x663   : > { %v6690_v39 = vpop.f32.mrf.mxu1  ;;  %20773 = vst [vmem:[#allocation341_spill] sm:$0xff] %v18183_v2  ;;  %v6381_v23 = vadd.f32 %v20777_v6, %v20776_v7 }
 0x664   : > { %v7335_v10 = vadd.f32 %v17792_v18, %v7203_v40  ;;  %v6773_v0 = vadd.f32 %v6690_v39, %v6380_v34  ;;  %8542 = vrot.lane.b32.xlu0 %v7388_v3, %s11193_s14  ;;  %v6794_v3 = vshll.u32 %v18176_v60, 16  ;;  %v6798_v40 = vshrl.u32 %v18176_v60, 16 }
 0x665   : > { %11012 = vmatmul.mubr.msk.bf16.gmra.mxu1 %vm601_vm1, %v7734_v44  ;;  %v10803_v37 = vpop.f32.mrf.mxu1  ;;  %v3632_v39 = vmax.bf16 %v20781_v26, %v20780_v13 }
 0x666   : > { %11015 = vmatprep.mubr.msk.bf16.mxu1 %vm11191_vm0, %v19240_v61  ;;  %v7389_v11 = vmax.f32 %v7335_v10, 0.0  ;;  %v7204_v62 = vadd.f32 %v20775_v59, %v6773_v0  ;;  %v18203_v10 = vpop.permute.xlu1 %8304  ;;  %v18205_v0 = vpop.permute.xlu0 %8306  ;;  %v20786_v37 = vld [vmem:[#allocation21_spill] sm:$0xff]  ;;  %v20787_v59 = vld [vmem:[#allocation346_spill] sm:$0xff]  ;;  %v18214_v26 = vrot.slane %v6794_v3, 5 }
 0x667   : > { %v6693_v63 = vpop.f32.mrf.mxu1  ;;  %20784 = vst [vmem:[#allocation35_spill] sm:$0xff] %v18203_v10  ;;  %20785 = vst [vmem:[#allocation225_spill] sm:$0xff] %v18205_v0  ;;  %v20806_v0 = vld [vmem:[#allocation190_spill] sm:$0xff] }
 0x668   : > { %v7336_v34 = vadd.f32 %v17792_v18, %v7204_v62  ;;  %v6774_v44 = vadd.f32 %v6693_v63, %v6381_v23  ;;  %8544 = vrot.lane.b32.xlu1 %v7389_v11, %s11193_s14  ;;  %v20788_v62 = vld [vmem:[#allocation229_spill] sm:$0xff]  ;;  %v20789_v11 = vld [vmem:[#allocation166_spill] sm:$0xff]  ;;  %v20790_v23 = vld [vmem:[#allocation139_spill] sm:$0xff] }
 0x669   : > { %v10804_v8 = vpop.f32.mrf.mxu1  ;;  %v6382_v7 = vadd.f32 %v20788_v62, %v20787_v59  ;;  %v7743_v6 = vsel %vm2387_vm14, %v7733_v28, %v20789_v11  ;;  %v5017_v5 = vmax.bf16 %v4473_v29, %v20790_v23  ;;  %v20791_v63 = vld [vmem:[#allocation147_spill] sm:$0xff]  ;;  %v20792_v28 = vld [vmem:[#allocation157_spill] sm:$0xff] }
 0x66a   : > { %v7390_v24 = vmax.f32 %v7336_v34, 0.0  ;;  %v7205_v15 = vadd.f32 %v20786_v37, %v6774_v44  ;;  %v5018_v13 = vmax.bf16 %v4474_v22, %v20791_v63  ;;  %v6800_v8 = vrot.slane %v6798_v40, 4  ;;  %v20793_v29 = vld [vmem:[#allocation163_spill] sm:$0xff]  ;;  %v11178_v22 = vld [vmem:[%s11299_s24 + $0xf0] sm:$0xf]  ;;  %v18228_v11 = vpop.permute.xlu1 %8308 }
 0x66b   : > { %v6698_v10 = vpop.f32.mrf.mxu1  ;;  %v6790_v34 = vrot.slane %v6788_v9, 4  ;;  %v4475_v59 = vmax.bf16 %v20792_v28, %v3632_v39  ;;  %v18226_v3 = vsel %vm18199_vm13, %v11178_v22, -1.00492276e+30  ;;  %20794 = vst [vmem:[#allocation53_spill] sm:$0xff] %v18228_v11  ;;  %v18230_v9 = vpop.permute.xlu0 %8310  ;;  %v20799_v63 = vld [vmem:[#allocation160_spill] sm:$0xff] }
 0x66c   : > { %v7337_v44 = vadd.f32 %v17792_v18, %v7205_v15  ;;  %v6775_v37 = vadd.f32 %v6698_v10, %v6382_v7  ;;  %8546 = vrot.lane.b32.xlu0 %v7390_v24, %s11193_s14  ;;  %v5482_v62 = vmax.bf16 %v20793_v29, %v5018_v13  ;;  %20795 = vst [vmem:[#allocation247_spill] sm:$0xff] %v18230_v9  ;;  %v20796_v15 = vld [vmem:[#allocation226_spill] sm:$0xff]  ;;  %v20797_v7 = vld [vmem:[#allocation23_spill] sm:$0xff]  ;;  %v20800_v29 = vld [vmem:[#allocation165_spill] sm:$0xff]  ;;  %v6804_v22 = vshll.u32 %v18226_v3, 16 }
 0x66d   : > { %11016 = vmatmul.mubr.msk.bf16.gmra.mxu1 %vm601_vm1, %v7743_v6  ;;  %v10807_v40 = vpop.f32.mrf.mxu1  ;;  %v20798_v6 = vld [vmem:[#allocation264_spill] sm:$0xff]  ;;  %v6801_v39 = vor.u32 %v6800_v8, %v18214_v26  ;;  %v5481_v13 = vmax.bf16 %v20799_v63, %v5017_v5  ;;  %v6791_v21 = vor.u32 %v6790_v34, %v20800_v29  ;;  %v20805_v34 = vld [vmem:[#allocation337_spill] sm:$0xff]  ;;  %v7221_v2 = vrot.slane %v18226_v3, 5 }
 0x66e   : > { %11019 = vmatprep.mubr.msk.bf16.mxu1 %vm11191_vm0, %v19240_v61  ;;  %v7391_v10 = vmax.f32 %v7337_v44, 0.0  ;;  %v7206_v24 = vadd.f32 %v20796_v15, %v6775_v37  ;;  %v6383_v23 = vadd.f32 %v20798_v6, %v20797_v7  ;;  %v20801_v44 = vld [vmem:[#allocation145_spill] sm:$0xff]  ;;  %v20802_v37 = vld [vmem:[#allocation168_spill] sm:$0xff]  ;;  %v6808_v7 = vshrl.u32 %v18226_v3, 16  ;;  %v18244_v8 = vpop.permute.xlu1 %8312 }
 0x66f   : > { %v6701_v28 = vpop.f32.mrf.mxu1  ;;  %v5019_v9 = vmax.bf16 %v4475_v59, %v20801_v44  ;;  %v6040_v15 = vmax.bf16 %v20802_v37, %v5482_v62  ;;  %20803 = vst [vmem:[#allocation36_spill] sm:$0xff] %v18244_v8  ;;  %v18246_v5 = vpop.permute.xlu0 %8314  ;;  %v20809_v62 = vld [vmem:[#allocation269_spill] sm:$0xff]  ;;  %v6792_v37 = vrot.slane %v6791_v21, 4 }
 0x670   : > { %v7338_v40 = vadd.f32 %v17792_v18, %v7206_v24  ;;  %v6776_v11 = vadd.f32 %v6701_v28, %v6383_v23  ;;  %8548 = vrot.lane.b32.xlu1 %v7391_v10, %s11193_s14  ;;  %20804 = vst [vmem:[#allocation343_spill] sm:$0xff] %v18246_v5  ;;  %v6384_v24 = vadd.f32 %v20807_v53, %v20806_v0  ;;  %v6802_v23 = vrot.slane %v6801_v39, 4  ;;  %v20808_v28 = vld [vmem:[#allocation164_spill] sm:$0xff]  ;;  %v20810_v0 = vld [vmem:[#allocation161_spill] sm:$0xff] }
 0x671   : > { %v10808_v6 = vpop.f32.mrf.mxu1  ;;  %v7218_v10 = vrot.slane %v18176_v60, 5  ;;  %v6039_v59 = vmax.bf16 %v20808_v28, %v5481_v13  ;;  %v6443_v53 = vmax.bf16 %v6040_v15, %v18176_v60  ;;  %v6810_v39 = vrot.slane %v6808_v7, 4 }
 0x672   : > { %v7392_v63 = vmax.f32 %v7338_v40, 0.0  ;;  %v7207_v29 = vadd.f32 %v20805_v34, %v6776_v11  ;;  %v6806_v6 = vrot.slane %v6804_v22, 5  ;;  %v5483_v11 = vmax.bf16 %v20810_v0, %v5019_v9  ;;  %v18261_v40 = vpop.permute.xlu1 %8316  ;;  %v20813_v22 = vld [vmem:[#allocation222_spill] sm:$0xff]  ;;  %v20817_v0 = vld [vmem:[#allocation169_spill] sm:$0xff] }
 0x673   : > { %20811 = vst [vmem:[#allocation31_spill] sm:$0xff] %v18261_v40  ;;  %v18263_v34 = vpop.permute.xlu0 %8318  ;;  %v6797_v9 = vsel %vm12552_vm6, %v6792_v37, %v18214_v26  ;;  %v20821_v37 = vld [vmem:[#allocation124_spill] sm:$0xff] }
 0x674   : > { %v7339_v8 = vadd.f32 %v17792_v18, %v7207_v29  ;;  %8550 = vrot.lane.b32.xlu0 %v7392_v63, %s11193_s14  ;;  %20812 = vst [vmem:[#allocation88_spill] sm:$0xff] %v18263_v34  ;;  %v20814_v29 = vld [vmem:[#allocation324_spill] sm:$0xff]  ;;  %v7220_v63 = vrot.slane %v7218_v10, 4  ;;  %v6807_v15 = vsel %vm12552_vm6, %v6802_v23, %v6806_v6 }
 0x675   : > { %v6706_v44 = vpop.f32.mrf.mxu1  ;;  %11020 = vmatmul.mubr.msk.bf16.gmra.mxu1 %vm601_vm1, %v20809_v62  ;;  %v6442_v62 = vmax.bf16 %v6039_v59, %v20779_v25  ;;  %v6811_v59 = vor.u32 %v6810_v39, %v6806_v6  ;;  %v20832_v6 = vld [vmem:[#allocation261_spill] sm:$0xff] }
 0x676   : > { %v6777_v5 = vadd.f32 %v6706_v44, %v6384_v24  ;;  %11023 = vmatprep.mubr.msk.bf16.mxu1 %vm11191_vm0, %v19240_v61  ;;  %v7393_v21 = vmax.f32 %v7339_v8, 0.0  ;;  %v20815_v24 = vld [vmem:[#allocation172_spill] sm:$0xff]  ;;  %v18281_v40 = vpop.permute.xlu1 %8320 }
 0x677   : > { %v10811_v13 = vpop.f32.mrf.mxu1  ;;  %v6385_v44 = vadd.f32 %v20815_v24, %v20814_v29  ;;  %v20818_v24 = vrot.slane %v20779_v25, 5  ;;  %20819 = vst [vmem:[#allocation64_spill] sm:$0xff] %v18281_v40  ;;  %v18283_v26 = vpop.permute.xlu0 %8322  ;;  %v7222_v25 = vsel %vm12583_vm12, %v7220_v63, %v7221_v2  ;;  %v6812_v39 = vrot.slane %v6811_v59, 4 }
 0x678   : > { %v7208_v28 = vadd.f32 %v20813_v22, %v6777_v5  ;;  %8552 = vrot.lane.b32.xlu1 %v7393_v21, %s11193_s14  ;;  %v20816_v5 = vld [vmem:[#allocation37_spill] sm:$0xff]  ;;  %v6041_v13 = vmax.bf16 %v20817_v0, %v5483_v11  ;;  %v6871_v22 = vmax.bf16 %v6807_v15, %v6443_v53  ;;  %20820 = vst [vmem:[#allocation38_spill] sm:$0xff] %v18283_v26  ;;  %v7223_v59 = vrot.slane %v7221_v2, 4 }
 0x679   : > { %v6709_v60 = vpop.f32.mrf.mxu1  ;;  %vm1822_vm8 = vcmp.eq.s32.totalorder %v20816_v5, 1  ;;  %v7217_v34 = vrot.slane %v20818_v24, 4  ;;  %v20823_v5 = vld [vmem:[#allocation270_spill] sm:$0xff]  ;;  %v20829_v24 = vld [vmem:[#allocation279_spill] sm:$0xff] }
 0x67a   : > { %v7340_v7 = vadd.f32 %v17792_v18, %v7208_v28  ;;  %v6778_v8 = vadd.f32 %v6709_v60, %v6385_v44  ;;  %v20822_v28 = vld [vmem:[#allocation148_spill] sm:$0xff]  ;;  %v6870_v44 = vmax.bf16 %v6797_v9, %v6442_v62  ;;  %vm18290_vm6 = vmpackc.low %vm1822_vm8, %vm1822_vm8  ;;  %v7283_v62 = vmax.bf16 %v7222_v25, %v6871_v22 }
 0x67b   : > { %v10812_v29 = vpop.f32.mrf.mxu1  ;;  %v6386_v21 = vadd.f32 %v20822_v28, %v20821_v37  ;;  %v7219_v15 = vsel %vm12583_vm12, %v7217_v34, %v7218_v10  ;;  %v18305_v63 = vpop.permute.xlu0 %8326  ;;  %v11179_v37 = vld [vmem:[%s11299_s24 + $0xf4] sm:$0xf] }
 0x67c   : > { %v7394_v27 = vmax.f32 %v7340_v7, 0.0  ;;  %v7209_v23 = vadd.f32 %v17829_v47, %v6778_v8  ;;  %v6444_v47 = vmax.bf16 %v6041_v13, %v18226_v3  ;;  %v18303_v7 = vpop.permute.xlu1 %8324  ;;  %20827 = vst [vmem:[#allocation250_spill] sm:$0xff] %v18305_v63  ;;  %v20828_v29 = vld [vmem:[#allocation299_spill] sm:$0xff]  ;;  %v1950_v3 = vsel %vm18290_vm6, %v11179_v37, -1.00492276e+30 }
 0x67d   : > { %v6714_v60 = vpop.f32.mrf.mxu1  ;;  %11024 = vmatmul.mubr.msk.bf16.gmra.mxu1 %vm601_vm1, %v20823_v5  ;;  %20826 = vst [vmem:[#allocation253_spill] sm:$0xff] %v18303_v7 }
 0x67e   : > { %v7341_v53 = vadd.f32 %v17792_v18, %v7209_v23  ;;  %v6779_v11 = vadd.f32 %v6714_v60, %v6386_v21  ;;  %8554 = vrot.lane.b32.xlu0 %v7394_v27, %s11193_s14  ;;  %11027 = vmatprep.mubr.msk.bf16.mxu1 %vm11191_vm0, %v19240_v61  ;;  %v6387_v27 = vadd.f32 %v20829_v24, %v20828_v29  ;;  %v7224_v60 = vrot.slane %v1950_v3, 5 }
 0x67f   : > { %v10815_v9 = vpop.f32.mrf.mxu1  ;;  %v7282_v23 = vmax.bf16 %v7219_v15, %v6870_v44  ;;  %v6872_v34 = vmax.bf16 %v6812_v39, %v6444_v47  ;;  %v18317_v5 = vpop.permute.xlu0 %8330  ;;  %v11180_v47 = vld [vmem:[%s18873_s5] ss:$0 sm:$0xff] }
 0x680   : > { %v7395_v8 = vmax.f32 %v7341_v53, 0.0  ;;  %v7210_v0 = vadd.f32 %v17856_v41, %v6779_v11  ;;  %v18315_v41 = vpop.permute.xlu1 %8328  ;;  %20831 = vst [vmem:[#allocation74_spill] sm:$0xff] %v18317_v5  ;;  %v20833_v53 = vld [vmem:[#allocation89_spill] sm:$0xff]  ;;  %v20834_v9 = vld [vmem:[#allocation272_spill] sm:$0xff] }
 0x681   : > { %v6717_v13 = vpop.f32.mrf.mxu1  ;;  %v9446_v28 = vcombine.low %v7282_v23, %v7283_v62  ;;  %20830 = vst [vmem:[#allocation345_spill] sm:$0xff] %v18315_v41  ;;  %v6388_v11 = vadd.f32 %v20833_v53, %v20832_v6  ;;  %v20838_v23 = vld [vmem:[#allocation93_spill] sm:$0xff] }
 0x682   : > { %v7342_v22 = vadd.f32 %v17792_v18, %v7210_v0  ;;  %v6780_v10 = vadd.f32 %v6717_v13, %v6387_v27  ;;  %8556 = vrot.lane.b32.xlu1 %v7395_v8, %s11193_s14  ;;  %v7225_v18 = vsel %vm12583_vm12, %v7223_v59, %v7224_v60  ;;  %v20837_v27 = vld [vmem:[#allocation32_spill] sm:$0xff] }
 0x683   : > { %v10816_v21 = vpop.f32.mrf.mxu1  ;;  %v7781_v8 = vshrl.u32 %v9446_v28, 16  ;;  %v18334_v29 = vpop.permute.xlu0 %8334  ;;  %v6389_v37 = vadd.f32 %v20838_v23, %v20837_v27  ;;  %v7784_v3 = vshll.u32 %v9446_v28, 16 }
 0x684   : > { %v7396_v44 = vmax.f32 %v7342_v22, 0.0  ;;  %v7211_v25 = vadd.f32 %v17885_v12, %v6780_v10  ;;  %v7284_v12 = vmax.bf16 %v7225_v18, %v6872_v34  ;;  %v18332_v0 = vpop.permute.xlu1 %8332  ;;  %20836 = vst [vmem:[#allocation105_spill] sm:$0xff] %v18334_v29  ;;  %v18343_v21 = vld [vmem:[%s18875_s7] ss:$0 sm:$0xff] }
 0x685   : > { %v6722_v2 = vpop.f32.mrf.mxu1  ;;  %11028 = vmatmul.mubr.msk.bf16.gmra.mxu1 %vm601_vm1, %v20834_v9  ;;  %20835 = vst [vmem:[#allocation260_spill] sm:$0xff] %v18332_v0  ;;  %v7783_v28 = vrot.slane %v7781_v8, 3  ;;  %v7786_v6 = vrot.slane %v7784_v3, 4 }
 0x686   : > { %v7343_v39 = vadd.f32 %v11180_v47, %v7211_v25  ;;  %v6781_v62 = vadd.f32 %v6722_v2, %v6388_v11  ;;  %8558 = vrot.lane.b32.xlu0 %v7396_v44, %s11193_s14  ;;  %11031 = vmatprep.mubr.msk.bf16.mxu1 %vm11191_vm0, %v19240_v61  ;;  %v9447_v10 = vcombine.low %v7284_v12, %v7284_v12  ;;  %v20841_v11 = vld [vmem:[#allocation275_spill] sm:$0xff] }
 0x687   : > { %v10819_v15 = vpop.f32.mrf.mxu1  ;;  %v18347_v44 = vpop.permute.xlu0 %8338  ;;  %v7787_v8 = vor.u32 %v7786_v6, %v7783_v28 }
 0x688   : > { %v7397_v45 = vmax.f32 %v7343_v39, 0.0  ;;  %v7212_v24 = vadd.f32 %v17915_v55, %v6781_v62  ;;  %v18345_v60 = vpop.permute.xlu1 %8336  ;;  %20840 = vst [vmem:[#allocation39_spill] sm:$0xff] %v18347_v44  ;;  %v7790_v39 = vshrl.u32 %v9447_v10, 16 }
 0x689   : > { %v6725_v13 = vpop.f32.mrf.mxu1  ;;  %20839 = vst [vmem:[#allocation258_spill] sm:$0xff] %v18345_v60 }
 0x68a   : > { %v7344_v59 = vadd.f32 %v11180_v47, %v7212_v24  ;;  %v6782_v22 = vadd.f32 %v6725_v13, %v6389_v37  ;;  %8560 = vrot.lane.b32.xlu1 %v7397_v45, %s11193_s14  ;;  %v7793_v45 = vshll.u32 %v9447_v10, 16  ;;  %v20846_v13 = vld [vmem:[#allocation273_spill] sm:$0xff] }
 0x68b   : > { %v10820_v34 = vpop.f32.mrf.mxu1  ;;  %v18358_v12 = vpop.permute.xlu0 %8342 }
 0x68c   : > { %v7398_v55 = vmax.f32 %v7344_v59, 0.0  ;;  %v7213_v25 = vadd.f32 %v17938_v19, %v6782_v22  ;;  %v18356_v62 = vpop.permute.xlu1 %8340  ;;  %20843 = vst [vmem:[#allocation41_spill] sm:$0xff] %v18358_v12  ;;  %v7788_v59 = vsel %vm2387_vm14, %v20846_v13, %v7787_v8  ;;  %v7792_v22 = vrot.slane %v7790_v39, 3 }
 0x68d   : > { %v7919_v53 = vpop.f32.mrf.mxu1  ;;  %11032 = vmatmul.mubr.msk.bf16.gmra.mxu1 %vm601_vm1, %v20841_v11  ;;  %20842 = vst [vmem:[#allocation110_spill] sm:$0xff] %v18356_v62  ;;  %v7795_v34 = vrot.slane %v7793_v45, 4 }
 0x68e   : > { %v7345_v2 = vadd.f32 %v11180_v47, %v7213_v25  ;;  %v7920_v9 = vadd.f32 %v18343_v21, %v7919_v53  ;;  %8562 = vrot.lane.b32.xlu0 %v7398_v55, %s11193_s14  ;;  %11035 = vmatprep.mubr.msk.bf16.mxu1 %vm11191_vm0, %v19240_v61 }
 0x68f   : > { %v10937_v18 = vpop.f32.mrf.mxu1  ;;  %v18365_v37 = vpop.permute.xlu0 %8346  ;;  %v7796_v11 = vor.u32 %v7795_v34, %v7792_v22 }
 0x690   : > { %v7399_v19 = vmax.f32 %v7345_v2, 0.0  ;;  %v8134_v15 = vmax.f32 %v7920_v9, 0.0  ;;  %v18363_v23 = vpop.permute.xlu1 %8344  ;;  %20845 = vst [vmem:[#allocation347_spill] sm:$0xff] %v18365_v37 }
 0x691   : > { %v7922_v24 = vpop.f32.mrf.mxu1  ;;  %20844 = vst [vmem:[#allocation40_spill] sm:$0xff] %v18363_v23 }
 0x692   : > { %v7923_v47 = vadd.f32 %v18343_v21, %v7922_v24  ;;  %8674 = vrot.lane.b32.xlu0 %v8134_v15, %s11192_s9  ;;  %8564 = vrot.lane.b32.xlu1 %v7399_v19, %s11193_s14 }
 0x693   : > { %v10938_v27 = vpop.f32.mrf.mxu1  ;;  %v18376_v6 = vpop.permute.xlu0 %8458 }
 0x694   : > { %v8135_v3 = vmax.f32 %v7923_v47, 0.0  ;;  %v18374_v28 = vpop.permute.xlu1 %8348 }
 0x695   : > { %v7927_v55 = vpop.f32.mrf.mxu1  ;;  %11036 = vmatmul.mubr.msk.bf16.gmra.mxu1 %vm601_vm1, %v7788_v59  ;;  %20847 = vst [vmem:[#allocation85_spill] sm:$0xff] %v18374_v28 }
 0x696   : > { %v7928_v10 = vadd.f32 %v18343_v21, %v7927_v55  ;;  %8676 = vrot.lane.b32.xlu1 %v8135_v3, %s11192_s9  ;;  %11039 = vmatprep.mubr.msk.bf16.mxu1 %vm11191_vm0, %v19240_v61  ;;  %v7797_v61 = vsel %vm2387_vm14, %v7787_v8, %v7796_v11  ;;  %vm8890_vm0 = vcmask 785408  }
 0x697   : > { %v10941_v25 = vpop.f32.mrf.mxu1  ;;  %v18382_v19 = vpop.permute.xlu0 %8462 }
 0x698   : > { %v8136_v53 = vmax.f32 %v7928_v10, 0.0  ;;  %v18380_v39 = vpop.permute.xlu1 %8460 }
 0x699   : > { %v7930_v2 = vpop.f32.mrf.mxu1 }
 0x69a   : > { %v7931_v9 = vadd.f32 %v18343_v21, %v7930_v2  ;;  %8678 = vrot.lane.b32.xlu0 %v8136_v53, %s11192_s9 }
 0x69b   : > { %v10942_v18 = vpop.f32.mrf.mxu1  ;;  %v18390_v3 = vpop.permute.xlu0 %8466 }
 0x69c   : > { %v8137_v15 = vmax.f32 %v7931_v9, 0.0  ;;  %v18388_v27 = vpop.permute.xlu1 %8464 }
 0x69d   : > { %v7935_v45 = vpop.f32.mrf.mxu1  ;;  %11040 = vmatmul.mubr.msk.bf16.gmra.mxu1 %vm601_vm1, %v7797_v61 }
 0x69e   : > { %v7936_v24 = vadd.f32 %v18343_v21, %v7935_v45  ;;  %8680 = vrot.lane.b32.xlu1 %v8137_v15, %s11192_s9 }
 0x69f   : > { %v10945_v47 = vpop.f32.mrf.mxu1  ;;  %v18396_v55 = vpop.permute.xlu0 %8470 }
 0x6a0   : > { %v8138_v13 = vmax.f32 %v7936_v24, 0.0  ;;  %v18394_v8 = vpop.permute.xlu1 %8468 }
 0x6a1   : > { %v7938_v59 = vpop.f32.mrf.mxu1 }
 0x6a2   : > { %v7939_v22 = vadd.f32 %v18343_v21, %v7938_v59  ;;  %8682 = vrot.lane.b32.xlu0 %v8138_v13, %s11192_s9 }
 0x6a3   : > { %v10946_v34 = vpop.f32.mrf.mxu1  ;;  %v18402_v9 = vpop.permute.xlu0 %8474 }
 0x6a4   : > { %v8139_v10 = vmax.f32 %v7939_v22, 0.0  ;;  %v18400_v2 = vpop.permute.xlu1 %8472 }
 0x6a5   : > { %v7943_v25 = vpop.f32.mrf.mxu1 }
 0x6a6   : > { %v7944_v53 = vadd.f32 %v18343_v21, %v7943_v25  ;;  %8684 = vrot.lane.b32.xlu1 %v8139_v10, %s11192_s9 }
 0x6a7   : > { %v10949_v11 = vpop.f32.mrf.mxu1  ;;  %v18408_v47 = vpop.permute.xlu0 %8478 }
 0x6a8   : > { %v8140_v18 = vmax.f32 %v7944_v53, 0.0  ;;  %v18406_v24 = vpop.permute.xlu1 %8476 }
 0x6a9   : > { %v7946_v15 = vpop.f32.mrf.mxu1 }
 0x6aa   : > { %v7947_v61 = vadd.f32 %v18343_v21, %v7946_v15  ;;  %8686 = vrot.lane.b32.xlu0 %v8140_v18, %s11192_s9 }
 0x6ab   : > { %v10950_v45 = vpop.f32.mrf.mxu1  ;;  %v18414_v25 = vpop.permute.xlu0 %8482 }
 0x6ac   : > { %v8141_v13 = vmax.f32 %v7947_v61, 0.0  ;;  %v18412_v10 = vpop.permute.xlu1 %8480 }
 0x6ad   : > { %v7951_v59 = vpop.f32.mrf.mxu1 }
 0x6ae   : > { %v7952_v22 = vadd.f32 %v18343_v21, %v7951_v59  ;;  %8688 = vrot.lane.b32.xlu1 %v8141_v13, %s11192_s9 }
 0x6af   : > { %v10953_v34 = vpop.f32.mrf.mxu1  ;;  %v18420_v61 = vpop.permute.xlu0 %8486 }
 0x6b0   : > { %v8142_v53 = vmax.f32 %v7952_v22, 0.0  ;;  %v18418_v45 = vpop.permute.xlu1 %8484 }
 0x6b1   : > { %v7954_v11 = vpop.f32.mrf.mxu1 }
 0x6b2   : > { %v7955_v18 = vadd.f32 %v18343_v21, %v7954_v11  ;;  %8690 = vrot.lane.b32.xlu0 %v8142_v53, %s11192_s9 }
 0x6b3   : > { %v10954_v15 = vpop.f32.mrf.mxu1  ;;  %v18426_v22 = vpop.permute.xlu0 %8490 }
 0x6b4   : > { %v8143_v28 = vmax.f32 %v7955_v18, 0.0  ;;  %v18424_v37 = vpop.permute.xlu1 %8488 }
 0x6b5   : > { %v7959_v59 = vpop.f32.mrf.mxu1 }
 0x6b6   : > { %v7960_v13 = vadd.f32 %v18343_v21, %v7959_v59  ;;  %8692 = vrot.lane.b32.xlu1 %v8143_v28, %s11192_s9 }
 0x6b7   : > { %v10957_v34 = vpop.f32.mrf.mxu1  ;;  %v18432_v18 = vpop.permute.xlu0 %8494 }
 0x6b8   : > { %v8144_v23 = vmax.f32 %v7960_v13, 0.0  ;;  %v18430_v12 = vpop.permute.xlu1 %8492 }
 0x6b9   : > { %v7962_v11 = vpop.f32.mrf.mxu1 }
 0x6ba   : > { %v7963_v53 = vadd.f32 %v18343_v21, %v7962_v11  ;;  %8694 = vrot.lane.b32.xlu0 %v8144_v23, %s11192_s9 }
 0x6bb   : > { %v10958_v15 = vpop.f32.mrf.mxu1  ;;  %v18438_v13 = vpop.permute.xlu0 %8498 }
 0x6bc   : > { %v8145_v62 = vmax.f32 %v7963_v53, 0.0  ;;  %v18436_v44 = vpop.permute.xlu1 %8496 }
 0x6bd   : > { %v7967_v59 = vpop.f32.mrf.mxu1 }
 0x6be   : > { %v7968_v28 = vadd.f32 %v18343_v21, %v7967_v59  ;;  %8696 = vrot.lane.b32.xlu1 %v8145_v62, %s11192_s9 }
 0x6bf   : > { %v10961_v34 = vpop.f32.mrf.mxu1  ;;  %v18444_v53 = vpop.permute.xlu0 %8502 }
 0x6c0   : > { %v8146_v60 = vmax.f32 %v7968_v28, 0.0  ;;  %v18442_v29 = vpop.permute.xlu1 %8500 }
 0x6c1   : > { %v7970_v11 = vpop.f32.mrf.mxu1 }
 0x6c2   : > { %v7971_v23 = vadd.f32 %v18343_v21, %v7970_v11  ;;  %8698 = vrot.lane.b32.xlu0 %v8146_v60, %s11192_s9 }
 0x6c3   : > { %v10962_v15 = vpop.f32.mrf.mxu1  ;;  %v18450_v28 = vpop.permute.xlu0 %8506 }
 0x6c4   : > { %v8147_v0 = vmax.f32 %v7971_v23, 0.0  ;;  %v18448_v5 = vpop.permute.xlu1 %8504 }
 0x6c5   : > { %v7975_v59 = vpop.f32.mrf.mxu1 }
 0x6c6   : > { %v7976_v62 = vadd.f32 %v18343_v21, %v7975_v59  ;;  %8700 = vrot.lane.b32.xlu1 %v8147_v0, %s11192_s9 }
 0x6c7   : > { %v10965_v34 = vpop.f32.mrf.mxu1  ;;  %v18456_v23 = vpop.permute.xlu0 %8510 }
 0x6c8   : > { %v8148_v41 = vmax.f32 %v7976_v62, 0.0  ;;  %v18454_v63 = vpop.permute.xlu1 %8508 }
 0x6c9   : > { %v7978_v11 = vpop.f32.mrf.mxu1 }
 0x6ca   : > { %v7979_v60 = vadd.f32 %v18343_v21, %v7978_v11  ;;  %8702 = vrot.lane.b32.xlu0 %v8148_v41, %s11192_s9 }
 0x6cb   : > { %v10966_v15 = vpop.f32.mrf.mxu1  ;;  %v18462_v62 = vpop.permute.xlu0 %8514 }
 0x6cc   : > { %v8149_v7 = vmax.f32 %v7979_v60, 0.0  ;;  %v18460_v26 = vpop.permute.xlu1 %8512  ;;  %20849 = vst [vmem:[#allocation104_spill] sm:$0xff] %v18462_v62 }
 0x6cd   : > { %v7983_v59 = vpop.f32.mrf.mxu1  ;;  %20848 = vst [vmem:[#allocation137_spill] sm:$0xff] %v18460_v26 }
 0x6ce   : > { %v7984_v0 = vadd.f32 %v18343_v21, %v7983_v59  ;;  %8704 = vrot.lane.b32.xlu1 %v8149_v7, %s11192_s9 }
 0x6cf   : > { %v10969_v34 = vpop.f32.mrf.mxu1  ;;  %v18468_v60 = vpop.permute.xlu0 %8518 }
 0x6d0   : > { %v8150_v40 = vmax.f32 %v7984_v0, 0.0  ;;  %v18466_v51 = vpop.permute.xlu1 %8516  ;;  %20851 = vst [vmem:[#allocation349_spill] sm:$0xff] %v18468_v60 }
 0x6d1   : > { %v7986_v11 = vpop.f32.mrf.mxu1  ;;  %20850 = vst [vmem:[#allocation42_spill] sm:$0xff] %v18466_v51 }
 0x6d2   : > { %v7987_v41 = vadd.f32 %v18343_v21, %v7986_v11  ;;  %8706 = vrot.lane.b32.xlu0 %v8150_v40, %s11192_s9 }
 0x6d3   : > { %v10970_v15 = vpop.f32.mrf.mxu1  ;;  %v18474_v0 = vpop.permute.xlu0 %8522 }
 0x6d4   : > { %v8151_v56 = vmax.f32 %v7987_v41, 0.0  ;;  %v18472_v26 = vpop.permute.xlu1 %8520  ;;  %20853 = vst [vmem:[#allocation135_spill] sm:$0xff] %v18474_v0 }
 0x6d5   : > { %v7991_v59 = vpop.f32.mrf.mxu1  ;;  %20852 = vst [vmem:[#allocation92_spill] sm:$0xff] %v18472_v26 }
 0x6d6   : > { %v7992_v7 = vadd.f32 %v18343_v21, %v7991_v59  ;;  %8708 = vrot.lane.b32.xlu1 %v8151_v56, %s11192_s9 }
 0x6d7   : > { %v10973_v34 = vpop.f32.mrf.mxu1  ;;  %v18480_v41 = vpop.permute.xlu0 %8526 }
 0x6d8   : > { %v8152_v62 = vmax.f32 %v7992_v7, 0.0  ;;  %v18478_v51 = vpop.permute.xlu1 %8524  ;;  %20855 = vst [vmem:[#allocation43_spill] sm:$0xff] %v18480_v41 }
 0x6d9   : > { %v7994_v11 = vpop.f32.mrf.mxu1  ;;  %20854 = vst [vmem:[#allocation350_spill] sm:$0xff] %v18478_v51 }
 0x6da   : > { %v7995_v40 = vadd.f32 %v18343_v21, %v7994_v11  ;;  %8710 = vrot.lane.b32.xlu0 %v8152_v62, %s11192_s9 }
 0x6db   : > { %v10974_v15 = vpop.f32.mrf.mxu1  ;;  %v18486_v7 = vpop.permute.xlu0 %8530 }
 0x6dc   : > { %v8153_v60 = vmax.f32 %v7995_v40, 0.0  ;;  %v18484_v26 = vpop.permute.xlu1 %8528  ;;  %20857 = vst [vmem:[#allocation65_spill] sm:$0xff] %v18486_v7 }
 0x6dd   : > { %v7999_v59 = vpop.f32.mrf.mxu1  ;;  %20856 = vst [vmem:[#allocation352_spill] sm:$0xff] %v18484_v26 }
 0x6de   : > { %v8000_v56 = vadd.f32 %v18343_v21, %v7999_v59  ;;  %8712 = vrot.lane.b32.xlu1 %v8153_v60, %s11192_s9 }
 0x6df   : > { %v10977_v34 = vpop.f32.mrf.mxu1  ;;  %v18492_v40 = vpop.permute.xlu0 %8534 }
 0x6e0   : > { %v8154_v0 = vmax.f32 %v8000_v56, 0.0  ;;  %v18490_v51 = vpop.permute.xlu1 %8532  ;;  %20859 = vst [vmem:[#allocation127_spill] sm:$0xff] %v18492_v40 }
 0x6e1   : > { %v8002_v11 = vpop.f32.mrf.mxu1  ;;  %20858 = vst [vmem:[#allocation44_spill] sm:$0xff] %v18490_v51 }
 0x6e2   : > { %v8003_v62 = vadd.f32 %v18343_v21, %v8002_v11  ;;  %8714 = vrot.lane.b32.xlu0 %v8154_v0, %s11192_s9 }
 0x6e3   : > { %v10978_v15 = vpop.f32.mrf.mxu1  ;;  %v18498_v56 = vpop.permute.xlu0 %8538 }
 0x6e4   : > { %v8155_v41 = vmax.f32 %v8003_v62, 0.0  ;;  %v18496_v26 = vpop.permute.xlu1 %8536  ;;  %20861 = vst [vmem:[#allocation134_spill] sm:$0xff] %v18498_v56 }
 0x6e5   : > { %v8007_v59 = vpop.f32.mrf.mxu1  ;;  %20860 = vst [vmem:[#allocation140_spill] sm:$0xff] %v18496_v26 }
 0x6e6   : > { %v8008_v60 = vadd.f32 %v18343_v21, %v8007_v59  ;;  %8716 = vrot.lane.b32.xlu1 %v8155_v41, %s11192_s9 }
 0x6e7   : > { %v10981_v34 = vpop.f32.mrf.mxu1  ;;  %v18504_v62 = vpop.permute.xlu0 %8542 }
 0x6e8   : > { %v8156_v7 = vmax.f32 %v8008_v60, 0.0  ;;  %v18502_v51 = vpop.permute.xlu1 %8540  ;;  %20863 = vst [vmem:[#allocation263_spill] sm:$0xff] %v18504_v62 }
 0x6e9   : > { %v8010_v11 = vpop.f32.mrf.mxu1  ;;  %20862 = vst [vmem:[#allocation75_spill] sm:$0xff] %v18502_v51 }
 0x6ea   : > { %v8011_v0 = vadd.f32 %v18343_v21, %v8010_v11  ;;  %8718 = vrot.lane.b32.xlu0 %v8156_v7, %s11192_s9 }
 0x6eb   : > { %v10982_v15 = vpop.f32.mrf.mxu1  ;;  %v18510_v60 = vpop.permute.xlu0 %8546 }
 0x6ec   : > { %v8157_v40 = vmax.f32 %v8011_v0, 0.0  ;;  %v18508_v26 = vpop.permute.xlu1 %8544  ;;  %20865 = vst [vmem:[#allocation47_spill] sm:$0xff] %v18510_v60 }
 0x6ed   : > { %v8015_v59 = vpop.f32.mrf.mxu1  ;;  %20864 = vst [vmem:[#allocation46_spill] sm:$0xff] %v18508_v26 }
 0x6ee   : > { %v8016_v41 = vadd.f32 %v18343_v21, %v8015_v59  ;;  %8720 = vrot.lane.b32.xlu1 %v8157_v40, %s11192_s9 }
 0x6ef   : > { %v10985_v34 = vpop.f32.mrf.mxu1  ;;  %v18516_v0 = vpop.permute.xlu0 %8550 }
 0x6f0   : > { %v8158_v56 = vmax.f32 %v8016_v41, 0.0  ;;  %v18514_v51 = vpop.permute.xlu1 %8548  ;;  %20867 = vst [vmem:[#allocation205_spill] sm:$0xff] %v18516_v0 }
 0x6f1   : > { %v8018_v11 = vpop.f32.mrf.mxu1  ;;  %20866 = vst [vmem:[#allocation86_spill] sm:$0xff] %v18514_v51 }
 0x6f2   : > { %v8019_v7 = vadd.f32 %v18343_v21, %v8018_v11  ;;  %8722 = vrot.lane.b32.xlu0 %v8158_v56, %s11192_s9 }
 0x6f3   : > { %v10986_v15 = vpop.f32.mrf.mxu1  ;;  %v18522_v41 = vpop.permute.xlu0 %8554 }
 0x6f4   : > { %v8159_v62 = vmax.f32 %v8019_v7, 0.0  ;;  %v18520_v60 = vpop.permute.xlu1 %8552  ;;  %20869 = vst [vmem:[#allocation49_spill] sm:$0xff] %v18522_v41 }
 0x6f5   : > { %v8023_v59 = vpop.f32.mrf.mxu1  ;;  %20868 = vst [vmem:[#allocation48_spill] sm:$0xff] %v18520_v60 }
 0x6f6   : > { %v8024_v40 = vadd.f32 %v18343_v21, %v8023_v59  ;;  %8724 = vrot.lane.b32.xlu1 %v8159_v62, %s11192_s9 }
 0x6f7   : > { %v10989_v34 = vpop.f32.mrf.mxu1 }
 0x6f8   : > { %v8160_v11 = vmax.f32 %v8024_v40, 0.0  ;;  %v18526_v0 = vpop.permute.xlu1 %8556  ;;  %v18528_v7 = vpop.permute.xlu0 %8558 }
 0x6f9   : > { %v8026_v26 = vpop.f32.mrf.mxu1  ;;  %20870 = vst [vmem:[#allocation94_spill] sm:$0xff] %v18528_v7 }
 0x6fa   : > { %v8027_v56 = vadd.f32 %v18343_v21, %v8026_v26  ;;  %8726 = vrot.lane.b32.xlu0 %v8160_v11, %s11192_s9 }
 0x6fb   : > { %v10990_v15 = vpop.f32.mrf.mxu1 }
 0x6fc   : > { %v8161_v59 = vmax.f32 %v8027_v56, 0.0  ;;  %v18533_v41 = vpop.permute.xlu1 %8560 }
 0x6fd   : > { %v8031_v51 = vpop.f32.mrf.mxu1  ;;  %20871 = vst [vmem:[#allocation206_spill] sm:$0xff] %v18533_v41  ;;  %v8837_v41 = vsel %vm2056_vm9, %v17861_v14, %v18380_v39 }
 0x6fe   : > { %v8032_v62 = vadd.f32 %v18343_v21, %v8031_v51  ;;  %8728 = vrot.lane.b32.xlu1 %v8161_v59, %s11192_s9  ;;  %v20873_v51 = vld [vmem:[#allocation233_spill] sm:$0xff] }
 0x6ff   : > { %v10993_v34 = vpop.f32.mrf.mxu1  ;;  %v8836_v56 = vsel %vm2056_vm9, %v20873_v51, %v18376_v6 }
 0x700   : > { %v8162_v40 = vmax.f32 %v8032_v62, 0.0  ;;  %v18535_v60 = vpop.permute.xlu0 %8562 }
 0x701   : > { %20872 = vst [vmem:[#allocation210_spill] sm:$0xff] %v18535_v60  ;;  %v8034_v26 = vpop.f32.mrf.mxu1 }
 0x702   : > { %v8035_v11 = vadd.f32 %v18343_v21, %v8034_v26  ;;  %8730 = vrot.lane.b32.xlu0 %v8162_v40, %s11192_s9 }
 0x703   : > { %v10994_v15 = vpop.f32.mrf.mxu1 }
 0x704   : > { %v8163_v59 = vmax.f32 %v8035_v11, 0.0  ;;  %v8675_v62 = vpop.permute.xlu0 %8674  ;;  %v18547_v34 = vpop.permute.xlu1 %8564 }
 0x705   : > { %v8891_v26 = vsel %vm8890_vm0, %v8836_v56, %v8675_v62  ;;  %v8039_v40 = vpop.f32.mrf.mxu1 }
 0x706   : > { %8945 = vst [vmem:[%s18542_s23] sm:$0xff] %v8891_v26  ;;  %v8040_v15 = vadd.f32 %v18343_v21, %v8039_v40  ;;  %8732 = vrot.lane.b32.xlu1 %v8163_v59, %s11192_s9 }
 0x707   : > { %v10997_v60 = vpop.f32.mrf.mxu1 }
 0x708   : > { %v8164_v7 = vmax.f32 %v8040_v15, 0.0  ;;  %v8677_v6 = vpop.permute.xlu1 %8676  ;;  %v8838_v60 = vsel %vm2056_vm9, %v17863_v31, %v18382_v19 }
 0x709   : > { %v8892_v11 = vsel %vm8890_vm0, %v8837_v41, %v8677_v6  ;;  %v8042_v51 = vpop.f32.mrf.mxu1 }
 0x70a   : > { %8946 = vst [vmem:[%s18542_s23 + $0x8] sm:$0xff] %v8892_v11  ;;  %v8043_v56 = vadd.f32 %v18343_v21, %v8042_v51  ;;  %8734 = vrot.lane.b32.xlu0 %v8164_v7, %s11192_s9  ;;  %v8839_v7 = vsel %vm2056_vm9, %v17903_v54, %v18388_v27 }
 0x70b   : > { %v10998_v62 = vpop.f32.mrf.mxu1 }
 0x70c   : > { %v8165_v59 = vmax.f32 %v8043_v56, 0.0  ;;  %v8679_v26 = vpop.permute.xlu0 %8678  ;;  %v8840_v56 = vsel %vm2056_vm9, %v17905_v30, %v18390_v3 }
 0x70d   : > { %v8893_v14 = vsel %vm8890_vm0, %v8838_v60, %v8679_v26  ;;  %v8047_v39 = vpop.f32.mrf.mxu1 }
 0x70e   : > { %8947 = vst [vmem:[%s18542_s23 + $0x10] sm:$0xff] %v8893_v14  ;;  %v8048_v41 = vadd.f32 %v18343_v21, %v8047_v39  ;;  %8736 = vrot.lane.b32.xlu1 %v8165_v59, %s11192_s9  ;;  %v8841_v14 = vsel %vm2056_vm9, %v17943_v1, %v18394_v8 }
 0x70f   : > { %v11001_v40 = vpop.f32.mrf.mxu1 }
 0x710   : > { %v8166_v15 = vmax.f32 %v8048_v41, 0.0  ;;  %v8681_v6 = vpop.permute.xlu1 %8680 }
 0x711   : > { %v8894_v31 = vsel %vm8890_vm0, %v8839_v7, %v8681_v6  ;;  %v8050_v19 = vpop.f32.mrf.mxu1 }
 0x712   : > { %8948 = vst [vmem:[%s18542_s23 + $0x18] sm:$0xff] %v8894_v31  ;;  %v8051_v11 = vadd.f32 %v18343_v21, %v8050_v19  ;;  %8738 = vrot.lane.b32.xlu0 %v8166_v15, %s11192_s9  ;;  %v8842_v15 = vsel %vm2056_vm9, %v17945_v32, %v18396_v55 }
 0x713   : > { %v11002_v51 = vpop.f32.mrf.mxu1 }
 0x714   : > { %v8167_v62 = vmax.f32 %v8051_v11, 0.0  ;;  %v8683_v60 = vpop.permute.xlu0 %8682  ;;  %v20874_v51 = vld [vmem:[#allocation339_spill] sm:$0xff] }
 0x715   : > { %v8895_v54 = vsel %vm8890_vm0, %v8840_v56, %v8683_v60  ;;  %v8055_v27 = vpop.f32.mrf.mxu1  ;;  %v8843_v56 = vsel %vm2056_vm9, %v20874_v51, %v18400_v2 }
 0x716   : > { %8949 = vst [vmem:[%s18542_s23 + $0x20] sm:$0xff] %v8895_v54  ;;  %v8056_v59 = vadd.f32 %v18343_v21, %v8055_v27  ;;  %8740 = vrot.lane.b32.xlu1 %v8167_v62, %s11192_s9 }
 0x717   : > { %v11005_v26 = vpop.f32.mrf.mxu1 }
 0x718   : > { %v8168_v39 = vmax.f32 %v8056_v59, 0.0  ;;  %v8685_v41 = vpop.permute.xlu1 %8684  ;;  %v8844_v59 = vsel %vm2056_vm9, %v17995_v17, %v18402_v9 }
 0x719   : > { %v8896_v30 = vsel %vm8890_vm0, %v8841_v14, %v8685_v41  ;;  %v8058_v3 = vpop.f32.mrf.mxu1 }
 0x71a   : > { %8950 = vst [vmem:[%s18542_s23 + $0x28] sm:$0xff] %v8896_v30  ;;  %v8059_v40 = vadd.f32 %v18343_v21, %v8058_v3  ;;  %8742 = vrot.lane.b32.xlu0 %v8168_v39, %s11192_s9  ;;  %v20875_v3 = vld [vmem:[#allocation224_spill] sm:$0xff] }
 0x71b   : > { %v11006_v7 = vpop.f32.mrf.mxu1 }
 0x71c   : > { %v8169_v6 = vmax.f32 %v8059_v40, 0.0  ;;  %v8687_v31 = vpop.permute.xlu0 %8686  ;;  %v8845_v40 = vsel %vm2056_vm9, %v20875_v3, %v18406_v24 }
 0x71d   : > { %v8897_v1 = vsel %vm8890_vm0, %v8842_v15, %v8687_v31  ;;  %v8063_v8 = vpop.f32.mrf.mxu1 }
 0x71e   : > { %8951 = vst [vmem:[%s18542_s23 + $0x30] sm:$0xff] %v8897_v1  ;;  %v8064_v19 = vadd.f32 %v18343_v21, %v8063_v8  ;;  %8744 = vrot.lane.b32.xlu1 %v8169_v6, %s11192_s9  ;;  %v20876_v1 = vld [vmem:[#allocation45_spill] sm:$0xff] }
 0x71f   : > { %v11009_v11 = vpop.f32.mrf.mxu1  ;;  %v8846_v8 = vsel %vm2056_vm9, %v20876_v1, %v18408_v47 }
 0x720   : > { %v8170_v62 = vmax.f32 %v8064_v19, 0.0  ;;  %v8689_v60 = vpop.permute.xlu1 %8688 }
 0x721   : > { %v8898_v32 = vsel %vm8890_vm0, %v8843_v56, %v8689_v60  ;;  %v8066_v55 = vpop.f32.mrf.mxu1  ;;  %v8847_v60 = vsel %vm2056_vm9, %v18047_v49, %v18412_v10 }
 0x722   : > { %8952 = vst [vmem:[%s18542_s23 + $0x38] sm:$0xff] %v8898_v32  ;;  %v8067_v54 = vadd.f32 %v18343_v21, %v8066_v55  ;;  %8746 = vrot.lane.b32.xlu0 %v8170_v62, %s11192_s9 }
 0x723   : > { %v11010_v27 = vpop.f32.mrf.mxu1 }
 0x724   : > { %v8171_v26 = vmax.f32 %v8067_v54, 0.0  ;;  %v8691_v14 = vpop.permute.xlu0 %8690 }
 0x725   : > { %v8899_v2 = vsel %vm8890_vm0, %v8844_v59, %v8691_v14  ;;  %v8071_v39 = vpop.f32.mrf.mxu1 }
 0x726   : > { %8953 = vst [vmem:[%s18542_s23 + $0x40] sm:$0xff] %v8899_v2  ;;  %v8072_v41 = vadd.f32 %v18343_v21, %v8071_v39  ;;  %8748 = vrot.lane.b32.xlu1 %v8171_v26, %s11192_s9  ;;  %v8848_v26 = vsel %vm2056_vm9, %v18049_v35, %v18414_v25 }
 0x727   : > { %v11013_v30 = vpop.f32.mrf.mxu1 }
 0x728   : > { %v8172_v7 = vmax.f32 %v8072_v41, 0.0  ;;  %v8693_v15 = vpop.permute.xlu1 %8692  ;;  %v8849_v30 = vsel %vm2056_vm9, %v18067_v38, %v18418_v45 }
 0x729   : > { %v8900_v17 = vsel %vm8890_vm0, %v8845_v40, %v8693_v15  ;;  %v8074_v9 = vpop.f32.mrf.mxu1 }
 0x72a   : > { %8954 = vst [vmem:[%s18542_s23 + $0x48] sm:$0xff] %v8900_v17  ;;  %v8075_v6 = vadd.f32 %v18343_v21, %v8074_v9  ;;  %8750 = vrot.lane.b32.xlu0 %v8172_v7, %s11192_s9  ;;  %v8850_v17 = vsel %vm2056_vm9, %v18069_v33, %v18420_v61 }
 0x72b   : > { %v11014_v31 = vpop.f32.mrf.mxu1 }
 0x72c   : > { %v8173_v19 = vmax.f32 %v8075_v6, 0.0  ;;  %v8695_v11 = vpop.permute.xlu0 %8694 }
 0x72d   : > { %v8901_v24 = vsel %vm8890_vm0, %v8846_v8, %v8695_v11  ;;  %v8079_v51 = vpop.f32.mrf.mxu1  ;;  %v8851_v8 = vsel %vm2056_vm9, %v18089_v57, %v18424_v37 }
 0x72e   : > { %8955 = vst [vmem:[%s18542_s23 + $0x50] sm:$0xff] %v8901_v24  ;;  %v8080_v56 = vadd.f32 %v18343_v21, %v8079_v51  ;;  %8752 = vrot.lane.b32.xlu1 %v8173_v19, %s11192_s9 }
 0x72f   : > { %v11017_v62 = vpop.f32.mrf.mxu1 }
 0x730   : > { %v8174_v32 = vmax.f32 %v8080_v56, 0.0  ;;  %v8697_v55 = vpop.permute.xlu1 %8696  ;;  %v8852_v56 = vsel %vm2056_vm9, %v18091_v46, %v18426_v22 }
 0x731   : > { %v8902_v47 = vsel %vm8890_vm0, %v8847_v60, %v8697_v55  ;;  %v8082_v54 = vpop.f32.mrf.mxu1 }
 0x732   : > { %8956 = vst [vmem:[%s18542_s23 + $0x58] sm:$0xff] %v8902_v47  ;;  %v8083_v27 = vadd.f32 %v18343_v21, %v8082_v54  ;;  %8754 = vrot.lane.b32.xlu0 %v8174_v32, %s11192_s9  ;;  %v8853_v47 = vsel %vm2056_vm9, %v18107_v52, %v18430_v12 }
 0x733   : > { %v11018_v59 = vpop.f32.mrf.mxu1 }
 0x734   : > { %v8175_v14 = vmax.f32 %v8083_v27, 0.0  ;;  %v8699_v2 = vpop.permute.xlu0 %8698 }
 0x735   : > { %v8903_v49 = vsel %vm8890_vm0, %v8848_v26, %v8699_v2  ;;  %v8087_v10 = vpop.f32.mrf.mxu1 }
 0x736   : > { %8957 = vst [vmem:[%s18542_s23 + $0x60] sm:$0xff] %v8903_v49  ;;  %v8088_v39 = vadd.f32 %v18343_v21, %v8087_v10  ;;  %8756 = vrot.lane.b32.xlu1 %v8175_v14, %s11192_s9  ;;  %v8854_v14 = vsel %vm2056_vm9, %v18109_v43, %v18432_v18 }
 0x737   : > { %v11021_v41 = vpop.f32.mrf.mxu1 }
 0x738   : > { %v8176_v3 = vmax.f32 %v8088_v39, 0.0  ;;  %v8701_v40 = vpop.permute.xlu1 %8700  ;;  %v8855_v41 = vsel %vm2056_vm9, %v18117_v42, %v18436_v44 }
 0x739   : > { %v8904_v35 = vsel %vm8890_vm0, %v8849_v30, %v8701_v40  ;;  %v8090_v25 = vpop.f32.mrf.mxu1 }
 0x73a   : > { %8958 = vst [vmem:[%s18542_s23 + $0x68] sm:$0xff] %v8904_v35  ;;  %v8091_v7 = vadd.f32 %v18343_v21, %v8090_v25  ;;  %8758 = vrot.lane.b32.xlu0 %v8176_v3, %s11192_s9  ;;  %v8856_v25 = vsel %vm2056_vm9, %v18119_v16, %v18438_v13 }
 0x73b   : > { %v11022_v15 = vpop.f32.mrf.mxu1 }
 0x73c   : > { %v8177_v9 = vmax.f32 %v8091_v7, 0.0  ;;  %v8703_v6 = vpop.permute.xlu0 %8702 }
 0x73d   : > { %v8905_v38 = vsel %vm8890_vm0, %v8850_v17, %v8703_v6  ;;  %v8095_v45 = vpop.f32.mrf.mxu1  ;;  %v8857_v6 = vsel %vm2056_vm9, %v18130_v4, %v18442_v29 }
 0x73e   : > { %8959 = vst [vmem:[%s18542_s23 + $0x70] sm:$0xff] %v8905_v38  ;;  %v8096_v31 = vadd.f32 %v18343_v21, %v8095_v45  ;;  %8760 = vrot.lane.b32.xlu1 %v8177_v9, %s11192_s9 }
 0x73f   : > { %v11025_v1 = vpop.f32.mrf.mxu1 }
 0x740   : > { %v8178_v19 = vmax.f32 %v8096_v31, 0.0  ;;  %v8705_v11 = vpop.permute.xlu1 %8704 }
 0x741   : > { %v8906_v33 = vsel %vm8890_vm0, %v8851_v8, %v8705_v11  ;;  %v8098_v61 = vpop.f32.mrf.mxu1  ;;  %v8858_v8 = vsel %vm2056_vm9, %v18132_v20, %v18444_v53 }
 0x742   : > { %8960 = vst [vmem:[%s18542_s23 + $0x78] sm:$0xff] %v8906_v33  ;;  %v8099_v24 = vadd.f32 %v18343_v21, %v8098_v61  ;;  %8762 = vrot.lane.b32.xlu0 %v8178_v19, %s11192_s9 }
 0x743   : > { %v11026_v51 = vpop.f32.mrf.mxu1 }
 0x744   : > { %v8179_v62 = vmax.f32 %v8099_v24, 0.0  ;;  %v8707_v60 = vpop.permute.xlu0 %8706  ;;  %v8859_v24 = vsel %vm2056_vm9, %v18139_v48, %v18448_v5 }
 0x745   : > { %v8907_v57 = vsel %vm8890_vm0, %v8852_v56, %v8707_v60  ;;  %v8103_v37 = vpop.f32.mrf.mxu1 }
 0x746   : > { %8961 = vst [vmem:[%s18542_s23 + $0x80] sm:$0xff] %v8907_v57  ;;  %v8104_v32 = vadd.f32 %v18343_v21, %v8103_v37  ;;  %8764 = vrot.lane.b32.xlu1 %v8179_v62, %s11192_s9  ;;  %v8860_v57 = vsel %vm2056_vm9, %v18141_v36, %v18450_v28  ;;  %v8862_v36 = vsel %vm2056_vm9, %v18155_v50, %v18456_v23  ;;  %v20881_v23 = vld [vmem:[#allocation42_spill] sm:$0xff] }
 0x747   : > { %v11029_v55 = vpop.f32.mrf.mxu1 }
 0x748   : > { %v8180_v54 = vmax.f32 %v8104_v32, 0.0  ;;  %v8709_v27 = vpop.permute.xlu1 %8708 }
 0x749   : > { %v8908_v46 = vsel %vm8890_vm0, %v8853_v47, %v8709_v27  ;;  %v8106_v22 = vpop.f32.mrf.mxu1  ;;  %v20878_v27 = vld [vmem:[#allocation33_spill] sm:$0xff] }
 0x74a   : > { %8962 = vst [vmem:[%s18542_s23 + $0x88] sm:$0xff] %v8908_v46  ;;  %v8107_v59 = vadd.f32 %v18343_v21, %v8106_v22  ;;  %8766 = vrot.lane.b32.xlu0 %v8180_v54, %s11192_s9  ;;  %v20877_v54 = vld [vmem:[#allocation137_spill] sm:$0xff] }
 0x74b   : > { %v11030_v26 = vpop.f32.mrf.mxu1  ;;  %v8863_v46 = vsel %vm2056_vm9, %v20878_v27, %v20877_v54 }
 0x74c   : > { %v8181_v2 = vmax.f32 %v8107_v59, 0.0  ;;  %v8711_v49 = vpop.permute.xlu0 %8710  ;;  %v20880_v59 = vld [vmem:[#allocation242_spill] sm:$0xff] }
 0x74d   : > { %v8909_v52 = vsel %vm8890_vm0, %v8854_v14, %v8711_v49  ;;  %v8111_v12 = vpop.f32.mrf.mxu1 }
 0x74e   : > { %8963 = vst [vmem:[%s18542_s23 + $0x90] sm:$0xff] %v8909_v52  ;;  %v8112_v10 = vadd.f32 %v18343_v21, %v8111_v12  ;;  %8768 = vrot.lane.b32.xlu1 %v8181_v2, %s11192_s9  ;;  %v20882_v2 = vld [vmem:[#allocation341_spill] sm:$0xff] }
 0x74f   : > { %v11033_v39 = vpop.f32.mrf.mxu1  ;;  %v8865_v49 = vsel %vm2056_vm9, %v20882_v2, %v20881_v23 }
 0x750   : > { %v8182_v30 = vmax.f32 %v8112_v10, 0.0  ;;  %v8713_v3 = vpop.permute.xlu1 %8712  ;;  %v20883_v10 = vld [vmem:[#allocation349_spill] sm:$0xff]  ;;  %v20884_v39 = vld [vmem:[#allocation34_spill] sm:$0xff] }
 0x751   : > { %v8910_v43 = vsel %vm8890_vm0, %v8855_v41, %v8713_v3  ;;  %v8114_v18 = vpop.f32.mrf.mxu1  ;;  %v8866_v41 = vsel %vm2056_vm9, %v20884_v39, %v20883_v10 }
 0x752   : > { %8964 = vst [vmem:[%s18542_s23 + $0x98] sm:$0xff] %v8910_v43  ;;  %v8115_v40 = vadd.f32 %v18343_v21, %v8114_v18  ;;  %8770 = vrot.lane.b32.xlu0 %v8182_v30, %s11192_s9  ;;  %v20885_v43 = vld [vmem:[#allocation92_spill] sm:$0xff]  ;;  %v20886_v18 = vld [vmem:[#allocation35_spill] sm:$0xff] }
 0x753   : > { %v11034_v35 = vpop.f32.mrf.mxu1 }
 0x754   : > { %v8183_v7 = vmax.f32 %v8115_v40, 0.0  ;;  %v8715_v15 = vpop.permute.xlu0 %8714  ;;  %v8867_v40 = vsel %vm2056_vm9, %v20886_v18, %v20885_v43 }
 0x755   : > { %v8911_v42 = vsel %vm8890_vm0, %v8856_v25, %v8715_v15  ;;  %v8119_v44 = vpop.f32.mrf.mxu1  ;;  %v20888_v15 = vld [vmem:[#allocation225_spill] sm:$0xff] }
 0x756   : > { %8965 = vst [vmem:[%s18542_s23 + $0xa0] sm:$0xff] %v8911_v42  ;;  %v8120_v17 = vadd.f32 %v18343_v21, %v8119_v44  ;;  %8772 = vrot.lane.b32.xlu1 %v8183_v7, %s11192_s9  ;;  %v20887_v7 = vld [vmem:[#allocation135_spill] sm:$0xff] }
 0x757   : > { %v11037_v9 = vpop.f32.mrf.mxu1  ;;  %v8868_v42 = vsel %vm2056_vm9, %v20888_v15, %v20887_v7 }
 0x758   : > { %v8184_v38 = vmax.f32 %v8120_v17, 0.0  ;;  %v8717_v45 = vpop.permute.xlu1 %8716  ;;  %v20889_v9 = vld [vmem:[#allocation350_spill] sm:$0xff] }
 0x759   : > { %v8912_v16 = vsel %vm8890_vm0, %v8857_v6, %v8717_v45  ;;  %v8122_v13 = vpop.f32.mrf.mxu1  ;;  %v20890_v6 = vld [vmem:[#allocation53_spill] sm:$0xff] }
 0x75a   : > { %8966 = vst [vmem:[%s18542_s23 + $0xa8] sm:$0xff] %v8912_v16  ;;  %v8123_v31 = vadd.f32 %v18343_v21, %v8122_v13  ;;  %8774 = vrot.lane.b32.xlu0 %v8184_v38, %s11192_s9  ;;  %v8869_v38 = vsel %vm2056_vm9, %v20890_v6, %v20889_v9  ;;  %v20891_v13 = vld [vmem:[#allocation43_spill] sm:$0xff] }
 0x75b   : > { %v11038_v1 = vpop.f32.mrf.mxu1 }
 0x75c   : > { %v8185_v19 = vmax.f32 %v8123_v31, 0.0  ;;  %v8719_v11 = vpop.permute.xlu0 %8718  ;;  %v20892_v31 = vld [vmem:[#allocation247_spill] sm:$0xff] }
 0x75d   : > { %v8913_v4 = vsel %vm8890_vm0, %v8858_v8, %v8719_v11  ;;  %v8127_v29 = vpop.f32.mrf.mxu1  ;;  %v8870_v1 = vsel %vm2056_vm9, %v20892_v31, %v20891_v13  ;;  %v20893_v11 = vld [vmem:[#allocation352_spill] sm:$0xff] }
 0x75e   : > { %8967 = vst [vmem:[%s18542_s23 + $0xb0] sm:$0xff] %v8913_v4  ;;  %v8128_v33 = vadd.f32 %v18343_v21, %v8127_v29  ;;  %8776 = vrot.lane.b32.xlu1 %v8185_v19, %s11192_s9  ;;  %v20894_v4 = vld [vmem:[#allocation36_spill] sm:$0xff] }
 0x75f   : > { %v11041_v61 = vpop.f32.mrf.mxu1  ;;  %v8871_v29 = vsel %vm2056_vm9, %v20894_v4, %v20893_v11 }
 0x760   : > { %v8186_v51 = vmax.f32 %v8128_v33, 0.0  ;;  %v8721_v56 = vpop.permute.xlu1 %8720 }
 0x761   : > { %v8914_v20 = vsel %vm8890_vm0, %v8859_v24, %v8721_v56  ;;  %v8130_v53 = vpop.f32.mrf.mxu1  ;;  %v20895_v24 = vld [vmem:[#allocation65_spill] sm:$0xff] }
 0x762   : > { %8968 = vst [vmem:[%s18542_s23 + $0xb8] sm:$0xff] %v8914_v20  ;;  %v8131_v62 = vadd.f32 %v18343_v21, %v8130_v53  ;;  %8778 = vrot.lane.b32.xlu0 %v8186_v51, %s11192_s9  ;;  %v8861_v21 = vsel %vm2056_vm9, %v18153_v58, %v18454_v63  ;;  %v20879_v63 = vld [vmem:[#allocation104_spill] sm:$0xff]  ;;  %v20896_v51 = vld [vmem:[#allocation343_spill] sm:$0xff] }
 0x763   : > { %v11042_v60 = vpop.f32.mrf.mxu1  ;;  %v8864_v26 = vsel %vm2056_vm9, %v20880_v59, %v20879_v63  ;;  %v8872_v56 = vsel %vm2056_vm9, %v20896_v51, %v20895_v24 }
 0x764   : > { %v8187_v37 = vmax.f32 %v8131_v62, 0.0  ;;  %v8723_v48 = vpop.permute.xlu0 %8722  ;;  %v20897_v62 = vld [vmem:[#allocation44_spill] sm:$0xff]  ;;  %v20898_v60 = vld [vmem:[#allocation31_spill] sm:$0xff] }
 0x765   : > { %v8915_v5 = vsel %vm8890_vm0, %v8860_v57, %v8723_v48  ;;  %v8873_v57 = vsel %vm2056_vm9, %v20898_v60, %v20897_v62 }
 0x766   : > { %8969 = vst [vmem:[%s18542_s23 + $0xc0] sm:$0xff] %v8915_v5  ;;  %8780 = vrot.lane.b32.xlu1 %v8187_v37, %s11192_s9  ;;  %v20899_v5 = vld [vmem:[#allocation127_spill] sm:$0xff] }
 0x768   : > { %v8725_v32 = vpop.permute.xlu1 %8724 }
 0x769   : > { %v8916_v55 = vsel %vm8890_vm0, %v8861_v21, %v8725_v32  ;;  %v20900_v21 = vld [vmem:[#allocation88_spill] sm:$0xff] }
 0x76a   : > { %8970 = vst [vmem:[%s18542_s23 + $0xc8] sm:$0xff] %v8916_v55  ;;  %v8874_v32 = vsel %vm2056_vm9, %v20900_v21, %v20899_v5 }
 0x76c   : > { %v8727_v28 = vpop.permute.xlu0 %8726 }
 0x76d   : > { %v8917_v47 = vsel %vm8890_vm0, %v8862_v36, %v8727_v28  ;;  %v20901_v28 = vld [vmem:[#allocation140_spill] sm:$0xff] }
 0x76e   : > { %8971 = vst [vmem:[%s18542_s23 + $0xd0] sm:$0xff] %v8917_v47  ;;  %v20902_v47 = vld [vmem:[#allocation64_spill] sm:$0xff] }
 0x76f   : > { %v8875_v54 = vsel %vm2056_vm9, %v20902_v47, %v20901_v28  ;;  %v20926_v47 = vld [vmem:[#allocation210_spill] sm:$0xff] }
 0x770   : > { %v8729_v22 = vpop.permute.xlu1 %8728 }
 0x771   : > { %v8918_v58 = vsel %vm8890_vm0, %v8863_v46, %v8729_v22  ;;  %v20903_v22 = vld [vmem:[#allocation134_spill] sm:$0xff] }
 0x772   : > { %8972 = vst [vmem:[%s18542_s23 + $0xd8] sm:$0xff] %v8918_v58  ;;  %v20904_v58 = vld [vmem:[#allocation38_spill] sm:$0xff] }
 0x773   : > { %v8876_v63 = vsel %vm2056_vm9, %v20904_v58, %v20903_v22  ;;  %v20928_v58 = vld [vmem:[#allocation85_spill] sm:$0xff] }
 0x774   : > { %v8731_v14 = vpop.permute.xlu0 %8730 }
 0x775   : > { %v8919_v50 = vsel %vm8890_vm0, %v8864_v26, %v8731_v14  ;;  %v20905_v14 = vld [vmem:[#allocation75_spill] sm:$0xff] }
 0x776   : > { %8973 = vst [vmem:[%s18542_s23 + $0xe0] sm:$0xff] %v8919_v50  ;;  %v20906_v50 = vld [vmem:[#allocation253_spill] sm:$0xff] }
 0x777   : > { %v8877_v23 = vsel %vm2056_vm9, %v20906_v50, %v20905_v14 }
 0x778   : > { %v8733_v52 = vpop.permute.xlu1 %8732 }
 0x779   : > { %v8920_v12 = vsel %vm8890_vm0, %v8865_v49, %v8733_v52  ;;  %v20907_v52 = vld [vmem:[#allocation263_spill] sm:$0xff] }
 0x77a   : > { %8974 = vst [vmem:[%s18542_s23 + $0xe8] sm:$0xff] %v8920_v12  ;;  %v20908_v12 = vld [vmem:[#allocation250_spill] sm:$0xff] }
 0x77b   : > { %v8878_v10 = vsel %vm2056_vm9, %v20908_v12, %v20907_v52 }
 0x77c   : > { %v8735_v30 = vpop.permute.xlu0 %8734 }
 0x77d   : > { %v8921_v3 = vsel %vm8890_vm0, %v8866_v41, %v8735_v30  ;;  %v20909_v30 = vld [vmem:[#allocation46_spill] sm:$0xff] }
 0x77e   : > { %8975 = vst [vmem:[%s18542_s23 + $0xf0] sm:$0xff] %v8921_v3  ;;  %v20910_v3 = vld [vmem:[#allocation345_spill] sm:$0xff] }
 0x77f   : > { %v8879_v43 = vsel %vm2056_vm9, %v20910_v3, %v20909_v30 }
 0x780   : > { %v8737_v35 = vpop.permute.xlu1 %8736 }
 0x781   : > { %v8922_v25 = vsel %vm8890_vm0, %v8867_v40, %v8737_v35  ;;  %v20911_v35 = vld [vmem:[#allocation47_spill] sm:$0xff] }
 0x782   : > { %8976 = vst [vmem:[%s18542_s23 + $0xf8] sm:$0xff] %v8922_v25  ;;  %v20912_v25 = vld [vmem:[#allocation74_spill] sm:$0xff] }
 0x783   : > { %v8880_v7 = vsel %vm2056_vm9, %v20912_v25, %v20911_v35 }
 0x784   : > { %v8739_v44 = vpop.permute.xlu0 %8738 }
 0x785   : > { %v8923_v17 = vsel %vm8890_vm0, %v8868_v42, %v8739_v44  ;;  %v20913_v44 = vld [vmem:[#allocation86_spill] sm:$0xff] }
 0x786   : > { %8977 = vst [vmem:[%s18542_s23 + $0x100] sm:$0xff] %v8923_v17  ;;  %v20914_v17 = vld [vmem:[#allocation260_spill] sm:$0xff] }
 0x787   : > { %v8881_v9 = vsel %vm2056_vm9, %v20914_v17, %v20913_v44 }
 0x788   : > { %v8741_v45 = vpop.permute.xlu1 %8740 }
 0x789   : > { %v8924_v16 = vsel %vm8890_vm0, %v8869_v38, %v8741_v45  ;;  %v20915_v45 = vld [vmem:[#allocation205_spill] sm:$0xff] }
 0x78a   : > { %8978 = vst [vmem:[%s18542_s23 + $0x108] sm:$0xff] %v8924_v16  ;;  %v20916_v16 = vld [vmem:[#allocation105_spill] sm:$0xff] }
 0x78b   : > { %v8882_v13 = vsel %vm2056_vm9, %v20916_v16, %v20915_v45 }
 0x78c   : > { %v8743_v8 = vpop.permute.xlu0 %8742 }
 0x78d   : > { %v8925_v19 = vsel %vm8890_vm0, %v8870_v1, %v8743_v8  ;;  %v20917_v8 = vld [vmem:[#allocation48_spill] sm:$0xff] }
 0x78e   : > { %8979 = vst [vmem:[%s18542_s23 + $0x110] sm:$0xff] %v8925_v19  ;;  %v20918_v19 = vld [vmem:[#allocation258_spill] sm:$0xff] }
 0x78f   : > { %v8883_v11 = vsel %vm2056_vm9, %v20918_v19, %v20917_v8 }
 0x790   : > { %v8745_v33 = vpop.permute.xlu1 %8744 }
 0x791   : > { %v8926_v61 = vsel %vm8890_vm0, %v8871_v29, %v8745_v33  ;;  %v20919_v33 = vld [vmem:[#allocation49_spill] sm:$0xff] }
 0x792   : > { %8980 = vst [vmem:[%s18542_s23 + $0x118] sm:$0xff] %v8926_v61  ;;  %v20920_v61 = vld [vmem:[#allocation39_spill] sm:$0xff] }
 0x793   : > { %v8884_v24 = vsel %vm2056_vm9, %v20920_v61, %v20919_v33 }
 0x794   : > { %v8747_v20 = vpop.permute.xlu0 %8746 }
 0x795   : > { %v8927_v53 = vsel %vm8890_vm0, %v8872_v56, %v8747_v20  ;;  %v20921_v20 = vld [vmem:[#allocation110_spill] sm:$0xff] }
 0x796   : > { %8981 = vst [vmem:[%s18542_s23 + $0x120] sm:$0xff] %v8927_v53  ;;  %v8885_v53 = vsel %vm2056_vm9, %v20921_v20, %v18526_v0 }
 0x798   : > { %v8749_v37 = vpop.permute.xlu1 %8748 }
 0x799   : > { %v8928_v48 = vsel %vm8890_vm0, %v8873_v57, %v8749_v37  ;;  %v20922_v57 = vld [vmem:[#allocation94_spill] sm:$0xff]  ;;  %v20923_v37 = vld [vmem:[#allocation41_spill] sm:$0xff] }
 0x79a   : > { %8982 = vst [vmem:[%s18542_s23 + $0x128] sm:$0xff] %v8928_v48  ;;  %v8886_v48 = vsel %vm2056_vm9, %v20923_v37, %v20922_v57 }
 0x79c   : > { %v8751_v55 = vpop.permute.xlu0 %8750 }
 0x79d   : > { %v8929_v36 = vsel %vm8890_vm0, %v8874_v32, %v8751_v55  ;;  %v20924_v32 = vld [vmem:[#allocation206_spill] sm:$0xff]  ;;  %v20925_v55 = vld [vmem:[#allocation40_spill] sm:$0xff] }
 0x79e   : > { %8983 = vst [vmem:[%s18542_s23 + $0x130] sm:$0xff] %v8929_v36  ;;  %v8887_v36 = vsel %vm2056_vm9, %v20925_v55, %v20924_v32 }
 0x7a0   : > { %v8753_v27 = vpop.permute.xlu1 %8752 }
 0x7a1   : > { %v8930_v46 = vsel %vm8890_vm0, %v8875_v54, %v8753_v27  ;;  %v20927_v54 = vld [vmem:[#allocation347_spill] sm:$0xff] }
 0x7a2   : > { %8984 = vst [vmem:[%s18542_s23 + $0x138] sm:$0xff] %v8930_v46  ;;  %v8888_v27 = vsel %vm2056_vm9, %v20927_v54, %v20926_v47 }
 0x7a4   : > { %v8755_v59 = vpop.permute.xlu0 %8754 }
 0x7a5   : > { %v8931_v26 = vsel %vm8890_vm0, %v8876_v63, %v8755_v59  ;;  %v8889_v63 = vsel %vm2056_vm9, %v20928_v58, %v18547_v34 }
 0x7a6   : > { %8985 = vst [vmem:[%s18542_s23 + $0x140] sm:$0xff] %v8931_v26 }
 0x7a8   : > { %v8757_v2 = vpop.permute.xlu1 %8756 }
 0x7a9   : > { %v8932_v49 = vsel %vm8890_vm0, %v8877_v23, %v8757_v2 }
 0x7aa   : > { %8986 = vst [vmem:[%s18542_s23 + $0x148] sm:$0xff] %v8932_v49 }
 0x7ac   : > { %v8759_v39 = vpop.permute.xlu0 %8758 }
 0x7ad   : > { %v8933_v41 = vsel %vm8890_vm0, %v8878_v10, %v8759_v39 }
 0x7ae   : > { %8987 = vst [vmem:[%s18542_s23 + $0x150] sm:$0xff] %v8933_v41 }
 0x7b0   : > { %v8761_v18 = vpop.permute.xlu1 %8760 }
 0x7b1   : > { %v8934_v40 = vsel %vm8890_vm0, %v8879_v43, %v8761_v18 }
 0x7b2   : > { %8988 = vst [vmem:[%s18542_s23 + $0x158] sm:$0xff] %v8934_v40 }
 0x7b4   : > { %v8763_v15 = vpop.permute.xlu0 %8762 }
 0x7b5   : > { %v8935_v42 = vsel %vm8890_vm0, %v8880_v7, %v8763_v15 }
 0x7b6   : > { %8989 = vst [vmem:[%s18542_s23 + $0x160] sm:$0xff] %v8935_v42 }
 0x7b8   : > { %v8765_v6 = vpop.permute.xlu1 %8764 }
 0x7b9   : > { %v8936_v38 = vsel %vm8890_vm0, %v8881_v9, %v8765_v6 }
 0x7ba   : > { %8990 = vst [vmem:[%s18542_s23 + $0x168] sm:$0xff] %v8936_v38 }
 0x7bc   : > { %v8767_v31 = vpop.permute.xlu0 %8766 }
 0x7bd   : > { %v8937_v1 = vsel %vm8890_vm0, %v8882_v13, %v8767_v31 }
 0x7be   : > { %8991 = vst [vmem:[%s18542_s23 + $0x170] sm:$0xff] %v8937_v1 }
 0x7c0   : > { %v8769_v4 = vpop.permute.xlu1 %8768 }
 0x7c1   : > { %v8938_v29 = vsel %vm8890_vm0, %v8883_v11, %v8769_v4 }
 0x7c2   : > { %8992 = vst [vmem:[%s18542_s23 + $0x178] sm:$0xff] %v8938_v29 }
 0x7c4   : > { %v8771_v51 = vpop.permute.xlu0 %8770 }
 0x7c5   : > { %v8939_v56 = vsel %vm8890_vm0, %v8884_v24, %v8771_v51 }
 0x7c6   : > { %8993 = vst [vmem:[%s18542_s23 + $0x180] sm:$0xff] %v8939_v56 }
 0x7c8   : > { %v8773_v62 = vpop.permute.xlu1 %8772 }
 0x7c9   : > { %v8940_v60 = vsel %vm8890_vm0, %v8885_v53, %v8773_v62 }
 0x7ca   : > { %8994 = vst [vmem:[%s18542_s23 + $0x188] sm:$0xff] %v8940_v60 }
 0x7cc   : > { %v8775_v5 = vpop.permute.xlu0 %8774 }
 0x7cd   : > { %v8941_v21 = vsel %vm8890_vm0, %v8886_v48, %v8775_v5 }
 0x7ce   : > { %8995 = vst [vmem:[%s18542_s23 + $0x190] sm:$0xff] %v8941_v21 }
 0x7d0   : > { %v8777_v28 = vpop.permute.xlu1 %8776 }
 0x7d1   : > { %v8942_v0 = vsel %vm8890_vm0, %v8887_v36, %v8777_v28 }
 0x7d2   : > { %8996 = vst [vmem:[%s18542_s23 + $0x198] sm:$0xff] %v8942_v0 }
 0x7d4   : > { %v8779_v46 = vpop.permute.xlu0 %8778 }
 0x7d5   : > { %v8943_v22 = vsel %vm8890_vm0, %v8888_v27, %v8779_v46 }
 0x7d6   : > { %8997 = vst [vmem:[%s18542_s23 + $0x1a0] sm:$0xff] %v8943_v22 }
 0x7d8   : > { %v8781_v59 = vpop.permute.xlu1 %8780 }
 0x7d9   : > { %v8944_v26 = vsel %vm8890_vm0, %v8889_v63, %v8781_v59 }
 0x7da   : > { %8998 = vst [vmem:[%s18542_s23 + $0x1a8] sm:$0xff] %v8944_v26 }
 0x7db PF: > { %s18_s27 = sadd.s32 1, %s11187_s27  }
 0x7dc   : > { %p15_p4 = scmp.ge.s32.totalorder %s18_s27, 4  }
 0x7de   :  { %17 = sbr.rel (!%p15_p4) target bundleno = 1 (0x1), region = 90 }

</bundles_post_ra>
